<compile_context>
chip_gen: v6e
topology: v6e:2x2x1
jax: 0.10.0
libtpu: 0.0.40
codegen_flags: <defaults>
</compile_context>

<pallas_src>
import functools

import jax
import jax.numpy as jnp
from jax import lax
from jax.experimental import pallas as pl
from jax.experimental.pallas import tpu as pltpu

EXPANSION = 4          # Bottleneck.expansion
BN_EPS = 1e-5
LANE = 128


# --------------------------------------------------------------------------
# small helpers
# --------------------------------------------------------------------------
def _rup(n, m):
    return ((n + m - 1) // m) * m


def _pad_axis(x, axis, new_size):
    pad = new_size - x.shape[axis]
    if pad == 0:
        return x
    cfg = [(0, 0)] * x.ndim
    cfg[axis] = (0, pad)
    return jnp.pad(x, cfg)


def _pick_batch_block(n, h, w):
    """Images per grid step: big enough that M = B*H*W feeds the MXU rows
    (target >= 256), small enough to keep VMEM modest and several grid steps."""
    hw = h * w
    divisors = [d for d in range(1, n + 1) if n % d == 0]
    pick = divisors[-1]
    for d in divisors:
        if d * hw >= 256:
            pick = d
            break
    while pick > 1 and pick * hw > 4096:          # cap per-step working set
        pick = max(d for d in divisors if d < pick)
    return pick


@functools.lru_cache(maxsize=None)
def _vmem_limit_bytes():
    cap = 128 * 1024 * 1024
    try:
        cap = int(pltpu.get_tpu_info().vmem_capacity_bytes)
    except Exception:
        pass
    return int(min(64 * 1024 * 1024, (cap * 3) // 4))


# --------------------------------------------------------------------------
# in-kernel value helpers (pure jnp on traced values)
# --------------------------------------------------------------------------
def _subsample_even(v4, B, H, W):
    """(B, H, W, C) -> (B*(H//2)*(W//2), C): keep even rows / even cols."""
    C = v4.shape[-1]
    Ho, Wo = H // 2, W // 2
    v = v4.reshape(B * H * Wo, 2, C)[:, 0, :]           # even columns
    v = v.reshape(B, Ho, 2, Wo, C)[:, :, 0, :, :]       # even rows
    return v.reshape(B * Ho * Wo, C)


def _extract_valid(vpad, B, H, W, C, stride):
    """(B*(H+2)*(W+2), C) padded-anchor layout -> (B*Ho*Wo, C) valid outputs."""
    Wp2 = W + 2
    v = vpad.reshape(B, H + 2, Wp2, C)[:, :H, :W, :]
    if stride == 1:
        return v.reshape(B * H * W, C)
    return _subsample_even(v, B, H, W)


# --------------------------------------------------------------------------
# Fused Bottleneck kernel (one pallas_call per block, all strides)
# --------------------------------------------------------------------------
def _bottleneck_kernel(x_ref, w1_ref, s1_ref, b1_ref,
                       w2_ref, s2_ref, b2_ref,
                       w3_ref, s3_ref, b3_ref,
                       *rest, B, H, W, stride, has_ds):
    if has_ds:
        wd_ref, sd_ref, bd_ref, o_ref, halo_ref = rest
    else:
        o_ref, halo_ref = rest

    cin = x_ref.shape[-1]
    wd_p = w1_ref.shape[-1]
    co_p = w3_ref.shape[-1]
    Wp2 = W + 2
    Mf = B * (H + 2) * Wp2
    Ho = (H - 1) // stride + 1
    Wo = (W - 1) // stride + 1

    # ---- conv1 (1x1) + BN1 + ReLU: one fat GEMM, M = B*H*W ---------------
    x2d = x_ref[...].reshape(B * H * W, cin)                       # bf16
    h1 = jnp.dot(x2d, w1_ref[...], preferred_element_type=jnp.float32)
    h1 = jnp.maximum(h1 * s1_ref[...] + b1_ref[...], 0.0)
    h1_4 = h1.astype(jnp.bfloat16).reshape(B, H, W, wd_p)

    # ---- assemble the zero-padded bf16 halo in VMEM -----------------------
    # Only the 1-wide border (and the small tail) is zeroed each step; the
    # interior is a single window store per image.  Every step is fully
    # self-contained (no persistent scratch state -> megacore-safe).
    zrow = jnp.zeros((1, Wp2, wd_p), jnp.bfloat16)
    zcol = jnp.zeros((H, 1, wd_p), jnp.bfloat16)
    for b in range(B):
        r0 = b * (H + 2)
        halo_ref[r0:r0 + 1, :, :] = zrow                     # top pad row
        halo_ref[r0 + H + 1:r0 + H + 2, :, :] = zrow         # bottom pad row
        halo_ref[r0 + 1:r0 + H + 1, 0:1, :] = zcol           # left pad col
        halo_ref[r0 + 1:r0 + H + 1, W + 1:W + 2, :] = zcol   # right pad col
        halo_ref[r0 + 1:r0 + H + 1, 1:W + 1, :] = h1_4[b]    # data interior
    halo_ref[B * (H + 2):, :, :] = jnp.zeros((3, Wp2, wd_p), jnp.bfloat16)

    # ---- conv2 (3x3, pad 1) as flat-offset implicit GEMMs -----------------
    # Flatten the halo once; for each dy the three dx taps are merged along K
    # into one K = 3*wd_p GEMM.  acc row m = (b*(H+2)+i)*Wp2 + j is the
    # stride-1 conv output anchored at padded position (i, j); ghost anchors
    # (pad rows / pad cols) are computed and discarded by _extract_valid.
    hp = halo_ref[...].reshape((B * (H + 2) + 3) * Wp2, wd_p)       # bf16
    acc2 = None
    for dy in range(3):
        base = dy * Wp2
        win = jnp.concatenate([hp[base + 0:base + 0 + Mf, :],
                               hp[base + 1:base + 1 + Mf, :],
                               hp[base + 2:base + 2 + Mf, :]], axis=1)
        part = jnp.dot(win, w2_ref[dy], preferred_element_type=jnp.float32)
        acc2 = part if acc2 is None else acc2 + part
    h2 = jnp.maximum(acc2 * s2_ref[...] + b2_ref[...], 0.0).astype(jnp.bfloat16)
    h2c = _extract_valid(h2, B, H, W, wd_p, stride)          # (B*Ho*Wo, wd_p)

    # ---- conv3 (1x1) + BN3 + residual + ReLU ------------------------------
    y = jnp.dot(h2c, w3_ref[...], preferred_element_type=jnp.float32)
    y = y * s3_ref[...] + b3_ref[...]
    if has_ds:
        if stride == 1:
            xs = x_ref[...].reshape(B * H * W, cin)
        else:
            xs = _subsample_even(x_ref[...], B, H, W)
        idn = jnp.dot(xs, wd_ref[...], preferred_element_type=jnp.float32)
        idn = idn * sd_ref[...] + bd_ref[...]
    else:
        # identity path: cin_p == co_p and stride == 1
        idn = x_ref[...].reshape(B * H * W, cin).astype(jnp.float32)
    out = jnp.maximum(y + idn, 0.0)
    o_ref[...] = out.reshape(B, Ho, Wo, co_p).astype(o_ref.dtype)


def bottleneck_fused_call(x_nhwc_p, p):
    """x_nhwc_p: (N, H, W, cin_p) bf16, channels already padded to 128."""
    N, H, W, cin_p = x_nhwc_p.shape
    stride, has_ds = p["stride"], "wdg" in p
    wd_p = p["w1g"].shape[1]
    co_p = p["w3g"].shape[1]
    assert has_ds or stride == 1
    if stride == 2:
        # TODO(synk): odd spatial extents with stride 2 need a dedicated tail path.
        assert H % 2 == 0 and W % 2 == 0, "stride-2 fused path assumes even H/W"
    Ho = (H - 1) // stride + 1
    Wo = (W - 1) // stride + 1
    B = _pick_batch_block(N, H, W)
    # TODO(synk): very large feature maps should additionally be split into
    # spatial row strips (with a 1-row halo) to bound VMEM on v7x.
    Wp2 = W + 2
    steps = N // B

    c2 = lambda i: (0, 0)
    in_specs = [
        pl.BlockSpec((B, H, W, cin_p), lambda i: (i, 0, 0, 0)),
        pl.BlockSpec((cin_p, wd_p), c2),
        pl.BlockSpec((1, wd_p), c2), pl.BlockSpec((1, wd_p), c2),
        pl.BlockSpec((3, 3 * wd_p, wd_p), lambda i: (0, 0, 0)),
        pl.BlockSpec((1, wd_p), c2), pl.BlockSpec((1, wd_p), c2),
        pl.BlockSpec((wd_p, co_p), c2),
        pl.BlockSpec((1, co_p), c2), pl.BlockSpec((1, co_p), c2),
    ]
    args = [x_nhwc_p, p["w1g"], p["s1"], p["b1"], p["w2g"], p["s2"], p["b2"],
            p["w3g"], p["s3"], p["b3"]]
    if has_ds:
        in_specs += [pl.BlockSpec((cin_p, co_p), c2),
                     pl.BlockSpec((1, co_p), c2), pl.BlockSpec((1, co_p), c2)]
        args += [p["wdg"], p["sd"], p["bd"]]

    m1, mf, mc = B * H * W, B * (H + 2) * Wp2, B * Ho * Wo
    flops = 2 * steps * (m1 * cin_p * wd_p + 9 * mf * wd_p * wd_p
                         + mc * wd_p * co_p + (mc * cin_p * co_p if has_ds else 0))
    bytes_accessed = int(sum(int(a.size) * a.dtype.itemsize for a in args)
                         + N * Ho * Wo * co_p * 2)

    kernel = functools.partial(_bottleneck_kernel, B=B, H=H, W=W,
                               stride=stride, has_ds=has_ds)
    return pl.pallas_call(
        kernel,
        out_shape=jax.ShapeDtypeStruct((N, Ho, Wo, co_p), jnp.bfloat16),
        grid_spec=pltpu.PrefetchScalarGridSpec(
            num_scalar_prefetch=0,
            grid=(steps,),
            in_specs=in_specs,
            out_specs=pl.BlockSpec((B, Ho, Wo, co_p), lambda i: (i, 0, 0, 0)),
            scratch_shapes=[pltpu.VMEM((B * (H + 2) + 3, Wp2, wd_p),
                                       jnp.bfloat16)],
        ),
        compiler_params=pltpu.CompilerParams(
            dimension_semantics=("parallel",),
            vmem_limit_bytes=_vmem_limit_bytes(),
        ),
        cost_estimate=pl.CostEstimate(flops=flops, transcendentals=0,
                                      bytes_accessed=bytes_accessed),
    )(*args)


# --------------------------------------------------------------------------
# Top-level forward (PyTorch NCHW in/out)
# --------------------------------------------------------------------------
def bottleneck_forward(x_nchw, p):
    x = jnp.transpose(x_nchw, (0, 2, 3, 1))                  # NCHW -> NHWC
    x = _pad_axis(x, 3, p["cin_p"]).astype(jnp.bfloat16)     # bf16 at boundary
    out = bottleneck_fused_call(x, p)                        # (N, Ho, Wo, co_p)
    out = out[..., :p["out_ch"]]
    return jnp.transpose(out, (0, 3, 1, 2)).astype(x_nchw.dtype)


# --------------------------------------------------------------------------
# Deterministic parameter init (raw HWIO conv weights + BN stats) and
# kernel-ready prep (BN folded, channels padded to 128, bf16 GEMM weights)
# --------------------------------------------------------------------------
def init_bottleneck(key, inplanes, planes, stride=1):
    width = planes                       # groups=1, base_width=64
    out_ch = planes * EXPANSION
    has_ds = (stride != 1) or (inplanes != out_ch)
    keys = jax.random.split(key, 8)

    def conv_w(k, kh, kw, cin, cout):
        fan_in = kh * kw * cin
        return jax.random.normal(k, (kh, kw, cin, cout), jnp.float32) \
            / jnp.sqrt(jnp.float32(fan_in))

    def bn_p(k, c):
        k1, k2, k3, k4 = jax.random.split(k, 4)
        gamma = 1.0 + 0.1 * jax.random.normal(k1, (c,), jnp.float32)
        beta = 0.1 * jax.random.normal(k2, (c,), jnp.float32)
        mean = 0.1 * jax.random.normal(k3, (c,), jnp.float32)
        var = 0.5 + jax.random.uniform(k4, (c,), jnp.float32)
        return (gamma, beta, mean, var)

    raw = {
        "w1": conv_w(keys[0], 1, 1, inplanes, width), "bn1": bn_p(keys[1], width),
        "w2": conv_w(keys[2], 3, 3, width, width),    "bn2": bn_p(keys[3], width),
        "w3": conv_w(keys[4], 1, 1, width, out_ch),   "bn3": bn_p(keys[5], out_ch),
    }
    if has_ds:
        raw["wd"] = conv_w(keys[6], 1, 1, inplanes, out_ch)
        raw["bnd"] = bn_p(keys[7], out_ch)

    cin_p, wd_p, co_p = _rup(inplanes, LANE), _rup(width, LANE), _rup(out_ch, LANE)

    def fold_bn(bn, cp):
        gamma, beta, mean, var = bn
        scale = gamma / jnp.sqrt(var + BN_EPS)
        bias = beta - mean * scale
        return (_pad_axis(scale, 0, cp).reshape(1, cp),
                _pad_axis(bias, 0, cp).reshape(1, cp))

    p = {"stride": stride, "inplanes": inplanes, "out_ch": out_ch,
         "cin_p": cin_p, "raw": raw}
    p["w1g"] = _pad_axis(_pad_axis(raw["w1"].reshape(inplanes, width), 0, cin_p),
                         1, wd_p).astype(jnp.bfloat16)
    p["s1"], p["b1"] = fold_bn(raw["bn1"], wd_p)
    # conv2 weights grouped per dy with the 3 dx taps stacked along K:
    w2_p = _pad_axis(_pad_axis(raw["w2"], 2, wd_p), 3, wd_p)        # (3,3,wd_p,wd_p)
    p["w2g"] = w2_p.reshape(3, 3 * wd_p, wd_p).astype(jnp.bfloat16)
    p["s2"], p["b2"] = fold_bn(raw["bn2"], wd_p)
    p["w3g"] = _pad_axis(_pad_axis(raw["w3"].reshape(width, out_ch), 0, wd_p),
                         1, co_p).astype(jnp.bfloat16)
    p["s3"], p["b3"] = fold_bn(raw["bn3"], co_p)
    if has_ds:
        p["wdg"] = _pad_axis(_pad_axis(raw["wd"].reshape(inplanes, out_ch),
                                       0, cin_p), 1, co_p).astype(jnp.bfloat16)
        p["sd"], p["bd"] = fold_bn(raw["bnd"], co_p)
    return p


# --------------------------------------------------------------------------
# Pure-JAX f32 reference (lax.conv) for numerical validation
# --------------------------------------------------------------------------
def bottleneck_reference(x_nchw, p):
    raw, stride = p["raw"], p["stride"]
    x = jnp.transpose(x_nchw, (0, 2, 3, 1)).astype(jnp.float32)

    def conv(v, w, s, pad):
        return lax.conv_general_dilated(
            v, w, window_strides=(s, s), padding=pad,
            dimension_numbers=("NHWC", "HWIO", "NHWC"))

    def bn(v, bnp):
        gamma, beta, mean, var = bnp
        return (v - mean) / jnp.sqrt(var + BN_EPS) * gamma + beta

    out = jax.nn.relu(bn(conv(x, raw["w1"], 1, "VALID"), raw["bn1"]))
    out = jax.nn.relu(bn(conv(out, raw["w2"], stride, [(1, 1), (1, 1)]),
                         raw["bn2"]))
    out = bn(conv(out, raw["w3"], 1, "VALID"), raw["bn3"])
    if "wd" in raw:
        idn = bn(conv(x, raw["wd"], stride, "VALID"), raw["bnd"])
    else:
        idn = x
    out = jax.nn.relu(out + idn)
    return jnp.transpose(out, (0, 3, 1, 2))


# --------------------------------------------------------------------------
if __name__ == "__main__":
    root = jax.random.PRNGKey(0)
    case_keys = jax.random.split(root, 3)

    # (name, inplanes, planes, stride, spatial)
    cases = [
        ("identity_s1",   256,  64, 1, 16),   # identity residual
        ("downsample_s1", 128,  64, 1, 16),   # downsample residual, stride 1
        ("downsample_s2", 256, 128, 2, 16),   # stride-2 downsampling block
    ]

    for (name, inplanes, planes, stride, hw), ck in zip(cases, case_keys):
        kp, kx = jax.random.split(ck)
        params = init_bottleneck(kp, inplanes, planes, stride)
        x = jax.random.normal(kx, (2, inplanes, hw, hw), jnp.float32)

        fwd = jax.jit(lambda v, _p=params: bottleneck_forward(v, _p))
        out = jax.block_until_ready(fwd(x))
        ref = jax.block_until_ready(bottleneck_reference(x, params))

        assert out.shape == ref.shape, (name, out.shape, ref.shape)
        assert bool(jnp.all(jnp.isfinite(out))), name
        err = float(jnp.max(jnp.abs(out - ref)))
        mag = float(jnp.max(jnp.abs(ref))) + 1e-6
        assert err <= 5e-2 * mag + 1e-3, (name, err, mag)

    print("KERNEL_OK")
</pallas_src>

<mosaic_0001>
module attributes {stable_mosaic.version = 11 : i64} {
  func.func @_bottleneck_kernel(%arg0: i32, %arg1: memref<1x16x16x256xbf16, #tpu.memory_space<vmem>>, %arg2: memref<256x128xbf16, #tpu.memory_space<vmem>>, %arg3: memref<1x128xf32, #tpu.memory_space<vmem>>, %arg4: memref<1x128xf32, #tpu.memory_space<vmem>>, %arg5: memref<3x384x128xbf16, #tpu.memory_space<vmem>>, %arg6: memref<1x128xf32, #tpu.memory_space<vmem>>, %arg7: memref<1x128xf32, #tpu.memory_space<vmem>>, %arg8: memref<128x256xbf16, #tpu.memory_space<vmem>>, %arg9: memref<1x256xf32, #tpu.memory_space<vmem>>, %arg10: memref<1x256xf32, #tpu.memory_space<vmem>>, %arg11: memref<1x16x16x256xbf16, #tpu.memory_space<vmem>>, %arg12: memref<21x18x128xbf16, #tpu.memory_space<vmem>>) attributes {dimension_semantics = [#tpu.dimension_semantics<parallel>], iteration_bounds = array<i64: 2>, scalar_prefetch = 0 : i64, scratch_operands = 1 : i64, tpu.core_type = #tpu.core_type<tc>, window_params = [{transform_indices = @transform_0, window_bounds = array<i64: 1, 16, 16, 256>}, {pipeline_mode = #tpu.pipeline_mode<synchronous>, transform_indices = @transform_1, window_bounds = array<i64: 256, 128>}, {pipeline_mode = #tpu.pipeline_mode<synchronous>, transform_indices = @transform_2, window_bounds = array<i64: 1, 128>}, {pipeline_mode = #tpu.pipeline_mode<synchronous>, transform_indices = @transform_3, window_bounds = array<i64: 1, 128>}, {pipeline_mode = #tpu.pipeline_mode<synchronous>, transform_indices = @transform_4, window_bounds = array<i64: 3, 384, 128>}, {pipeline_mode = #tpu.pipeline_mode<synchronous>, transform_indices = @transform_5, window_bounds = array<i64: 1, 128>}, {pipeline_mode = #tpu.pipeline_mode<synchronous>, transform_indices = @transform_6, window_bounds = array<i64: 1, 128>}, {pipeline_mode = #tpu.pipeline_mode<synchronous>, transform_indices = @transform_7, window_bounds = array<i64: 128, 256>}, {pipeline_mode = #tpu.pipeline_mode<synchronous>, transform_indices = @transform_8, window_bounds = array<i64: 1, 256>}, {pipeline_mode = #tpu.pipeline_mode<synchronous>, transform_indices = @transform_9, window_bounds = array<i64: 1, 256>}, {transform_indices = @transform_10, window_bounds = array<i64: 1, 16, 16, 256>}]} {
    %c0 = arith.constant 0 : index
    %c0_0 = arith.constant 0 : index
    %c0_1 = arith.constant 0 : index
    %c0_2 = arith.constant 0 : index
    %0 = vector.load %arg1[%c0, %c0_0, %c0_1, %c0_2] : memref<1x16x16x256xbf16, #tpu.memory_space<vmem>>, vector<1x16x16x256xbf16>
    %1 = vector.shape_cast %0 : vector<1x16x16x256xbf16> to vector<256x256xbf16>
    %c0_3 = arith.constant 0 : index
    %c0_4 = arith.constant 0 : index
    %2 = vector.load %arg2[%c0_3, %c0_4] : memref<256x128xbf16, #tpu.memory_space<vmem>>, vector<256x128xbf16>
    %cst = arith.constant dense<0.000000e+00> : vector<256x128xf32>
    %3 = tpu.matmul %1, %2, %cst {dimension_numbers = #tpu.dot_dimension_numbers<[1], [0], [0], [1], [0, 0, 1, 1], [], []>} : vector<256x256xbf16>, vector<256x128xbf16>, vector<256x128xf32> -> vector<256x128xf32>
    %c0_5 = arith.constant 0 : index
    %c0_6 = arith.constant 0 : index
    %4 = vector.load %arg3[%c0_5, %c0_6] : memref<1x128xf32, #tpu.memory_space<vmem>>, vector<1x128xf32>
    %5 = vector.broadcast %4 : vector<1x128xf32> to vector<256x128xf32>
    %6 = arith.mulf %3, %5 : vector<256x128xf32>
    %c0_7 = arith.constant 0 : index
    %c0_8 = arith.constant 0 : index
    %7 = vector.load %arg4[%c0_7, %c0_8] : memref<1x128xf32, #tpu.memory_space<vmem>>, vector<1x128xf32>
    %8 = vector.broadcast %7 : vector<1x128xf32> to vector<256x128xf32>
    %9 = arith.addf %6, %8 : vector<256x128xf32>
    %cst_9 = arith.constant 0.000000e+00 : f32
    %10 = vector.broadcast %cst_9 : f32 to vector<256x128xf32>
    %11 = arith.maximumf %9, %10 : vector<256x128xf32>
    %12 = arith.truncf %11 : vector<256x128xf32> to vector<256x128xbf16>
    %13 = vector.shape_cast %12 : vector<256x128xbf16> to vector<1x16x16x128xbf16>
    %cst_10 = arith.constant 0.000000e+00 : bf16
    %14 = vector.broadcast %cst_10 : bf16 to vector<1x18x128xbf16>
    %cst_11 = arith.constant 0.000000e+00 : bf16
    %15 = vector.broadcast %cst_11 : bf16 to vector<16x1x128xbf16>
    %c0_12 = arith.constant 0 : index
    %c0_13 = arith.constant 0 : index
    %c0_14 = arith.constant 0 : index
    %16 = vector.load %arg12[%c0_12, %c0_13, %c0_14] : memref<21x18x128xbf16, #tpu.memory_space<vmem>>, vector<1x18x128xbf16>
    tpu.vector_store %arg12[%c0_12, %c0_13, %c0_14], %14 {strides = array<i32>} : memref<21x18x128xbf16, #tpu.memory_space<vmem>>, vector<1x18x128xbf16>,
    %c17 = arith.constant 17 : index
    %c0_15 = arith.constant 0 : index
    %c0_16 = arith.constant 0 : index
    %17 = vector.load %arg12[%c17, %c0_15, %c0_16] : memref<21x18x128xbf16, #tpu.memory_space<vmem>>, vector<1x18x128xbf16>
    tpu.vector_store %arg12[%c17, %c0_15, %c0_16], %14 {strides = array<i32>} : memref<21x18x128xbf16, #tpu.memory_space<vmem>>, vector<1x18x128xbf16>,
    %c1 = arith.constant 1 : index
    %c0_17 = arith.constant 0 : index
    %c0_18 = arith.constant 0 : index
    %18 = vector.load %arg12[%c1, %c0_17, %c0_18] : memref<21x18x128xbf16, #tpu.memory_space<vmem>>, vector<16x1x128xbf16>
    tpu.vector_store %arg12[%c1, %c0_17, %c0_18], %15 {strides = array<i32>} : memref<21x18x128xbf16, #tpu.memory_space<vmem>>, vector<16x1x128xbf16>,
    %c1_19 = arith.constant 1 : index
    %c17_20 = arith.constant 17 : index
    %c0_21 = arith.constant 0 : index
    %19 = vector.load %arg12[%c1_19, %c17_20, %c0_21] : memref<21x18x128xbf16, #tpu.memory_space<vmem>>, vector<16x1x128xbf16>
    tpu.vector_store %arg12[%c1_19, %c17_20, %c0_21], %15 {strides = array<i32>} : memref<21x18x128xbf16, #tpu.memory_space<vmem>>, vector<16x1x128xbf16>,
    %20 = vector.shape_cast %13 : vector<1x16x16x128xbf16> to vector<16x16x128xbf16>
    %c1_22 = arith.constant 1 : index
    %c1_23 = arith.constant 1 : index
    %c0_24 = arith.constant 0 : index
    %21 = vector.load %arg12[%c1_22, %c1_23, %c0_24] : memref<21x18x128xbf16, #tpu.memory_space<vmem>>, vector<16x16x128xbf16>
    tpu.vector_store %arg12[%c1_22, %c1_23, %c0_24], %20 {strides = array<i32>} : memref<21x18x128xbf16, #tpu.memory_space<vmem>>, vector<16x16x128xbf16>,
    %cst_25 = arith.constant 0.000000e+00 : bf16
    %22 = vector.broadcast %cst_25 : bf16 to vector<3x18x128xbf16>
    %c18 = arith.constant 18 : index
    %c0_26 = arith.constant 0 : index
    %c0_27 = arith.constant 0 : index
    %23 = vector.load %arg12[%c18, %c0_26, %c0_27] : memref<21x18x128xbf16, #tpu.memory_space<vmem>>, vector<3x18x128xbf16>
    tpu.vector_store %arg12[%c18, %c0_26, %c0_27], %22 {strides = array<i32>} : memref<21x18x128xbf16, #tpu.memory_space<vmem>>, vector<3x18x128xbf16>,
    %c0_28 = arith.constant 0 : index
    %c0_29 = arith.constant 0 : index
    %c0_30 = arith.constant 0 : index
    %24 = vector.load %arg12[%c0_28, %c0_29, %c0_30] : memref<21x18x128xbf16, #tpu.memory_space<vmem>>, vector<21x18x128xbf16>
    %25 = vector.shape_cast %24 : vector<21x18x128xbf16> to vector<378x128xbf16>
    %26 = vector.extract_strided_slice %25 {offsets = [0, 0], sizes = [324, 128], strides = [1, 1]} : vector<378x128xbf16> to vector<324x128xbf16>
    %27 = vector.extract_strided_slice %25 {offsets = [1, 0], sizes = [324, 128], strides = [1, 1]} : vector<378x128xbf16> to vector<324x128xbf16>
    %28 = vector.extract_strided_slice %25 {offsets = [2, 0], sizes = [324, 128], strides = [1, 1]} : vector<378x128xbf16> to vector<324x128xbf16>
    %29 = tpu.concatenate %26, %27, %28 in 1 : vector<324x128xbf16>, vector<324x128xbf16>, vector<324x128xbf16> -> vector<324x384xbf16>
    %c0_31 = arith.constant 0 : index
    %c0_32 = arith.constant 0 : index
    %c0_33 = arith.constant 0 : index
    %30 = vector.load %arg5[%c0_31, %c0_32, %c0_33] : memref<3x384x128xbf16, #tpu.memory_space<vmem>>, vector<1x384x128xbf16>
    %31 = vector.shape_cast %30 : vector<1x384x128xbf16> to vector<384x128xbf16>
    %cst_34 = arith.constant dense<0.000000e+00> : vector<324x128xf32>
    %32 = tpu.matmul %29, %31, %cst_34 {dimension_numbers = #tpu.dot_dimension_numbers<[1], [0], [0], [1], [0, 0, 1, 1], [], []>} : vector<324x384xbf16>, vector<384x128xbf16>, vector<324x128xf32> -> vector<324x128xf32>
    %33 = vector.extract_strided_slice %25 {offsets = [18, 0], sizes = [324, 128], strides = [1, 1]} : vector<378x128xbf16> to vector<324x128xbf16>
    %34 = vector.extract_strided_slice %25 {offsets = [19, 0], sizes = [324, 128], strides = [1, 1]} : vector<378x128xbf16> to vector<324x128xbf16>
    %35 = vector.extract_strided_slice %25 {offsets = [20, 0], sizes = [324, 128], strides = [1, 1]} : vector<378x128xbf16> to vector<324x128xbf16>
    %36 = tpu.concatenate %33, %34, %35 in 1 : vector<324x128xbf16>, vector<324x128xbf16>, vector<324x128xbf16> -> vector<324x384xbf16>
    %c1_35 = arith.constant 1 : index
    %c0_36 = arith.constant 0 : index
    %c0_37 = arith.constant 0 : index
    %37 = vector.load %arg5[%c1_35, %c0_36, %c0_37] : memref<3x384x128xbf16, #tpu.memory_space<vmem>>, vector<1x384x128xbf16>
    %38 = vector.shape_cast %37 : vector<1x384x128xbf16> to vector<384x128xbf16>
    %cst_38 = arith.constant dense<0.000000e+00> : vector<324x128xf32>
    %39 = tpu.matmul %36, %38, %cst_38 {dimension_numbers = #tpu.dot_dimension_numbers<[1], [0], [0], [1], [0, 0, 1, 1], [], []>} : vector<324x384xbf16>, vector<384x128xbf16>, vector<324x128xf32> -> vector<324x128xf32>
    %40 = arith.addf %32, %39 : vector<324x128xf32>
    %41 = vector.extract_strided_slice %25 {offsets = [36, 0], sizes = [324, 128], strides = [1, 1]} : vector<378x128xbf16> to vector<324x128xbf16>
    %42 = vector.extract_strided_slice %25 {offsets = [37, 0], sizes = [324, 128], strides = [1, 1]} : vector<378x128xbf16> to vector<324x128xbf16>
    %43 = vector.extract_strided_slice %25 {offsets = [38, 0], sizes = [324, 128], strides = [1, 1]} : vector<378x128xbf16> to vector<324x128xbf16>
    %44 = tpu.concatenate %41, %42, %43 in 1 : vector<324x128xbf16>, vector<324x128xbf16>, vector<324x128xbf16> -> vector<324x384xbf16>
    %c2 = arith.constant 2 : index
    %c0_39 = arith.constant 0 : index
    %c0_40 = arith.constant 0 : index
    %45 = vector.load %arg5[%c2, %c0_39, %c0_40] : memref<3x384x128xbf16, #tpu.memory_space<vmem>>, vector<1x384x128xbf16>
    %46 = vector.shape_cast %45 : vector<1x384x128xbf16> to vector<384x128xbf16>
    %cst_41 = arith.constant dense<0.000000e+00> : vector<324x128xf32>
    %47 = tpu.matmul %44, %46, %cst_41 {dimension_numbers = #tpu.dot_dimension_numbers<[1], [0], [0], [1], [0, 0, 1, 1], [], []>} : vector<324x384xbf16>, vector<384x128xbf16>, vector<324x128xf32> -> vector<324x128xf32>
    %48 = arith.addf %40, %47 : vector<324x128xf32>
    %c0_42 = arith.constant 0 : index
    %c0_43 = arith.constant 0 : index
    %49 = vector.load %arg6[%c0_42, %c0_43] : memref<1x128xf32, #tpu.memory_space<vmem>>, vector<1x128xf32>
    %50 = vector.broadcast %49 : vector<1x128xf32> to vector<324x128xf32>
    %51 = arith.mulf %48, %50 : vector<324x128xf32>
    %c0_44 = arith.constant 0 : index
    %c0_45 = arith.constant 0 : index
    %52 = vector.load %arg7[%c0_44, %c0_45] : memref<1x128xf32, #tpu.memory_space<vmem>>, vector<1x128xf32>
    %53 = vector.broadcast %52 : vector<1x128xf32> to vector<324x128xf32>
    %54 = arith.addf %51, %53 : vector<324x128xf32>
    %cst_46 = arith.constant 0.000000e+00 : f32
    %55 = vector.broadcast %cst_46 : f32 to vector<324x128xf32>
    %56 = arith.maximumf %54, %55 : vector<324x128xf32>
    %57 = arith.truncf %56 : vector<324x128xf32> to vector<324x128xbf16>
    %58 = vector.shape_cast %57 : vector<324x128xbf16> to vector<1x18x18x128xbf16>
    %59 = vector.extract_strided_slice %58 {offsets = [0, 0, 0, 0], sizes = [1, 16, 16, 128], strides = [1, 1, 1, 1]} : vector<1x18x18x128xbf16> to vector<1x16x16x128xbf16>
    %60 = vector.shape_cast %59 : vector<1x16x16x128xbf16> to vector<256x128xbf16>
    %c0_47 = arith.constant 0 : index
    %c0_48 = arith.constant 0 : index
    %61 = vector.load %arg8[%c0_47, %c0_48] : memref<128x256xbf16, #tpu.memory_space<vmem>>, vector<128x256xbf16>
    %cst_49 = arith.constant dense<0.000000e+00> : vector<256x256xf32>
    %62 = tpu.matmul %60, %61, %cst_49 {dimension_numbers = #tpu.dot_dimension_numbers<[1], [0], [0], [1], [0, 0, 1, 1], [], []>} : vector<256x128xbf16>, vector<128x256xbf16>, vector<256x256xf32> -> vector<256x256xf32>
    %c0_50 = arith.constant 0 : index
    %c0_51 = arith.constant 0 : index
    %63 = vector.load %arg9[%c0_50, %c0_51] : memref<1x256xf32, #tpu.memory_space<vmem>>, vector<1x256xf32>
    %64 = vector.broadcast %63 : vector<1x256xf32> to vector<256x256xf32>
    %65 = arith.mulf %62, %64 : vector<256x256xf32>
    %c0_52 = arith.constant 0 : index
    %c0_53 = arith.constant 0 : index
    %66 = vector.load %arg10[%c0_52, %c0_53] : memref<1x256xf32, #tpu.memory_space<vmem>>, vector<1x256xf32>
    %67 = vector.broadcast %66 : vector<1x256xf32> to vector<256x256xf32>
    %68 = arith.addf %65, %67 : vector<256x256xf32>
    %c0_54 = arith.constant 0 : index
    %c0_55 = arith.constant 0 : index
    %c0_56 = arith.constant 0 : index
    %c0_57 = arith.constant 0 : index
    %69 = vector.load %arg1[%c0_54, %c0_55, %c0_56, %c0_57] : memref<1x16x16x256xbf16, #tpu.memory_space<vmem>>, vector<1x16x16x256xbf16>
    %70 = vector.shape_cast %69 : vector<1x16x16x256xbf16> to vector<256x256xbf16>
    %71 = arith.extf %70 : vector<256x256xbf16> to vector<256x256xf32>
    %72 = arith.addf %68, %71 : vector<256x256xf32>
    %cst_58 = arith.constant 0.000000e+00 : f32
    %73 = vector.broadcast %cst_58 : f32 to vector<256x256xf32>
    %74 = arith.maximumf %72, %73 : vector<256x256xf32>
    %75 = vector.shape_cast %74 : vector<256x256xf32> to vector<1x16x16x256xf32>
    %76 = arith.truncf %75 : vector<1x16x16x256xf32> to vector<1x16x16x256xbf16>
    %c0_59 = arith.constant 0 : index
    %c0_60 = arith.constant 0 : index
    %c0_61 = arith.constant 0 : index
    %c0_62 = arith.constant 0 : index
    %77 = vector.load %arg11[%c0_59, %c0_60, %c0_61, %c0_62] : memref<1x16x16x256xbf16, #tpu.memory_space<vmem>>, vector<1x16x16x256xbf16>
    tpu.vector_store %arg11[%c0_59, %c0_60, %c0_61, %c0_62], %76 {strides = array<i32>} : memref<1x16x16x256xbf16, #tpu.memory_space<vmem>>, vector<1x16x16x256xbf16>,
    return
  }
  func.func @transform_0(%arg0: i32) -> (i32, i32, i32, i32) {
    %c0_i32 = arith.constant 0 : i32
    %c0_i32_0 = arith.constant 0 : i32
    %c0_i32_1 = arith.constant 0 : i32
    %c0_i32_2 = arith.constant 0 : i32
    return %arg0, %c0_i32, %c0_i32_0, %c0_i32_1 : i32, i32, i32, i32
  }
  func.func @transform_1(%arg0: i32) -> (i32, i32) {
    %c0_i32 = arith.constant 0 : i32
    %c0_i32_0 = arith.constant 0 : i32
    %c0_i32_1 = arith.constant 0 : i32
    return %c0_i32, %c0_i32_0 : i32, i32
  }
  func.func @transform_2(%arg0: i32) -> (i32, i32) {
    %c0_i32 = arith.constant 0 : i32
    %c0_i32_0 = arith.constant 0 : i32
    %c0_i32_1 = arith.constant 0 : i32
    return %c0_i32, %c0_i32_0 : i32, i32
  }
  func.func @transform_3(%arg0: i32) -> (i32, i32) {
    %c0_i32 = arith.constant 0 : i32
    %c0_i32_0 = arith.constant 0 : i32
    %c0_i32_1 = arith.constant 0 : i32
    return %c0_i32, %c0_i32_0 : i32, i32
  }
  func.func @transform_4(%arg0: i32) -> (i32, i32, i32) {
    %c0_i32 = arith.constant 0 : i32
    %c0_i32_0 = arith.constant 0 : i32
    %c0_i32_1 = arith.constant 0 : i32
    %c0_i32_2 = arith.constant 0 : i32
    return %c0_i32, %c0_i32_0, %c0_i32_1 : i32, i32, i32
  }
  func.func @transform_5(%arg0: i32) -> (i32, i32) {
    %c0_i32 = arith.constant 0 : i32
    %c0_i32_0 = arith.constant 0 : i32
    %c0_i32_1 = arith.constant 0 : i32
    return %c0_i32, %c0_i32_0 : i32, i32
  }
  func.func @transform_6(%arg0: i32) -> (i32, i32) {
    %c0_i32 = arith.constant 0 : i32
    %c0_i32_0 = arith.constant 0 : i32
    %c0_i32_1 = arith.constant 0 : i32
    return %c0_i32, %c0_i32_0 : i32, i32
  }
  func.func @transform_7(%arg0: i32) -> (i32, i32) {
    %c0_i32 = arith.constant 0 : i32
    %c0_i32_0 = arith.constant 0 : i32
    %c0_i32_1 = arith.constant 0 : i32
    return %c0_i32, %c0_i32_0 : i32, i32
  }
  func.func @transform_8(%arg0: i32) -> (i32, i32) {
    %c0_i32 = arith.constant 0 : i32
    %c0_i32_0 = arith.constant 0 : i32
    %c0_i32_1 = arith.constant 0 : i32
    return %c0_i32, %c0_i32_0 : i32, i32
  }
  func.func @transform_9(%arg0: i32) -> (i32, i32) {
    %c0_i32 = arith.constant 0 : i32
    %c0_i32_0 = arith.constant 0 : i32
    %c0_i32_1 = arith.constant 0 : i32
    return %c0_i32, %c0_i32_0 : i32, i32
  }
  func.func @transform_10(%arg0: i32) -> (i32, i32, i32, i32) {
    %c0_i32 = arith.constant 0 : i32
    %c0_i32_0 = arith.constant 0 : i32
    %c0_i32_1 = arith.constant 0 : i32
    %c0_i32_2 = arith.constant 0 : i32
    return %arg0, %c0_i32, %c0_i32_0, %c0_i32_1 : i32, i32, i32, i32
  }
}

</mosaic_0001>

<bundles_post_ra>
// kernel: _lambda_.1
= control target key start
LH: loop header
LB: loop body
LE: loop exit
PB: predicated region body
PF: predicated region fallthrough
CT: control target
= control target key end

     0   :  { %s12385_s13 = smov 0   ;;  %s16149_s0 = inlined_call_operand.vmem [shape: bf16[2,16,16,256], index: 0, kind: input, shape index: {}]   ;;  %s16150_s1 = inlined_call_operand.vmem [shape: bf16[256,128], index: 1, kind: input, shape index: {}]   ;;  %s16151_s2 = inlined_call_operand.vmem [shape: f32[1,128], index: 2, kind: input, shape index: {}]   ;;  %s16152_s3 = inlined_call_operand.vmem [shape: f32[1,128], index: 3, kind: input, shape index: {}]   ;;  %s16153_s4 = inlined_call_operand.vmem [shape: bf16[3,384,128], index: 4, kind: input, shape index: {}]   ;;  %s16154_s5 = inlined_call_operand.vmem [shape: f32[1,128], index: 5, kind: input, shape index: {}]   ;;  %s16155_s6 = inlined_call_operand.vmem [shape: f32[1,128], index: 6, kind: input, shape index: {}]   ;;  %s16156_s7 = inlined_call_operand.vmem [shape: bf16[128,256], index: 7, kind: input, shape index: {}]   ;;  %s16157_s8 = inlined_call_operand.vmem [shape: f32[1,256], index: 8, kind: input, shape index: {}]   ;;  %s16158_s9 = inlined_call_operand.vmem [shape: f32[1,256], index: 9, kind: input, shape index: {}]   ;;  %s16159_s10 = inlined_call_operand.vmem [shape: bf16[2,16,16,256], index: 10, kind: output, shape index: {}]  }
   0x1 LB: > { %s11113_s14 = sadd.s32 4294967295, %s12324_s13   ;;  %p11117_p0 = scmp.ge.s32.totalorder %s12324_s13, 1  ;;  %s12324_s13 = sphi %s12385_s13, %s20_s13  }
   0x2   : > { %p312_p1 = scmp.lt.s32.totalorder %s12324_s13, 3 }
   0x4   : > { %p313_p2 = pnand %p11117_p0, %p312_p1 }
   0x6   : > { %316 = sbr.rel (%p313_p2) target bundleno = 1352 (0x548), region = 60 }
   0xb   : > { %v12152_v0 = vld [vmem:[%s16150_s1 + $0x78] sm:$0xff]   ;;  %v12154_v2 = vld [vmem:[%s16150_s1 + $0x70] sm:$0xff]   ;;  %p350_p3 = scmp.lt.s32.totalorder %s11113_s14, 1  ;;  %v12156_v4 = vld [vmem:[%s16150_s1 + $0x68] sm:$0xff]   ;;  %v16162_v17 = vmov 0   ;;  %v16160_v20 = vmov 0.0  }
   0xc   : > { %v12153_v1 = vld [vmem:[%s16150_s1 + $0x38] sm:$0xff]   ;;  %11625 = vmatprep.subr.bf16.mxu0 %v12152_v0  ;;  %v12155_v3 = vld [vmem:[%s16150_s1 + $0x30] sm:$0xff]   ;;  %v12157_v5 = vld [vmem:[%s16150_s1 + $0x28] sm:$0xff]   ;;  %6125 = vmatprep.subr.bf16.mxu1 %v16162_v17  ;;  %968 = vst [vmem:[#allocation2] sm:$0xf] %v16162_v17  ;;  %vm976_vm0 = vcmask 1040384  }
   0xd   : > { %11626 = vmatpush3.bf16.msra.mxu0 %v12153_v1  ;;  %s16766_s14 = smov (!%p350_p3, %s11113_s14), 1  ;;  %v12158_v6 = vld [vmem:[%s16150_s1 + $0x60] sm:$0xff]   ;;  %v12160_v8 = vld [vmem:[%s16150_s1 + $0x58] sm:$0xff]   ;;  %v12162_v10 = vld [vmem:[%s16150_s1 + $0x50] sm:$0xff]   ;;  %969 = vst [vmem:[#allocation2 + $0x4] sm:$0xf] %v16162_v17 }
   0xe   : > { %11627 = vmatprep.subr.bf16.mxu0 %v12154_v2  ;;  %v12159_v7 = vld [vmem:[%s16150_s1 + $0x20] sm:$0xff]   ;;  %s11559_s11 = sshll.u32 %s16766_s14, 8  ;;  %v12161_v9 = vld [vmem:[%s16150_s1 + $0x18] sm:$0xff]   ;;  %v12163_v12 = vld [vmem:[%s16150_s1 + $0x10] sm:$0xff]   ;;  %970 = vst [vmem:[#allocation2 + $0x8] sm:$0x1] %v16162_v17 }
   0xf   : > { %s12428_s18 = scalar_lea.vmem %s16149_s0, %s11559_s11  ;;  %v12164_v13 = vld [vmem:[%s16150_s1 + $0x48] sm:$0xff]   ;;  %v12166_v15 = vld [vmem:[%s16150_s1 + $0x40] sm:$0xff]   ;;  %972 = vst [vmem:[#allocation2 + $0xcc] sm:$0xf] %v16162_v17  ;;  %973 = vst [vmem:[#allocation2 + $0xd0] sm:$0xf] %v16162_v17  ;;  %s15962_s27 = scalar_lea.vmem %s16159_s10, %s11559_s11 }
  0x10   : > { %v12170_v11 = vld [vmem:[%s12428_s18 + $0x4] ss:$8 sps:$4 sm:$0xff]   ;;  %974 = vst [vmem:[#allocation2 + $0xd4] sm:$0x1] %v16162_v17  ;;  %1594 = vst [vmem:[#allocation2 + $0xd8] sm:$0xf] %v16162_v17 }
  0x11   : > { %11628 = vmatpush3.bf16.msra.mxu0 %v12155_v3  ;;  %713 = vmatprep.mubr.bf16.mxu0 %v12170_v11  ;;  %v12165_v14 = vld [vmem:[%s16150_s1 + $0x8] sm:$0xff]   ;;  %v12167_v16 = vld [vmem:[%s16150_s1] sm:$0xff]   ;;  %1595 = vst [vmem:[#allocation2 + $0xdc] sm:$0xf] %v16162_v17  ;;  %1596 = vst [vmem:[#allocation2 + $0xe0] sm:$0x1] %v16162_v17 }
  0x12   : > { %11629 = vmatprep.subr.bf16.mxu0 %v12156_v4  ;;  %1597 = vst [vmem:[#allocation2 + $0xe4] sm:$0xf] %v16162_v17  ;;  %1598 = vst [vmem:[#allocation2 + $0xe8] sm:$0xf] %v16162_v17  ;;  %v12168_v18 = vld [vmem:[%s12428_s18] ss:$8 sps:$4 sm:$0xff]  }
  0x13   : > { %1599 = vst [vmem:[#allocation2 + $0xec] sm:$0x1] %v16162_v17  ;;  %1600 = vst [vmem:[#allocation2 + $0xf0] sm:$0xf] %v16162_v17  ;;  %v12171_v19 = vld [vmem:[%s12428_s18 + $0x14] ss:$8 sps:$4 sm:$0xff]  }
  0x14   : > { %v12173_v21 = vld [vmem:[%s12428_s18 + $0x10] ss:$8 sps:$4 sm:$0xff]   ;;  %v12174_v23 = vld [vmem:[%s12428_s18 + $0x24] ss:$8 sps:$4 sm:$0xff]   ;;  %v12176_v27 = vld [vmem:[%s12428_s18 + $0x20] ss:$8 sps:$4 sm:$0xff]  }
  0x15   : > { %11630 = vmatpush3.bf16.msra.mxu0 %v12157_v5  ;;  %v12216_v22 = vld [vmem:[%s16153_s4 + $0x178] sm:$0xff]   ;;  %v12217_v24 = vld [vmem:[%s16153_s4 + $0x170] sm:$0xff]   ;;  %v12218_v26 = vld [vmem:[%s16153_s4 + $0x168] sm:$0xff]   ;;  %vm977_vm1 = vsmask.f32 256  ;;  %vm12328_vm5 = vmmov 0  }
  0x16   : > { %11631 = vmatprep.subr.bf16.mxu0 %v12158_v6  ;;  %v12220_v25 = vld [vmem:[%s16153_s4 + $0xf8] sm:$0xff]   ;;  %v12219_v29 = vld [vmem:[%s16153_s4 + $0x160] sm:$0xff]   ;;  %v12222_v43 = vld [vmem:[%s16153_s4 + $0xf0] sm:$0xff]   ;;  %vm1027_vm3 = vsmask.f32 7938  ;;  %vm1479_vm6 = vcmask 1043456  }
  0x17   : > { %6126 = vmatpush1.bf16.msra.mxu1 %v12220_v25  ;;  %v12177_v28 = vld [vmem:[%s12428_s18 + $0x34] ss:$8 sps:$4 sm:$0xff]   ;;  %v12179_v31 = vld [vmem:[%s12428_s18 + $0x30] ss:$8 sps:$4 sm:$0xff]   ;;  %v12180_v32 = vld [vmem:[%s12428_s18 + $0x44] ss:$8 sps:$4 sm:$0xff]  }
  0x18   : > { %6127 = vmatprep.subr.bf16.mxu1 %v16162_v17  ;;  %v12221_v30 = vld [vmem:[%s16153_s4 + $0x158] sm:$0xff]   ;;  %v12182_v33 = vld [vmem:[%s12428_s18 + $0x40] ss:$8 sps:$4 sm:$0xff]   ;;  %v12186_v36 = vld [vmem:[%s12428_s18 + $0x64] ss:$8 sps:$4 sm:$0xff]  }
  0x19   : > { %11632 = vmatpush3.bf16.msra.mxu0 %v12159_v7  ;;  %v12183_v34 = vld [vmem:[%s12428_s18 + $0x54] ss:$8 sps:$4 sm:$0xff]   ;;  %v12185_v35 = vld [vmem:[%s12428_s18 + $0x50] ss:$8 sps:$4 sm:$0xff]   ;;  %v12188_v37 = vld [vmem:[%s12428_s18 + $0x60] ss:$8 sps:$4 sm:$0xff]  }
  0x1a   : > { %11633 = vmatprep.subr.bf16.mxu0 %v12160_v8  ;;  %v12189_v38 = vld [vmem:[%s12428_s18 + $0x74] ss:$8 sps:$4 sm:$0xff]   ;;  %v12191_v39 = vld [vmem:[%s12428_s18 + $0x70] ss:$8 sps:$4 sm:$0xff]   ;;  %v12192_v40 = vld [vmem:[%s12428_s18 + $0x84] ss:$8 sps:$4 sm:$0xff]  }
  0x1b   : > { %v12194_v41 = vld [vmem:[%s12428_s18 + $0x80] ss:$8 sps:$4 sm:$0xff]   ;;  %v12195_v42 = vld [vmem:[%s12428_s18 + $0x94] ss:$8 sps:$4 sm:$0xff]   ;;  %6128 = vmatpush1.bf16.msra.mxu1 %v12222_v43  ;;  %v12197_v45 = vld [vmem:[%s12428_s18 + $0x90] ss:$8 sps:$4 sm:$0xff]  }
  0x1c   : > { %6129 = vmatprep.subr.bf16.mxu1 %v16162_v17  ;;  %v12223_v44 = vld [vmem:[%s16153_s4 + $0xe8] sm:$0xff]   ;;  %v12224_v47 = vld [vmem:[%s16153_s4 + $0xe0] sm:$0xff]   ;;  %vm12523_vm2 = vmand %vm976_vm0, %vm977_vm1  ;;  %vm1157_vm8 = vsmask.f32 4368  ;;  %vm4010_vm10 = vsmask.f32 7424 }
  0x1d   : > { %11634 = vmatpush3.bf16.msra.mxu0 %v12161_v9  ;;  %v12198_v46 = vld [vmem:[%s12428_s18 + $0xa4] ss:$8 sps:$4 sm:$0xff]   ;;  %vm12531_vm4 = vmand %vm976_vm0, %vm1027_vm3  ;;  %v12200_v52 = vld [vmem:[%s12428_s18 + $0xa0] ss:$8 sps:$4 sm:$0xff]  }
  0x1e   : > { %11635 = vmatprep.subr.bf16.mxu0 %v12162_v10  ;;  %v979_v49 = vld [vmem:[#allocation2 + $0xc] sm:$0x1]  ;;  %v12225_v53 = vld [vmem:[%s16153_s4 + $0xd8] sm:$0xff]   ;;  %v1029_v55 = vld [vmem:[#allocation2 + $0x14] sm:$0x1] }
  0x1f   : > { %6130 = vmatpush1.bf16.msra.mxu1 %v12223_v44  ;;  %v980_v50 = vsel %vm12523_vm2, 0, %v979_v49  ;;  %v12201_v54 = vld [vmem:[%s12428_s18 + $0xb4] ss:$8 sps:$4 sm:$0xff]   ;;  %v1030_v56 = vsel %vm12531_vm4, 0, %v1029_v55  ;;  %v982_v58 = vld [vmem:[#allocation2 + $0x18] sm:$0x1]  ;;  %vm12667_vm7 = vmand %vm1479_vm6, %vm1027_vm3 }
  0x20   : > { %6131 = vmatprep.subr.bf16.mxu1 %v16162_v17  ;;  %981 = vst [vmem:[#allocation2 + $0xc] sm:$0x1] %v980_v50  ;;  %1031 = vst [vmem:[#allocation2 + $0x14] sm:$0x1] %v1030_v56  ;;  %v12227_v57 = vld [vmem:[%s16153_s4 + $0xd0] sm:$0xff]   ;;  %v983_v59 = vsel %vm12523_vm2, 0, %v982_v58 }
  0x21   : > { %11636 = vmatpush3.bf16.msra.mxu0 %v12163_v12  ;;  %v12203_v60 = vld [vmem:[%s12428_s18 + $0xb0] ss:$8 sps:$4 sm:$0xff]   ;;  %984 = vst [vmem:[#allocation2 + $0x18] sm:$0x1] %v983_v59  ;;  %v12228_v61 = vld [vmem:[%s16153_s4 + $0xc8] sm:$0xff]   ;;  %v12229_v1 = vld [vmem:[%s16153_s4 + $0xc0] sm:$0xff]  }
  0x22   : > { %11637 = vmatprep.subr.bf16.mxu0 %v12164_v13  ;;  %v12204_v62 = vld [vmem:[%s12428_s18 + $0xc4] ss:$8 sps:$4 sm:$0xff]   ;;  %v1032_v63 = vld [vmem:[#allocation2 + $0x20] sm:$0x1]  ;;  %v12230_v5 = vld [vmem:[%s16153_s4 + $0x138] sm:$0xff]  }
  0x23   : > { %6132 = vmatpush1.bf16.msra.mxu1 %v12224_v47  ;;  %v1033_v0 = vsel %vm12531_vm4, 0, %v1032_v63  ;;  %v985_v2 = vld [vmem:[#allocation2 + $0x24] sm:$0x1]  ;;  %v12206_v4 = vld [vmem:[%s12428_s18 + $0xc0] ss:$8 sps:$4 sm:$0xff]   ;;  %v12226_v7 = vld [vmem:[%s16153_s4 + $0x150] sm:$0xff]  }
  0x24   : > { %6133 = vmatprep.subr.bf16.mxu1 %v16162_v17  ;;  %1034 = vst [vmem:[#allocation2 + $0x20] sm:$0x1] %v1033_v0  ;;  %v986_v3 = vsel %vm12523_vm2, 0, %v985_v2  ;;  %v12207_v6 = vld [vmem:[%s12428_s18 + $0xd4] ss:$8 sps:$4 sm:$0xff]   ;;  %vm12677_vm9 = vmor %vm977_vm1, %vm1157_vm8 }
  0x25   : > { %11638 = vmatpush3.bf16.msra.mxu0 %v12165_v14  ;;  %987 = vst [vmem:[#allocation2 + $0x24] sm:$0x1] %v986_v3  ;;  %v1035_v8 = vld [vmem:[#allocation2 + $0x2c] sm:$0x1]  ;;  %v12232_v10 = vld [vmem:[%s16153_s4 + $0x130] sm:$0xff]   ;;  %v12235_v25 = vld [vmem:[%s16153_s4 + $0x118] sm:$0xff]  }
  0x26   : > { %11639 = vmatprep.subr.bf16.mxu0 %v12166_v15  ;;  %v1036_v9 = vsel %vm12531_vm4, 0, %v1035_v8  ;;  %v988_v11 = vld [vmem:[#allocation2 + $0x30] sm:$0x1]  ;;  %v12233_v14 = vld [vmem:[%s16153_s4 + $0x128] sm:$0xff]   ;;  %v1053_v49 = vld [vmem:[#allocation2 + $0x74] sm:$0x1] }
  0x27   : > { %6134 = vmatpush1.bf16.msra.mxu1 %v12225_v53  ;;  %1037 = vst [vmem:[#allocation2 + $0x2c] sm:$0x1] %v1036_v9  ;;  %v989_v12 = vsel %vm12523_vm2, 0, %v988_v11  ;;  %v12209_v13 = vld [vmem:[%s12428_s18 + $0xd0] ss:$8 sps:$4 sm:$0xff]   ;;  %v1054_v50 = vsel %vm12531_vm4, 0, %v1053_v49 }
  0x28   : > { %6135 = vmatprep.subr.bf16.mxu1 %v16162_v17  ;;  %990 = vst [vmem:[#allocation2 + $0x30] sm:$0x1] %v989_v12  ;;  %v12210_v15 = vld [vmem:[%s12428_s18 + $0xe4] ss:$8 sps:$4 sm:$0xff]   ;;  %v1050_v44 = vld [vmem:[#allocation2 + $0x68] sm:$0x1] }
  0x29   : > { %11640 = vmatpush3.bf16.msra.mxu0 %v12167_v16  ;;  %v1038_v16 = vld [vmem:[#allocation2 + $0x38] sm:$0x1]  ;;  %1055 = vst [vmem:[#allocation2 + $0x74] sm:$0x1] %v1054_v50  ;;  %v12649_v59 = vld [vmem:[%s16151_s2] ss:$0 sm:$0xff] }
  0x2a   : > { %11824 = vmatprep.subr.bf16.mxu0 %v16160_v20  ;;  %v1059_v11 = vld [vmem:[#allocation2 + $0x8c] sm:$0x1] }
  0x2b   : > { %6136 = vmatpush1.bf16.msra.mxu1 %v12227_v57  ;;  %v1009_v57 = vld [vmem:[#allocation2 + $0x84] sm:$0x1] }
  0x2c   : > { %714 = vmatmul.mubr.bf16.vlgmr.msra.gmra.mxu0 %v12168_v18  ;;  %6137 = vmatprep.subr.bf16.mxu1 %v16162_v17  ;;  %v1039_v18 = vsel %vm12531_vm4, 0, %v1038_v16 }
  0x2d   : > { %721 = vmatprep.mubr.bf16.mxu0 %v12171_v19  ;;  %11825 = vmatpush3.bf16.msra.mxu0 %v12216_v22  ;;  %v12231_v19 = vld [vmem:[%s16153_s4 + $0x148] sm:$0xff]   ;;  %1040 = vst [vmem:[#allocation2 + $0x38] sm:$0x1] %v1039_v18  ;;  %v991_v22 = vld [vmem:[#allocation2 + $0x3c] sm:$0x1] }
  0x2e   : > { %11826 = vmatprep.subr.bf16.mxu0 %v16160_v20 }
  0x2f   : > { %6138 = vmatpush1.bf16.msra.mxu1 %v12228_v61 }
  0x30   : > { %6139 = vmatprep.subr.bf16.mxu1 %v16162_v17 }
  0x31   : > { %11827 = vmatpush3.bf16.msra.mxu0 %v12217_v24  ;;  %v12212_v24 = vld [vmem:[%s12428_s18 + $0xe0] ss:$8 sps:$4 sm:$0xff]  }
  0x32   : > { %11828 = vmatprep.subr.bf16.mxu0 %v16160_v20 }
  0x33   : > { %6140 = vmatpush1.bf16.msra.mxu1 %v12229_v1 }
  0x34   : > { %722 = vmatmul.mubr.bf16.gmra.mxu0 %v12173_v21  ;;  %6141 = vmatprep.subr.bf16.mxu1 %v16162_v17  ;;  %v12234_v21 = vld [vmem:[%s16153_s4 + $0x120] sm:$0xff]  }
  0x35   : > { %729 = vmatprep.mubr.bf16.mxu0 %v12174_v23  ;;  %11829 = vmatpush3.bf16.msra.mxu0 %v12218_v26  ;;  %v992_v23 = vsel %vm12523_vm2, 0, %v991_v22  ;;  %v12236_v26 = vld [vmem:[%s16153_s4 + $0x140] sm:$0xff]  }
  0x36   : > { %11830 = vmatprep.subr.bf16.mxu0 %v16160_v20  ;;  %993 = vst [vmem:[#allocation2 + $0x3c] sm:$0x1] %v992_v23 }
  0x37   : > { %6142 = vmatpush2.bf16.msra.mxu1 %v12230_v5 }
  0x38   : > { %6143 = vmatprep.subr.bf16.mxu1 %v16162_v17 }
  0x39   : > { %11831 = vmatpush3.bf16.msra.mxu0 %v12219_v29 }
  0x3a   : > { %11832 = vmatprep.subr.bf16.mxu0 %v16160_v20 }
  0x3b   : > { %6144 = vmatpush2.bf16.msra.mxu1 %v12232_v10 }
  0x3c   : > { %730 = vmatmul.mubr.bf16.gmra.mxu0 %v12176_v27  ;;  %6145 = vmatprep.subr.bf16.mxu1 %v16162_v17  ;;  %v12213_v27 = vld [vmem:[%s12428_s18 + $0xf4] ss:$8 sps:$4 sm:$0xff]  }
  0x3d   : > { %737 = vmatprep.mubr.bf16.mxu0 %v12177_v28  ;;  %11833 = vmatpush3.bf16.msra.mxu0 %v12221_v30  ;;  %v1041_v28 = vld [vmem:[#allocation2 + $0x44] sm:$0x1]  ;;  %v12237_v30 = vld [vmem:[%s16153_s4 + $0x110] sm:$0xff]  }
  0x3e   : > { %11834 = vmatprep.subr.bf16.mxu0 %v16160_v20  ;;  %v1042_v29 = vsel %vm12531_vm4, 0, %v1041_v28  ;;  %v12329_v28 = vmov 1966171168  }
  0x3f   : > { %6146 = vmatpush2.bf16.msra.mxu1 %v12233_v14  ;;  %1043 = vst [vmem:[#allocation2 + $0x44] sm:$0x1] %v1042_v29  ;;  %v1734_v29 = vunpack.c.l.s4 %v12329_v28 }
  0x40   : > { %6147 = vmatprep.subr.bf16.mxu1 %v16162_v17 }
  0x41   : > { %11835 = vmatpush3.bf16.msra.mxu0 %v12226_v7 }
  0x42   : > { %11836 = vmatprep.subr.bf16.mxu0 %v16160_v20 }
  0x43   : > { %6148 = vmatpush2.bf16.msra.mxu1 %v12234_v21 }
  0x44   : > { %738 = vmatmul.mubr.bf16.gmra.mxu0 %v12179_v31  ;;  %6149 = vmatprep.subr.bf16.mxu1 %v16162_v17  ;;  %v994_v31 = vld [vmem:[#allocation2 + $0x48] sm:$0x1] }
  0x45   : > { %745 = vmatprep.mubr.bf16.mxu0 %v12180_v32  ;;  %11837 = vmatpush3.bf16.msra.mxu0 %v12231_v19  ;;  %v995_v32 = vsel %vm12523_vm2, 0, %v994_v31 }
  0x46   : > { %11838 = vmatprep.subr.bf16.mxu0 %v16160_v20  ;;  %996 = vst [vmem:[#allocation2 + $0x48] sm:$0x1] %v995_v32 }
  0x47   : > { %6150 = vmatpush2.bf16.msra.mxu1 %v12235_v25 }
  0x48   : > { %6151 = vmatprep.subr.bf16.mxu1 %v16162_v17 }
  0x49   : > { %11839 = vmatpush3.bf16.msra.mxu0 %v12236_v26  ;;  %v1481_v26 = vld [vmem:[#allocation2 + $0xc] sm:$0xf] }
  0x4a   : > { %11924 = vmatprep.subr.bf16.mxu0 %v16160_v20 }
  0x4b   : > { %6152 = vmatpush2.bf16.msra.mxu1 %v12237_v30  ;;  %v1736_v30 = vlaneseq }
  0x4c   : > { %746 = vmatmul.mubr.bf16.gmra.mxu0 %v12182_v33  ;;  %6153 = vmatprep.subr.bf16.mxu1 %v16162_v17  ;;  %v12215_v33 = vld [vmem:[%s12428_s18 + $0xf0] ss:$8 sps:$4 sm:$0xff]  }
  0x4d   : > { %753 = vmatprep.mubr.bf16.mxu0 %v12183_v34  ;;  %v1044_v34 = vld [vmem:[#allocation2 + $0x50] sm:$0x1]  ;;  %v12682_v49 = vshrl.u32 %v1736_v30, 7 }
  0x4f   : > { %16368 = vst [vmem:[#allocation3_spill] sm:$0xff] %v12682_v49 }
  0x54   : > { %754 = vmatmul.mubr.bf16.gmra.mxu0 %v12185_v35  ;;  %v1045_v35 = vsel %vm12531_vm4, 0, %v1044_v34 }
  0x55   : > { %761 = vmatprep.mubr.bf16.mxu0 %v12186_v36  ;;  %1046 = vst [vmem:[#allocation2 + $0x50] sm:$0x1] %v1045_v35  ;;  %v12238_v36 = vld [vmem:[%s16153_s4 + $0x108] sm:$0xff]  }
  0x56   : > { %6154 = vmatpush2.bf16.msra.mxu1 %v12238_v36 }
  0x57   : > { %6155 = vmatprep.subr.bf16.mxu1 %v16162_v17 }
  0x5c   : > { %762 = vmatmul.mubr.bf16.gmra.mxu0 %v12188_v37  ;;  %v12239_v37 = vld [vmem:[%s16153_s4 + $0x100] sm:$0xff]  }
  0x5d   : > { %769 = vmatprep.mubr.bf16.mxu0 %v12189_v38  ;;  %v997_v38 = vld [vmem:[#allocation2 + $0x54] sm:$0x1]  ;;  %6156 = vmatpush2.bf16.msra.mxu1 %v12239_v37 }
  0x5e   : > { %6659 = vmatprep.subr.bf16.mxu1 %v16162_v17 }
  0x64   : > { %770 = vmatmul.mubr.bf16.gmra.mxu0 %v12191_v39  ;;  %v998_v39 = vsel %vm12523_vm2, 0, %v997_v38 }
  0x65   : > { %777 = vmatprep.mubr.bf16.mxu0 %v12192_v40  ;;  %999 = vst [vmem:[#allocation2 + $0x54] sm:$0x1] %v998_v39  ;;  %v1047_v40 = vld [vmem:[#allocation2 + $0x5c] sm:$0x1] }
  0x6c   : > { %778 = vmatmul.mubr.bf16.gmra.mxu0 %v12194_v41  ;;  %v1048_v41 = vsel %vm12531_vm4, 0, %v1047_v40 }
  0x6d   : > { %785 = vmatprep.mubr.bf16.mxu0 %v12195_v42  ;;  %1049 = vst [vmem:[#allocation2 + $0x5c] sm:$0x1] %v1048_v41  ;;  %v1000_v42 = vld [vmem:[#allocation2 + $0x60] sm:$0x1] }
  0x6e   : > { %v1001_v43 = vsel %vm12523_vm2, 0, %v1000_v42 }
  0x6f   : > { %1002 = vst [vmem:[#allocation2 + $0x60] sm:$0x1] %v1001_v43  ;;  %v1485_v43 = vld [vmem:[#allocation2 + $0x14] sm:$0x1] }
  0x74   : > { %786 = vmatmul.mubr.bf16.gmra.mxu0 %v12197_v45  ;;  %v1051_v45 = vsel %vm12531_vm4, 0, %v1050_v44 }
  0x75   : > { %793 = vmatprep.mubr.bf16.mxu0 %v12198_v46  ;;  %1052 = vst [vmem:[#allocation2 + $0x68] sm:$0x1] %v1051_v45  ;;  %v1003_v46 = vld [vmem:[#allocation2 + $0x6c] sm:$0x1] }
  0x76   : > { %v1004_v47 = vsel %vm12523_vm2, 0, %v1003_v46 }
  0x77   : > { %1005 = vst [vmem:[#allocation2 + $0x6c] sm:$0x1] %v1004_v47  ;;  %v1735_v47 = vunpack.c.0.s8 %v1734_v29 }
  0x7c   : > { %794 = vmatmul.mubr.bf16.gmra.mxu0 %v12200_v52  ;;  %v1006_v52 = vld [vmem:[#allocation2 + $0x78] sm:$0x1] }
  0x7d   : > { %801 = vmatprep.mubr.bf16.mxu0 %v12201_v54  ;;  %v1007_v53 = vsel %vm12523_vm2, 0, %v1006_v52  ;;  %v1056_v54 = vld [vmem:[#allocation2 + $0x80] sm:$0x1] }
  0x7e   : > { %1008 = vst [vmem:[#allocation2 + $0x78] sm:$0x1] %v1007_v53  ;;  %v1057_v55 = vsel %vm12531_vm4, 0, %v1056_v54 }
  0x7f   : > { %1058 = vst [vmem:[#allocation2 + $0x80] sm:$0x1] %v1057_v55 }
  0x84   : > { %802 = vmatmul.mubr.bf16.gmra.mxu0 %v12203_v60  ;;  %v1010_v60 = vsel %vm12523_vm2, 0, %v1009_v57 }
  0x85   : > { %809 = vmatprep.mubr.bf16.mxu0 %v12204_v62  ;;  %1011 = vst [vmem:[#allocation2 + $0x84] sm:$0x1] %v1010_v60  ;;  %v12656_v62 = vld [vmem:[%s16152_s3] ss:$0 sm:$0xff] }
  0x8c   : > { %810 = vmatmul.mubr.bf16.gmra.mxu0 %v12206_v4 }
  0x8d   : > { %817 = vmatprep.mubr.bf16.mxu0 %v12207_v6 }
  0x94   : > { %818 = vmatmul.mubr.bf16.gmra.mxu0 %v12209_v13  ;;  %v1060_v13 = vsel %vm12531_vm4, 0, %v1059_v11 }
  0x95   : > { %825 = vmatprep.mubr.bf16.mxu0 %v12210_v15  ;;  %1061 = vst [vmem:[#allocation2 + $0x8c] sm:$0x1] %v1060_v13 }
  0x9c   : > { %826 = vmatmul.mubr.bf16.gmra.mxu0 %v12212_v24 }
  0x9d   : > { %833 = vmatprep.mubr.bf16.mxu0 %v12213_v27 }
  0xa4   : > { %834 = vmatmul.mubr.bf16.gmra.mxu0 %v12215_v33  ;;  %v1012_v33 = vld [vmem:[#allocation2 + $0x90] sm:$0x1] }
  0xa5   : > { %11840 = vmatprep.mubr.msk.bf16.mxu0 %vm12328_vm5, %v16160_v20  ;;  %v1013_v37 = vsel %vm12523_vm2, 0, %v1012_v33 }
  0xa6   : > { %1014 = vst [vmem:[#allocation2 + $0x90] sm:$0x1] %v1013_v37 }
  0xec   : > { %v11641_v56 = vpop.f32.mrf.mxu0 }
  0xee   : > { %v11642_v58 = vpop.f32.mrf.mxu0 }
  0xef   : > { %v11643_v61 = vadd.f32 %v11642_v58, %v11641_v56 }
  0xf0   : > { %v11644_v63 = vpop.f32.mrf.mxu0 }
  0xf1   : > { %v849_v0 = vmul.f32 %v11643_v61, %v12649_v59 }
  0xf2   : > { %v11645_v1 = vpop.f32.mrf.mxu0 }
  0xf3   : > { %v888_v2 = vadd.f32 %v12656_v62, %v849_v0  ;;  %v11646_v3 = vadd.f32 %v11645_v1, %v11644_v63 }
  0xf4   : > { %v11647_v4 = vpop.f32.mrf.mxu0 }
  0xf5   : > { %v920_v5 = vmax.f32 %v888_v2, 0.0  ;;  %v850_v6 = vmul.f32 %v11646_v3, %v12649_v59 }
  0xf6   : > { %v11648_v7 = vpop.f32.mrf.mxu0 }
  0xf7   : > { %v11561_v8 = vpack.c.bf16 %v920_v5, %v920_v5  ;;  %v889_v9 = vadd.f32 %v12656_v62, %v850_v6  ;;  %v11649_v10 = vadd.f32 %v11648_v7, %v11647_v4  ;;  %v12691_v4 = vsub.s32 %v1735_v47, %v12682_v49  ;;  %v1062_v5 = vld [vmem:[#allocation2 + $0x98] sm:$0x1] }
  0xf8   : > { %v11650_v12 = vpop.f32.mrf.mxu0  ;;  %v1488_v6 = vld [vmem:[#allocation2 + $0x18] sm:$0xf] }
  0xf9   : > { %v1160_v14 = vshrl.u32 %v11561_v8, 16  ;;  %v921_v15 = vmax.f32 %v889_v9, 0.0  ;;  %v851_v16 = vmul.f32 %v11649_v10, %v12649_v59  ;;  %v1163_v18 = vshll.u32 %v11561_v8, 16 }
  0xfa   : > { %v11651_v19 = vpop.f32.mrf.mxu0  ;;  %v1063_v9 = vsel %vm12531_vm4, 0, %v1062_v5  ;;  %v1499_v5 = vld [vmem:[#allocation2 + $0x2c] sm:$0x1] }
  0xfb   : > { %v1162_v21 = vrot.slane %v1160_v14, 7  ;;  %v11562_v22 = vpack.c.bf16 %v921_v15, %v921_v15  ;;  %v890_v23 = vadd.f32 %v12656_v62, %v851_v16  ;;  %v11652_v24 = vadd.f32 %v11651_v19, %v11650_v12  ;;  %1064 = vst [vmem:[#allocation2 + $0x98] sm:$0x1] %v1063_v9 }
  0xfc   : > { %v11653_v27 = vpop.f32.mrf.mxu0 }
  0xfd   : > { %v1165_v31 = vor.u32 %v1163_v18, %v1162_v21  ;;  %v1168_v32 = vshrl.u32 %v11562_v22, 16  ;;  %v922_v34 = vmax.f32 %v890_v23, 0.0  ;;  %v852_v35 = vmul.f32 %v11652_v24, %v12649_v59 }
  0xfe   : > { %v11654_v36 = vpop.f32.mrf.mxu0  ;;  %v1171_v40 = vshll.u32 %v11562_v22, 16  ;;  %v1166_v50 = vrot.slane %v1162_v21, 4 }
  0xff   : > { %v1482_v38 = vsel %vm12667_vm7, %v1165_v31, %v1481_v26  ;;  %v1170_v39 = vrot.slane %v1168_v32, 7  ;;  %v11655_v41 = vadd.f32 %v11654_v36, %v11653_v27  ;;  %v11563_v44 = vpack.c.bf16 %v922_v34, %v922_v34  ;;  %v1492_v27 = vld [vmem:[#allocation2 + $0x20] sm:$0x1] }
 0x100   : > { %1483 = vst [vmem:[#allocation2 + $0xc] sm:$0xf] %v1482_v38  ;;  %v891_v45 = vadd.f32 %v12656_v62, %v852_v35  ;;  %v11656_v46 = vpop.f32.mrf.mxu0 }
 0x101   : > { %v1173_v52 = vor.u32 %v1171_v40, %v1170_v39  ;;  %v1175_v53 = vrot.slane %v1170_v39, 4  ;;  %v853_v54 = vmul.f32 %v11655_v41, %v12649_v59  ;;  %v1177_v55 = vshrl.u32 %v11563_v44, 16 }
 0x102   : > { %v923_v56 = vmax.f32 %v891_v45, 0.0  ;;  %v11657_v57 = vpop.f32.mrf.mxu0  ;;  %v1180_v1 = vshll.u32 %v11563_v44, 16  ;;  %v1495_v45 = vld [vmem:[#allocation2 + $0x24] sm:$0xf] }
 0x103   : > { %v1174_v58 = vsel %vm12677_vm9, %v1166_v50, %v1173_v52  ;;  %v1486_v60 = vsel %vm12523_vm2, %v1175_v53, %v1485_v43  ;;  %v892_v61 = vadd.f32 %v12656_v62, %v853_v54  ;;  %v11658_v63 = vadd.f32 %v11657_v57, %v11656_v46 }
 0x104   : > { %1484 = vst [vmem:[#allocation2 + $0x10] sm:$0xf] %v1174_v58  ;;  %1487 = vst [vmem:[#allocation2 + $0x14] sm:$0x1] %v1486_v60  ;;  %v1179_v0 = vrot.slane %v1177_v55, 7  ;;  %v11564_v2 = vpack.c.bf16 %v923_v56, %v923_v56  ;;  %v11659_v3 = vpop.f32.mrf.mxu0 }
 0x105   : > { %v924_v7 = vmax.f32 %v892_v61, 0.0  ;;  %v854_v8 = vmul.f32 %v11658_v63, %v12649_v59 }
 0x106   : > { %v1182_v10 = vor.u32 %v1180_v1, %v1179_v0  ;;  %v1183_v11 = vrot.slane %v1179_v0, 4  ;;  %v1185_v12 = vshrl.u32 %v11564_v2, 16  ;;  %v11660_v13 = vpop.f32.mrf.mxu0  ;;  %v1188_v14 = vshll.u32 %v11564_v2, 16 }
 0x107   : > { %v11565_v15 = vpack.c.bf16 %v924_v7, %v924_v7  ;;  %v893_v16 = vadd.f32 %v12656_v62, %v854_v8  ;;  %v11661_v18 = vadd.f32 %v11660_v13, %v11659_v3  ;;  %v11207_v19 = vld.sshfl [vmem:[#allocation2 + $0xc] sm:$0x33 pattern:$0x75316420] }
 0x108   : > { %v1489_v21 = vsel %vm12667_vm7, %v1182_v10, %v1488_v6  ;;  %v1187_v22 = vrot.slane %v1185_v12, 7  ;;  %v11662_v23 = vpop.f32.mrf.mxu0  ;;  %v1794_v24 = vcombine.high %v11207_v19, %v11207_v19  ;;  %v12700_v26 = vrot.slane %v11207_v19, %v12691_v4 }
 0x109   : > { %1490 = vst [vmem:[#allocation2 + $0x18] sm:$0xf] %v1489_v21  ;;  %v1194_v28 = vshrl.u32 %v11565_v15, 16  ;;  %v1197_v29 = vshll.u32 %v11565_v15, 16  ;;  %v925_v30 = vmax.f32 %v893_v16, 0.0  ;;  %v855_v31 = vmul.f32 %v11661_v18, %v12649_v59 }
 0x10a   : > { %v1190_v32 = vor.u32 %v1188_v14, %v1187_v22  ;;  %v1192_v33 = vrot.slane %v1187_v22, 4  ;;  %v11663_v34 = vpop.f32.mrf.mxu0  ;;  %v12704_v35 = vrot.slane %v1794_v24, %v12691_v4  ;;  %v1809_v36 = vcombine.high %v12700_v26, %v12700_v26 }
 0x10b   : > { %v1196_v37 = vrot.slane %v1194_v28, 7  ;;  %v11566_v38 = vpack.c.bf16 %v925_v30, %v925_v30  ;;  %v894_v39 = vadd.f32 %v12656_v62, %v855_v31  ;;  %v11664_v40 = vadd.f32 %v11663_v34, %v11662_v23  ;;  %v11208_v41 = vld.sshfl [vmem:[#allocation2 + $0x10] sm:$0x33 pattern:$0x75316420] }
 0x10c   : > { %v1191_v43 = vsel %vm12677_vm9, %v1183_v11, %v1190_v32  ;;  %v1493_v44 = vsel %vm12523_vm2, %v1192_v33, %v1492_v27  ;;  %v11665_v46 = vpop.f32.mrf.mxu0  ;;  %v11209_v47 = vld.sshfl [vmem:[#allocation2 + $0x14] sm:$0x1 pattern:$0x75316420]  ;;  %v1810_v50 = vcombine.high %v12704_v35, %v12704_v35  ;;  %v1818_v52 = vcombine.high %v11208_v41, %v11208_v41  ;;  %v1502_v33 = vld [vmem:[#allocation2 + $0x30] sm:$0xf] }
 0x10d   : > { %1491 = vst [vmem:[#allocation2 + $0x1c] sm:$0xf] %v1191_v43  ;;  %1494 = vst [vmem:[#allocation2 + $0x20] sm:$0x1] %v1493_v44  ;;  %v1199_v53 = vor.u32 %v1197_v29, %v1196_v37  ;;  %v1200_v54 = vrot.slane %v1196_v37, 4  ;;  %v1202_v55 = vshrl.u32 %v11566_v38, 16  ;;  %v856_v58 = vmul.f32 %v11664_v40, %v12649_v59 }
 0x10e   : > { %v1205_v56 = vshll.u32 %v11566_v38, 16  ;;  %v926_v57 = vmax.f32 %v894_v39, 0.0  ;;  %v11666_v60 = vpop.f32.mrf.mxu0  ;;  %v12717_v61 = vrot.slane %v11208_v41, %v12691_v4  ;;  %v12720_v63 = vrot.slane %v1818_v52, %v12691_v4 }
 0x10f   : > { %v1496_v0 = vsel %vm12667_vm7, %v1199_v53, %v1495_v45  ;;  %v1204_v1 = vrot.slane %v1202_v55, 7  ;;  %v11667_v2 = vadd.f32 %v11666_v60, %v11665_v46  ;;  %v12725_v3 = vrot.slane %v11209_v47, %v12691_v4 }
 0x110   : > { %1497 = vst [vmem:[#allocation2 + $0x24] sm:$0xf] %v1496_v0  ;;  %v11567_v6 = vpack.c.bf16 %v926_v57, %v926_v57  ;;  %v895_v7 = vadd.f32 %v12656_v62, %v856_v58  ;;  %v11668_v8 = vpop.f32.mrf.mxu0  ;;  %v1833_v9 = vcombine.high %v12717_v61, %v12717_v61  ;;  %v1834_v10 = vcombine.high %v12720_v63, %v12720_v63  ;;  %v11210_v57 = vld.sshfl [vmem:[#allocation2 + $0x18] sm:$0x33 pattern:$0x75316420] }
 0x111   : > { %v1207_v11 = vor.u32 %v1205_v56, %v1204_v1  ;;  %v1209_v12 = vrot.slane %v1204_v1, 4  ;;  %v857_v13 = vmul.f32 %v11667_v2, %v12649_v59  ;;  %v3029_v14 = vcombine.low %v12704_v35, %v1809_v36  ;;  %v1506_v58 = vld [vmem:[#allocation2 + $0x38] sm:$0x1] }
 0x112   : > { %v1211_v15 = vshrl.u32 %v11567_v6, 16  ;;  %v1214_v16 = vshll.u32 %v11567_v6, 16  ;;  %v927_v18 = vmax.f32 %v895_v7, 0.0  ;;  %v11669_v19 = vpop.f32.mrf.mxu0  ;;  %v3030_v21 = vcombine.low %v1810_v50, %v12717_v61 }
 0x113   : > { %v1208_v22 = vsel %vm12677_vm9, %v1200_v54, %v1207_v11  ;;  %v1500_v23 = vsel %vm12523_vm2, %v1209_v12, %v1499_v5  ;;  %v896_v24 = vadd.f32 %v12656_v62, %v857_v13  ;;  %v11670_v27 = vadd.f32 %v11669_v19, %v11668_v8 }
 0x114   : > { %1498 = vst [vmem:[#allocation2 + $0x28] sm:$0xf] %v1208_v22  ;;  %1501 = vst [vmem:[#allocation2 + $0x2c] sm:$0x1] %v1500_v23  ;;  %v1213_v28 = vrot.slane %v1211_v15, 7  ;;  %v11568_v29 = vpack.c.bf16 %v927_v18, %v927_v18  ;;  %v11671_v30 = vpop.f32.mrf.mxu0  ;;  %v3031_v31 = vcombine.low %v12720_v63, %v1833_v9  ;;  %v12742_v32 = vrot.slane %v3029_v14, %v12691_v4 }
 0x115   : > { %v928_v34 = vmax.f32 %v896_v24, 0.0  ;;  %v858_v36 = vmul.f32 %v11670_v27, %v12649_v59  ;;  %v12746_v37 = vrot.slane %v3030_v21, %v12691_v4  ;;  %v3077_v38 = vcombine.low %v1834_v10, %v12725_v3  ;;  %v11211_v21 = vld.sshfl [vmem:[#allocation2 + $0x1c] sm:$0x33 pattern:$0x75316420] }
 0x116   : > { %v1216_v39 = vor.u32 %v1214_v16, %v1213_v28  ;;  %v1217_v40 = vrot.slane %v1213_v28, 4  ;;  %v1219_v41 = vshrl.u32 %v11568_v29, 16  ;;  %v1222_v43 = vshll.u32 %v11568_v29, 16  ;;  %v11672_v44 = vpop.f32.mrf.mxu0  ;;  %v1509_v16 = vld [vmem:[#allocation2 + $0x3c] sm:$0xf] }
 0x117   : > { %v11569_v45 = vpack.c.bf16 %v928_v34, %v928_v34  ;;  %v897_v46 = vadd.f32 %v12656_v62, %v858_v36  ;;  %v11673_v47 = vadd.f32 %v11672_v44, %v11671_v30  ;;  %v12751_v50 = vrot.slane %v3031_v31, %v12691_v4  ;;  %v12241_v29 = vld [vmem:[%s16153_s4 + $0xb8] sm:$0xff]  }
 0x118   : > { %v1503_v52 = vsel %vm12667_vm7, %v1216_v39, %v1502_v33  ;;  %v1221_v53 = vrot.slane %v1219_v41, 7  ;;  %v11674_v54 = vpop.f32.mrf.mxu0  ;;  %v12756_v55 = vrot.slane %v3077_v38, %v12691_v4  ;;  %v5524_v56 = vcombine.low %v12742_v32, %v12746_v37 }
 0x119   : > { %1504 = vst [vmem:[#allocation2 + $0x30] sm:$0xf] %v1503_v52  ;;  %v1228_v60 = vshrl.u32 %v11569_v45, 16  ;;  %v1231_v0 = vshll.u32 %v11569_v45, 16  ;;  %v929_v1 = vmax.f32 %v897_v46, 0.0  ;;  %v859_v2 = vmul.f32 %v11673_v47, %v12649_v59 }
 0x11a   : > { %v1224_v5 = vor.u32 %v1222_v43, %v1221_v53  ;;  %v1226_v6 = vrot.slane %v1221_v53, 4  ;;  %v11675_v7 = vpop.f32.mrf.mxu0  ;;  %v5525_v8 = vcombine.low %v12751_v50, %v12756_v55  ;;  %v5532_v9 = vrot.slane %v5524_v56, %v12691_v4  ;;  %v1513_v43 = vld [vmem:[#allocation2 + $0x44] sm:$0x1] }
 0x11b   : > { %v1230_v10 = vrot.slane %v1228_v60, 7  ;;  %v11570_v11 = vpack.c.bf16 %v929_v1, %v929_v1  ;;  %v898_v12 = vadd.f32 %v12656_v62, %v859_v2  ;;  %v11676_v13 = vadd.f32 %v11675_v7, %v11674_v54 }
 0x11c   : > { %v1225_v14 = vsel %vm12677_vm9, %v1217_v40, %v1224_v5  ;;  %v1507_v15 = vsel %vm12523_vm2, %v1226_v6, %v1506_v58  ;;  %v11677_v18 = vpop.f32.mrf.mxu0  ;;  %v5539_v19 = vrot.slane %v5525_v8, %v12691_v4  ;;  %v1856_v22 = vcombine.high %v11210_v57, %v11210_v57  ;;  %v12244_v58 = vld [vmem:[%s16153_s4 + $0xb0] sm:$0xff]  }
 0x11d   : > { %1505 = vst [vmem:[#allocation2 + $0x34] sm:$0xf] %v1225_v14  ;;  %1508 = vst [vmem:[#allocation2 + $0x38] sm:$0x1] %v1507_v15  ;;  %v1233_v23 = vor.u32 %v1231_v0, %v1230_v10  ;;  %v1234_v24 = vrot.slane %v1230_v10, 4  ;;  %v1236_v27 = vshrl.u32 %v11570_v11, 16  ;;  %v860_v31 = vmul.f32 %v11676_v13, %v12649_v59 }
 0x11e   : > { %v1239_v28 = vshll.u32 %v11570_v11, 16  ;;  %v930_v30 = vmax.f32 %v898_v12, 0.0  ;;  %v5540_v33 = vcombine.low %v5532_v9, %v5539_v19  ;;  %v11678_v34 = vpop.f32.mrf.mxu0  ;;  %v12775_v36 = vrot.slane %v11210_v57, %v12691_v4  ;;  %v1516_v15 = vld [vmem:[#allocation2 + $0x48] sm:$0xf] }
 0x11f   : > { %v1510_v38 = vsel %vm12667_vm7, %v1233_v23, %v1509_v16  ;;  %v1238_v39 = vrot.slane %v1236_v27, 7  ;;  %v11679_v40 = vadd.f32 %v11678_v34, %v11677_v18  ;;  %v12780_v41 = vrot.slane %v1856_v22, %v12691_v4  ;;  %v12247_v22 = vld [vmem:[%s16153_s4 + $0xa8] sm:$0xff]  }
 0x120   : > { %1511 = vst [vmem:[#allocation2 + $0x3c] sm:$0xf] %v1510_v38  ;;  %v11571_v44 = vpack.c.bf16 %v930_v30, %v930_v30  ;;  %v899_v45 = vadd.f32 %v12656_v62, %v860_v31  ;;  %11841 = vmatmul.mubr.bf16.vlgmr.msra.gmra.mxu0 %v5540_v33  ;;  %v11680_v46 = vpop.f32.mrf.mxu0  ;;  %v1880_v47 = vcombine.high %v11211_v21, %v11211_v21 }
 0x121   : > { %v12784_v52 = vrot.slane %v11211_v21, %v12691_v4  ;;  %v1241_v53 = vor.u32 %v1239_v28, %v1238_v39  ;;  %v1243_v54 = vrot.slane %v1238_v39, 4  ;;  %v861_v56 = vmul.f32 %v11679_v40, %v12649_v59  ;;  %11844 = vmatprep.mubr.msk.bf16.mxu0 %vm12328_vm5, %v16160_v20  ;;  %11925 = vmatpush3.bf16.msra.mxu0 %v12241_v29 }
 0x122   : > { %v3078_v57 = vcombine.low %v12775_v36, %v12780_v41  ;;  %v1245_v60 = vshrl.u32 %v11571_v44, 16  ;;  %v1248_v0 = vshll.u32 %v11571_v44, 16  ;;  %v931_v1 = vmax.f32 %v899_v45, 0.0  ;;  %v11681_v2 = vpop.f32.mrf.mxu0  ;;  %11926 = vmatprep.subr.bf16.mxu0 %v16160_v20  ;;  %v1520_v44 = vld [vmem:[#allocation2 + $0x50] sm:$0x1] }
 0x123   : > { %v12795_v5 = vrot.slane %v1880_v47, %v12691_v4  ;;  %v1242_v6 = vsel %vm12677_vm9, %v1234_v24, %v1241_v53  ;;  %v1514_v7 = vsel %vm12523_vm2, %v1243_v54, %v1513_v43  ;;  %v900_v8 = vadd.f32 %v12656_v62, %v861_v56 }
 0x124   : > { %v11682_v9 = vadd.f32 %v11681_v2, %v11680_v46  ;;  %1512 = vst [vmem:[#allocation2 + $0x40] sm:$0xf] %v1242_v6  ;;  %1515 = vst [vmem:[#allocation2 + $0x44] sm:$0x1] %v1514_v7  ;;  %v1247_v10 = vrot.slane %v1245_v60, 7  ;;  %v11572_v11 = vpack.c.bf16 %v931_v1, %v931_v1  ;;  %v11683_v12 = vpop.f32.mrf.mxu0  ;;  %v11267_v13 = vcombine.high %v12775_v36, %v12780_v41 }
 0x125   : > { %v3080_v14 = vcombine.low %v12784_v52, %v12795_v5  ;;  %v932_v16 = vmax.f32 %v900_v8, 0.0  ;;  %v12809_v19 = vrot.slane %v3078_v57, %v12691_v4  ;;  %v11268_v21 = vcombine.high %v12784_v52, %v12795_v5  ;;  %11927 = vmatpush3.bf16.msra.mxu0 %v12244_v58  ;;  %v1523_v8 = vld [vmem:[#allocation2 + $0x54] sm:$0xf] }
 0x126   : > { %v862_v18 = vmul.f32 %v11682_v9, %v12649_v59  ;;  %v1250_v23 = vor.u32 %v1248_v0, %v1247_v10  ;;  %v1251_v24 = vrot.slane %v1247_v10, 4  ;;  %v1253_v27 = vshrl.u32 %v11572_v11, 16  ;;  %v11684_v29 = vpop.f32.mrf.mxu0  ;;  %11928 = vmatprep.subr.bf16.mxu0 %v16160_v20 }
 0x127   : > { %v1256_v28 = vshll.u32 %v11572_v11, 16  ;;  %v11573_v30 = vpack.c.bf16 %v932_v16, %v932_v16  ;;  %v12819_v33 = vrot.slane %v11267_v13, %v12691_v4  ;;  %v12822_v34 = vrot.slane %v3080_v14, %v12691_v4 }
 0x128   : > { %v901_v31 = vadd.f32 %v12656_v62, %v862_v18  ;;  %v1517_v38 = vsel %vm12667_vm7, %v1250_v23, %v1516_v15  ;;  %v1255_v39 = vrot.slane %v1253_v27, 7  ;;  %v12827_v40 = vrot.slane %v11268_v21, %v12691_v4  ;;  %v11686_v11 = vpop.f32.mrf.mxu0 }
 0x129   : > { %v11685_v43 = vadd.f32 %v11684_v29, %v11683_v12  ;;  %1518 = vst [vmem:[#allocation2 + $0x48] sm:$0xf] %v1517_v38  ;;  %v1262_v45 = vshrl.u32 %v11573_v30, 16  ;;  %v1265_v46 = vshll.u32 %v11573_v30, 16  ;;  %v5541_v53 = vcombine.low %v12809_v19, %v12819_v33  ;;  %11929 = vmatpush3.bf16.msra.mxu0 %v12247_v22  ;;  %v1527_v29 = vld [vmem:[#allocation2 + $0x5c] sm:$0x1] }
 0x12a   : > { %v933_v47 = vmax.f32 %v901_v31, 0.0  ;;  %v1258_v54 = vor.u32 %v1256_v28, %v1255_v39  ;;  %v1260_v56 = vrot.slane %v1255_v39, 4  ;;  %v5542_v57 = vcombine.low %v12822_v34, %v12827_v40  ;;  %11930 = vmatprep.subr.bf16.mxu0 %v16160_v20 }
 0x12b   : > { %v863_v58 = vmul.f32 %v11685_v43, %v12649_v59  ;;  %v1264_v60 = vrot.slane %v1262_v45, 7  ;;  %v5549_v1 = vrot.slane %v5541_v53, %v12691_v4  ;;  %v1871_v2 = vcombine.high %v12775_v36, %v12775_v36  ;;  %v11687_v43 = vpop.f32.mrf.mxu0  ;;  %v11220_v49 = vld.sshfl [vmem:[#allocation2 + $0x40] sm:$0x33 pattern:$0x75316420] }
 0x12c   : > { %v11574_v0 = vpack.c.bf16 %v933_v47, %v933_v47  ;;  %v1259_v6 = vsel %vm12677_vm9, %v1251_v24, %v1258_v54  ;;  %v1521_v7 = vsel %vm12523_vm2, %v1260_v56, %v1520_v44  ;;  %v5556_v9 = vrot.slane %v5542_v57, %v12691_v4 }
 0x12d   : > { %v902_v10 = vadd.f32 %v12656_v62, %v863_v58  ;;  %1519 = vst [vmem:[#allocation2 + $0x4c] sm:$0xf] %v1259_v6  ;;  %1522 = vst [vmem:[#allocation2 + $0x50] sm:$0x1] %v1521_v7  ;;  %v1267_v12 = vor.u32 %v1265_v46, %v1264_v60  ;;  %v1268_v13 = vrot.slane %v1264_v60, 4  ;;  %v1872_v21 = vcombine.high %v12780_v41, %v12780_v41 }
 0x12e   : > { %v1270_v14 = vshrl.u32 %v11574_v0, 16  ;;  %v1273_v15 = vshll.u32 %v11574_v0, 16  ;;  %v12844_v16 = vcombine.low %v5549_v1, %v5556_v9  ;;  %v1895_v22 = vcombine.high %v12784_v52, %v12784_v52  ;;  %v11689_v1 = vpop.f32.mrf.mxu0  ;;  %v1530_v6 = vld [vmem:[#allocation2 + $0x60] sm:$0xf] }
 0x12f   : > { %v934_v18 = vmax.f32 %v902_v10, 0.0  ;;  %v1524_v23 = vsel %vm12667_vm7, %v1267_v12, %v1523_v8  ;;  %v4248_v27 = vcombine.low %v12700_v26, %v12704_v35  ;;  %v11283_v28 = vcombine.high %v12700_v26, %v12704_v35 }
 0x130   : > { %16369 = vst [vmem:[#allocation4_spill] sm:$0xff] %v12844_v16  ;;  %v1272_v24 = vrot.slane %v1270_v14, 7  ;;  %1525 = vst [vmem:[#allocation2 + $0x54] sm:$0xf] %v1524_v23  ;;  %11845 = vmatmul.mubr.bf16.gmra.mxu0 %v12844_v16  ;;  %v4250_v31 = vcombine.low %v12717_v61, %v12720_v63  ;;  %v11284_v38 = vcombine.high %v12717_v61, %v12720_v63 }
 0x131   : > { %v11575_v30 = vpack.c.bf16 %v934_v18, %v934_v18  ;;  %v4297_v39 = vcombine.low %v12725_v3, %v12775_v36  ;;  %v4258_v46 = vrot.slane %v4248_v27, %v12691_v4  ;;  %v4265_v35 = vrot.slane %v11283_v28, %v12691_v4  ;;  %11848 = vmatprep.mubr.msk.bf16.mxu0 %vm12328_vm5, %v16160_v20  ;;  %v11213_v14 = vld.sshfl [vmem:[#allocation2 + $0x24] sm:$0x33 pattern:$0x75316420] }
 0x132   : > { %v1275_v44 = vor.u32 %v1273_v15, %v1272_v24  ;;  %v1277_v45 = vrot.slane %v1272_v24, 4  ;;  %v4272_v54 = vrot.slane %v4250_v31, %v12691_v4  ;;  %v4279_v56 = vrot.slane %v11284_v38, %v12691_v4 }
 0x133   : > { %v1279_v47 = vshrl.u32 %v11575_v30, 16  ;;  %v1282_v53 = vshll.u32 %v11575_v30, 16  ;;  %v4280_v3 = vcombine.low %v4258_v46, %v4265_v35  ;;  %v4298_v36 = vcombine.low %v12780_v41, %v1871_v2  ;;  %v11212_v41 = vld.sshfl [vmem:[#allocation2 + $0x20] sm:$0x1 pattern:$0x75316420] }
 0x134   : > { %v1276_v61 = vsel %vm12677_vm9, %v1268_v13, %v1275_v44  ;;  %v1528_v63 = vsel %vm12523_vm2, %v1277_v45, %v1527_v29  ;;  %v4281_v58 = vcombine.low %v4272_v54, %v4279_v56  ;;  %v4299_v60 = vcombine.low %v1872_v21, %v12784_v52  ;;  %v11690_v29 = vpop.f32.mrf.mxu0 }
 0x135   : > { %1526 = vst [vmem:[#allocation2 + $0x58] sm:$0xf] %v1276_v61  ;;  %1529 = vst [vmem:[#allocation2 + $0x5c] sm:$0x1] %v1528_v63  ;;  %v12874_v57 = vrot.slane %v1279_v47, 7  ;;  %v4300_v0 = vcombine.low %v12795_v5, %v1895_v22  ;;  %v4288_v7 = vrot.slane %v4280_v3, %v12691_v4  ;;  %v4307_v8 = vrot.slane %v4297_v39, %v12691_v4 }
 0x136   : > { %v12881_v9 = vrot.slane %v4298_v36, %v12691_v4  ;;  %v11688_v10 = vadd.f32 %v11687_v43, %v11686_v11  ;;  %v4295_v13 = vrot.slane %v4281_v58, %v12691_v4  ;;  %v12887_v52 = vrot.slane %v4299_v60, %v12691_v4  ;;  %v11214_v22 = vld.sshfl [vmem:[#allocation2 + $0x28] sm:$0x33 pattern:$0x75316420]  ;;  %v11692_v3 = vpop.f32.mrf.mxu0 }
 0x137   : > { %v1284_v2 = vor.u32 %v1282_v53, %v12874_v57  ;;  %v1285_v12 = vrot.slane %v12874_v57, 4  ;;  %v12890_v15 = vrot.slane %v4300_v0, %v12691_v4  ;;  %v1896_v11 = vcombine.high %v12795_v5, %v12795_v5 }
 0x138   : > { %16370 = vst [vmem:[#allocation5_spill] sm:$0xff] %v12881_v9  ;;  %16371 = vst [vmem:[#allocation6_spill] sm:$0xff] %v12887_v52  ;;  %v4329_v18 = vcombine.low %v4307_v8, %v12881_v9  ;;  %v864_v21 = vmul.f32 %v11688_v10, %v12649_v59  ;;  %v12898_v24 = vcombine.low %v4288_v7, %v4295_v13 }
 0x139   : > { %16372 = vst [vmem:[#allocation7_spill] sm:$0xff] %v12890_v15  ;;  %v1531_v23 = vsel %vm12667_vm7, %v1284_v2, %v1530_v6  ;;  %v1910_v28 = vrot.slane %v11212_v41, %v12691_v4  ;;  %v4330_v30 = vcombine.low %v12887_v52, %v12890_v15  ;;  %v1918_v5 = vcombine.high %v11213_v14, %v11213_v14 }
 0x13a   : > { %1532 = vst [vmem:[#allocation2 + $0x60] sm:$0xf] %v1531_v23  ;;  %v4337_v31 = vrot.slane %v4329_v18, %v12691_v4  ;;  %v903_v38 = vadd.f32 %v12656_v62, %v864_v21  ;;  %v5337_v39 = vshrl.u32 %v12898_v24, 16  ;;  %v5339_v43 = vshll.u32 %v12898_v24, 16 }
 0x13b   : > { %v1925_v44 = vrot.slane %v11213_v14, %v12691_v4  ;;  %v1942_v45 = vcombine.high %v11214_v22, %v11214_v22  ;;  %v4344_v46 = vrot.slane %v4330_v30, %v12691_v4  ;;  %v1932_v47 = vrot.slane %v1918_v5, %v12691_v4  ;;  %v11693_v30 = vpop.f32.mrf.mxu0 }
 0x13c   : > { %v935_v35 = vmax.f32 %v903_v38, 0.0  ;;  %v12913_v53 = vrot.slane %v11214_v22, %v12691_v4  ;;  %v5341_v54 = vrot.slane %v5339_v43, 1  ;;  %v4346_v10 = vcombine.low %v1896_v11, %v1910_v28 }
 0x13d   : > { %v1933_v56 = vcombine.high %v1925_v44, %v1925_v44  ;;  %v12916_v61 = vrot.slane %v1942_v45, %v12691_v4  ;;  %v3127_v63 = vcombine.low %v1910_v28, %v1925_v44  ;;  %v12918_v36 = vcombine.low %v4337_v31, %v4344_v46  ;;  %v12240_v28 = vld [vmem:[%s16153_s4 + $0x38] sm:$0xff]  }
 0x13e   : > { %v11576_v58 = vpack.c.bf16 %v935_v35, %v935_v35  ;;  %v1934_v60 = vcombine.high %v1932_v47, %v1932_v47  ;;  %v1957_v0 = vcombine.high %v12913_v53, %v12913_v53  ;;  %v5342_v6 = vor.u32 %v5341_v54, %v5337_v39  ;;  %v1534_v39 = vld [vmem:[#allocation2 + $0x68] sm:$0x1] }
 0x13f   : > { %v3128_v7 = vcombine.low %v1932_v47, %v1933_v56  ;;  %v12923_v8 = vrot.slane %v3127_v63, %v12691_v4  ;;  %v5344_v41 = vshll.u32 %v12918_v36, 16  ;;  %v11691_v22 = vadd.f32 %v11690_v29, %v11689_v1 }
 0x140   : > { %v1287_v2 = vshrl.u32 %v11576_v58, 16  ;;  %v1290_v13 = vshll.u32 %v11576_v58, 16  ;;  %v3129_v14 = vcombine.low %v1934_v60, %v12913_v53  ;;  %v3175_v21 = vcombine.low %v12916_v61, %v1957_v0  ;;  %v12956_v60 = vpop.f32.mrf.mxu0  ;;  %v11215_v0 = vld.sshfl [vmem:[#allocation2 + $0x2c] sm:$0x1 pattern:$0x75316420] }
 0x141   : > { %v12928_v18 = vrot.slane %v3128_v7, %v12691_v4  ;;  %v4347_v23 = vcombine.low %v1925_v44, %v1932_v47  ;;  %v5346_v31 = vrot.slane %v5344_v41, 1  ;;  %v11285_v11 = vcombine.high %v1925_v44, %v1932_v47 }
 0x142   : > { %v1289_v38 = vrot.slane %v1287_v2, 7  ;;  %v12932_v5 = vrot.slane %v3129_v14, %v12691_v4  ;;  %v12938_v43 = vrot.slane %v3175_v21, %v12691_v4  ;;  %v865_v1 = vmul.f32 %v11691_v22, %v12649_v59  ;;  %v11216_v2 = vld.sshfl [vmem:[#allocation2 + $0x30] sm:$0x33 pattern:$0x75316420]  ;;  %v12250_v22 = vld [vmem:[%s16153_s4 + $0xa0] sm:$0xff]  }
 0x143   : > { %v5558_v45 = vcombine.low %v12923_v8, %v12928_v18  ;;  %v4349_v29 = vcombine.low %v12913_v53, %v12916_v61  ;;  %v5347_v46 = vsel %vm4010_vm10, %v5342_v6, %v5346_v31  ;;  %v12947_v47 = vrot.slane %v4346_v10, %v12691_v4  ;;  %v12242_v21 = vld [vmem:[%s16153_s4 + $0x30] sm:$0xff]   ;;  %11931 = vmatpush3.bf16.msra.mxu0 %v12250_v22 }
 0x144   : > { %v1292_v35 = vor.u32 %v1290_v13, %v1289_v38  ;;  %v1294_v44 = vrot.slane %v1289_v38, 4  ;;  %6157 = vmatprep.mubr.bf16.mxu1 %v5347_v46  ;;  %v5559_v54 = vcombine.low %v12932_v5, %v12938_v43  ;;  %v904_v63 = vadd.f32 %v12656_v62, %v865_v1  ;;  %11932 = vmatprep.subr.bf16.mxu0 %v16160_v20 }
 0x145   : > { %16373 = vst [vmem:[#allocation8_spill] sm:$0xff] %v12947_v47  ;;  %v5566_v56 = vrot.slane %v5558_v45, %v12691_v4  ;;  %v12954_v58 = vrot.slane %v4347_v23, %v12691_v4  ;;  %6158 = vmatmul.mubr.bf16.vlgmr.msra.gmra.mxu1 %v12898_v24  ;;  %v12966_v10 = vrot.slane %v11285_v11, %v12691_v4  ;;  %v11217_v11 = vld.sshfl [vmem:[#allocation2 + $0x34] sm:$0x33 pattern:$0x75316420] }
 0x146   : > { %v1293_v6 = vsel %vm12677_vm9, %v1285_v12, %v1292_v35  ;;  %v1535_v7 = vsel %vm12523_vm2, %v1294_v44, %v1534_v39  ;;  %v12969_v41 = vrot.slane %v4349_v29, %v12691_v4  ;;  %6660 = vmatpush1.bf16.msra.mxu1 %v12240_v28  ;;  %v5573_v13 = vrot.slane %v5559_v54, %v12691_v4  ;;  %v12992_v35 = vpop.f32.mrf.mxu0 }
 0x147   : > { %16374 = vst [vmem:[#allocation9_spill] sm:$0xff] %v12954_v58  ;;  %16375 = vst [vmem:[#allocation10_spill] sm:$0xff] %v12966_v10  ;;  %v936_v14 = vmax.f32 %v904_v63, 0.0  ;;  %v4378_v57 = vcombine.low %v12947_v47, %v12954_v58  ;;  %v5348_v12 = vshrl.u32 %v12918_v36, 16  ;;  %v11694_v38 = vadd.f32 %v11693_v30, %v11692_v3  ;;  %6661 = vmatprep.subr.bf16.mxu1 %v16162_v17 }
 0x148   : > { %16376 = vst [vmem:[#allocation11_spill] sm:$0xff] %v12969_v41  ;;  %1533 = vst [vmem:[#allocation2 + $0x64] sm:$0xf] %v1293_v6  ;;  %v4379_v23 = vcombine.low %v12966_v10, %v12969_v41  ;;  %v1958_v28 = vcombine.high %v12916_v61, %v12916_v61  ;;  %v12987_v39 = vrot.slane %v11215_v0, %v12691_v4  ;;  %v12243_v6 = vld [vmem:[%s16153_s4 + $0x28] sm:$0xff]   ;;  %v11698_v22 = vpop.f32.mrf.mxu0 }
 0x149   : > { %1536 = vst [vmem:[#allocation2 + $0x68] sm:$0x1] %v1535_v7  ;;  %v12989_v45 = vcombine.low %v5566_v56, %v5573_v13  ;;  %v11577_v1 = vpack.c.bf16 %v936_v14, %v936_v14  ;;  %v4386_v29 = vrot.slane %v4378_v57, %v12691_v4  ;;  %v5350_v46 = vor.u32 %v5348_v12, %v5346_v31 }
 0x14a   : > { %v4393_v3 = vrot.slane %v4379_v23, %v12691_v4  ;;  %v866_v30 = vmul.f32 %v11694_v38, %v12649_v59  ;;  %v1980_v44 = vcombine.high %v11216_v2, %v11216_v2  ;;  %v1987_v54 = vrot.slane %v11216_v2, %v12691_v4  ;;  %6662 = vmatpush1.bf16.msra.mxu1 %v12242_v21  ;;  %v1537_v23 = vld [vmem:[#allocation2 + $0x6c] sm:$0xf] }
 0x14b   : > { %16377 = vst [vmem:[#allocation12_spill] sm:$0xff] %v12989_v45  ;;  %11849 = vmatmul.mubr.bf16.gmra.mxu0 %v12989_v45  ;;  %v1296_v56 = vshrl.u32 %v11577_v1, 16  ;;  %v1299_v63 = vshll.u32 %v11577_v1, 16  ;;  %v2004_v0 = vcombine.high %v11217_v11, %v11217_v11  ;;  %v13000_v31 = vrot.slane %v11217_v11, %v12691_v4  ;;  %6663 = vmatprep.subr.bf16.mxu1 %v16162_v17 }
 0x14c   : > { %v13005_v7 = vcombine.low %v4386_v29, %v4393_v3  ;;  %v905_v59 = vadd.f32 %v12656_v62, %v866_v30  ;;  %11852 = vmatprep.mubr.msk.bf16.mxu0 %vm12328_vm5, %v16160_v20  ;;  %v1994_v2 = vrot.slane %v1980_v44, %v12691_v4  ;;  %v3176_v13 = vcombine.low %v1958_v28, %v12987_v39 }
 0x14d   : > { %v13012_v14 = vrot.slane %v1296_v56, 7  ;;  %v13015_v57 = vrot.slane %v2004_v0, %v12691_v4  ;;  %v4396_v12 = vcombine.low %v12987_v39, %v1987_v54  ;;  %v1995_v21 = vcombine.high %v1987_v54, %v1987_v54 }
 0x14e   : > { %16378 = vst [vmem:[#allocation13_spill] sm:$0xff] %v13005_v7  ;;  %v5352_v62 = vshll.u32 %v13005_v7, 16  ;;  %v937_v38 = vmax.f32 %v905_v59, 0.0  ;;  %v3177_v11 = vcombine.low %v1987_v54, %v1994_v2  ;;  %v11269_v1 = vcombine.high %v1987_v54, %v1994_v2  ;;  %6664 = vmatpush1.bf16.msra.mxu1 %v12243_v6 }
 0x14f   : > { %v1301_v29 = vor.u32 %v1299_v63, %v13012_v14  ;;  %v1302_v28 = vrot.slane %v13012_v14, 4  ;;  %v13023_v3 = vrot.slane %v3176_v13, %v12691_v4  ;;  %v3224_v39 = vcombine.low %v13000_v31, %v13015_v57  ;;  %6665 = vmatprep.subr.bf16.mxu1 %v16162_v17  ;;  %v11699_v13 = vpop.f32.mrf.mxu0  ;;  %v12245_v14 = vld [vmem:[%s16153_s4 + $0x20] sm:$0xff]   ;;  %v11218_v17 = vld.sshfl [vmem:[#allocation2 + $0x38] sm:$0x1 pattern:$0x75316420] }
 0x150   : > { %v5354_v30 = vrot.slane %v5352_v62, 1  ;;  %v11578_v44 = vpack.c.bf16 %v937_v38, %v937_v38  ;;  %v13028_v56 = vrot.slane %v3177_v11, %v12691_v4  ;;  %v13031_v0 = vrot.slane %v11269_v1, %v12691_v4 }
 0x151   : > { %v1538_v54 = vsel %vm12667_vm7, %v1301_v29, %v1537_v23  ;;  %v13037_v63 = vrot.slane %v3224_v39, %v12691_v4  ;;  %v1996_v59 = vcombine.high %v1994_v2, %v1994_v2  ;;  %v11286_v6 = vcombine.high %v12913_v53, %v12916_v61 }
 0x152   : > { %1539 = vst [vmem:[#allocation2 + $0x6c] sm:$0xf] %v1538_v54  ;;  %v5355_v62 = vsel %vm4010_vm10, %v5350_v46, %v5354_v30  ;;  %v1304_v38 = vshrl.u32 %v11578_v44, 16  ;;  %v1307_v11 = vshll.u32 %v11578_v44, 16  ;;  %v5575_v23 = vcombine.low %v13023_v3, %v13028_v56  ;;  %6666 = vmatpush1.bf16.msra.mxu1 %v12245_v14 }
 0x153   : > { %16379 = vst [vmem:[#allocation14_spill] sm:$0xff] %v13037_v63  ;;  %6165 = vmatprep.mubr.bf16.mxu1 %v5355_v62  ;;  %v5576_v1 = vcombine.low %v13031_v0, %v13037_v63  ;;  %v4397_v29 = vcombine.low %v1994_v2, %v1995_v21  ;;  %v4398_v53 = vcombine.low %v1996_v59, %v13000_v31  ;;  %v5356_v54 = vshrl.u32 %v13005_v7, 16  ;;  %v1541_v62 = vld [vmem:[#allocation2 + $0x74] sm:$0x1] }
 0x154   : > { %v13051_v61 = vrot.slane %v11286_v6, %v12691_v4  ;;  %6166 = vmatmul.mubr.bf16.gmra.mxu1 %v12918_v36  ;;  %v1306_v39 = vrot.slane %v1304_v38, 7  ;;  %v5583_v46 = vrot.slane %v5575_v23, %v12691_v4  ;;  %v13056_v44 = vrot.slane %v4396_v12, %v12691_v4  ;;  %v13068_v6 = vpop.f32.mrf.mxu0 }
 0x155   : > { %v5590_v27 = vrot.slane %v5576_v1, %v12691_v4  ;;  %v13061_v2 = vrot.slane %v4397_v29, %v12691_v4  ;;  %v13064_v21 = vrot.slane %v4398_v53, %v12691_v4  ;;  %v11697_v59 = vadd.f32 %v12992_v35, %v12956_v60  ;;  %v13080_v60 = vld [vmem:[%s16151_s2] ss:$0 sm:$0xff] }
 0x156   : > { %16380 = vst [vmem:[#allocation15_spill] sm:$0xff] %v13051_v61  ;;  %16381 = vst [vmem:[#allocation16_spill] sm:$0xff] %v13056_v44  ;;  %v1309_v38 = vor.u32 %v1307_v11, %v1306_v39  ;;  %v1311_v12 = vrot.slane %v1306_v39, 4  ;;  %v4427_v23 = vcombine.low %v13051_v61, %v13056_v44  ;;  %v5358_v20 = vor.u32 %v5356_v54, %v5354_v30  ;;  %v12246_v30 = vld [vmem:[%s16153_s4 + $0x18] sm:$0xff]  }
 0x157   : > { %16382 = vst [vmem:[#allocation17_spill] sm:$0xff] %v13061_v2  ;;  %16383 = vst [vmem:[#allocation18_spill] sm:$0xff] %v13064_v21  ;;  %v16384_v1 = vmov 0   ;;  %v13073_v29 = vcombine.low %v5583_v46, %v5590_v27  ;;  %v4428_v53 = vcombine.low %v13061_v2, %v13064_v21  ;;  %v867_v35 = vmul.f32 %v13080_v60, %v11697_v59 }
 0x158   : > { %6667 = vmatprep.subr.bf16.mxu1 %v16384_v1  ;;  %v11700_v14 = vadd.f32 %v11699_v13, %v11698_v22  ;;  %v11219_v11 = vld.sshfl [vmem:[#allocation2 + $0x3c] sm:$0x33 pattern:$0x75316420]  ;;  %v1310_v27 = vsel %vm12677_vm9, %v1302_v28, %v1309_v38  ;;  %v1542_v39 = vsel %vm12523_vm2, %v1311_v12, %v1541_v62  ;;  %v4435_v46 = vrot.slane %v4427_v23, %v12691_v4  ;;  %v13098_v13 = vld [vmem:[%s16152_s3] ss:$0 sm:$0xff]  ;;  %v13104_v38 = vpop.f32.mrf.mxu0 }
 0x159   : > { %16385 = vst [vmem:[#allocation19_spill] sm:$0xff] %v13073_v29  ;;  %v2019_v54 = vcombine.high %v13000_v31, %v13000_v31  ;;  %1540 = vst [vmem:[#allocation2 + $0x70] sm:$0xf] %v1310_v27  ;;  %11853 = vmatmul.mubr.bf16.gmra.mxu0 %v13073_v29  ;;  %v4442_v22 = vrot.slane %v4428_v53, %v12691_v4  ;;  %v906_v28 = vadd.f32 %v13098_v13, %v867_v35 }
 0x15a   : > { %1543 = vst [vmem:[#allocation2 + $0x74] sm:$0x1] %v1542_v39  ;;  %v868_v62 = vmul.f32 %v13080_v60, %v11700_v14  ;;  %v2020_v59 = vcombine.high %v13015_v57, %v13015_v57  ;;  %v13107_v12 = vrot.slane %v11218_v17, %v12691_v4  ;;  %v2042_v23 = vcombine.high %v11219_v11, %v11219_v11  ;;  %v12248_v17 = vld [vmem:[%s16153_s4 + $0x10] sm:$0xff]   ;;  %v11704_v29 = vpop.f32.mrf.mxu0 }
 0x15b   : > { %v13110_v53 = vrot.slane %v11219_v11, %v12691_v4  ;;  %v4444_v27 = vcombine.low %v13015_v57, %v2019_v54  ;;  %v16386_v39 = vmov 0.0   ;;  %v13115_v35 = vcombine.low %v4435_v46, %v4442_v22  ;;  %6668 = vmatpush1.bf16.msra.mxu1 %v12246_v30 }
 0x15c   : > { %11856 = vmatprep.mubr.msk.bf16.mxu0 %vm12328_vm5, %v16386_v39  ;;  %v938_v14 = vmax.f32 %v906_v28, 0.0  ;;  %v907_v44 = vadd.f32 %v13098_v13, %v868_v62  ;;  %v2066_v2 = vcombine.high %v11220_v49, %v11220_v49  ;;  %v2056_v21 = vrot.slane %v2042_v23, %v12691_v4  ;;  %6669 = vmatprep.subr.bf16.mxu1 %v16384_v1 }
 0x15d   : > { %16387 = vst [vmem:[#allocation20_spill] sm:$0xff] %v13115_v35  ;;  %v4445_v11 = vcombine.low %v2020_v59, %v13107_v12  ;;  %v13124_v54 = vrot.slane %v4444_v27, %v12691_v4  ;;  %v2057_v46 = vcombine.high %v13110_v53, %v13110_v53  ;;  %v5360_v22 = vshll.u32 %v13115_v35, 16 }
 0x15e   : > { %v11579_v28 = vpack.c.bf16 %v938_v14, %v938_v14  ;;  %v939_v30 = vmax.f32 %v907_v44, 0.0  ;;  %v5364_v62 = vshrl.u32 %v13115_v35, 16  ;;  %v4446_v58 = vcombine.low %v13110_v53, %v2056_v21 }
 0x15f   : > { %16388 = vst [vmem:[#allocation21_spill] sm:$0xff] %v13124_v54  ;;  %v11287_v23 = vcombine.high %v13110_v53, %v2056_v21  ;;  %v13134_v59 = vrot.slane %v4445_v11, %v12691_v4  ;;  %v2058_v27 = vcombine.high %v2056_v21, %v2056_v21  ;;  %v5362_v10 = vrot.slane %v5360_v22, 1  ;;  %6670 = vmatpush1.bf16.msra.mxu1 %v12248_v17  ;;  %v12249_v11 = vld [vmem:[%s16153_s4 + $0x8] sm:$0xff]  }
 0x160   : > { %v1313_v41 = vshrl.u32 %v11579_v28, 16  ;;  %v1316_v61 = vshll.u32 %v11579_v28, 16  ;;  %v11580_v45 = vpack.c.bf16 %v939_v30, %v939_v30  ;;  %v13137_v16 = vrot.slane %v4446_v58, %v12691_v4  ;;  %6671 = vmatprep.subr.bf16.mxu1 %v16384_v1  ;;  %v11705_v30 = vpop.f32.mrf.mxu0 }
 0x161   : > { %16389 = vst [vmem:[#allocation22_spill] sm:$0xff] %v13134_v59  ;;  %v13140_v44 = vrot.slane %v11287_v23, %v12691_v4  ;;  %v4476_v14 = vcombine.low %v13124_v54, %v13134_v59  ;;  %v13145_v52 = vrot.slane %v11220_v49, %v12691_v4  ;;  %v5363_v17 = vsel %vm4010_vm10, %v5358_v20, %v5362_v10  ;;  %v1544_v23 = vld [vmem:[#allocation2 + $0x78] sm:$0xf] }
 0x162   : > { %16390 = vst [vmem:[#allocation23_spill] sm:$0xff] %v13137_v16  ;;  %v1315_v22 = vrot.slane %v1313_v41, 7  ;;  %v1321_v58 = vshrl.u32 %v11580_v45, 16  ;;  %v1324_v28 = vshll.u32 %v11580_v45, 16  ;;  %6173 = vmatprep.mubr.bf16.mxu1 %v5363_v17  ;;  %v5366_v54 = vor.u32 %v5364_v62, %v5362_v10  ;;  %v1548_v45 = vld [vmem:[#allocation2 + $0x80] sm:$0x1] }
 0x163   : > { %16391 = vst [vmem:[#allocation24_spill] sm:$0xff] %v13140_v44  ;;  %v4477_v59 = vcombine.low %v13137_v16, %v13140_v44  ;;  %v4484_v49 = vrot.slane %v4476_v14, %v12691_v4  ;;  %v13156_v9 = vrot.slane %v2066_v2, %v12691_v4  ;;  %6174 = vmatmul.mubr.bf16.gmra.mxu1 %v13005_v7 }
 0x164   : > { %v1318_v15 = vor.u32 %v1316_v61, %v1315_v22  ;;  %v1319_v47 = vrot.slane %v1315_v22, 4  ;;  %v1323_v20 = vrot.slane %v1321_v58, 7  ;;  %v11270_v41 = vcombine.high %v13000_v31, %v13015_v57  ;;  %6672 = vmatpush1.bf16.msra.mxu1 %v12249_v11  ;;  %v12251_v61 = vld [vmem:[%s16153_s4] sm:$0xff]  }
 0x165   : > { %v4491_v17 = vrot.slane %v4477_v59, %v12691_v4  ;;  %v3226_v16 = vcombine.low %v13107_v12, %v13110_v53  ;;  %v3227_v44 = vcombine.low %v2056_v21, %v2057_v46  ;;  %v3273_v10 = vcombine.low %v2058_v27, %v13145_v52  ;;  %v11221_v57 = vld.sshfl [vmem:[#allocation2 + $0x44] sm:$0x1 pattern:$0x75316420]  ;;  %v13173_v59 = vpop.f32.mrf.mxu0  ;;  %6673 = vmatprep.subr.bf16.mxu1 %v16384_v1  ;;  %v12253_v27 = vld [vmem:[%s16153_s4 + $0x98] sm:$0xff]  }
 0x166   : > { %v1545_v2 = vsel %vm12667_vm7, %v1318_v15, %v1544_v23  ;;  %v1326_v62 = vor.u32 %v1324_v28, %v1323_v20  ;;  %v1328_v14 = vrot.slane %v1323_v20, 4  ;;  %v13171_v31 = vrot.slane %v11270_v41, %v12691_v4  ;;  %v11222_v46 = vld.sshfl [vmem:[#allocation2 + $0x48] sm:$0x33 pattern:$0x75316420]  ;;  %11933 = vmatpush3.bf16.msra.mxu0 %v12253_v27 }
 0x167   : > { %1546 = vst [vmem:[#allocation2 + $0x78] sm:$0xf] %v1545_v2  ;;  %v13176_v21 = vcombine.low %v4484_v49, %v4491_v17  ;;  %v13179_v12 = vrot.slane %v3226_v16, %v12691_v4  ;;  %v13182_v53 = vrot.slane %v3227_v44, %v12691_v4  ;;  %v13185_v15 = vrot.slane %v3273_v10, %v12691_v4  ;;  %v11708_v20 = vpop.f32.mrf.mxu0 }
 0x168   : > { %v1327_v11 = vsel %vm12677_vm9, %v1319_v47, %v1326_v62  ;;  %v1549_v22 = vsel %vm12523_vm2, %v1328_v14, %v1548_v45  ;;  %v11703_v16 = vadd.f32 %v13104_v38, %v13068_v6  ;;  %v11706_v58 = vadd.f32 %v11705_v30, %v11704_v29  ;;  %6674 = vmatpush1.bf16.msra.mxu1 %v12251_v61  ;;  %v12252_v47 = vld [vmem:[%s16153_s4 + $0x78] sm:$0xff]  }
 0x169   : > { %16392 = vst [vmem:[#allocation25_spill] sm:$0xff] %v13176_v21  ;;  %16393 = vst [vmem:[#allocation26_spill] sm:$0xff] %v13185_v15  ;;  %v5368_v44 = vshll.u32 %v13176_v21, 16  ;;  %v5592_v28 = vcombine.low %v13171_v31, %v13179_v12  ;;  %v5593_v23 = vcombine.low %v13182_v53, %v13185_v15  ;;  %v2096_v49 = vrot.slane %v11221_v57, %v12691_v4 }
 0x16a   : > { %1547 = vst [vmem:[#allocation2 + $0x7c] sm:$0xf] %v1327_v11  ;;  %1550 = vst [vmem:[#allocation2 + $0x80] sm:$0x1] %v1549_v22  ;;  %v869_v6 = vmul.f32 %v13080_v60, %v11703_v16  ;;  %v870_v29 = vmul.f32 %v13080_v60, %v11706_v58  ;;  %v2104_v38 = vcombine.high %v11222_v46, %v11222_v46  ;;  %6675 = vmatprep.subr.bf16.mxu1 %v16384_v1 }
 0x16b   : > { %v13208_v30 = vrot.slane %v11222_v46, %v12691_v4  ;;  %v5370_v41 = vrot.slane %v5368_v44, 1  ;;  %v5600_v45 = vrot.slane %v5592_v28, %v12691_v4  ;;  %v5607_v17 = vrot.slane %v5593_v23, %v12691_v4  ;;  %11934 = vmatprep.subr.bf16.mxu0 %v16386_v39  ;;  %v11710_v28 = vpop.f32.mrf.mxu0 }
 0x16c   : > { %v4493_v10 = vcombine.low %v13145_v52, %v13156_v9  ;;  %v908_v61 = vadd.f32 %v13098_v13, %v869_v6  ;;  %v909_v2 = vadd.f32 %v13098_v13, %v870_v29  ;;  %v13219_v62 = vrot.slane %v2104_v38, %v12691_v4  ;;  %6676 = vmatpush2.bf16.msra.mxu1 %v12252_v47 }
 0x16d   : > { %v2119_v14 = vcombine.high %v13208_v30, %v13208_v30  ;;  %v5371_v57 = vsel %vm4010_vm10, %v5366_v54, %v5370_v41  ;;  %v13224_v46 = vcombine.low %v5600_v45, %v5607_v17  ;;  %v11288_v27 = vcombine.high %v13145_v52, %v13156_v9  ;;  %6677 = vmatprep.subr.bf16.mxu1 %v16384_v1 }
 0x16e   : > { %v4495_v11 = vcombine.low %v2096_v49, %v13208_v30  ;;  %6181 = vmatprep.mubr.bf16.mxu1 %v5371_v57  ;;  %v940_v22 = vmax.f32 %v908_v61, 0.0  ;;  %v941_v16 = vmax.f32 %v909_v2, 0.0  ;;  %v13231_v44 = vrot.slane %v4493_v10, %v12691_v4 }
 0x16f   : > { %16394 = vst [vmem:[#allocation27_spill] sm:$0xff] %v13224_v46  ;;  %v4496_v58 = vcombine.low %v13219_v62, %v2119_v14  ;;  %11857 = vmatmul.mubr.bf16.gmra.mxu0 %v13224_v46  ;;  %6182 = vmatmul.mubr.bf16.gmra.mxu1 %v13115_v35  ;;  %v13237_v54 = vrot.slane %v11288_v27, %v12691_v4  ;;  %v5372_v47 = vshrl.u32 %v13176_v21, 16  ;;  %v1555_v46 = vld [vmem:[#allocation2 + $0x8c] sm:$0x1] }
 0x170   : > { %16395 = vst [vmem:[#allocation28_spill] sm:$0xff] %v13231_v44  ;;  %v13240_v23 = vrot.slane %v4495_v11, %v12691_v4  ;;  %v2081_v6 = vcombine.high %v13145_v52, %v13145_v52  ;;  %v11581_v29 = vpack.c.bf16 %v940_v22, %v940_v22  ;;  %v11582_v38 = vpack.c.bf16 %v941_v16, %v941_v16  ;;  %v11711_v22 = vpop.f32.mrf.mxu0  ;;  %v12254_v16 = vld [vmem:[%s16153_s4 + $0x70] sm:$0xff]  }
 0x171   : > { %16396 = vst [vmem:[#allocation29_spill] sm:$0xff] %v13237_v54  ;;  %v13246_v45 = vrot.slane %v4496_v58, %v12691_v4  ;;  %11860 = vmatprep.mubr.msk.bf16.mxu0 %vm12328_vm5, %v16386_v39  ;;  %v2082_v17 = vcombine.high %v13156_v9, %v13156_v9  ;;  %v4525_v10 = vcombine.low %v13231_v44, %v13237_v54  ;;  %v1551_v44 = vld [vmem:[#allocation2 + $0x84] sm:$0xf] }
 0x172   : > { %16397 = vst [vmem:[#allocation30_spill] sm:$0xff] %v13240_v23  ;;  %v5374_v61 = vor.u32 %v5372_v47, %v5370_v41  ;;  %v3274_v2 = vcombine.low %v13156_v9, %v2081_v6  ;;  %v3276_v52 = vcombine.low %v13208_v30, %v13219_v62  ;;  %v1330_v14 = vshrl.u32 %v11581_v29, 16  ;;  %6678 = vmatpush2.bf16.msra.mxu1 %v12254_v16 }
 0x173   : > { %16398 = vst [vmem:[#allocation31_spill] sm:$0xff] %v13246_v45  ;;  %v1333_v57 = vshll.u32 %v11581_v29, 16  ;;  %v1338_v27 = vshrl.u32 %v11582_v38, 16  ;;  %v1341_v11 = vshll.u32 %v11582_v38, 16  ;;  %v4526_v58 = vcombine.low %v13240_v23, %v13246_v45  ;;  %6679 = vmatprep.subr.bf16.mxu1 %v16384_v1  ;;  %v1558_v45 = vld [vmem:[#allocation2 + $0x90] sm:$0xf] }
 0x174   : > { %v4533_v54 = vrot.slane %v4525_v10, %v12691_v4  ;;  %v3275_v41 = vcombine.low %v2082_v17, %v2096_v49  ;;  %v13264_v9 = vrot.slane %v3274_v2, %v12691_v4  ;;  %v1332_v47 = vrot.slane %v1330_v14, 7 }
 0x175   : > { %v1340_v6 = vrot.slane %v1338_v27, 7  ;;  %v13267_v29 = vrot.slane %v3276_v52, %v12691_v4  ;;  %v11271_v38 = vcombine.high %v13208_v30, %v13219_v62  ;;  %v4540_v35 = vrot.slane %v4526_v58, %v12691_v4 }
 0x176   : > { %16399 = vst [vmem:[#allocation32_spill] sm:$0xff] %v13264_v9  ;;  %v13273_v23 = vrot.slane %v3275_v41, %v12691_v4  ;;  %v11709_v49 = vadd.f32 %v11708_v20, %v13173_v59  ;;  %v11712_v17 = vadd.f32 %v11711_v22, %v11710_v28  ;;  %v1335_v10 = vor.u32 %v1333_v57, %v1332_v47  ;;  %v11223_v41 = vld.sshfl [vmem:[#allocation2 + $0x4c] sm:$0x33 pattern:$0x75316420] }
 0x177   : > { %16400 = vst [vmem:[#allocation33_spill] sm:$0xff] %v13267_v29  ;;  %v1336_v2 = vrot.slane %v1332_v47, 4  ;;  %v1343_v52 = vor.u32 %v1341_v11, %v1340_v6  ;;  %v1345_v14 = vrot.slane %v1340_v6, 4  ;;  %v13277_v27 = vcombine.low %v4533_v54, %v4540_v35 }
 0x178   : > { %16401 = vst [vmem:[#allocation34_spill] sm:$0xff] %v13273_v23  ;;  %v13280_v30 = vrot.slane %v11271_v38, %v12691_v4  ;;  %v5609_v16 = vcombine.low %v13264_v9, %v13273_v23  ;;  %v871_v58 = vmul.f32 %v13080_v60, %v11709_v49  ;;  %v1552_v59 = vsel %vm12667_vm7, %v1335_v10, %v1551_v44  ;;  %v11224_v54 = vld.sshfl [vmem:[#allocation2 + $0x50] sm:$0x1 pattern:$0x75316420] }
 0x179   : > { %16402 = vst [vmem:[#allocation35_spill] sm:$0xff] %v13277_v27  ;;  %v1344_v20 = vsel %vm12677_vm9, %v1336_v2, %v1343_v52  ;;  %v1556_v28 = vsel %vm12523_vm2, %v1345_v14, %v1555_v46  ;;  %v872_v35 = vmul.f32 %v13080_v60, %v11712_v17  ;;  %1553 = vst [vmem:[#allocation2 + $0x84] sm:$0xf] %v1552_v59  ;;  %v5376_v57 = vshll.u32 %v13277_v27, 16 }
 0x17a   : > { %16403 = vst [vmem:[#allocation36_spill] sm:$0xff] %v13280_v30  ;;  %1554 = vst [vmem:[#allocation2 + $0x88] sm:$0xf] %v1344_v20  ;;  %v5610_v11 = vcombine.low %v13267_v29, %v13280_v30  ;;  %v5617_v22 = vrot.slane %v5609_v16, %v12691_v4  ;;  %v910_v44 = vadd.f32 %v13098_v13, %v871_v58  ;;  %v1562_v30 = vld [vmem:[#allocation2 + $0x98] sm:$0x1] }
 0x17b   : > { %1557 = vst [vmem:[#allocation2 + $0x8c] sm:$0x1] %v1556_v28  ;;  %v11225_v47 = vld.sshfl [vmem:[#allocation2 + $0x54] sm:$0x33 pattern:$0x75316420]  ;;  %v911_v6 = vadd.f32 %v13098_v13, %v872_v35  ;;  %v2120_v46 = vcombine.high %v13219_v62, %v13219_v62  ;;  %v2128_v38 = vcombine.high %v11223_v41, %v11223_v41  ;;  %v2135_v49 = vrot.slane %v11223_v41, %v12691_v4  ;;  %v11713_v41 = vpop.f32.mrf.mxu0 }
 0x17c   : > { %v5378_v17 = vrot.slane %v5376_v57, 1  ;;  %v5624_v10 = vrot.slane %v5610_v11, %v12691_v4  ;;  %v942_v2 = vmax.f32 %v910_v44, 0.0  ;;  %v2158_v52 = vrot.slane %v11224_v54, %v12691_v4  ;;  %v11226_v23 = vld.sshfl [vmem:[#allocation2 + $0x58] sm:$0x33 pattern:$0x75316420] }
 0x17d   : > { %v943_v14 = vmax.f32 %v911_v6, 0.0  ;;  %v2142_v16 = vrot.slane %v2128_v38, %v12691_v4  ;;  %v2143_v59 = vcombine.high %v2135_v49, %v2135_v49  ;;  %v2166_v58 = vcombine.high %v11225_v47, %v11225_v47 }
 0x17e   : > { %v5379_v20 = vsel %vm4010_vm10, %v5374_v61, %v5378_v17  ;;  %v13305_v28 = vcombine.low %v5617_v22, %v5624_v10  ;;  %v11583_v35 = vpack.c.bf16 %v942_v2, %v942_v2  ;;  %v13308_v62 = vrot.slane %v11225_v47, %v12691_v4 }
 0x17f   : > { %6189 = vmatprep.mubr.bf16.mxu1 %v5379_v20  ;;  %v11584_v57 = vpack.c.bf16 %v943_v14, %v943_v14  ;;  %v2144_v11 = vcombine.high %v2142_v16, %v2142_v16  ;;  %v13311_v44 = vrot.slane %v2166_v58, %v12691_v4  ;;  %v4542_v54 = vcombine.low %v2120_v46, %v2135_v49 }
 0x180   : > { %16404 = vst [vmem:[#allocation37_spill] sm:$0xff] %v13305_v28  ;;  %11861 = vmatmul.mubr.bf16.gmra.mxu0 %v13305_v28  ;;  %v1347_v6 = vshrl.u32 %v11583_v35, 16  ;;  %v1350_v38 = vshll.u32 %v11583_v35, 16  ;;  %6190 = vmatmul.mubr.bf16.gmra.mxu1 %v13176_v21  ;;  %v4543_v61 = vcombine.low %v2142_v16, %v2143_v59  ;;  %v5380_v22 = vshrl.u32 %v13277_v27, 16  ;;  %v11714_v59 = vpop.f32.mrf.mxu0 }
 0x181   : > { %v1355_v10 = vshrl.u32 %v11584_v57, 16  ;;  %v1358_v47 = vshll.u32 %v11584_v57, 16  ;;  %v4544_v2 = vcombine.low %v2144_v11, %v2158_v52  ;;  %v4545_v14 = vcombine.low %v13308_v62, %v13311_v44  ;;  %11864 = vmatprep.mubr.msk.bf16.mxu0 %vm12328_vm5, %v16386_v39 }
 0x182   : > { %v1349_v58 = vrot.slane %v1347_v6, 7  ;;  %v13321_v46 = vrot.slane %v4542_v54, %v12691_v4  ;;  %v13324_v20 = vrot.slane %v4543_v61, %v12691_v4  ;;  %v13326_v35 = vor.u32 %v5380_v22, %v5378_v17  ;;  %v1015_v22 = vld [vmem:[#allocation2 + $0x9c] sm:$0x1] }
 0x183   : > { %v1357_v28 = vrot.slane %v1355_v10, 7  ;;  %v13329_v57 = vrot.slane %v4544_v2, %v12691_v4  ;;  %v13332_v11 = vrot.slane %v4545_v14, %v12691_v4  ;;  %v2181_v6 = vcombine.high %v13308_v62, %v13308_v62 }
 0x184   : > { %16405 = vst [vmem:[#allocation38_spill] sm:$0xff] %v13321_v46  ;;  %16406 = vst [vmem:[#allocation39_spill] sm:$0xff] %v13324_v20  ;;  %v1352_v21 = vor.u32 %v1350_v38, %v1349_v58  ;;  %v1353_v54 = vrot.slane %v1349_v58, 4  ;;  %v4574_v61 = vcombine.low %v13321_v46, %v13324_v20  ;;  %v3323_v17 = vcombine.low %v2135_v49, %v2142_v16  ;;  %v11716_v20 = vpop.f32.mrf.mxu0 }
 0x185   : > { %16407 = vst [vmem:[#allocation40_spill] sm:$0xff] %v13329_v57  ;;  %16408 = vst [vmem:[#allocation41_spill] sm:$0xff] %v13332_v11  ;;  %v1360_v15 = vor.u32 %v1358_v47, %v1357_v28  ;;  %v1362_v9 = vrot.slane %v1357_v28, 4  ;;  %v4575_v10 = vcombine.low %v13329_v57, %v13332_v11  ;;  %v11272_v2 = vcombine.high %v2135_v49, %v2142_v16 }
 0x186   : > { %v1559_v14 = vsel %vm12667_vm7, %v1352_v21, %v1558_v45  ;;  %v4582_v29 = vrot.slane %v4574_v61, %v12691_v4  ;;  %v3325_v38 = vcombine.low %v2158_v52, %v13308_v62  ;;  %v13345_v58 = vrot.slane %v3323_v17, %v12691_v4  ;;  %v11227_v46 = vld.sshfl [vmem:[#allocation2 + $0x5c] sm:$0x1 pattern:$0x75316420] }
 0x187   : > { %1560 = vst [vmem:[#allocation2 + $0x90] sm:$0xf] %v1559_v14  ;;  %v1361_v28 = vsel %vm12677_vm9, %v1353_v54, %v1360_v15  ;;  %v1563_v49 = vsel %vm12523_vm2, %v1362_v9, %v1562_v30  ;;  %v4589_v16 = vrot.slane %v4575_v10, %v12691_v4  ;;  %v13353_v21 = vrot.slane %v11272_v2, %v12691_v4  ;;  %v13355_v45 = vld.sshfl [vmem:[#allocation2 + $0x60] sm:$0x33 pattern:$0x75316420] }
 0x188   : > { %16409 = vst [vmem:[#allocation42_spill] sm:$0xff] %v13345_v58  ;;  %1561 = vst [vmem:[#allocation2 + $0x94] sm:$0xf] %v1361_v28  ;;  %v13358_v52 = vrot.slane %v3325_v38, %v12691_v4  ;;  %v3371_v47 = vcombine.low %v13311_v44, %v2181_v6  ;;  %v11715_v61 = vadd.f32 %v11714_v59, %v11713_v41  ;;  %v1016_v15 = vsel %vm12523_vm2, 0, %v1015_v22  ;;  %v12255_v10 = vld [vmem:[%s16153_s4 + $0x68] sm:$0xff]   ;;  %v12256_v41 = vld [vmem:[%s16153_s4 + $0x90] sm:$0xff]  }
 0x189   : > { %16410 = vst [vmem:[#allocation43_spill] sm:$0xff] %v13353_v21  ;;  %1564 = vst [vmem:[#allocation2 + $0x98] sm:$0x1] %v1563_v49  ;;  %v13363_v54 = vcombine.low %v4582_v29, %v4589_v16  ;;  %v5626_v9 = vcombine.low %v13345_v58, %v13353_v21  ;;  %v2190_v30 = vcombine.high %v11226_v23, %v11226_v23  ;;  %6680 = vmatpush2.bf16.msra.mxu1 %v12255_v10 }
 0x18a   : > { %16411 = vst [vmem:[#allocation44_spill] sm:$0xff] %v13358_v52  ;;  %1017 = vst [vmem:[#allocation2 + $0x9c] sm:$0x1] %v1016_v15  ;;  %v2197_v17 = vrot.slane %v11226_v23, %v12691_v4  ;;  %v13375_v59 = vrot.slane %v3371_v47, %v12691_v4  ;;  %v873_v29 = vmul.f32 %v13080_v60, %v11715_v61  ;;  %v11717_v23 = vpop.f32.mrf.mxu0  ;;  %11935 = vmatpush3.bf16.msra.mxu0 %v12256_v41 }
 0x18b   : > { %16412 = vst [vmem:[#allocation45_spill] sm:$0xff] %v13363_v54  ;;  %v2220_v6 = vrot.slane %v11227_v46, %v12691_v4  ;;  %v13381_v22 = vrot.slane %v13355_v45, %v12691_v4  ;;  %v5384_v2 = vshll.u32 %v13363_v54, 16  ;;  %v5634_v14 = vrot.slane %v5626_v9, %v12691_v4  ;;  %6681 = vmatprep.subr.bf16.mxu1 %v16384_v1 }
 0x18c   : > { %16413 = vst [vmem:[#allocation46_spill] sm:$0xff] %v13375_v59  ;;  %v2204_v38 = vrot.slane %v2190_v30, %v12691_v4  ;;  %v11289_v28 = vcombine.high %v13308_v62, %v13311_v44  ;;  %v5627_v49 = vcombine.low %v13358_v52, %v13375_v59  ;;  %v912_v46 = vadd.f32 %v13098_v13, %v873_v29  ;;  %v1065_v30 = vld [vmem:[#allocation2 + $0xa4] sm:$0x1]  ;;  %v11719_v11 = vpop.f32.mrf.mxu0 }
 0x18d   : > { %v4594_v16 = vcombine.low %v2220_v6, %v13381_v22  ;;  %v5388_v47 = vshrl.u32 %v13363_v54, 16  ;;  %11936 = vmatprep.subr.bf16.mxu0 %v16386_v39  ;;  %v5386_v61 = vrot.slane %v5384_v2, 1  ;;  %v11718_v57 = vadd.f32 %v11717_v23, %v11716_v20 }
 0x18e   : > { %v4592_v15 = vcombine.low %v2197_v17, %v2204_v38  ;;  %v11290_v9 = vcombine.high %v2197_v17, %v2204_v38  ;;  %v13396_v62 = vrot.slane %v11289_v28, %v12691_v4  ;;  %v5641_v10 = vrot.slane %v5627_v49, %v12691_v4 }
 0x18f   : > { %v944_v41 = vmax.f32 %v912_v46, 0.0  ;;  %v13400_v29 = vrot.slane %v4594_v16, %v12691_v4  ;;  %v5387_v59 = vsel %vm4010_vm10, %v13326_v35, %v5386_v61  ;;  %v5390_v28 = vor.u32 %v5388_v47, %v5386_v61 }
 0x190   : > { %16414 = vst [vmem:[#allocation47_spill] sm:$0xff] %v13396_v62  ;;  %v13405_v58 = vrot.slane %v4592_v15, %v12691_v4  ;;  %v13408_v2 = vrot.slane %v11290_v9, %v12691_v4  ;;  %6197 = vmatprep.mubr.bf16.mxu1 %v5387_v59  ;;  %v13410_v21 = vcombine.low %v5634_v14, %v5641_v10  ;;  %v1066_v20 = vsel %vm12531_vm4, 0, %v1065_v30  ;;  %v11720_v9 = vpop.f32.mrf.mxu0 }
 0x191   : > { %16415 = vst [vmem:[#allocation48_spill] sm:$0xff] %v13400_v29  ;;  %v11585_v49 = vpack.c.bf16 %v944_v41, %v944_v41  ;;  %v874_v46 = vmul.f32 %v13080_v60, %v11718_v57  ;;  %6198 = vmatmul.mubr.bf16.gmra.mxu1 %v13277_v27  ;;  %1067 = vst [vmem:[#allocation2 + $0xa4] sm:$0x1] %v1066_v20  ;;  %v2182_v59 = vcombine.high %v13311_v44, %v13311_v44  ;;  %v12257_v57 = vld [vmem:[%s16153_s4 + $0x60] sm:$0xff]  }
 0x192   : > { %16416 = vst [vmem:[#allocation49_spill] sm:$0xff] %v13405_v58  ;;  %16417 = vst [vmem:[#allocation50_spill] sm:$0xff] %v13408_v2  ;;  %v4623_v35 = vcombine.low %v13396_v62, %v13405_v58  ;;  %v4624_v23 = vcombine.low %v13408_v2, %v13400_v29  ;;  %v2205_v14 = vcombine.high %v2197_v17, %v2197_v17  ;;  %11865 = vmatmul.mubr.bf16.gmra.mxu0 %v13410_v21 }
 0x193   : > { %16418 = vst [vmem:[#allocation51_spill] sm:$0xff] %v13410_v21  ;;  %v1364_v16 = vshrl.u32 %v11585_v49, 16  ;;  %v1367_v47 = vshll.u32 %v11585_v49, 16  ;;  %v913_v61 = vadd.f32 %v13098_v13, %v874_v46  ;;  %v2206_v15 = vcombine.high %v2204_v38, %v2204_v38  ;;  %11868 = vmatprep.mubr.msk.bf16.mxu0 %vm12328_vm5, %v16386_v39  ;;  %6682 = vmatpush2.bf16.msra.mxu1 %v12257_v57  ;;  %v1565_v49 = vld [vmem:[#allocation2 + $0x9c] sm:$0xf] }
 0x194   : > { %v4631_v30 = vrot.slane %v4623_v35, %v12691_v4  ;;  %v4638_v10 = vrot.slane %v4624_v23, %v12691_v4  ;;  %v2228_v44 = vcombine.high %v13355_v45, %v13355_v45  ;;  %v3372_v41 = vcombine.low %v2182_v59, %v2197_v17  ;;  %6683 = vmatprep.subr.bf16.mxu1 %v16384_v1 }
 0x195   : > { %v1366_v20 = vrot.slane %v1364_v16, 7  ;;  %v945_v58 = vmax.f32 %v913_v61, 0.0  ;;  %v3373_v2 = vcombine.low %v2204_v38, %v2205_v14  ;;  %v3374_v29 = vcombine.low %v2206_v15, %v2220_v6  ;;  %v1018_v6 = vld [vmem:[#allocation2 + $0xa8] sm:$0x1] }
 0x196   : > { %v13433_v46 = vcombine.low %v4631_v30, %v4638_v10  ;;  %v13436_v62 = vrot.slane %v2228_v44, %v12691_v4  ;;  %v13439_v35 = vrot.slane %v3372_v41, %v12691_v4  ;;  %v11721_v23 = vadd.f32 %v11720_v9, %v11719_v11  ;;  %v11722_v11 = vpop.f32.mrf.mxu0  ;;  %v11229_v15 = vld.sshfl [vmem:[#allocation2 + $0x64] sm:$0x33 pattern:$0x75316420] }
 0x197   : > { %v1369_v21 = vor.u32 %v1367_v47, %v1366_v20  ;;  %v1370_v45 = vrot.slane %v1366_v20, 4  ;;  %v11586_v17 = vpack.c.bf16 %v945_v58, %v945_v58  ;;  %v13443_v59 = vrot.slane %v3373_v2, %v12691_v4  ;;  %v11230_v44 = vld.sshfl [vmem:[#allocation2 + $0x68] sm:$0x1 pattern:$0x75316420] }
 0x198   : > { %16419 = vst [vmem:[#allocation52_spill] sm:$0xff] %v13433_v46  ;;  %16420 = vst [vmem:[#allocation53_spill] sm:$0xff] %v13439_v35  ;;  %v5392_v38 = vshll.u32 %v13433_v46, 16  ;;  %v13447_v14 = vrot.slane %v3374_v29, %v12691_v4  ;;  %v3420_v57 = vcombine.low %v13381_v22, %v13436_v62  ;;  %v875_v16 = vmul.f32 %v13080_v60, %v11721_v23 }
 0x199   : > { %16421 = vst [vmem:[#allocation54_spill] sm:$0xff] %v13443_v59  ;;  %v1566_v47 = vsel %vm12667_vm7, %v1369_v21, %v1565_v49  ;;  %v1372_v61 = vshrl.u32 %v11586_v17, 16  ;;  %v1375_v58 = vshll.u32 %v11586_v17, 16  ;;  %v5643_v2 = vcombine.low %v13439_v35, %v13443_v59  ;;  %v1569_v17 = vld [vmem:[#allocation2 + $0xa4] sm:$0x1] }
 0x19a   : > { %16422 = vst [vmem:[#allocation55_spill] sm:$0xff] %v13447_v14  ;;  %1567 = vst [vmem:[#allocation2 + $0x9c] sm:$0xf] %v1566_v47  ;;  %v5394_v9 = vrot.slane %v5392_v38, 1  ;;  %v13457_v29 = vrot.slane %v3420_v57, %v12691_v4  ;;  %v914_v30 = vadd.f32 %v13098_v13, %v875_v16  ;;  %v1019_v10 = vsel %vm12523_vm2, 0, %v1018_v6  ;;  %v11723_v6 = vpop.f32.mrf.mxu0 }
 0x19b   : > { %v1374_v41 = vrot.slane %v1372_v61, 7  ;;  %v5651_v21 = vrot.slane %v5643_v2, %v12691_v4  ;;  %1020 = vst [vmem:[#allocation2 + $0xa8] sm:$0x1] %v1019_v10  ;;  %v2243_v20 = vcombine.high %v13381_v22, %v13381_v22  ;;  %v2244_v49 = vcombine.high %v13436_v62, %v13436_v62 }
 0x19c   : > { %16423 = vst [vmem:[#allocation56_spill] sm:$0xff] %v13457_v29  ;;  %v5395_v23 = vsel %vm4010_vm10, %v5390_v28, %v5394_v9  ;;  %v5644_v38 = vcombine.low %v13447_v14, %v13457_v29  ;;  %v946_v57 = vmax.f32 %v914_v30, 0.0  ;;  %v2252_v16 = vcombine.high %v11229_v15, %v11229_v15  ;;  %v11725_v29 = vpop.f32.mrf.mxu0 }
 0x19d   : > { %6205 = vmatprep.mubr.bf16.mxu1 %v5395_v23  ;;  %v1377_v47 = vor.u32 %v1375_v58, %v1374_v41  ;;  %v1379_v61 = vrot.slane %v1374_v41, 4  ;;  %v13471_v2 = vrot.slane %v11229_v15, %v12691_v4  ;;  %v13474_v10 = vrot.slane %v11230_v44, %v12691_v4  ;;  %v1068_v41 = vld [vmem:[#allocation2 + $0xb0] sm:$0x1] }
 0x19e   : > { %v5658_v27 = vrot.slane %v5644_v38, %v12691_v4  ;;  %v11587_v35 = vpack.c.bf16 %v946_v57, %v946_v57  ;;  %6206 = vmatmul.mubr.bf16.gmra.mxu1 %v13363_v54  ;;  %v2266_v28 = vrot.slane %v2252_v16, %v12691_v4  ;;  %v4640_v30 = vcombine.low %v13436_v62, %v2243_v20  ;;  %v11231_v38 = vld.sshfl [vmem:[#allocation2 + $0x6c] sm:$0x33 pattern:$0x75316420] }
 0x19f   : > { %v1378_v23 = vsel %vm12677_vm9, %v1370_v45, %v1377_v47  ;;  %v1570_v58 = vsel %vm12523_vm2, %v1379_v61, %v1569_v17  ;;  %v2267_v15 = vcombine.high %v13471_v2, %v13471_v2  ;;  %v4641_v44 = vcombine.low %v2244_v49, %v13471_v2  ;;  %v12258_v45 = vld [vmem:[%s16153_s4 + $0x58] sm:$0xff]   ;;  %v12259_v17 = vld [vmem:[%s16153_s4 + $0x88] sm:$0xff]  }
 0x1a0   : > { %1568 = vst [vmem:[#allocation2 + $0xa0] sm:$0xf] %v1378_v23  ;;  %1571 = vst [vmem:[#allocation2 + $0xa4] sm:$0x1] %v1570_v58  ;;  %v13487_v57 = vcombine.low %v5651_v21, %v5658_v27  ;;  %v1381_v16 = vshrl.u32 %v11587_v35, 16  ;;  %v1384_v54 = vshll.u32 %v11587_v35, 16  ;;  %v2268_v20 = vcombine.high %v2266_v28, %v2266_v28  ;;  %6684 = vmatpush2.bf16.msra.mxu1 %v12258_v45  ;;  %v11726_v45 = vpop.f32.mrf.mxu0 }
 0x1a1   : > { %v4642_v47 = vcombine.low %v2266_v28, %v2267_v15  ;;  %v13496_v49 = vrot.slane %v4640_v30, %v12691_v4  ;;  %v13499_v61 = vrot.slane %v4641_v44, %v12691_v4  ;;  %v5396_v27 = vshrl.u32 %v13433_v46, 16  ;;  %11937 = vmatpush3.bf16.msra.mxu0 %v12259_v17  ;;  %6685 = vmatprep.subr.bf16.mxu1 %v16384_v1 }
 0x1a2   : > { %16424 = vst [vmem:[#allocation57_spill] sm:$0xff] %v13487_v57  ;;  %11869 = vmatmul.mubr.bf16.gmra.mxu0 %v13487_v57  ;;  %v13503_v35 = vrot.slane %v1381_v16, 7  ;;  %v4643_v21 = vcombine.low %v2268_v20, %v13474_v10  ;;  %v11724_v23 = vadd.f32 %v11723_v6, %v11722_v11  ;;  %v1069_v58 = vsel %vm12531_vm4, 0, %v1068_v41  ;;  %v1572_v15 = vld [vmem:[#allocation2 + $0xa8] sm:$0xf]  ;;  %11938 = vmatprep.subr.bf16.mxu0 %v16386_v39 }
 0x1a3   : > { %16425 = vst [vmem:[#allocation58_spill] sm:$0xff] %v13496_v49  ;;  %16426 = vst [vmem:[#allocation59_spill] sm:$0xff] %v13499_v61  ;;  %v13509_v30 = vrot.slane %v4642_v47, %v12691_v4  ;;  %v4672_v44 = vcombine.low %v13496_v49, %v13499_v61  ;;  %v13513_v59 = vor.u32 %v5396_v27, %v5394_v9  ;;  %11872 = vmatprep.mubr.msk.bf16.mxu0 %vm12328_vm5, %v16386_v39 }
 0x1a4   : > { %1070 = vst [vmem:[#allocation2 + $0xb0] sm:$0x1] %v1069_v58  ;;  %v2290_v16 = vcombine.high %v11231_v38, %v11231_v38  ;;  %v1386_v11 = vor.u32 %v1384_v54, %v13503_v35  ;;  %v13520_v41 = vrot.slane %v4643_v21, %v12691_v4  ;;  %v876_v20 = vmul.f32 %v13080_v60, %v11724_v23  ;;  %v1021_v58 = vld [vmem:[#allocation2 + $0xb4] sm:$0x1] }
 0x1a5   : > { %16427 = vst [vmem:[#allocation60_spill] sm:$0xff] %v13509_v30  ;;  %v4680_v9 = vrot.slane %v4672_v44, %v12691_v4  ;;  %v13526_v47 = vrot.slane %v11231_v38, %v12691_v4  ;;  %v11273_v54 = vcombine.high %v13381_v22, %v13436_v62  ;;  %v3422_v38 = vcombine.low %v13471_v2, %v2266_v28  ;;  %v11232_v44 = vld.sshfl [vmem:[#allocation2 + $0x70] sm:$0x33 pattern:$0x75316420] }
 0x1a6   : > { %16428 = vst [vmem:[#allocation61_spill] sm:$0xff] %v13520_v41  ;;  %v13529_v27 = vrot.slane %v2290_v16, %v12691_v4  ;;  %v1573_v21 = vsel %vm12667_vm7, %v1386_v11, %v1572_v15  ;;  %v4673_v17 = vcombine.low %v13509_v30, %v13520_v41  ;;  %v915_v23 = vadd.f32 %v13098_v13, %v876_v20 }
 0x1a7   : > { %1574 = vst [vmem:[#allocation2 + $0xa8] sm:$0xf] %v1573_v21  ;;  %v11274_v16 = vcombine.high %v13471_v2, %v2266_v28  ;;  %v13542_v6 = vrot.slane %v11273_v54, %v12691_v4  ;;  %v3469_v22 = vcombine.low %v13474_v10, %v13526_v47  ;;  %v11727_v62 = vadd.f32 %v11726_v45, %v11725_v29  ;;  %v12260_v29 = vld [vmem:[%s16153_s4 + $0x50] sm:$0xff]  }
 0x1a8   : > { %v4687_v15 = vrot.slane %v4673_v17, %v12691_v4  ;;  %v947_v11 = vmax.f32 %v915_v23, 0.0  ;;  %v13548_v61 = vrot.slane %v3422_v38, %v12691_v4  ;;  %v1022_v20 = vsel %vm12523_vm2, 0, %v1021_v58  ;;  %v11728_v17 = vpop.f32.mrf.mxu0  ;;  %6686 = vmatpush2.bf16.msra.mxu1 %v12260_v29 }
 0x1a9   : > { %16429 = vst [vmem:[#allocation62_spill] sm:$0xff] %v13542_v6  ;;  %v13553_v21 = vrot.slane %v11274_v16, %v12691_v4  ;;  %v13556_v2 = vrot.slane %v3469_v22, %v12691_v4  ;;  %v877_v28 = vmul.f32 %v13080_v60, %v11727_v62  ;;  %1023 = vst [vmem:[#allocation2 + $0xb4] sm:$0x1] %v1022_v20  ;;  %6687 = vmatprep.subr.bf16.mxu1 %v16384_v1 }
 0x1aa   : > { %16430 = vst [vmem:[#allocation63_spill] sm:$0xff] %v13548_v61  ;;  %v2314_v10 = vcombine.high %v11232_v44, %v11232_v44  ;;  %v13562_v45 = vcombine.low %v4680_v9, %v4687_v15  ;;  %v11588_v54 = vpack.c.bf16 %v947_v11, %v947_v11  ;;  %v5660_v58 = vcombine.low %v13542_v6, %v13548_v61 }
 0x1ab   : > { %16431 = vst [vmem:[#allocation64_spill] sm:$0xff] %v13553_v21  ;;  %16432 = vst [vmem:[#allocation65_spill] sm:$0xff] %v13556_v2  ;;  %v13567_v23 = vrot.slane %v11232_v44, %v12691_v4  ;;  %v5661_v38 = vcombine.low %v13553_v21, %v13556_v2  ;;  %v916_v16 = vadd.f32 %v13098_v13, %v877_v28  ;;  %v1576_v57 = vld [vmem:[#allocation2 + $0xb0] sm:$0x1] }
 0x1ac   : > { %16433 = vst [vmem:[#allocation66_spill] sm:$0xff] %v13562_v45  ;;  %v13573_v22 = vrot.slane %v2314_v10, %v12691_v4  ;;  %v4689_v9 = vcombine.low %v13526_v47, %v13529_v27  ;;  %v5400_v62 = vshll.u32 %v13562_v45, 16  ;;  %v1389_v15 = vshrl.u32 %v11588_v54, 16 }
 0x1ad   : > { %v1392_v11 = vshll.u32 %v11588_v54, 16  ;;  %v5668_v20 = vrot.slane %v5660_v58, %v12691_v4  ;;  %v5675_v44 = vrot.slane %v5661_v38, %v12691_v4  ;;  %v948_v30 = vmax.f32 %v916_v16, 0.0  ;;  %v11729_v58 = vpop.f32.mrf.mxu0 }
 0x1ae   : > { %v11291_v28 = vcombine.high %v13526_v47, %v13529_v27  ;;  %v4691_v10 = vcombine.low %v13567_v23, %v13573_v22  ;;  %v5402_v41 = vrot.slane %v5400_v62, 1  ;;  %v1391_v49 = vrot.slane %v1389_v15, 7 }
 0x1af   : > { %v11292_v29 = vcombine.high %v13567_v23, %v13573_v22  ;;  %v13588_v54 = vrot.slane %v4689_v9, %v12691_v4  ;;  %v13590_v2 = vcombine.low %v5668_v20, %v5675_v44  ;;  %v11589_v38 = vpack.c.bf16 %v948_v30, %v948_v30  ;;  %v1071_v9 = vld [vmem:[#allocation2 + $0xbc] sm:$0x1] }
 0x1b0   : > { %v13593_v16 = vrot.slane %v11291_v28, %v12691_v4  ;;  %v13596_v6 = vrot.slane %v4691_v10, %v12691_v4  ;;  %v5403_v62 = vsel %vm4010_vm10, %v13513_v59, %v5402_v41  ;;  %v1394_v15 = vor.u32 %v1392_v11, %v1391_v49 }
 0x1b1   : > { %16434 = vst [vmem:[#allocation67_spill] sm:$0xff] %v13588_v54  ;;  %16435 = vst [vmem:[#allocation68_spill] sm:$0xff] %v13590_v2  ;;  %v1396_v61 = vrot.slane %v1391_v49, 4  ;;  %v13601_v21 = vrot.slane %v11292_v29, %v12691_v4  ;;  %6213 = vmatprep.mubr.bf16.mxu1 %v5403_v62  ;;  %11873 = vmatmul.mubr.bf16.gmra.mxu0 %v13590_v2  ;;  %v1398_v20 = vshrl.u32 %v11589_v38, 16  ;;  %v1401_v30 = vshll.u32 %v11589_v38, 16  ;;  %v11731_v38 = vpop.f32.mrf.mxu0 }
 0x1b2   : > { %16436 = vst [vmem:[#allocation69_spill] sm:$0xff] %v13593_v16  ;;  %16437 = vst [vmem:[#allocation70_spill] sm:$0xff] %v13596_v6  ;;  %v4721_v44 = vcombine.low %v13588_v54, %v13593_v16  ;;  %v5404_v28 = vshrl.u32 %v13562_v45, 16  ;;  %v16439_v10 = vrot.slane %v13503_v35, 4  ;;  %6214 = vmatmul.mubr.bf16.gmra.mxu1 %v13433_v46  ;;  %v11730_v29 = vadd.f32 %v11729_v58, %v11728_v17 }
 0x1b3   : > { %16438 = vst [vmem:[#allocation71_spill] sm:$0xff] %v13601_v21  ;;  %v1577_v49 = vsel %vm12523_vm2, %v1396_v61, %v1576_v57  ;;  %v4722_v11 = vcombine.low %v13596_v6, %v13601_v21  ;;  %v11233_v62 = vld.sshfl [vmem:[#allocation2 + $0x74] sm:$0x1 pattern:$0x75316420]  ;;  %v13616_v16 = vrot.slane %v1398_v20, 7  ;;  %11876 = vmatprep.mubr.msk.bf16.mxu0 %vm12328_vm5, %v16386_v39  ;;  %v2305_v58 = vcombine.high %v13526_v47, %v13526_v47 }
 0x1b4   : > { %v1395_v59 = vsel %vm12677_vm9, %v16439_v10, %v1394_v15  ;;  %1578 = vst [vmem:[#allocation2 + $0xb0] sm:$0x1] %v1577_v49  ;;  %v4729_v35 = vrot.slane %v4721_v44, %v12691_v4  ;;  %v5406_v54 = vor.u32 %v5404_v28, %v5402_v41  ;;  %v1072_v15 = vsel %vm12531_vm4, 0, %v1071_v9  ;;  %v1579_v61 = vld [vmem:[#allocation2 + $0xb4] sm:$0xf] }
 0x1b5   : > { %1575 = vst [vmem:[#allocation2 + $0xac] sm:$0xf] %v1395_v59  ;;  %v11234_v57 = vld.sshfl [vmem:[#allocation2 + $0x78] sm:$0x33 pattern:$0x75316420]  ;;  %v4736_v10 = vrot.slane %v4722_v11, %v12691_v4  ;;  %v878_v17 = vmul.f32 %v13080_v60, %v11730_v29  ;;  %v2306_v20 = vcombine.high %v13529_v27, %v13529_v27  ;;  %v1403_v41 = vor.u32 %v1401_v30, %v13616_v16  ;;  %v11732_v11 = vpop.f32.mrf.mxu0 }
 0x1b6   : > { %1073 = vst [vmem:[#allocation2 + $0xbc] sm:$0x1] %v1072_v15  ;;  %v2329_v44 = vcombine.high %v13567_v23, %v13567_v23  ;;  %v2330_v28 = vcombine.high %v13573_v22, %v13573_v22  ;;  %v2344_v49 = vrot.slane %v11233_v62, %v12691_v4  ;;  %v2352_v47 = vcombine.high %v11234_v57, %v11234_v57  ;;  %v12261_v30 = vld [vmem:[%s16153_s4 + $0x48] sm:$0xff]   ;;  %v12262_v29 = vld [vmem:[%s16153_s4 + $0x80] sm:$0xff]  }
 0x1b7   : > { %v13635_v59 = vcombine.low %v4729_v35, %v4736_v10  ;;  %v917_v60 = vadd.f32 %v13098_v13, %v878_v17  ;;  %v1580_v15 = vsel %vm12667_vm7, %v1403_v41, %v1579_v61  ;;  %v13648_v35 = vrot.slane %v11234_v57, %v12691_v4  ;;  %v1024_v21 = vld [vmem:[#allocation2 + $0xc0] sm:$0x1]  ;;  %6688 = vmatpush2.bf16.msra.mxu1 %v12261_v30 }
 0x1b8   : > { %v3470_v13 = vcombine.low %v13529_v27, %v2305_v58  ;;  %v3471_v62 = vcombine.low %v2306_v20, %v13567_v23  ;;  %1581 = vst [vmem:[#allocation2 + $0xb4] sm:$0xf] %v1580_v15  ;;  %v3472_v9 = vcombine.low %v13573_v22, %v2329_v44  ;;  %v3518_v6 = vcombine.low %v2330_v28, %v2344_v49  ;;  %v12314_v44 = vld [vmem:[%s16151_s2] ss:$0 sm:$0xff] }
 0x1b9   : > { %16440 = vst [vmem:[#allocation72_spill] sm:$0xff] %v13635_v59  ;;  %v5408_v10 = vshll.u32 %v13635_v59, 16  ;;  %v949_v17 = vmax.f32 %v917_v60, 0.0  ;;  %11939 = vmatpush3.bf16.msra.mxu0 %v12262_v29  ;;  %v4738_v27 = vcombine.low %v2344_v49, %v13648_v35  ;;  %v11733_v61 = vadd.f32 %v11732_v11, %v11731_v38  ;;  %6689 = vmatprep.subr.bf16.mxu1 %v16384_v1  ;;  %v11734_v60 = vpop.f32.mrf.mxu0 }
 0x1ba   : > { %v13655_v2 = vrot.slane %v3470_v13, %v12691_v4  ;;  %v13658_v57 = vrot.slane %v3471_v62, %v12691_v4  ;;  %v13663_v20 = vrot.slane %v3472_v9, %v12691_v4  ;;  %v13666_v22 = vrot.slane %v3518_v6, %v12691_v4  ;;  %12024 = vmatprep.subr.bf16.mxu0 %v16386_v39  ;;  %v11235_v49 = vld.sshfl [vmem:[#allocation2 + $0x7c] sm:$0x33 pattern:$0x75316420] }
 0x1bb   : > { %v5410_v23 = vrot.slane %v5408_v10, 1  ;;  %v11590_v58 = vpack.c.bf16 %v949_v17, %v949_v17  ;;  %v879_v38 = vmul.f32 %v12314_v44, %v11733_v61  ;;  %v1025_v28 = vsel %vm12523_vm2, 0, %v1024_v21  ;;  %v12315_v21 = vld [vmem:[%s16152_s3] ss:$0 sm:$0xff] }
 0x1bc   : > { %16441 = vst [vmem:[#allocation73_spill] sm:$0xff] %v13655_v2  ;;  %16442 = vst [vmem:[#allocation74_spill] sm:$0xff] %v13658_v57  ;;  %v5677_v41 = vcombine.low %v13655_v2, %v13658_v57  ;;  %v13677_v9 = vrot.slane %v2352_v47, %v12691_v4  ;;  %v5678_v29 = vcombine.low %v13663_v20, %v13666_v22  ;;  %v1074_v57 = vld [vmem:[#allocation2 + $0xc8] sm:$0x1] }
 0x1bd   : > { %16443 = vst [vmem:[#allocation75_spill] sm:$0xff] %v13663_v20  ;;  %16444 = vst [vmem:[#allocation76_spill] sm:$0xff] %v13666_v22  ;;  %v5411_v6 = vsel %vm4010_vm10, %v5406_v54, %v5410_v23  ;;  %v1406_v11 = vshrl.u32 %v11590_v58, 16  ;;  %v1409_v30 = vshll.u32 %v11590_v58, 16  ;;  %v918_v13 = vadd.f32 %v12315_v21, %v879_v38  ;;  %v1583_v58 = vld [vmem:[#allocation2 + $0xbc] sm:$0x1]  ;;  %v11735_v22 = vpop.f32.mrf.mxu0 }
 0x1be   : > { %1026 = vst [vmem:[#allocation2 + $0xc0] sm:$0x1] %v1025_v28  ;;  %6221 = vmatprep.mubr.bf16.mxu1 %v5411_v6  ;;  %v5685_v15 = vrot.slane %v5677_v41, %v12691_v4  ;;  %v2367_v47 = vcombine.high %v13648_v35, %v13648_v35  ;;  %v2368_v54 = vcombine.high %v13677_v9, %v13677_v9  ;;  %v5412_v6 = vshrl.u32 %v13635_v59, 16 }
 0x1bf   : > { %v1408_v62 = vrot.slane %v1406_v11, 7  ;;  %v5692_v10 = vrot.slane %v5678_v29, %v12691_v4  ;;  %6222 = vmatmul.mubr.bf16.gmra.mxu1 %v13562_v45  ;;  %v2376_v17 = vcombine.high %v11235_v49, %v11235_v49  ;;  %v2383_v61 = vrot.slane %v11235_v49, %v12691_v4  ;;  %v12263_v49 = vld [vmem:[%s16153_s4 + $0x40] sm:$0xff]  }
 0x1c0   : > { %v950_v41 = vmax.f32 %v918_v13, 0.0  ;;  %v4739_v28 = vcombine.low %v13677_v9, %v2367_v47  ;;  %v13695_v38 = vrot.slane %v4738_v27, %v12691_v4  ;;  %v16448_v20 = vrot.slane %v13616_v16, 4  ;;  %6690 = vmatpush2.bf16.msra.mxu1 %v12263_v49  ;;  %v11236_v49 = vld.sshfl [vmem:[#allocation2 + $0x80] sm:$0x1 pattern:$0x75316420] }
 0x1c1   : > { %v1411_v46 = vor.u32 %v1409_v30, %v1408_v62  ;;  %v1413_v2 = vrot.slane %v1408_v62, 4  ;;  %v13698_v11 = vcombine.low %v5685_v15, %v5692_v10  ;;  %v13701_v29 = vrot.slane %v2376_v17, %v12691_v4  ;;  %7911 = vmatprep.subr.bf16.mxu1 %v16384_v1 }
 0x1c2   : > { %16445 = vst [vmem:[#allocation77_spill] sm:$0xff] %v13695_v38  ;;  %v11591_v13 = vpack.c.bf16 %v950_v41, %v950_v41  ;;  %v2391_v45 = vcombine.high %v2383_v61, %v2383_v61  ;;  %v4740_v47 = vcombine.low %v2368_v54, %v2383_v61  ;;  %v13707_v27 = vrot.slane %v4739_v28, %v12691_v4 }
 0x1c3   : > { %16446 = vst [vmem:[#allocation78_spill] sm:$0xff] %v13698_v11  ;;  %v1412_v30 = vsel %vm12677_vm9, %v16448_v20, %v1411_v46  ;;  %v1584_v15 = vsel %vm12523_vm2, %v1413_v2, %v1583_v58  ;;  %11877 = vmatmul.mubr.bf16.gmra.mxu0 %v13698_v11  ;;  %v13716_v62 = vor.u32 %v5412_v6, %v5410_v23  ;;  %v1075_v16 = vsel %vm12531_vm4, 0, %v1074_v57 }
 0x1c4   : > { %16447 = vst [vmem:[#allocation79_spill] sm:$0xff] %v13707_v27  ;;  %v11736_v10 = vadd.f32 %v11735_v22, %v11734_v60  ;;  %1582 = vst [vmem:[#allocation2 + $0xb8] sm:$0xf] %v1412_v30  ;;  %v1415_v54 = vshrl.u32 %v11591_v13, 16  ;;  %v1418_v17 = vshll.u32 %v11591_v13, 16  ;;  %v4741_v41 = vcombine.low %v13701_v29, %v2391_v45  ;;  %11880 = vmatprep.mubr.msk.bf16.mxu0 %vm12328_vm5, %v16386_v39 }
 0x1c5   : > { %1585 = vst [vmem:[#allocation2 + $0xbc] sm:$0x1] %v1584_v15  ;;  %v13720_v28 = vrot.slane %v4740_v47, %v12691_v4  ;;  %v4770_v46 = vcombine.low %v13695_v38, %v13707_v27  ;;  %v3519_v23 = vcombine.low %v13648_v35, %v13677_v9  ;;  %1076 = vst [vmem:[#allocation2 + $0xc8] sm:$0x1] %v1075_v16 }
 0x1c6   : > { %v880_v2 = vmul.f32 %v12314_v44, %v11736_v10  ;;  %v13731_v45 = vrot.slane %v1415_v54, 7  ;;  %v13734_v20 = vrot.slane %v4741_v41, %v12691_v4  ;;  %v11275_v22 = vcombine.high %v13648_v35, %v13677_v9  ;;  %v1586_v44 = vld [vmem:[#allocation2 + $0xc0] sm:$0xf] }
 0x1c7   : > { %16449 = vst [vmem:[#allocation80_spill] sm:$0xff] %v13720_v28  ;;  %v3521_v60 = vcombine.low %v2383_v61, %v13701_v29  ;;  %v4778_v51 = vrot.slane %v4770_v46, %v12691_v4  ;;  %v13741_v58 = vrot.slane %v3519_v23, %v12691_v4  ;;  %v11276_v6 = vcombine.high %v2383_v61, %v13701_v29  ;;  %v11237_v9 = vld.sshfl [vmem:[#allocation2 + $0x84] sm:$0x33 pattern:$0x75316420] }
 0x1c8   : > { %16450 = vst [vmem:[#allocation81_spill] sm:$0xff] %v13734_v20  ;;  %v919_v57 = vadd.f32 %v12315_v21, %v880_v2  ;;  %v1420_v13 = vor.u32 %v1418_v17, %v13731_v45  ;;  %v1421_v47 = vrot.slane %v13731_v45, 4  ;;  %v4771_v30 = vcombine.low %v13720_v28, %v13734_v20  ;;  %v11238_v61 = vld.sshfl [vmem:[#allocation2 + $0x88] sm:$0x33 pattern:$0x75316420] }
 0x1c9   : > { %16451 = vst [vmem:[#allocation82_spill] sm:$0xff] %v13741_v58  ;;  %v13749_v35 = vrot.slane %v11275_v22, %v12691_v4  ;;  %v13752_v21 = vrot.slane %v3521_v60, %v12691_v4  ;;  %v13755_v10 = vrot.slane %v11276_v6, %v12691_v4  ;;  %v2392_v54 = vcombine.high %v13701_v29, %v13701_v29 }
 0x1ca   : > { %v951_v15 = vmax.f32 %v919_v57, 0.0  ;;  %v1587_v17 = vsel %vm12667_vm7, %v1420_v13, %v1586_v44  ;;  %v4785_v41 = vrot.slane %v4771_v30, %v12691_v4  ;;  %v2406_v2 = vrot.slane %v11236_v49, %v12691_v4 }
 0x1cb   : > { %16452 = vst [vmem:[#allocation83_spill] sm:$0xff] %v13749_v35  ;;  %16453 = vst [vmem:[#allocation84_spill] sm:$0xff] %v13752_v21  ;;  %v5694_v46 = vcombine.low %v13741_v58, %v13749_v35  ;;  %v5695_v23 = vcombine.low %v13752_v21, %v13755_v10  ;;  %v2414_v45 = vcombine.high %v11237_v9, %v11237_v9  ;;  %v11204_v58 = vld.sshfl [vmem:[#allocation2] sm:$0x33 pattern:$0x75316420] }
 0x1cc   : > { %16454 = vst [vmem:[#allocation85_spill] sm:$0xff] %v13755_v10  ;;  %1588 = vst [vmem:[#allocation2 + $0xc0] sm:$0xf] %v1587_v17  ;;  %v11592_v16 = vpack.c.bf16 %v951_v15, %v951_v15  ;;  %v2421_v22 = vrot.slane %v11237_v9, %v12691_v4  ;;  %v13768_v60 = vcombine.low %v4778_v51, %v4785_v41  ;;  %v1590_v28 = vld [vmem:[#allocation2 + $0xc8] sm:$0x1] }
 0x1cd   : > { %v5702_v25 = vrot.slane %v5694_v46, %v12691_v4  ;;  %v2438_v29 = vcombine.high %v11238_v61, %v11238_v61  ;;  %v13772_v44 = vrot.slane %v11238_v61, %v12691_v4  ;;  %v5709_v49 = vrot.slane %v5695_v23, %v12691_v4  ;;  %v11245_v10 = vld.sshfl [vmem:[#allocation2 + $0xa4] sm:$0x1 pattern:$0x75316420] }
 0x1ce   : > { %16455 = vst [vmem:[#allocation86_spill] sm:$0xff] %v13768_v60  ;;  %v1423_v57 = vshrl.u32 %v11592_v16, 16  ;;  %v1426_v6 = vshll.u32 %v11592_v16, 16  ;;  %v2428_v13 = vrot.slane %v2414_v45, %v12691_v4  ;;  %v5416_v30 = vshll.u32 %v13768_v60, 16 }
 0x1cf   : > { %v13778_v15 = vrot.slane %v2438_v29, %v12691_v4  ;;  %v4787_v9 = vcombine.low %v2392_v54, %v2406_v2  ;;  %v5420_v51 = vshrl.u32 %v13768_v60, 16  ;;  %v13781_v41 = vcombine.low %v5702_v25, %v5709_v49 }
 0x1d0   : > { %v1425_v17 = vrot.slane %v1423_v57, 7  ;;  %v4788_v46 = vcombine.low %v2421_v22, %v2428_v13  ;;  %v11293_v61 = vcombine.high %v2421_v22, %v2428_v13  ;;  %v5418_v27 = vrot.slane %v5416_v30, 1  ;;  %v11239_v57 = vld.sshfl [vmem:[#allocation2 + $0x8c] sm:$0x1 pattern:$0x75316420] }
 0x1d1   : > { %16456 = vst [vmem:[#allocation87_spill] sm:$0xff] %v13781_v41  ;;  %v4790_v16 = vcombine.low %v13772_v44, %v13778_v15  ;;  %v13786_v23 = vrot.slane %v4787_v9, %v12691_v4  ;;  %v2429_v45 = vcombine.high %v2421_v22, %v2421_v22  ;;  %11881 = vmatmul.mubr.bf16.gmra.mxu0 %v13781_v41 }
 0x1d2   : > { %v1428_v20 = vor.u32 %v1426_v6, %v1425_v17  ;;  %v1430_v29 = vrot.slane %v1425_v17, 4  ;;  %v13790_v54 = vrot.slane %v4788_v46, %v12691_v4  ;;  %v13793_v25 = vrot.slane %v11293_v61, %v12691_v4  ;;  %11884 = vmatprep.mubr.msk.bf16.mxu0 %vm12328_vm5, %v16386_v39  ;;  %v11240_v17 = vld.sshfl [vmem:[#allocation2 + $0x90] sm:$0x33 pattern:$0x75316420] }
 0x1d3   : > { %16457 = vst [vmem:[#allocation88_spill] sm:$0xff] %v13786_v23  ;;  %v5419_v49 = vsel %vm4010_vm10, %v13716_v62, %v5418_v27  ;;  %v13798_v30 = vrot.slane %v4790_v16, %v12691_v4  ;;  %v5422_v9 = vor.u32 %v5420_v51, %v5418_v27  ;;  %v2430_v6 = vcombine.high %v2428_v13, %v2428_v13 }
 0x1d4   : > { %16458 = vst [vmem:[#allocation89_spill] sm:$0xff] %v13790_v54  ;;  %16459 = vst [vmem:[#allocation90_spill] sm:$0xff] %v13793_v25  ;;  %6229 = vmatprep.mubr.bf16.mxu1 %v5419_v49  ;;  %v1429_v46 = vsel %vm12677_vm9, %v1421_v47, %v1428_v20  ;;  %v1591_v61 = vsel %vm12523_vm2, %v1430_v29, %v1590_v28  ;;  %v4819_v41 = vcombine.low %v13786_v23, %v13790_v54  ;;  %v11241_v20 = vld.sshfl [vmem:[#allocation2 + $0x94] sm:$0x33 pattern:$0x75316420] }
 0x1d5   : > { %16460 = vst [vmem:[#allocation91_spill] sm:$0xff] %v13798_v30  ;;  %v2453_v62 = vcombine.high %v13772_v44, %v13772_v44  ;;  %1589 = vst [vmem:[#allocation2 + $0xc4] sm:$0xf] %v1429_v46  ;;  %6230 = vmatmul.mubr.bf16.gmra.mxu1 %v13635_v59  ;;  %v4820_v27 = vcombine.low %v13793_v25, %v13798_v30  ;;  %v3568_v51 = vcombine.low %v2406_v2, %v2421_v22 }
 0x1d6   : > { %1592 = vst [vmem:[#allocation2 + $0xc8] sm:$0x1] %v1591_v61  ;;  %v3569_v16 = vcombine.low %v2428_v13, %v2429_v45  ;;  %v3570_v42 = vcombine.low %v2430_v6, %v13772_v44  ;;  %v4827_v48 = vrot.slane %v4819_v41, %v12691_v4  ;;  %v2468_v47 = vrot.slane %v11239_v57, %v12691_v4 }
 0x1d7   : > { %v3616_v28 = vcombine.low %v13778_v15, %v2453_v62  ;;  %v2476_v29 = vcombine.high %v11240_v17, %v11240_v17  ;;  %v4834_v49 = vrot.slane %v4820_v27, %v12691_v4  ;;  %v13819_v46 = vrot.slane %v3568_v51, %v12691_v4 }
 0x1d8   : > { %v13822_v61 = vrot.slane %v3569_v16, %v12691_v4  ;;  %v13825_v2 = vrot.slane %v3570_v42, %v12691_v4  ;;  %v2483_v13 = vrot.slane %v11240_v17, %v12691_v4  ;;  %v13833_v45 = vrot.slane %v11241_v20, %v12691_v4 }
 0x1d9   : > { %16461 = vst [vmem:[#allocation92_spill] sm:$0xff] %v13819_v46  ;;  %v13828_v22 = vrot.slane %v3616_v28, %v12691_v4  ;;  %v2490_v41 = vrot.slane %v2476_v29, %v12691_v4  ;;  %v13835_v57 = vcombine.low %v4827_v48, %v4834_v49  ;;  %v11294_v62 = vcombine.high %v13772_v44, %v13778_v15 }
 0x1da   : > { %16462 = vst [vmem:[#allocation93_spill] sm:$0xff] %v13822_v61  ;;  %16463 = vst [vmem:[#allocation94_spill] sm:$0xff] %v13825_v2  ;;  %v5711_v6 = vcombine.low %v13819_v46, %v13822_v61  ;;  %v2454_v27 = vcombine.high %v13778_v15, %v13778_v15  ;;  %v2491_v17 = vcombine.high %v2483_v13, %v2483_v13  ;;  %v11246_v46 = vld.sshfl [vmem:[#allocation2 + $0xa8] sm:$0x33 pattern:$0x75316420] }
 0x1db   : > { %16464 = vst [vmem:[#allocation95_spill] sm:$0xff] %v13828_v22  ;;  %16465 = vst [vmem:[#allocation96_spill] sm:$0xff] %v13835_v57  ;;  %v5712_v51 = vcombine.low %v13825_v2, %v13828_v22  ;;  %v2492_v16 = vcombine.high %v2490_v41, %v2490_v41  ;;  %v4837_v42 = vcombine.low %v2468_v47, %v2483_v13  ;;  %v5424_v28 = vshll.u32 %v13835_v57, 16 }
 0x1dc   : > { %v5719_v48 = vrot.slane %v5711_v6, %v12691_v4  ;;  %v13848_v29 = vrot.slane %v11294_v62, %v12691_v4  ;;  %v5428_v49 = vshrl.u32 %v13835_v57, 16  ;;  %v4838_v54 = vcombine.low %v2490_v41, %v2491_v17 }
 0x1dd   : > { %v5726_v44 = vrot.slane %v5712_v51, %v12691_v4  ;;  %v4839_v15 = vcombine.low %v2492_v16, %v13833_v45  ;;  %v13854_v25 = vrot.slane %v4837_v42, %v12691_v4  ;;  %v5426_v30 = vrot.slane %v5424_v28, 1 }
 0x1de   : > { %16466 = vst [vmem:[#allocation97_spill] sm:$0xff] %v13848_v29  ;;  %v2500_v23 = vcombine.high %v11241_v20, %v11241_v20  ;;  %v3617_v38 = vcombine.low %v2454_v27, %v2468_v47  ;;  %v3618_v11 = vcombine.low %v2483_v13, %v2490_v41  ;;  %v13859_v6 = vrot.slane %v4838_v54, %v12691_v4  ;;  %v11242_v20 = vld.sshfl [vmem:[#allocation2 + $0x98] sm:$0x1 pattern:$0x75316420] }
 0x1df   : > { %16467 = vst [vmem:[#allocation98_spill] sm:$0xff] %v13854_v25  ;;  %v13856_v22 = vcombine.low %v5719_v48, %v5726_v44  ;;  %v13862_v62 = vrot.slane %v4839_v15, %v12691_v4  ;;  %v4868_v51 = vcombine.low %v13848_v29, %v13854_v25  ;;  %v5427_v17 = vsel %vm4010_vm10, %v5422_v9, %v5426_v30  ;;  %v11243_v48 = vld.sshfl [vmem:[#allocation2 + $0x9c] sm:$0x33 pattern:$0x75316420] }
 0x1e0   : > { %16469 = vst [vmem:[#allocation100_spill] sm:$0xff] %v13859_v6  ;;  %v5430_v16 = vor.u32 %v5428_v49, %v5426_v30  ;;  %v2514_v42 = vrot.slane %v2500_v23, %v12691_v4  ;;  %v11277_v28 = vcombine.high %v2483_v13, %v2490_v41  ;;  %6237 = vmatprep.mubr.bf16.mxu1 %v5427_v17  ;;  %v11244_v13 = vld.sshfl [vmem:[#allocation2 + $0xa0] sm:$0x33 pattern:$0x75316420] }
 0x1e1   : > { %16468 = vst [vmem:[#allocation99_spill] sm:$0xff] %v13856_v22  ;;  %16470 = vst [vmem:[#allocation101_spill] sm:$0xff] %v13862_v62  ;;  %11885 = vmatmul.mubr.bf16.gmra.mxu0 %v13856_v22  ;;  %v4869_v54 = vcombine.low %v13859_v6, %v13862_v62  ;;  %v4876_v47 = vrot.slane %v4868_v51, %v12691_v4  ;;  %v13873_v27 = vrot.slane %v3617_v38, %v12691_v4 }
 0x1e2   : > { %6238 = vmatmul.mubr.bf16.gmra.mxu1 %v13768_v60  ;;  %11888 = vmatprep.mubr.msk.bf16.mxu0 %vm12328_vm5, %v16386_v39  ;;  %v13879_v23 = vrot.slane %v3618_v11, %v12691_v4  ;;  %v13882_v30 = vrot.slane %v11277_v28, %v12691_v4  ;;  %v3665_v9 = vcombine.low %v13833_v45, %v2514_v42 }
 0x1e3   : > { %16471 = vst [vmem:[#allocation102_spill] sm:$0xff] %v13873_v27  ;;  %v4883_v41 = vrot.slane %v4869_v54, %v12691_v4  ;;  %v2515_v38 = vcombine.high %v13833_v45, %v13833_v45  ;;  %v2516_v49 = vcombine.high %v2514_v42, %v2514_v42  ;;  %v2530_v44 = vrot.slane %v11242_v20, %v12691_v4 }
 0x1e4   : > { %16472 = vst [vmem:[#allocation103_spill] sm:$0xff] %v13879_v23  ;;  %16473 = vst [vmem:[#allocation104_spill] sm:$0xff] %v13882_v30  ;;  %v13890_v15 = vrot.slane %v3665_v9, %v12691_v4  ;;  %v5728_v11 = vcombine.low %v13873_v27, %v13879_v23  ;;  %v2538_v51 = vcombine.high %v11243_v48, %v11243_v48 }
 0x1e5   : > { %v2545_v17 = vrot.slane %v11243_v48, %v12691_v4  ;;  %v13895_v28 = vcombine.low %v4876_v47, %v4883_v41  ;;  %v4885_v25 = vcombine.low %v2514_v42, %v2515_v38  ;;  %v4886_v6 = vcombine.low %v2516_v49, %v2530_v44  ;;  %v13909_v41 = vpop.f32.mrf.mxu0 }
 0x1e6   : > { %16474 = vst [vmem:[#allocation105_spill] sm:$0xff] %v13890_v15  ;;  %v2562_v54 = vcombine.high %v11244_v13, %v11244_v13  ;;  %v5729_v62 = vcombine.low %v13882_v30, %v13890_v15  ;;  %v5736_v29 = vrot.slane %v5728_v11, %v12691_v4  ;;  %v2552_v20 = vrot.slane %v2538_v51, %v12691_v4 }
 0x1e7   : > { %16475 = vst [vmem:[#allocation106_spill] sm:$0xff] %v13895_v28  ;;  %v2553_v9 = vcombine.high %v2545_v17, %v2545_v17  ;;  %v5432_v22 = vshll.u32 %v13895_v28, 16  ;;  %v13903_v60 = vrot.slane %v4885_v25, %v12691_v4  ;;  %v13906_v48 = vrot.slane %v4886_v6, %v12691_v4  ;;  %16478 = vst [vmem:[#allocation109_spill] sm:$0xff] %v13909_v41  ;;  %v11842_v30 = vpop.f32.mrf.mxu0 }
 0x1e8   : > { %v5436_v47 = vshrl.u32 %v13895_v28, 16  ;;  %v5743_v38 = vrot.slane %v5729_v62, %v12691_v4  ;;  %v4887_v49 = vcombine.low %v2545_v17, %v2552_v20  ;;  %v11295_v15 = vcombine.high %v2545_v17, %v2552_v20 }
 0x1e9   : > { %16476 = vst [vmem:[#allocation107_spill] sm:$0xff] %v13903_v60  ;;  %16477 = vst [vmem:[#allocation108_spill] sm:$0xff] %v13906_v48  ;;  %v2554_v11 = vcombine.high %v2552_v20, %v2552_v20  ;;  %v5434_v27 = vrot.slane %v5432_v22, 1  ;;  %v4917_v51 = vcombine.low %v13903_v60, %v13906_v48  ;;  %v2569_v23 = vrot.slane %v11244_v13, %v12691_v4 }
 0x1ea   : > { %v2576_v25 = vrot.slane %v2562_v54, %v12691_v4  ;;  %v13916_v6 = vcombine.low %v5736_v29, %v5743_v38  ;;  %v13919_v59 = vrot.slane %v4887_v49, %v12691_v4  ;;  %v13922_v41 = vrot.slane %v11295_v15, %v12691_v4  ;;  %v13927_v54 = vpop.f32.mrf.mxu0 }
 0x1eb   : > { %v11278_v62 = vcombine.high %v13833_v45, %v2514_v42  ;;  %v5435_v22 = vsel %vm4010_vm10, %v5430_v16, %v5434_v27  ;;  %v4925_v48 = vrot.slane %v4917_v51, %v12691_v4  ;;  %v5438_v60 = vor.u32 %v5436_v47, %v5434_v27  ;;  %16482 = vst [vmem:[#allocation113_spill] sm:$0xff] %v13927_v54 }
 0x1ec   : > { %16479 = vst [vmem:[#allocation110_spill] sm:$0xff] %v13916_v6  ;;  %16480 = vst [vmem:[#allocation111_spill] sm:$0xff] %v13919_v59  ;;  %v3667_v13 = vcombine.low %v2530_v44, %v2545_v17  ;;  %6245 = vmatprep.mubr.bf16.mxu1 %v5435_v22  ;;  %11889 = vmatmul.mubr.bf16.gmra.mxu0 %v13916_v6  ;;  %v4918_v29 = vcombine.low %v13919_v59, %v13922_v41  ;;  %v11843_v27 = vpop.f32.mrf.mxu0 }
 0x1ed   : > { %16481 = vst [vmem:[#allocation112_spill] sm:$0xff] %v13922_v41  ;;  %v3668_v30 = vcombine.low %v2552_v20, %v2553_v9  ;;  %v13933_v15 = vrot.slane %v11278_v62, %v12691_v4  ;;  %6246 = vmatmul.mubr.bf16.gmra.mxu1 %v13835_v57  ;;  %11892 = vmatprep.mubr.msk.bf16.mxu0 %vm12328_vm5, %v16386_v39 }
 0x1ee   : > { %v13939_v45 = vrot.slane %v3667_v13, %v12691_v4  ;;  %v3714_v16 = vcombine.low %v2554_v11, %v2569_v23  ;;  %v2592_v42 = vrot.slane %v11245_v10, %v12691_v4  ;;  %v4932_v44 = vrot.slane %v4918_v29, %v12691_v4 }
 0x1ef   : > { %16483 = vst [vmem:[#allocation114_spill] sm:$0xff] %v13933_v15  ;;  %v13944_v17 = vrot.slane %v3668_v30, %v12691_v4  ;;  %v2600_v20 = vcombine.high %v11246_v46, %v11246_v46  ;;  %v2607_v9 = vrot.slane %v11246_v46, %v12691_v4  ;;  %v4934_v49 = vcombine.low %v2569_v23, %v2576_v25 }
 0x1f0   : > { %16484 = vst [vmem:[#allocation115_spill] sm:$0xff] %v13939_v45  ;;  %v13948_v47 = vrot.slane %v3714_v16, %v12691_v4  ;;  %v5745_v38 = vcombine.low %v13933_v15, %v13939_v45  ;;  %v11296_v51 = vcombine.high %v2569_v23, %v2576_v25  ;;  %v13952_v11 = vcombine.low %v4925_v48, %v4932_v44  ;;  %v11247_v15 = vld.sshfl [vmem:[#allocation2 + $0xac] sm:$0x33 pattern:$0x75316420] }
 0x1f1   : > { %16485 = vst [vmem:[#allocation116_spill] sm:$0xff] %v13944_v17  ;;  %v2614_v10 = vrot.slane %v2600_v20, %v12691_v4  ;;  %v2615_v62 = vcombine.high %v2607_v9, %v2607_v9  ;;  %v4936_v22 = vcombine.low %v2592_v42, %v2607_v9  ;;  %v13959_v46 = vrot.slane %v4934_v49, %v12691_v4 }
 0x1f2   : > { %16486 = vst [vmem:[#allocation117_spill] sm:$0xff] %v13948_v47  ;;  %16487 = vst [vmem:[#allocation118_spill] sm:$0xff] %v13952_v11  ;;  %v5746_v13 = vcombine.low %v13944_v17, %v13948_v47  ;;  %v5753_v29 = vrot.slane %v5745_v38, %v12691_v4  ;;  %v13962_v30 = vrot.slane %v11296_v51, %v12691_v4  ;;  %v5440_v16 = vshll.u32 %v13952_v11, 16 }
 0x1f3   : > { %16488 = vst [vmem:[#allocation119_spill] sm:$0xff] %v13959_v46  ;;  %v4937_v27 = vcombine.low %v2614_v10, %v2615_v62  ;;  %v13966_v48 = vrot.slane %v4936_v22, %v12691_v4  ;;  %v5444_v44 = vshrl.u32 %v13952_v11, 16  ;;  %v2577_v38 = vcombine.high %v2569_v23, %v2569_v23 }
 0x1f4   : > { %16489 = vst [vmem:[#allocation120_spill] sm:$0xff] %v13962_v30  ;;  %v5760_v20 = vrot.slane %v5746_v13, %v12691_v4  ;;  %v4966_v59 = vcombine.low %v13959_v46, %v13962_v30  ;;  %v2578_v41 = vcombine.high %v2576_v25, %v2576_v25  ;;  %v5442_v49 = vrot.slane %v5440_v16, 1 }
 0x1f5   : > { %16490 = vst [vmem:[#allocation121_spill] sm:$0xff] %v13966_v48  ;;  %v13973_v6 = vrot.slane %v4937_v27, %v12691_v4  ;;  %v3717_v51 = vcombine.low %v2607_v9, %v2614_v10  ;;  %v11279_v54 = vcombine.high %v2607_v9, %v2614_v10  ;;  %v3715_v22 = vcombine.low %v2576_v25, %v2577_v38  ;;  %v11248_v27 = vld.sshfl [vmem:[#allocation2 + $0xb0] sm:$0x1 pattern:$0x75316420]  ;;  %v13994_v25 = vpop.f32.mrf.mxu0 }
 0x1f6   : > { %v13975_v47 = vcombine.low %v5753_v29, %v5760_v20  ;;  %v4974_v62 = vrot.slane %v4966_v59, %v12691_v4  ;;  %v3716_v57 = vcombine.low %v2578_v41, %v2592_v42  ;;  %v5443_v13 = vsel %vm4010_vm10, %v5438_v60, %v5442_v49  ;;  %v11249_v60 = vld.sshfl [vmem:[#allocation2 + $0xb4] sm:$0x33 pattern:$0x75316420]  ;;  %16497 = vst [vmem:[#allocation128_spill] sm:$0xff] %v13994_v25 }
 0x1f7   : > { %16491 = vst [vmem:[#allocation122_spill] sm:$0xff] %v13973_v6  ;;  %v4967_v30 = vcombine.low %v13966_v48, %v13973_v6  ;;  %v5446_v23 = vor.u32 %v5444_v44, %v5442_v49  ;;  %v13982_v16 = vrot.slane %v3717_v51, %v12691_v4  ;;  %6253 = vmatprep.mubr.bf16.mxu1 %v5443_v13  ;;  %v11846_v49 = vpop.f32.mrf.mxu0 }
 0x1f8   : > { %16492 = vst [vmem:[#allocation123_spill] sm:$0xff] %v13975_v47  ;;  %11893 = vmatmul.mubr.bf16.gmra.mxu0 %v13975_v47  ;;  %v13986_v9 = vrot.slane %v3715_v22, %v12691_v4  ;;  %v13989_v59 = vrot.slane %v3716_v57, %v12691_v4  ;;  %v13992_v41 = vrot.slane %v11279_v54, %v12691_v4 }
 0x1f9   : > { %16493 = vst [vmem:[#allocation124_spill] sm:$0xff] %v13982_v16  ;;  %6254 = vmatmul.mubr.bf16.gmra.mxu1 %v13895_v28  ;;  %v4981_v42 = vrot.slane %v4967_v30, %v12691_v4  ;;  %11896 = vmatprep.mubr.msk.bf16.mxu0 %vm12328_vm5, %v16386_v39  ;;  %v2616_v29 = vcombine.high %v2614_v10, %v2614_v10  ;;  %v14012_v47 = vpop.f32.mrf.mxu0 }
 0x1fa   : > { %16494 = vst [vmem:[#allocation125_spill] sm:$0xff] %v13986_v9  ;;  %16495 = vst [vmem:[#allocation126_spill] sm:$0xff] %v13989_v59  ;;  %v2624_v44 = vcombine.high %v11247_v15, %v11247_v15  ;;  %v5762_v20 = vcombine.low %v13986_v9, %v13989_v59  ;;  %v5763_v57 = vcombine.low %v13982_v16, %v13992_v41 }
 0x1fb   : > { %16496 = vst [vmem:[#allocation127_spill] sm:$0xff] %v13992_v41  ;;  %v2631_v54 = vrot.slane %v11247_v15, %v12691_v4  ;;  %v2654_v38 = vrot.slane %v11248_v27, %v12691_v4  ;;  %v14006_v51 = vcombine.low %v4974_v62, %v4981_v42  ;;  %v2662_v22 = vcombine.high %v11249_v60, %v11249_v60  ;;  %v11847_v49 = vpop.f32.mrf.mxu0 }
 0x1fc   : > { %v2638_v30 = vrot.slane %v2624_v44, %v12691_v4  ;;  %v2669_v13 = vrot.slane %v11249_v60, %v12691_v4  ;;  %v5770_v10 = vrot.slane %v5762_v20, %v12691_v4  ;;  %v5777_v48 = vrot.slane %v5763_v57, %v12691_v4  ;;  %16499 = vst [vmem:[#allocation130_spill] sm:$0xff] %v14012_v47  ;;  %v11250_v47 = vld.sshfl [vmem:[#allocation2 + $0xb8] sm:$0x33 pattern:$0x75316420] }
 0x1fd   : > { %16498 = vst [vmem:[#allocation129_spill] sm:$0xff] %v14006_v51  ;;  %v2639_v6 = vcombine.high %v2631_v54, %v2631_v54  ;;  %v4983_v46 = vcombine.low %v2616_v29, %v2631_v54  ;;  %v5448_v15 = vshll.u32 %v14006_v51, 16  ;;  %v2676_v27 = vrot.slane %v2662_v22, %v12691_v4  ;;  %v11252_v49 = vld.sshfl [vmem:[#allocation2 + $0xc0] sm:$0x33 pattern:$0x75316420] }
 0x1fe   : > { %v2640_v25 = vcombine.high %v2638_v30, %v2638_v30  ;;  %v5452_v62 = vshrl.u32 %v14006_v51, 16  ;;  %v14017_v42 = vcombine.low %v5770_v10, %v5777_v48  ;;  %v2677_v20 = vcombine.high %v2669_v13, %v2669_v13  ;;  %v11251_v10 = vld.sshfl [vmem:[#allocation2 + $0xbc] sm:$0x1 pattern:$0x75316420] }
 0x1ff   : > { %v4984_v44 = vcombine.low %v2638_v30, %v2639_v6  ;;  %v14020_v60 = vrot.slane %v4983_v46, %v12691_v4  ;;  %v5450_v57 = vrot.slane %v5448_v15, 1  ;;  %v4986_v29 = vcombine.low %v2669_v13, %v2676_v27 }
 0x200   : > { %16500 = vst [vmem:[#allocation131_spill] sm:$0xff] %v14017_v42  ;;  %v4985_v41 = vcombine.low %v2640_v25, %v2654_v38  ;;  %v3764_v28 = vcombine.low %v2631_v54, %v2638_v30  ;;  %11897 = vmatmul.mubr.bf16.gmra.mxu0 %v14017_v42  ;;  %v11280_v22 = vcombine.high %v2631_v54, %v2638_v30 }
 0x201   : > { %16501 = vst [vmem:[#allocation132_spill] sm:$0xff] %v14020_v60  ;;  %v14024_v9 = vrot.slane %v4984_v44, %v12691_v4  ;;  %v3766_v59 = vcombine.low %v2654_v38, %v2669_v13  ;;  %v3812_v48 = vcombine.low %v2676_v27, %v2677_v20  ;;  %v5451_v6 = vsel %vm4010_vm10, %v5446_v23, %v5450_v57 }
 0x202   : > { %v14028_v46 = vrot.slane %v4985_v41, %v12691_v4  ;;  %v14031_v15 = vrot.slane %v4986_v29, %v12691_v4  ;;  %v5454_v25 = vor.u32 %v5452_v62, %v5450_v57  ;;  %11900 = vmatprep.mubr.msk.bf16.mxu0 %vm12328_vm5, %v16386_v39  ;;  %6261 = vmatprep.mubr.bf16.mxu1 %v5451_v6 }
 0x203   : > { %16502 = vst [vmem:[#allocation133_spill] sm:$0xff] %v14024_v9  ;;  %v5015_v54 = vcombine.low %v14020_v60, %v14024_v9  ;;  %v14038_v38 = vrot.slane %v3764_v28, %v12691_v4  ;;  %v14041_v23 = vrot.slane %v11280_v22, %v12691_v4  ;;  %v14044_v41 = vrot.slane %v3766_v59, %v12691_v4 }
 0x204   : > { %16503 = vst [vmem:[#allocation134_spill] sm:$0xff] %v14028_v46  ;;  %16504 = vst [vmem:[#allocation135_spill] sm:$0xff] %v14031_v15  ;;  %6262 = vmatmul.mubr.bf16.gmra.mxu1 %v13952_v11  ;;  %v5016_v30 = vcombine.low %v14028_v46, %v14031_v15  ;;  %v14050_v62 = vrot.slane %v3812_v48, %v12691_v4  ;;  %v2686_v44 = vcombine.high %v11250_v47, %v11250_v47 }
 0x205   : > { %16505 = vst [vmem:[#allocation136_spill] sm:$0xff] %v14038_v38  ;;  %16506 = vst [vmem:[#allocation137_spill] sm:$0xff] %v14041_v23  ;;  %v2693_v20 = vrot.slane %v11250_v47, %v12691_v4  ;;  %v5023_v28 = vrot.slane %v5015_v54, %v12691_v4  ;;  %v5779_v57 = vcombine.low %v14038_v38, %v14041_v23 }
 0x206   : > { %16507 = vst [vmem:[#allocation138_spill] sm:$0xff] %v14044_v41  ;;  %16508 = vst [vmem:[#allocation139_spill] sm:$0xff] %v14050_v62  ;;  %v2716_v29 = vrot.slane %v11251_v10, %v12691_v4  ;;  %v14058_v59 = vrot.slane %v11252_v49, %v12691_v4  ;;  %v5030_v22 = vrot.slane %v5016_v30, %v12691_v4 }
 0x207   : > { %v5780_v6 = vcombine.low %v14044_v41, %v14050_v62  ;;  %v2700_v48 = vrot.slane %v2686_v44, %v12691_v4  ;;  %v11297_v15 = vcombine.high %v2669_v13, %v2676_v27  ;;  %v5787_v47 = vrot.slane %v5779_v57, %v12691_v4 }
 0x208   : > { %v5035_v54 = vcombine.low %v2716_v29, %v14058_v59  ;;  %v2678_v9 = vcombine.high %v2676_v27, %v2676_v27  ;;  %v2701_v46 = vcombine.high %v2693_v20, %v2693_v20  ;;  %v14066_v60 = vcombine.low %v5023_v28, %v5030_v22 }
 0x209   : > { %v5794_v10 = vrot.slane %v5780_v6, %v12691_v4  ;;  %v5033_v42 = vcombine.low %v2693_v20, %v2700_v48  ;;  %v11298_v11 = vcombine.high %v2693_v20, %v2700_v48  ;;  %v14070_v30 = vrot.slane %v11297_v15, %v12691_v4 }
 0x20a   : > { %16509 = vst [vmem:[#allocation140_spill] sm:$0xff] %v14066_v60  ;;  %v14073_v62 = vrot.slane %v5035_v54, %v12691_v4  ;;  %v2702_v44 = vcombine.high %v2700_v48, %v2700_v48  ;;  %v2724_v13 = vcombine.high %v11252_v49, %v11252_v49  ;;  %v5456_v57 = vshll.u32 %v14066_v60, 16 }
 0x20b   : > { %16510 = vst [vmem:[#allocation141_spill] sm:$0xff] %v14070_v30  ;;  %v14076_v23 = vcombine.low %v5787_v47, %v5794_v10  ;;  %v14079_v27 = vrot.slane %v5033_v42, %v12691_v4  ;;  %v14082_v28 = vrot.slane %v11298_v11, %v12691_v4  ;;  %v5460_v22 = vshrl.u32 %v14066_v60, 16  ;;  %v11253_v10 = vld.sshfl [vmem:[#allocation2 + $0xc4] sm:$0x33 pattern:$0x75316420] }
 0x20c   : > { %16511 = vst [vmem:[#allocation142_spill] sm:$0xff] %v14073_v62  ;;  %v14086_v15 = vrot.slane %v2724_v13, %v12691_v4  ;;  %v3813_v6 = vcombine.low %v2678_v9, %v2693_v20  ;;  %v3814_v54 = vcombine.low %v2700_v48, %v2701_v46  ;;  %v5458_v41 = vrot.slane %v5456_v57, 1  ;;  %v11254_v20 = vld.sshfl [vmem:[#allocation2 + $0xc8] sm:$0x1 pattern:$0x75316420] }
 0x20d   : > { %16512 = vst [vmem:[#allocation143_spill] sm:$0xff] %v14076_v23  ;;  %16513 = vst [vmem:[#allocation144_spill] sm:$0xff] %v14079_v27  ;;  %11901 = vmatmul.mubr.bf16.gmra.mxu0 %v14076_v23  ;;  %v5064_v49 = vcombine.low %v14070_v30, %v14079_v27  ;;  %v5065_v42 = vcombine.low %v14082_v28, %v14073_v62  ;;  %v3815_v47 = vcombine.low %v2702_v44, %v2716_v29  ;;  %v11255_v27 = vld.sshfl [vmem:[#allocation2 + $0xcc] sm:$0x33 pattern:$0x75316420] }
 0x20e   : > { %16514 = vst [vmem:[#allocation145_spill] sm:$0xff] %v14082_v28  ;;  %11904 = vmatprep.mubr.msk.bf16.mxu0 %vm12328_vm5, %v16386_v39  ;;  %v14096_v11 = vrot.slane %v3813_v6, %v12691_v4  ;;  %v14099_v9 = vrot.slane %v3814_v54, %v12691_v4  ;;  %v3861_v46 = vcombine.low %v14058_v59, %v14086_v15  ;;  %v14108_v6 = vpop.f32.mrf.mxu1 }
 0x20f   : > { %v2739_v48 = vcombine.high %v14058_v59, %v14058_v59  ;;  %v5459_v13 = vsel %vm4010_vm10, %v5454_v25, %v5458_v41  ;;  %v5072_v29 = vrot.slane %v5064_v49, %v12691_v4  ;;  %v5079_v44 = vrot.slane %v5065_v42, %v12691_v4  ;;  %16517 = vst [vmem:[#allocation148_spill] sm:$0xff] %v14108_v6 }
 0x210   : > { %16515 = vst [vmem:[#allocation146_spill] sm:$0xff] %v14096_v11  ;;  %16516 = vst [vmem:[#allocation147_spill] sm:$0xff] %v14099_v9  ;;  %v5462_v57 = vor.u32 %v5460_v22, %v5458_v41  ;;  %6269 = vmatprep.mubr.bf16.mxu1 %v5459_v13  ;;  %v14111_v54 = vrot.slane %v3815_v47, %v12691_v4  ;;  %v14114_v28 = vrot.slane %v3861_v46, %v12691_v4  ;;  %v6161_v47 = vpop.f32.mrf.mxu1 }
 0x211   : > { %v5796_v62 = vcombine.low %v14096_v11, %v14099_v9  ;;  %v2740_v25 = vcombine.high %v14086_v15, %v14086_v15  ;;  %6270 = vmatmul.mubr.bf16.gmra.mxu1 %v14006_v51  ;;  %v14121_v49 = vcombine.low %v5072_v29, %v5079_v44  ;;  %v2748_v41 = vcombine.high %v11253_v10, %v11253_v10 }
 0x212   : > { %16518 = vst [vmem:[#allocation149_spill] sm:$0xff] %v14111_v54  ;;  %16519 = vst [vmem:[#allocation150_spill] sm:$0xff] %v14114_v28  ;;  %v2755_v22 = vrot.slane %v11253_v10, %v12691_v4  ;;  %v2778_v42 = vrot.slane %v11254_v20, %v12691_v4  ;;  %v5797_v46 = vcombine.low %v14111_v54, %v14114_v28  ;;  %v14131_v9 = vpop.f32.mrf.mxu1  ;;  %v14139_v28 = vpop.f32.mrf.mxu0 }
 0x213   : > { %16520 = vst [vmem:[#allocation151_spill] sm:$0xff] %v14121_v49  ;;  %v5804_v13 = vrot.slane %v5796_v62, %v12691_v4  ;;  %v5081_v30 = vcombine.low %v14086_v15, %v2739_v48  ;;  %v2786_v23 = vcombine.high %v11255_v27, %v11255_v27  ;;  %v5464_v6 = vshll.u32 %v14121_v49, 16  ;;  %16521 = vst [vmem:[#allocation152_spill] sm:$0xff] %v14131_v9 }
 0x214   : > { %v2762_v51 = vrot.slane %v2748_v41, %v12691_v4  ;;  %v2763_v29 = vcombine.high %v2755_v22, %v2755_v22  ;;  %v5082_v44 = vcombine.low %v2740_v25, %v2755_v22  ;;  %v5811_v10 = vrot.slane %v5797_v46, %v12691_v4  ;;  %v6164_v25 = vpop.f32.mrf.mxu1  ;;  %v11850_v16 = vpop.f32.mrf.mxu0 }
 0x215   : > { %v14135_v20 = vrot.slane %v5081_v30, %v12691_v4  ;;  %v5468_v47 = vshrl.u32 %v14121_v49, 16  ;;  %v2793_v62 = vrot.slane %v11255_v27, %v12691_v4  ;;  %v5466_v48 = vrot.slane %v5464_v6, 1 }
 0x216   : > { %v2764_v54 = vcombine.high %v2762_v51, %v2762_v51  ;;  %v5083_v11 = vcombine.low %v2762_v51, %v2763_v29  ;;  %v14142_v41 = vrot.slane %v5082_v44, %v12691_v4  ;;  %v14144_v38 = vcombine.low %v5804_v13, %v5811_v10  ;;  %v11256_v44 = vld.sshfl [vmem:[#allocation2 + $0xd0] sm:$0x33 pattern:$0x75316420]  ;;  %v14161_v16 = vpop.f32.mrf.mxu0 }
 0x217   : > { %16522 = vst [vmem:[#allocation153_spill] sm:$0xff] %v14135_v20  ;;  %v2800_v46 = vrot.slane %v2786_v23, %v12691_v4  ;;  %v11281_v30 = vcombine.high %v14058_v59, %v14086_v15  ;;  %v3863_v9 = vcombine.low %v2755_v22, %v2762_v51  ;;  %v5467_v27 = vsel %vm4010_vm10, %v5462_v57, %v5466_v48 }
 0x218   : > { %16523 = vst [vmem:[#allocation154_spill] sm:$0xff] %v14142_v41  ;;  %16524 = vst [vmem:[#allocation155_spill] sm:$0xff] %v14144_v38  ;;  %v5084_v45 = vcombine.low %v2764_v54, %v2778_v42  ;;  %v14151_v6 = vrot.slane %v5083_v11, %v12691_v4  ;;  %v5113_v29 = vcombine.low %v14135_v20, %v14142_v41  ;;  %6277 = vmatprep.mubr.bf16.mxu1 %v5467_v27 }
 0x219   : > { %11905 = vmatmul.mubr.bf16.gmra.mxu0 %v14144_v38  ;;  %v14156_v13 = vor.u32 %v5468_v47, %v5466_v48  ;;  %v11282_v23 = vcombine.high %v2755_v22, %v2762_v51  ;;  %v14159_v59 = vrot.slane %v11281_v30, %v12691_v4  ;;  %6278 = vmatmul.mubr.bf16.gmra.mxu1 %v14066_v60  ;;  %v11851_v47 = vpop.f32.mrf.mxu0 }
 0x21a   : > { %16525 = vst [vmem:[#allocation156_spill] sm:$0xff] %v14151_v6  ;;  %v14165_v15 = vrot.slane %v5084_v45, %v12691_v4  ;;  %v5121_v11 = vrot.slane %v5113_v29, %v12691_v4  ;;  %11908 = vmatprep.mubr.msk.bf16.mxu0 %vm12328_vm5, %v16386_v39  ;;  %v14171_v57 = vrot.slane %v3863_v9, %v12691_v4  ;;  %v11257_v29 = vld.sshfl [vmem:[#allocation2 + $0xd4] sm:$0x1 pattern:$0x75316420] }
 0x21b   : > { %16526 = vst [vmem:[#allocation157_spill] sm:$0xff] %v14159_v59  ;;  %v14174_v51 = vrot.slane %v11282_v23, %v12691_v4  ;;  %v3910_v54 = vcombine.low %v2778_v42, %v2793_v62  ;;  %v2810_v22 = vcombine.high %v11256_v44, %v11256_v44  ;;  %v2817_v10 = vrot.slane %v11256_v44, %v12691_v4 }
 0x21c   : > { %16527 = vst [vmem:[#allocation158_spill] sm:$0xff] %v14165_v15  ;;  %16528 = vst [vmem:[#allocation159_spill] sm:$0xff] %v14171_v57  ;;  %v5114_v45 = vcombine.low %v14151_v6, %v14165_v15  ;;  %v5813_v48 = vcombine.low %v14159_v59, %v14171_v57  ;;  %v5130_v25 = vcombine.low %v2793_v62, %v2800_v46  ;;  %v14193_v6 = vpop.f32.mrf.mxu1  ;;  %v11259_v59 = vld.sshfl [vmem:[#allocation2 + $0xdc] sm:$0x33 pattern:$0x75316420] }
 0x21d   : > { %16529 = vst [vmem:[#allocation160_spill] sm:$0xff] %v14174_v51  ;;  %v11299_v30 = vcombine.high %v2793_v62, %v2800_v46  ;;  %v14182_v27 = vrot.slane %v3910_v54, %v12691_v4  ;;  %v2824_v9 = vrot.slane %v2810_v22, %v12691_v4  ;;  %v2801_v23 = vcombine.high %v2793_v62, %v2793_v62 }
 0x21e   : > { %v2802_v42 = vcombine.high %v2800_v46, %v2800_v46  ;;  %v5128_v41 = vrot.slane %v5114_v45, %v12691_v4  ;;  %v5821_v44 = vrot.slane %v5813_v48, %v12691_v4  ;;  %v14188_v47 = vrot.slane %v5130_v25, %v12691_v4  ;;  %16533 = vst [vmem:[#allocation164_spill] sm:$0xff] %v14193_v6  ;;  %v6169_v60 = vpop.f32.mrf.mxu1 }
 0x21f   : > { %16530 = vst [vmem:[#allocation161_spill] sm:$0xff] %v14182_v27  ;;  %v14191_v15 = vrot.slane %v11299_v30, %v12691_v4  ;;  %v5814_v54 = vcombine.low %v14174_v51, %v14182_v27  ;;  %v5132_v20 = vcombine.low %v2817_v10, %v2824_v9  ;;  %v11300_v22 = vcombine.high %v2817_v10, %v2824_v9  ;;  %v11258_v51 = vld.sshfl [vmem:[#allocation2 + $0xd8] sm:$0x33 pattern:$0x75316420] }
 0x220   : > { %16531 = vst [vmem:[#allocation162_spill] sm:$0xff] %v14188_v47  ;;  %v2825_v38 = vcombine.high %v2817_v10, %v2817_v10  ;;  %v14197_v62 = vcombine.low %v5121_v11, %v5128_v41  ;;  %v2826_v48 = vcombine.high %v2824_v9, %v2824_v9  ;;  %v2840_v25 = vrot.slane %v11257_v29, %v12691_v4  ;;  %v14212_v29 = vpop.f32.mrf.mxu1 }
 0x221   : > { %16532 = vst [vmem:[#allocation163_spill] sm:$0xff] %v14191_v15  ;;  %v5162_v45 = vcombine.low %v14188_v47, %v14191_v15  ;;  %v5828_v30 = vrot.slane %v5814_v54, %v12691_v4  ;;  %v14204_v57 = vrot.slane %v5132_v20, %v12691_v4  ;;  %v14207_v6 = vrot.slane %v11300_v22, %v12691_v4 }
 0x222   : > { %16534 = vst [vmem:[#allocation165_spill] sm:$0xff] %v14197_v62  ;;  %v3911_v27 = vcombine.low %v2800_v46, %v2801_v23  ;;  %v5472_v41 = vshll.u32 %v14197_v62, 16  ;;  %v5476_v15 = vshrl.u32 %v14197_v62, 16  ;;  %v3912_v47 = vcombine.low %v2802_v42, %v2817_v10  ;;  %16537 = vst [vmem:[#allocation168_spill] sm:$0xff] %v14212_v29  ;;  %v14221_v46 = vpop.f32.mrf.mxu0  ;;  %v6172_v42 = vpop.f32.mrf.mxu1 }
 0x223   : > { %16535 = vst [vmem:[#allocation166_spill] sm:$0xff] %v14204_v57  ;;  %16536 = vst [vmem:[#allocation167_spill] sm:$0xff] %v14207_v6  ;;  %v5170_v11 = vrot.slane %v5162_v45, %v12691_v4  ;;  %v14214_v60 = vcombine.low %v5821_v44, %v5828_v30  ;;  %v5163_v20 = vcombine.low %v14204_v57, %v14207_v6 }
 0x224   : > { %v3913_v54 = vcombine.low %v2824_v9, %v2825_v38  ;;  %v14219_v22 = vrot.slane %v3911_v27, %v12691_v4  ;;  %v5474_v23 = vrot.slane %v5472_v41, 1  ;;  %v14224_v45 = vrot.slane %v3912_v47, %v12691_v4  ;;  %v11854_v9 = vpop.f32.mrf.mxu0 }
 0x225   : > { %16538 = vst [vmem:[#allocation169_spill] sm:$0xff] %v14214_v60  ;;  %v3959_v17 = vcombine.low %v2826_v48, %v2840_v25  ;;  %v2848_v10 = vcombine.high %v11258_v51, %v11258_v51  ;;  %11909 = vmatmul.mubr.bf16.gmra.mxu0 %v14214_v60  ;;  %v5177_v44 = vrot.slane %v5163_v20, %v12691_v4 }
 0x226   : > { %16539 = vst [vmem:[#allocation170_spill] sm:$0xff] %v14219_v22  ;;  %16540 = vst [vmem:[#allocation171_spill] sm:$0xff] %v14224_v45  ;;  %v14229_v30 = vrot.slane %v3913_v54, %v12691_v4  ;;  %v14232_v38 = vrot.slane %v11258_v51, %v12691_v4  ;;  %v2872_v27 = vcombine.high %v11259_v59, %v11259_v59  ;;  %11912 = vmatprep.mubr.msk.bf16.mxu0 %vm12328_vm5, %v16386_v39 }
 0x227   : > { %v5475_v41 = vsel %vm4010_vm10, %v14156_v13, %v5474_v23  ;;  %v5478_v47 = vor.u32 %v5476_v15, %v5474_v23  ;;  %v14239_v48 = vrot.slane %v3959_v17, %v12691_v4  ;;  %v5830_v20 = vcombine.low %v14219_v22, %v14224_v45  ;;  %v14248_v13 = vpop.f32.mrf.mxu0  ;;  %v11260_v22 = vld.sshfl [vmem:[#allocation2 + $0xe0] sm:$0x1 pattern:$0x75316420] }
 0x228   : > { %16541 = vst [vmem:[#allocation172_spill] sm:$0xff] %v14229_v30  ;;  %16542 = vst [vmem:[#allocation173_spill] sm:$0xff] %v14232_v38  ;;  %6285 = vmatprep.mubr.bf16.mxu1 %v5475_v41  ;;  %v14243_v54 = vcombine.low %v5170_v11, %v5177_v44  ;;  %v2862_v51 = vrot.slane %v2848_v10, %v12691_v4  ;;  %v2879_v42 = vrot.slane %v11259_v59, %v12691_v4 }
 0x229   : > { %16543 = vst [vmem:[#allocation174_spill] sm:$0xff] %v14239_v48  ;;  %v2886_v9 = vrot.slane %v2872_v27, %v12691_v4  ;;  %6286 = vmatmul.mubr.bf16.gmra.mxu1 %v14121_v49  ;;  %v5831_v17 = vcombine.low %v14229_v30, %v14239_v48  ;;  %v5838_v15 = vrot.slane %v5830_v20, %v12691_v4  ;;  %v11855_v41 = vpop.f32.mrf.mxu0 }
 0x22a   : > { %v2863_v23 = vcombine.high %v14232_v38, %v14232_v38  ;;  %v5179_v11 = vcombine.low %v2840_v25, %v14232_v38  ;;  %v5480_v10 = vshll.u32 %v14243_v54, 16  ;;  %v5847_v59 = vcombine.low %v14232_v38, %v2862_v51 }
 0x22b   : > { %v11301_v44 = vcombine.high %v14232_v38, %v2862_v51  ;;  %v5849_v27 = vcombine.low %v2879_v42, %v2886_v9  ;;  %v5845_v6 = vrot.slane %v5831_v17, %v12691_v4  ;;  %v11302_v57 = vcombine.high %v2879_v42, %v2886_v9 }
 0x22c   : > { %v2864_v60 = vcombine.high %v2862_v51, %v2862_v51  ;;  %v2887_v29 = vcombine.high %v2879_v42, %v2879_v42  ;;  %v5482_v48 = vrot.slane %v5480_v10, 1  ;;  %v5857_v20 = vrot.slane %v5847_v59, %v12691_v4  ;;  %v14271_v59 = vpop.f32.mrf.mxu1 }
 0x22d   : > { %v5864_v49 = vrot.slane %v11301_v44, %v12691_v4  ;;  %v5871_v25 = vrot.slane %v5849_v27, %v12691_v4  ;;  %v14264_v45 = vcombine.low %v5838_v15, %v5845_v6  ;;  %v5878_v30 = vrot.slane %v11302_v57, %v12691_v4  ;;  %v11261_v57 = vld.sshfl [vmem:[#allocation2 + $0xe4] sm:$0x33 pattern:$0x75316420] }
 0x22e   : > { %v14268_v38 = vrot.slane %v5179_v11, %v12691_v4  ;;  %v5263_v41 = vcombine.low %v2862_v51, %v2863_v23  ;;  %v5483_v17 = vsel %vm4010_vm10, %v5478_v47, %v5482_v48  ;;  %v5264_v2 = vcombine.low %v2864_v60, %v2879_v42  ;;  %v6177_v51 = vpop.f32.mrf.mxu1  ;;  %v11205_v27 = vld.sshfl [vmem:[#allocation2 + $0x4] sm:$0x33 pattern:$0x75316420] }
 0x22f   : > { %16544 = vst [vmem:[#allocation175_spill] sm:$0xff] %v14264_v45  ;;  %v5879_v61 = vcombine.low %v5857_v20, %v5864_v49  ;;  %v5265_v10 = vcombine.low %v2886_v9, %v2887_v29  ;;  %6293 = vmatprep.mubr.bf16.mxu1 %v5483_v17  ;;  %11913 = vmatmul.mubr.bf16.gmra.mxu0 %v14264_v45 }
 0x230   : > { %16545 = vst [vmem:[#allocation176_spill] sm:$0xff] %v14268_v38  ;;  %v5880_v6 = vcombine.low %v5871_v25, %v5878_v30  ;;  %v14275_v15 = vrot.slane %v5263_v41, %v12691_v4  ;;  %v2888_v11 = vcombine.high %v2886_v9, %v2886_v9  ;;  %11916 = vmatprep.mubr.msk.bf16.mxu0 %vm12328_vm5, %v16386_v39  ;;  %v5484_v9 = vshrl.u32 %v14243_v54, 16  ;;  %v14297_v20 = vpop.f32.mrf.mxu1 }
 0x231   : > { %v5887_v47 = vrot.slane %v5879_v61, %v12691_v4  ;;  %v14281_v49 = vrot.slane %v5264_v2, %v12691_v4  ;;  %v14284_v29 = vrot.slane %v5265_v10, %v12691_v4  ;;  %v2902_v60 = vrot.slane %v11260_v22, %v12691_v4  ;;  %6294 = vmatmul.mubr.bf16.gmra.mxu1 %v14197_v62 }
 0x232   : > { %16546 = vst [vmem:[#allocation177_spill] sm:$0xff] %v14275_v15  ;;  %v5894_v30 = vrot.slane %v5880_v6, %v12691_v4  ;;  %v5287_v42 = vcombine.low %v14268_v38, %v14275_v15  ;;  %v2910_v23 = vcombine.high %v11261_v57, %v11261_v57  ;;  %v14295_v2 = vrot.slane %v11261_v57, %v12691_v4 }
 0x233   : > { %16547 = vst [vmem:[#allocation178_spill] sm:$0xff] %v14281_v49  ;;  %16548 = vst [vmem:[#allocation179_spill] sm:$0xff] %v14284_v29  ;;  %v5288_v61 = vcombine.low %v14281_v49, %v14284_v29  ;;  %v5304_v44 = vcombine.low %v2888_v11, %v2902_v60  ;;  %v1732_v22 = vcombine.high %v11204_v58, %v11204_v58 }
 0x234   : > { %16549 = vst [vmem:[#allocation180_spill] sm:$0xff] %v14295_v2  ;;  %v14299_v25 = vcombine.low %v5887_v47, %v5894_v30  ;;  %v5295_v41 = vrot.slane %v5287_v42, %v12691_v4  ;;  %v14303_v17 = vrot.slane %v2910_v23, %v12691_v4  ;;  %v14306_v10 = vrot.slane %v11204_v58, %v12691_v4  ;;  %v6180_v47 = vpop.f32.mrf.mxu1  ;;  %v11206_v42 = vld.sshfl [vmem:[#allocation2 + $0x8] sm:$0x1 pattern:$0x75316420] }
 0x235   : > { %v5302_v6 = vrot.slane %v5288_v61, %v12691_v4  ;;  %v2925_v57 = vcombine.high %v14295_v2, %v14295_v2  ;;  %v5896_v11 = vcombine.low %v2902_v60, %v14295_v2  ;;  %v14313_v51 = vrot.slane %v5304_v44, %v12691_v4 }
 0x236   : > { %16550 = vst [vmem:[#allocation181_spill] sm:$0xff] %v14299_v25  ;;  %16551 = vst [vmem:[#allocation182_spill] sm:$0xff] %v14303_v17  ;;  %v5327_v30 = vrot.slane %v14295_v2, %v12691_v4  ;;  %v1746_v23 = vrot.slane %v1732_v22, %v12691_v4  ;;  %v1747_v58 = vcombine.high %v14306_v10, %v14306_v10 }
 0x237   : > { %v1756_v29 = vcombine.high %v11205_v27, %v11205_v27  ;;  %v14320_v61 = vcombine.low %v5295_v41, %v5302_v6  ;;  %v5486_v15 = vor.u32 %v5484_v9, %v5482_v48  ;;  %v5903_v49 = vrot.slane %v5896_v11, %v12691_v4  ;;  %11917 = vmatmul.mubr.bf16.gmra.mxu0 %v14299_v25 }
 0x238   : > { %v7049_v60 = vcombine.low %v14303_v17, %v2925_v57  ;;  %v5328_v44 = vcombine.low %v14313_v51, %v5327_v30  ;;  %v1748_v47 = vcombine.high %v1746_v23, %v1746_v23  ;;  %v1763_v2 = vrot.slane %v11205_v27, %v12691_v4  ;;  %11920 = vmatprep.mubr.msk.bf16.mxu0 %vm12328_vm5, %v16386_v39  ;;  %v14335_v17 = vpop.f32.mrf.mxu0  ;;  %v14337_v27 = vpop.f32.mrf.mxu1 }
 0x239   : > { %v1770_v22 = vrot.slane %v1756_v29, %v12691_v4  ;;  %v5488_v45 = vshll.u32 %v14320_v61, 16  ;;  %v5492_v9 = vshrl.u32 %v14320_v61, 16  ;;  %v1786_v41 = vrot.slane %v11206_v42, %v12691_v4 }
 0x23a   : > { %v7058_v48 = vrot.slane %v7049_v60, %v12691_v4  ;;  %v5335_v6 = vrot.slane %v5328_v44, %v12691_v4  ;;  %v1771_v57 = vcombine.high %v1763_v2, %v1763_v2  ;;  %v4199_v30 = vcombine.low %v1746_v23, %v1747_v58  ;;  %v11858_v14 = vpop.f32.mrf.mxu0  ;;  %v6185_v44 = vpop.f32.mrf.mxu1 }
 0x23b   : > { %v1772_v11 = vcombine.high %v1770_v22, %v1770_v22  ;;  %v5490_v29 = vrot.slane %v5488_v45, 1  ;;  %v5910_v25 = vrot.slane %v5903_v49, %v12691_v4  ;;  %v4200_v62 = vcombine.low %v1748_v47, %v1763_v2 }
 0x23c   : > { %v14340_v38 = vcombine.low %v5903_v49, %v7058_v48  ;;  %v5496_v60 = vshll.u32 %v5335_v6, 16  ;;  %v4201_v35 = vcombine.low %v1770_v22, %v1771_v57  ;;  %v4209_v42 = vrot.slane %v4199_v30, %v12691_v4  ;;  %v14348_v48 = vpop.f32.mrf.mxu0  ;;  %v14350_v57 = vpop.f32.mrf.mxu1 }
 0x23d   : > { %v4202_v21 = vcombine.low %v1772_v11, %v1786_v41  ;;  %v5491_v52 = vsel %vm4010_vm10, %v5486_v15, %v5490_v29  ;;  %v5494_v58 = vor.u32 %v5492_v9, %v5490_v29  ;;  %v4216_v7 = vrot.slane %v4200_v62, %v12691_v4 }
 0x23e   : > { %6301 = vmatprep.mubr.bf16.mxu1 %v5491_v52  ;;  %v5498_v63 = vrot.slane %v5496_v60, 1  ;;  %v4223_v45 = vrot.slane %v4201_v35, %v12691_v4  ;;  %v2979_v47 = vcombine.low %v14306_v10, %v1746_v23  ;;  %v11265_v15 = vcombine.high %v14306_v10, %v1746_v23  ;;  %v11859_v30 = vpop.f32.mrf.mxu0  ;;  %v6188_v29 = vpop.f32.mrf.mxu1 }
 0x23f   : > { %v4230_v49 = vrot.slane %v4202_v21, %v12691_v4  ;;  %6302 = vmatmul.mubr.bf16.gmra.mxu1 %v14243_v54  ;;  %v4231_v14 = vcombine.low %v4209_v42, %v4216_v7  ;;  %v2981_v9 = vcombine.low %v1763_v2, %v1770_v22  ;;  %v11266_v11 = vcombine.high %v1763_v2, %v1770_v22 }
 0x240   : > { %11921 = vmatmul.mubr.bf16.gmra.mxu0 %v5910_v25  ;;  %v5499_v52 = vsel %vm4010_vm10, %v5494_v58, %v5498_v63  ;;  %v5500_v35 = vshrl.u32 %v5335_v6, 16  ;;  %v2989_v21 = vrot.slane %v2979_v47, %v12691_v4  ;;  %v2996_v7 = vrot.slane %v11265_v15, %v12691_v4 }
 0x241   : > { %v4232_v62 = vcombine.low %v4223_v45, %v4230_v49  ;;  %6307 = vmatprep.mubr.bf16.mxu1 %v5499_v52  ;;  %11940 = vmatprep.mubr.msk.bf16.mxu0 %vm12328_vm5, %v16386_v39  ;;  %v4239_v60 = vrot.slane %v4231_v14, %v12691_v4  ;;  %v3003_v10 = vrot.slane %v2981_v9, %v12691_v4  ;;  %v12265_v14 = vld [vmem:[%s16153_s4 + $0x238] sm:$0xff]   ;;  %v14390_v9 = vpop.f32.mrf.mxu0 }
 0x242   : > { %v3010_v25 = vrot.slane %v11266_v11, %v12691_v4  ;;  %v3028_v23 = vcombine.low %v1786_v41, %v12700_v26  ;;  %v3061_v22 = vcombine.low %v12746_v37, %v12751_v50  ;;  %v3011_v6 = vcombine.low %v2989_v21, %v2996_v7  ;;  %v6191_v11 = vpop.f32.mrf.mxu1 }
 0x243   : > { %v4246_v2 = vrot.slane %v4232_v62, %v12691_v4  ;;  %v3110_v42 = vcombine.low %v12819_v33, %v12822_v34  ;;  %v5502_v58 = vor.u32 %v5500_v35, %v5498_v63  ;;  %v3109_v26 = vcombine.low %v12756_v55, %v12809_v19  ;;  %v11862_v29 = vpop.f32.mrf.mxu0 }
 0x244   : > { %v3012_v45 = vcombine.low %v3003_v10, %v3010_v25  ;;  %v3038_v49 = vrot.slane %v3028_v23, %v12691_v4  ;;  %v3019_v47 = vrot.slane %v3011_v6, %v12691_v4  ;;  %v3075_v33 = vrot.slane %v3061_v22, %v12691_v4  ;;  %v12271_v25 = vld [vmem:[%s16153_s4 + $0x228] sm:$0xff]  }
 0x245   : > { %v4247_v44 = vcombine.low %v4239_v60, %v4246_v2  ;;  %v3124_v34 = vrot.slane %v3110_v42, %v12691_v4  ;;  %v3117_v55 = vrot.slane %v3109_v26, %v12691_v4  ;;  %v5318_v52 = vrot.slane %v14313_v51, %v12691_v4  ;;  %v6193_v60 = vpop.f32.mrf.mxu1  ;;  %v14405_v23 = vpop.f32.mrf.mxu0 }
 0x246   : > { %v3026_v37 = vrot.slane %v3012_v45, %v12691_v4  ;;  %v3060_v50 = vcombine.low %v3038_v49, %v12742_v32  ;;  %v12268_v32 = vld [vmem:[%s16153_s4 + $0x230] sm:$0xff]   ;;  %v3159_v35 = vcombine.low %v12928_v18, %v12932_v5  ;;  %v3158_v7 = vcombine.low %v12827_v40, %v12923_v8 }
 0x247   : > { %6308 = vmatmul.mubr.bf16.gmra.mxu1 %v14320_v61  ;;  %v14394_v62 = vcombine.low %v3117_v55, %v3124_v34  ;;  %v6194_v18 = vpop.f32.mrf.mxu1  ;;  %v11863_v40 = vpop.f32.mrf.mxu0  ;;  %v3207_v26 = vcombine.low %v12938_v43, %v13023_v3  ;;  %v12277_v43 = vld [vmem:[%s16153_s4 + $0x218] sm:$0xff]   ;;  %v12266_v3 = vld [vmem:[%s16153_s4 + $0x1b0] sm:$0xff]   ;;  %v12267_v34 = vld [vmem:[%s16153_s4 + $0x1a8] sm:$0xff]  }
 0x248   : > { %11941 = vmatmul.mubr.bf16.vlgmr.msra.gmra.mxu0 %v4247_v44  ;;  %6313 = vmatprep.mubr.bf16.mxu1 %v5502_v58  ;;  %v3027_v63 = vcombine.low %v3019_v47, %v3026_v37  ;;  %v3068_v41 = vrot.slane %v3060_v50, %v12691_v4  ;;  %v3173_v22 = vrot.slane %v3159_v35, %v12691_v4  ;;  %v12274_v58 = vld [vmem:[%s16153_s4 + $0x220] sm:$0xff]  }
 0x249   : > { %11944 = vmatprep.mubr.msk.bf16.mxu0 %vm12328_vm5, %v16386_v39  ;;  %12025 = vmatpush3.bf16.msra.mxu0 %v12265_v14  ;;  %v4027_v5 = vshll.u32 %v14394_v62, 16  ;;  %v6196_v8 = vpop.f32.mrf.mxu1  ;;  %v3166_v42 = vrot.slane %v3158_v7, %v12691_v4  ;;  %v3208_v44 = vcombine.low %v13028_v56, %v13031_v0  ;;  %v14424_v47 = vadd.f32 %v14139_v28, %v14271_v59  ;;  %v12264_v56 = vld [vmem:[%s16153_s4 + $0x1b8] sm:$0xff]   ;;  %v12269_v35 = vld [vmem:[%s16153_s4 + $0x1a0] sm:$0xff]  }
 0x24a   : > { %v14387_v19 = vcombine.low %v3068_v41, %v3075_v33  ;;  %v4012_v61 = vshrl.u32 %v3027_v63, 16  ;;  %v4014_v15 = vshll.u32 %v3027_v63, 16  ;;  %12026 = vmatprep.subr.bf16.mxu0 %v16386_v39  ;;  %v14432_v0 = vadd.f32 %v14161_v16, %v14297_v20  ;;  %v16556_v40 = vld [vmem:[#allocation32_spill] sm:$0xff]  ;;  %v16557_v8 = vld [vmem:[#allocation26_spill] sm:$0xff] }
 0x24b   : > { %v4029_v49 = vrot.slane %v4027_v5, 1  ;;  %v14438_v37 = vadd.f32 %v14221_v46, %v14337_v27  ;;  %v3222_v28 = vrot.slane %v3208_v44, %v12691_v4  ;;  %v14445_v16 = vadd.f32 %v14248_v13, %v14350_v57 }
 0x24c   : > { %v4016_v21 = vrot.slane %v4014_v15, 1  ;;  %v4019_v30 = vshll.u32 %v14387_v19, 16  ;;  %v4023_v45 = vshrl.u32 %v14387_v19, 16  ;;  %v14448_v20 = vadd.f32 %v14335_v17, %v6191_v11 }
 0x24d   : > { %12027 = vmatpush3.bf16.msra.mxu0 %v12268_v32  ;;  %v3215_v46 = vrot.slane %v3207_v26, %v12691_v4  ;;  %v14460_v13 = vadd.f32 %v14348_v48, %v6194_v18  ;;  %v4031_v17 = vshrl.u32 %v14394_v62, 16  ;;  %v12280_v48 = vld [vmem:[%s16153_s4 + $0x210] sm:$0xff]   ;;  %v12286_v26 = vld [vmem:[%s16153_s4 + $0x200] sm:$0xff]  }
 0x24e   : > { %v4017_v10 = vor.u32 %v4016_v21, %v4012_v61  ;;  %v4021_v2 = vrot.slane %v4019_v30, 1  ;;  %12028 = vmatprep.subr.bf16.mxu0 %v16386_v39  ;;  %v16553_v30 = vld [vmem:[#allocation13_spill] sm:$0xff]  ;;  %v16555_v18 = vld [vmem:[#allocation34_spill] sm:$0xff] }
 0x24f   : > { %6314 = vmatmul.mubr.bf16.gmra.mxu1 %v5318_v52  ;;  %v14466_v57 = vcombine.low %v3215_v46, %v3222_v28  ;;  %v4033_v55 = vor.u32 %v4031_v17, %v4029_v49  ;;  %v16559_v46 = vld [vmem:[#allocation44_spill] sm:$0xff]  ;;  %v16560_v17 = vld [vmem:[#allocation43_spill] sm:$0xff] }
 0x250   : > { %v4022_v6 = vsel %vm4010_vm10, %v4017_v10, %v4021_v2  ;;  %11945 = vmatmul.mubr.bf16.gmra.mxu0 %v12898_v24  ;;  %v14420_v24 = vcombine.low %v3166_v42, %v3173_v22  ;;  %v4025_v14 = vor.u32 %v4023_v45, %v4021_v2  ;;  %v12270_v22 = vld [vmem:[%s16153_s4 + $0x198] sm:$0xff]   ;;  %v3305_v42 = vcombine.low %v16557_v8, %v16556_v40 }
 0x251   : > { %6691 = vmatprep.mubr.bf16.mxu1 %v4022_v6  ;;  %11948 = vmatprep.mubr.msk.bf16.mxu0 %vm12328_vm5, %v16386_v39  ;;  %v6199_v33 = vpop.f32.mrf.mxu1  ;;  %v4043_v11 = vshll.u32 %v14466_v57, 16 }
 0x252   : > { %12029 = vmatpush3.bf16.msra.mxu0 %v12271_v25  ;;  %v4030_v59 = vsel %vm4010_vm10, %v4025_v14, %v4029_v49  ;;  %v4035_v50 = vshll.u32 %v14420_v24, 16  ;;  %v14477_v41 = vadd.f32 %v14390_v9, %v6199_v33  ;;  %v4039_v10 = vshrl.u32 %v14420_v24, 16 }
 0x253   : > { %12030 = vmatprep.subr.bf16.mxu0 %v16386_v39  ;;  %v6201_v32 = vpop.f32.mrf.mxu1  ;;  %v4045_v2 = vrot.slane %v4043_v11, 1  ;;  %v3313_v28 = vrot.slane %v3305_v42, %v12691_v4 }
 0x254   : > { %v4037_v27 = vrot.slane %v4035_v50, 1  ;;  %v4047_v50 = vshrl.u32 %v14466_v57, 16 }
 0x255   : > { %v6202_v9 = vpop.f32.mrf.mxu1 }
 0x256   : > { %12031 = vmatpush3.bf16.msra.mxu0 %v12274_v58  ;;  %v4038_v15 = vsel %vm4010_vm10, %v4033_v55, %v4037_v27  ;;  %v4041_v6 = vor.u32 %v4039_v10, %v4037_v27  ;;  %v3355_v27 = vcombine.low %v16560_v17, %v16559_v46  ;;  %v16561_v55 = vld [vmem:[#allocation42_spill] sm:$0xff]  ;;  %v12279_v17 = vld [vmem:[%s16153_s4 + $0x1e8] sm:$0xff]  }
 0x257   : > { %6692 = vmatmul.mubr.bf16.vlgmr.msra.gmra.mxu1 %v3027_v63  ;;  %12032 = vmatprep.subr.bf16.mxu0 %v16386_v39  ;;  %v6402_v63 = vpop.f32.mrf.mxu0  ;;  %v6204_v60 = vpop.f32.mrf.mxu1  ;;  %v16565_v10 = vld [vmem:[#allocation54_spill] sm:$0xff] }
 0x258   : > { %7912 = vmatpush1.bf16.msra.mxu1 %v12264_v56  ;;  %6699 = vmatprep.mubr.bf16.mxu1 %v4030_v59  ;;  %v4046_v44 = vsel %vm4010_vm10, %v4041_v6, %v4045_v2  ;;  %v12272_v56 = vld [vmem:[%s16153_s4 + $0x190] sm:$0xff]  }
 0x259   : > { %11949 = vmatmul.mubr.bf16.gmra.mxu0 %v12918_v36  ;;  %7913 = vmatprep.subr.bf16.mxu1 %v16384_v1  ;;  %v3257_v36 = vcombine.low %v13179_v12, %v13182_v53  ;;  %v16552_v12 = vld [vmem:[#allocation14_spill] sm:$0xff]  ;;  %v11866_v61 = vpop.f32.mrf.mxu0 }
 0x25a   : > { %11952 = vmatprep.mubr.msk.bf16.mxu0 %vm12328_vm5, %v16386_v39  ;;  %12033 = vmatpush3.bf16.msra.mxu0 %v12277_v43  ;;  %v3256_v53 = vcombine.low %v16552_v12, %v13171_v31  ;;  %v14491_v31 = vadd.f32 %v14405_v23, %v6202_v9  ;;  %v16554_v23 = vld [vmem:[#allocation33_spill] sm:$0xff]  ;;  %v16562_v12 = vld [vmem:[#allocation36_spill] sm:$0xff] }
 0x25b   : > { %12034 = vmatprep.subr.bf16.mxu0 %v16386_v39  ;;  %v3271_v52 = vrot.slane %v3257_v36, %v12691_v4  ;;  %v6405_v21 = vpop.f32.mrf.mxu0  ;;  %v3306_v5 = vcombine.low %v16555_v18, %v16554_v23  ;;  %v12276_v23 = vld [vmem:[%s16153_s4 + $0x1f8] sm:$0xff]  }
 0x25c   : > { %7914 = vmatpush1.bf16.msra.mxu1 %v12266_v3  ;;  %v3264_v29 = vrot.slane %v3256_v53, %v12691_v4  ;;  %v3354_v53 = vcombine.low %v16562_v12, %v16561_v55 }
 0x25d   : > { %7915 = vmatprep.subr.bf16.mxu1 %v16384_v1  ;;  %v11867_v7 = vpop.f32.mrf.mxu0  ;;  %v3320_v45 = vrot.slane %v3306_v5, %v12691_v4  ;;  %v16566_v5 = vld [vmem:[#allocation53_spill] sm:$0xff] }
 0x25e   : > { %12035 = vmatpush3.bf16.msra.mxu0 %v12280_v48  ;;  %v14502_v25 = vcombine.low %v3264_v29, %v3271_v52  ;;  %v6207_v49 = vpop.f32.mrf.mxu1  ;;  %v12273_v48 = vld [vmem:[%s16153_s4 + $0x188] sm:$0xff]   ;;  %v3369_v52 = vrot.slane %v3355_v27, %v12691_v4  ;;  %v16564_v7 = vld [vmem:[#allocation55_spill] sm:$0xff] }
 0x25f   : > { %6700 = vmatmul.mubr.bf16.gmra.mxu1 %v14387_v19  ;;  %v12283_v19 = vld [vmem:[%s16153_s4 + $0x208] sm:$0xff]   ;;  %12036 = vmatprep.subr.bf16.mxu0 %v16386_v39  ;;  %v14521_v14 = vadd.f32 %v6402_v63, %v6207_v49  ;;  %v14532_v3 = vcombine.low %v3313_v28, %v3320_v45  ;;  %v4049_v63 = vor.u32 %v4047_v50, %v4045_v2  ;;  %v16570_v28 = vld [vmem:[#allocation63_spill] sm:$0xff] }
 0x260   : > { %6707 = vmatprep.mubr.bf16.mxu1 %v4038_v15  ;;  %7916 = vmatpush1.bf16.msra.mxu1 %v12267_v34  ;;  %v4051_v58 = vshll.u32 %v14502_v25, 16  ;;  %v6209_v59 = vpop.f32.mrf.mxu1  ;;  %v3404_v2 = vcombine.low %v16565_v10, %v16564_v7  ;;  %v12282_v10 = vld [vmem:[%s16153_s4 + $0x1d8] sm:$0xff]  }
 0x261   : > { %11953 = vmatmul.mubr.bf16.gmra.mxu0 %v16553_v30  ;;  %7917 = vmatprep.subr.bf16.mxu1 %v16384_v1  ;;  %v4059_v11 = vshll.u32 %v14532_v3, 16  ;;  %v4055_v30 = vshrl.u32 %v14502_v25, 16  ;;  %v4063_v49 = vshrl.u32 %v14532_v3, 16 }
 0x262   : > { %11956 = vmatprep.mubr.msk.bf16.mxu0 %vm12328_vm5, %v16386_v39  ;;  %12037 = vmatpush3.bf16.msra.mxu0 %v12283_v19  ;;  %v4053_v43 = vrot.slane %v4051_v58, 1  ;;  %v6410_v36 = vpop.f32.mrf.mxu0  ;;  %v6210_v33 = vpop.f32.mrf.mxu1  ;;  %v3362_v19 = vrot.slane %v3354_v53, %v12691_v4  ;;  %v3418_v42 = vrot.slane %v3404_v2, %v12691_v4  ;;  %v16568_v58 = vld [vmem:[#allocation35_spill] sm:$0xff] }
 0x263   : > { %12038 = vmatprep.subr.bf16.mxu0 %v16386_v39  ;;  %v14539_v34 = vadd.f32 %v6405_v21, %v6210_v33  ;;  %v16563_v21 = vld [vmem:[#allocation25_spill] sm:$0xff]  ;;  %v4061_v29 = vrot.slane %v4059_v11, 1  ;;  %v16571_v33 = vld [vmem:[#allocation62_spill] sm:$0xff] }
 0x264   : > { %7918 = vmatpush1.bf16.msra.mxu1 %v12269_v35  ;;  %v11870_v32 = vpop.f32.mrf.mxu0  ;;  %v6212_v61 = vpop.f32.mrf.mxu1  ;;  %v4054_v15 = vsel %vm4010_vm10, %v4049_v63, %v4053_v43  ;;  %v12275_v35 = vld [vmem:[%s16153_s4 + $0x180] sm:$0xff]   ;;  %v14557_v60 = vcombine.low %v3362_v19, %v3369_v52  ;;  %v4057_v18 = vor.u32 %v4055_v30, %v4053_v43 }
 0x265   : > { %7919 = vmatprep.subr.bf16.mxu1 %v16384_v1  ;;  %v4065_v27 = vor.u32 %v4063_v49, %v4061_v29  ;;  %v12281_v52 = vld [vmem:[%s16153_s4 + $0x1e0] sm:$0xff]  }
 0x266   : > { %12039 = vmatpush3.bf16.msra.mxu0 %v12286_v26  ;;  %v6413_v9 = vpop.f32.mrf.mxu0  ;;  %v4062_v40 = vsel %vm4010_vm10, %v4057_v18, %v4061_v29  ;;  %v4067_v8 = vshll.u32 %v14557_v60, 16  ;;  %v4071_v19 = vshrl.u32 %v14557_v60, 16  ;;  %v16574_v30 = vld [vmem:[#allocation75_spill] sm:$0xff]  ;;  %v16575_v29 = vld [vmem:[#allocation74_spill] sm:$0xff]  ;;  %v16577_v18 = vld [vmem:[#allocation65_spill] sm:$0xff] }
 0x267   : > { %6708 = vmatmul.mubr.bf16.gmra.mxu1 %v14394_v62  ;;  %v16558_v62 = vld [vmem:[#allocation20_spill] sm:$0xff]  ;;  %v3502_v7 = vcombine.low %v16575_v29, %v16574_v30  ;;  %v16584_v30 = vld [vmem:[#allocation94_spill] sm:$0xff]  ;;  %v16585_v29 = vld [vmem:[#allocation93_spill] sm:$0xff] }
 0x268   : > { %6715 = vmatprep.mubr.bf16.mxu1 %v4046_v44  ;;  %7920 = vmatpush1.bf16.msra.mxu1 %v12270_v22  ;;  %v16567_v22 = vld [vmem:[#allocation46_spill] sm:$0xff] }
 0x269   : > { %11957 = vmatmul.mubr.bf16.gmra.mxu0 %v16558_v62  ;;  %7921 = vmatprep.subr.bf16.mxu1 %v16384_v1  ;;  %v3403_v6 = vcombine.low %v16567_v22, %v16566_v5  ;;  %v12278_v44 = vld [vmem:[%s16153_s4 + $0x1f0] sm:$0xff]   ;;  %v16569_v62 = vld [vmem:[#allocation64_spill] sm:$0xff] }
 0x26a   : > { %11960 = vmatprep.mubr.msk.bf16.mxu0 %vm12328_vm5, %v16386_v39  ;;  %v3453_v59 = vcombine.low %v16570_v28, %v16569_v62  ;;  %v16579_v62 = vld [vmem:[#allocation84_spill] sm:$0xff]  ;;  %v16580_v28 = vld [vmem:[#allocation83_spill] sm:$0xff] }
 0x26b   : > { %v3411_v45 = vrot.slane %v3403_v6, %v12691_v4 }
 0x26c   : > { %7922 = vmatpush1.bf16.msra.mxu1 %v12272_v56  ;;  %v4069_v56 = vrot.slane %v4067_v8, 1  ;;  %v3467_v32 = vrot.slane %v3453_v59, %v12691_v4  ;;  %v3551_v59 = vcombine.low %v16580_v28, %v16579_v62 }
 0x26d   : > { %7923 = vmatprep.subr.bf16.mxu1 %v16384_v1  ;;  %v14580_v26 = vcombine.low %v3411_v45, %v3418_v42 }
 0x26e   : > { %v4070_v53 = vsel %vm4010_vm10, %v4065_v27, %v4069_v56  ;;  %v4073_v2 = vor.u32 %v4071_v19, %v4069_v56  ;;  %v12285_v27 = vld [vmem:[%s16153_s4 + $0x1c8] sm:$0xff]  }
 0x26f   : > { %6716 = vmatmul.mubr.bf16.gmra.mxu1 %v14420_v24  ;;  %v11871_v24 = vpop.f32.mrf.mxu0  ;;  %v4079_v49 = vshrl.u32 %v14580_v26, 16 }
 0x270   : > { %6723 = vmatprep.mubr.bf16.mxu1 %v4054_v15  ;;  %7924 = vmatpush1.bf16.msra.mxu1 %v12273_v48  ;;  %v16572_v48 = vld [vmem:[#allocation56_spill] sm:$0xff] }
 0x271   : > { %11961 = vmatmul.mubr.bf16.gmra.mxu0 %v16563_v21  ;;  %7925 = vmatprep.subr.bf16.mxu1 %v16384_v1  ;;  %v3452_v63 = vcombine.low %v16572_v48, %v16571_v33  ;;  %v16581_v48 = vld [vmem:[#allocation82_spill] sm:$0xff] }
 0x272   : > { %11964 = vmatprep.mubr.msk.bf16.mxu0 %vm12328_vm5, %v16386_v39  ;;  %v6215_v50 = vpop.f32.mrf.mxu1 }
 0x273   : > { %v14584_v46 = vadd.f32 %v6410_v36, %v6215_v50  ;;  %v4075_v36 = vshll.u32 %v14580_v26, 16 }
 0x274   : > { %7926 = vmatpush1.bf16.msra.mxu1 %v12275_v35  ;;  %v6217_v55 = vpop.f32.mrf.mxu1  ;;  %v16573_v35 = vld [vmem:[#allocation45_spill] sm:$0xff] }
 0x275   : > { %7927 = vmatprep.subr.bf16.mxu1 %v16384_v1  ;;  %v4077_v24 = vrot.slane %v4075_v36, 1 }
 0x276   : > { %v6218_v61 = vpop.f32.mrf.mxu1 }
 0x277   : > { %6724 = vmatmul.mubr.bf16.gmra.mxu1 %v14466_v57  ;;  %v6418_v57 = vpop.f32.mrf.mxu0  ;;  %v14596_v11 = vadd.f32 %v6413_v9, %v6218_v61  ;;  %v4078_v22 = vsel %vm4010_vm10, %v4073_v2, %v4077_v24  ;;  %v4081_v33 = vor.u32 %v4079_v49, %v4077_v24  ;;  %v3565_v61 = vrot.slane %v3551_v59, %v12691_v4  ;;  %v16586_v2 = vld [vmem:[#allocation92_spill] sm:$0xff]  ;;  %v16590_v49 = vld [vmem:[#allocation103_spill] sm:$0xff] }
 0x278   : > { %6731 = vmatprep.mubr.bf16.mxu1 %v4062_v40  ;;  %7928 = vmatpush2.bf16.msra.mxu1 %v12276_v23  ;;  %v6220_v21 = vpop.f32.mrf.mxu1  ;;  %v16576_v23 = vld [vmem:[#allocation73_spill] sm:$0xff]  ;;  %v3516_v40 = vrot.slane %v3502_v7, %v12691_v4  ;;  %v3600_v7 = vcombine.low %v16585_v29, %v16584_v30  ;;  %v16595_v30 = vld [vmem:[#allocation115_spill] sm:$0xff] }
 0x279   : > { %11965 = vmatmul.mubr.bf16.gmra.mxu0 %v16568_v58  ;;  %7929 = vmatprep.subr.bf16.mxu1 %v16384_v1  ;;  %v11874_v43 = vpop.f32.mrf.mxu0  ;;  %v3501_v5 = vcombine.low %v16577_v18, %v16576_v23  ;;  %v16578_v58 = vld [vmem:[#allocation52_spill] sm:$0xff]  ;;  %v16587_v23 = vld [vmem:[#allocation85_spill] sm:$0xff] }
 0x27a   : > { %11968 = vmatprep.mubr.msk.bf16.mxu0 %vm12328_vm5, %v16386_v39  ;;  %v3599_v18 = vcombine.low %v16587_v23, %v16586_v2  ;;  %v16597_v2 = vld [vmem:[#allocation105_spill] sm:$0xff] }
 0x27b   : > { %v6421_v12 = vpop.f32.mrf.mxu0  ;;  %v3509_v45 = vrot.slane %v3501_v5, %v12691_v4 }
 0x27c   : > { %7930 = vmatpush2.bf16.msra.mxu1 %v12278_v44  ;;  %v12284_v44 = vld [vmem:[%s16153_s4 + $0x1d0] sm:$0xff]  }
 0x27d   : > { %7931 = vmatprep.subr.bf16.mxu1 %v16384_v1  ;;  %v11875_v15 = vpop.f32.mrf.mxu0 }
 0x27f   : > { %6732 = vmatmul.mubr.bf16.gmra.mxu1 %v14502_v25  ;;  %v3460_v25 = vrot.slane %v3452_v63, %v12691_v4  ;;  %v6223_v8 = vpop.f32.mrf.mxu1  ;;  %v16582_v63 = vld [vmem:[#allocation76_spill] sm:$0xff] }
 0x280   : > { %6739 = vmatprep.mubr.bf16.mxu1 %v4070_v53  ;;  %7932 = vmatpush2.bf16.msra.mxu1 %v12279_v17  ;;  %v14621_v42 = vadd.f32 %v6418_v57, %v6223_v8  ;;  %v14632_v57 = vcombine.low %v3509_v45, %v3516_v40  ;;  %v3550_v55 = vcombine.low %v16582_v63, %v16581_v48  ;;  %v16588_v40 = vld [vmem:[#allocation72_spill] sm:$0xff] }
 0x281   : > { %11969 = vmatmul.mubr.bf16.gmra.mxu0 %v16573_v35  ;;  %7933 = vmatprep.subr.bf16.mxu1 %v16384_v1  ;;  %v14607_v9 = vcombine.low %v3460_v25, %v3467_v32  ;;  %v16583_v35 = vld [vmem:[#allocation66_spill] sm:$0xff]  ;;  %v3607_v8 = vrot.slane %v3599_v18, %v12691_v4 }
 0x282   : > { %11972 = vmatprep.mubr.msk.bf16.mxu0 %vm12328_vm5, %v16386_v39  ;;  %v3558_v25 = vrot.slane %v3550_v55, %v12691_v4 }
 0x283   : > { %v4083_v6 = vshll.u32 %v14607_v9, 16  ;;  %v6426_v50 = vpop.f32.mrf.mxu0 }
 0x284   : > { %7934 = vmatpush2.bf16.msra.mxu1 %v12281_v52  ;;  %v12287_v52 = vld [vmem:[%s16153_s4 + $0x1c0] sm:$0xff]   ;;  %v14657_v24 = vcombine.low %v3558_v25, %v3565_v61 }
 0x285   : > { %7935 = vmatprep.subr.bf16.mxu1 %v16384_v1  ;;  %v4085_v56 = vrot.slane %v4083_v6, 1  ;;  %v11878_v53 = vpop.f32.mrf.mxu0  ;;  %v3614_v6 = vrot.slane %v3600_v7, %v12691_v4 }
 0x287   : > { %6740 = vmatmul.mubr.bf16.gmra.mxu1 %v14532_v3  ;;  %v6225_v3 = vpop.f32.mrf.mxu1  ;;  %v4086_v32 = vsel %vm4010_vm10, %v4081_v33, %v4085_v56  ;;  %v6429_v15 = vpop.f32.mrf.mxu0 }
 0x288   : > { %6747 = vmatprep.mubr.bf16.mxu1 %v4078_v22  ;;  %7936 = vmatpush2.bf16.msra.mxu1 %v12282_v10  ;;  %v4099_v22 = vshll.u32 %v14657_v24, 16  ;;  %v14672_v3 = vcombine.low %v3607_v8, %v3614_v6 }
 0x289   : > { %11973 = vmatmul.mubr.bf16.gmra.mxu0 %v16578_v58  ;;  %7937 = vmatprep.subr.bf16.mxu1 %v16384_v1  ;;  %v6226_v43 = vpop.f32.mrf.mxu1  ;;  %v11879_v21 = vpop.f32.mrf.mxu0  ;;  %v4095_v58 = vshrl.u32 %v14632_v57, 16 }
 0x28a   : > { %11976 = vmatprep.mubr.msk.bf16.mxu0 %vm12328_vm5, %v16386_v39  ;;  %v14636_v17 = vadd.f32 %v6421_v12, %v6226_v43  ;;  %v4091_v12 = vshll.u32 %v14632_v57, 16  ;;  %v4101_v45 = vrot.slane %v4099_v22, 1  ;;  %v16591_v43 = vld [vmem:[#allocation102_spill] sm:$0xff] }
 0x28b   : > { %v6228_v36 = vpop.f32.mrf.mxu1 }
 0x28c   : > { %7938 = vmatpush2.bf16.msra.mxu1 %v12284_v44  ;;  %v4093_v19 = vrot.slane %v4091_v12, 1  ;;  %v4107_v36 = vshll.u32 %v14672_v3, 16 }
 0x28d   : > { %7939 = vmatprep.subr.bf16.mxu1 %v16384_v1 }
 0x28e   : > { %v4097_v59 = vor.u32 %v4095_v58, %v4093_v19  ;;  %v4109_v21 = vrot.slane %v4107_v36, 1 }
 0x28f   : > { %6748 = vmatmul.mubr.bf16.gmra.mxu1 %v14557_v60  ;;  %v4087_v60 = vshrl.u32 %v14607_v9, 16 }
 0x290   : > { %6755 = vmatprep.mubr.bf16.mxu1 %v4086_v32  ;;  %7940 = vmatpush2.bf16.msra.mxu1 %v12285_v27  ;;  %v16592_v27 = vld [vmem:[#allocation95_spill] sm:$0xff]  ;;  %v4102_v53 = vsel %vm4010_vm10, %v4097_v59, %v4101_v45  ;;  %v16600_v59 = vld [vmem:[#allocation126_spill] sm:$0xff] }
 0x291   : > { %11977 = vmatmul.mubr.bf16.gmra.mxu0 %v16583_v35  ;;  %7941 = vmatprep.subr.bf16.mxu1 %v16384_v1  ;;  %v4089_v10 = vor.u32 %v4087_v60, %v4085_v56  ;;  %v6434_v44 = vpop.f32.mrf.mxu0  ;;  %v3648_v33 = vcombine.low %v16592_v27, %v16591_v43 }
 0x292   : > { %11980 = vmatprep.mubr.msk.bf16.mxu0 %vm12328_vm5, %v16386_v39 }
 0x293   : > { %v4094_v5 = vsel %vm4010_vm10, %v4089_v10, %v4093_v19  ;;  %v11882_v62 = vpop.f32.mrf.mxu0  ;;  %v3656_v35 = vrot.slane %v3648_v33, %v12691_v4  ;;  %v16594_v19 = vld [vmem:[#allocation116_spill] sm:$0xff]  ;;  %v16596_v10 = vld [vmem:[#allocation114_spill] sm:$0xff] }
 0x294   : > { %7942 = vmatpush2.bf16.msra.mxu1 %v12287_v52  ;;  %v16593_v52 = vld [vmem:[#allocation86_spill] sm:$0xff]  ;;  %v3698_v29 = vcombine.low %v16595_v30, %v16594_v19  ;;  %v3697_v23 = vcombine.low %v16597_v2, %v16596_v10 }
 0x295   : > { %v6231_v28 = vpop.f32.mrf.mxu1  ;;  %v6437_v63 = vpop.f32.mrf.mxu0  ;;  %v16606_v2 = vld [vmem:[#allocation138_spill] sm:$0xff] }
 0x296   : > { %v14678_v48 = vadd.f32 %v6426_v50, %v6231_v28  ;;  %v3705_v8 = vrot.slane %v3697_v23, %v12691_v4  ;;  %v16599_v28 = vld [vmem:[#allocation124_spill] sm:$0xff]  ;;  %v16607_v23 = vld [vmem:[#allocation137_spill] sm:$0xff] }
 0x297   : > { %6756 = vmatmul.mubr.bf16.gmra.mxu1 %v14580_v26  ;;  %v16589_v26 = vld [vmem:[#allocation104_spill] sm:$0xff]  ;;  %v6233_v55 = vpop.f32.mrf.mxu1  ;;  %v11883_v12 = vpop.f32.mrf.mxu0  ;;  %v3747_v43 = vcombine.low %v16600_v59, %v16599_v28 }
 0x298   : > { %6763 = vmatprep.mubr.bf16.mxu1 %v4094_v5  ;;  %v3649_v56 = vcombine.low %v16590_v49, %v16589_v26  ;;  %v3712_v5 = vrot.slane %v3698_v29, %v12691_v4  ;;  %v4111_v26 = vshrl.u32 %v14672_v3, 16  ;;  %v16601_v55 = vld [vmem:[#allocation125_spill] sm:$0xff]  ;;  %v16604_v29 = vld [vmem:[#allocation136_spill] sm:$0xff] }
 0x299   : > { %11981 = vmatmul.mubr.bf16.gmra.mxu0 %v16588_v40  ;;  %v6234_v61 = vpop.f32.mrf.mxu1  ;;  %v16598_v40 = vld [vmem:[#allocation96_spill] sm:$0xff] }
 0x29a   : > { %11984 = vmatprep.mubr.msk.bf16.mxu0 %vm12328_vm5, %v16386_v39  ;;  %v3663_v32 = vrot.slane %v3649_v56, %v12691_v4  ;;  %v14686_v25 = vadd.f32 %v6429_v15, %v6234_v61  ;;  %v14708_v56 = vcombine.low %v3705_v8, %v3712_v5  ;;  %v4113_v33 = vor.u32 %v4111_v26, %v4109_v21 }
 0x29b   : > { %v6236_v50 = vpop.f32.mrf.mxu1 }
 0x29c   : > { %v14691_v60 = vcombine.low %v3656_v35, %v3663_v32  ;;  %v3761_v35 = vrot.slane %v3747_v43, %v12691_v4  ;;  %v16603_v50 = vld [vmem:[#allocation106_spill] sm:$0xff] }
 0x29e   : > { %v4115_v18 = vshll.u32 %v14691_v60, 16 }
 0x29f   : > { %6764 = vmatmul.mubr.bf16.gmra.mxu1 %v14607_v9  ;;  %v4103_v9 = vshrl.u32 %v14657_v24, 16 }
 0x2a0   : > { %6771 = vmatprep.mubr.bf16.mxu1 %v4102_v53  ;;  %v4117_v49 = vrot.slane %v4115_v18, 1  ;;  %v16602_v53 = vld [vmem:[#allocation117_spill] sm:$0xff] }
 0x2a1   : > { %11985 = vmatmul.mubr.bf16.gmra.mxu0 %v16593_v52  ;;  %v4105_v7 = vor.u32 %v4103_v9, %v4101_v45  ;;  %v6442_v22 = vpop.f32.mrf.mxu0  ;;  %v3746_v36 = vcombine.low %v16602_v53, %v16601_v55  ;;  %v4123_v52 = vshll.u32 %v14708_v56, 16  ;;  %v4127_v53 = vshrl.u32 %v14708_v56, 16 }
 0x2a2   : > { %11988 = vmatprep.mubr.msk.bf16.mxu0 %vm12328_vm5, %v16386_v39  ;;  %v6239_v6 = vpop.f32.mrf.mxu1  ;;  %v4118_v61 = vsel %vm4010_vm10, %v4113_v33, %v4117_v49  ;;  %v16610_v33 = vld [vmem:[#allocation139_spill] sm:$0xff] }
 0x2a3   : > { %v4110_v15 = vsel %vm4010_vm10, %v4105_v7, %v4109_v21  ;;  %v11886_v58 = vpop.f32.mrf.mxu0  ;;  %v14703_v45 = vadd.f32 %v6434_v44, %v6239_v6  ;;  %v3754_v9 = vrot.slane %v3746_v36, %v12691_v4  ;;  %v4119_v21 = vshrl.u32 %v14691_v60, 16  ;;  %v16605_v7 = vld [vmem:[#allocation127_spill] sm:$0xff] }
 0x2a4   : > { %v4125_v19 = vrot.slane %v4123_v52, 1  ;;  %v3795_v10 = vcombine.low %v16605_v7, %v16604_v29 }
 0x2a5   : > { %v6445_v62 = vpop.f32.mrf.mxu0  ;;  %v14725_v30 = vcombine.low %v3754_v9, %v3761_v35  ;;  %v4121_v6 = vor.u32 %v4119_v21, %v4117_v49 }
 0x2a6   : > { %v3803_v26 = vrot.slane %v3795_v10, %v12691_v4  ;;  %v4129_v35 = vor.u32 %v4127_v53, %v4125_v19 }
 0x2a7   : > { %6772 = vmatmul.mubr.bf16.gmra.mxu1 %v14632_v57  ;;  %v6241_v57 = vpop.f32.mrf.mxu1  ;;  %v11887_v44 = vpop.f32.mrf.mxu0  ;;  %v4126_v58 = vsel %vm4010_vm10, %v4121_v6, %v4125_v19 }
 0x2a8   : > { %6779 = vmatprep.mubr.bf16.mxu1 %v4110_v15  ;;  %v3796_v15 = vcombine.low %v16607_v23, %v16606_v2  ;;  %v4131_v57 = vshll.u32 %v14725_v30, 16  ;;  %v16613_v23 = vld [vmem:[#allocation129_spill] sm:$0xff] }
 0x2a9   : > { %11989 = vmatmul.mubr.bf16.gmra.mxu0 %v16598_v40  ;;  %v6242_v27 = vpop.f32.mrf.mxu1 }
 0x2aa   : > { %11992 = vmatprep.mubr.msk.bf16.mxu0 %vm12328_vm5, %v16386_v39  ;;  %v14714_v32 = vadd.f32 %v6437_v63, %v6242_v27  ;;  %v3810_v28 = vrot.slane %v3796_v15, %v12691_v4  ;;  %v4133_v36 = vrot.slane %v4131_v57, 1 }
 0x2ab   : > { %v6244_v12 = vpop.f32.mrf.mxu1 }
 0x2ac   : > { %v6450_v63 = vpop.f32.mrf.mxu0  ;;  %v14746_v44 = vcombine.low %v3803_v26, %v3810_v28  ;;  %v16611_v12 = vld [vmem:[#allocation149_spill] sm:$0xff]  ;;  %v4134_v21 = vsel %vm4010_vm10, %v4129_v35, %v4133_v36  ;;  %v16618_v35 = vld [vmem:[#allocation140_spill] sm:$0xff] }
 0x2ae   : > { %v11890_v18 = vpop.f32.mrf.mxu0 }
 0x2af   : > { %6780 = vmatmul.mubr.bf16.gmra.mxu1 %v14657_v24  ;;  %v6247_v24 = vpop.f32.mrf.mxu1  ;;  %v16614_v18 = vld [vmem:[#allocation157_spill] sm:$0xff] }
 0x2b0   : > { %6787 = vmatprep.mubr.bf16.mxu1 %v4118_v61  ;;  %v14731_v5 = vadd.f32 %v6442_v22, %v6247_v24  ;;  %v6453_v8 = vpop.f32.mrf.mxu0  ;;  %v16608_v22 = vld [vmem:[#allocation118_spill] sm:$0xff]  ;;  %v16612_v61 = vld [vmem:[#allocation147_spill] sm:$0xff]  ;;  %v4139_v24 = vshll.u32 %v14746_v44, 16 }
 0x2b1   : > { %11993 = vmatmul.mubr.bf16.gmra.mxu0 %v16603_v50  ;;  %v6249_v40 = vpop.f32.mrf.mxu1  ;;  %v3845_v52 = vcombine.low %v16612_v61, %v16611_v12 }
 0x2b2   : > { %11996 = vmatprep.mubr.msk.bf16.mxu0 %vm12328_vm5, %v16386_v39  ;;  %v11891_v43 = vpop.f32.mrf.mxu0  ;;  %v16616_v40 = vld [vmem:[#allocation160_spill] sm:$0xff]  ;;  %v4141_v26 = vrot.slane %v4139_v24, 1 }
 0x2b3   : > { %v6250_v59 = vpop.f32.mrf.mxu1  ;;  %v3859_v10 = vrot.slane %v3845_v52, %v12691_v4 }
 0x2b4   : > { %v14738_v27 = vadd.f32 %v6445_v62, %v6250_v59 }
 0x2b5   : > { %v6252_v49 = vpop.f32.mrf.mxu1 }
 0x2b7   : > { %6788 = vmatmul.mubr.bf16.gmra.mxu1 %v14672_v3  ;;  %v16609_v3 = vld [vmem:[#allocation146_spill] sm:$0xff] }
 0x2b8   : > { %6795 = vmatprep.mubr.bf16.mxu1 %v4126_v58  ;;  %v3844_v55 = vcombine.low %v16610_v33, %v16609_v3  ;;  %v6458_v62 = vpop.f32.mrf.mxu0  ;;  %v16617_v58 = vld [vmem:[#allocation159_spill] sm:$0xff] }
 0x2b9   : > { %11997 = vmatmul.mubr.bf16.gmra.mxu0 %v16608_v22  ;;  %v6255_v50 = vpop.f32.mrf.mxu1  ;;  %v3894_v57 = vcombine.low %v16617_v58, %v16616_v40 }
 0x2ba   : > { %12000 = vmatprep.mubr.msk.bf16.mxu0 %vm12328_vm5, %v16386_v39  ;;  %v3852_v9 = vrot.slane %v3844_v55, %v12691_v4  ;;  %v11894_v29 = vpop.f32.mrf.mxu0  ;;  %v14754_v7 = vadd.f32 %v6450_v63, %v6255_v50  ;;  %v4135_v63 = vshrl.u32 %v14725_v30, 16 }
 0x2bb   : > { %v6257_v2 = vpop.f32.mrf.mxu1  ;;  %v3908_v61 = vrot.slane %v3894_v57, %v12691_v4  ;;  %v16619_v29 = vld [vmem:[#allocation170_spill] sm:$0xff] }
 0x2bc   : > { %v6461_v19 = vpop.f32.mrf.mxu0  ;;  %v14765_v28 = vcombine.low %v3852_v9, %v3859_v10  ;;  %v4137_v49 = vor.u32 %v4135_v63, %v4133_v36  ;;  %v4143_v36 = vshrl.u32 %v14746_v44, 16  ;;  %v16620_v10 = vld [vmem:[#allocation161_spill] sm:$0xff] }
 0x2bd   : > { %v6258_v15 = vpop.f32.mrf.mxu1  ;;  %v3942_v2 = vcombine.low %v16620_v10, %v16619_v29 }
 0x2be   : > { %v11895_v59 = vpop.f32.mrf.mxu0  ;;  %v14767_v43 = vadd.f32 %v6453_v8, %v6258_v15  ;;  %v4142_v33 = vsel %vm4010_vm10, %v4137_v49, %v4141_v26  ;;  %v4147_v55 = vshll.u32 %v14765_v28, 16  ;;  %v16622_v15 = vld [vmem:[#allocation171_spill] sm:$0xff] }
 0x2bf   : > { %6796 = vmatmul.mubr.bf16.gmra.mxu1 %v14691_v60  ;;  %v16615_v60 = vld [vmem:[#allocation150_spill] sm:$0xff]  ;;  %v6260_v22 = vpop.f32.mrf.mxu1  ;;  %v3950_v63 = vrot.slane %v3942_v2, %v12691_v4  ;;  %v16623_v49 = vld [vmem:[#allocation151_spill] sm:$0xff] }
 0x2c0   : > { %6803 = vmatprep.mubr.bf16.mxu1 %v4134_v21  ;;  %v3893_v6 = vcombine.low %v16615_v60, %v16614_v18  ;;  %v6466_v3 = vpop.f32.mrf.mxu0  ;;  %v4149_v9 = vrot.slane %v4147_v55, 1  ;;  %v16624_v55 = vld [vmem:[#allocation173_spill] sm:$0xff]  ;;  %v16625_v2 = vld [vmem:[#allocation174_spill] sm:$0xff] }
 0x2c1   : > { %12001 = vmatmul.mubr.bf16.gmra.mxu0 %v16613_v23  ;;  %v16621_v23 = vld [vmem:[#allocation172_spill] sm:$0xff] }
 0x2c2   : > { %12004 = vmatprep.mubr.msk.bf16.mxu0 %vm12328_vm5, %v16386_v39  ;;  %v11898_v53 = vpop.f32.mrf.mxu0  ;;  %v3901_v12 = vrot.slane %v3893_v6, %v12691_v4  ;;  %v3943_v18 = vcombine.low %v16622_v15, %v16621_v23 }
 0x2c3   : > { %v4001_v53 = vrot.slane %v16624_v55, %v12691_v4 }
 0x2c4   : > { %v6263_v52 = vpop.f32.mrf.mxu1  ;;  %v6469_v50 = vpop.f32.mrf.mxu0  ;;  %v14780_v21 = vcombine.low %v3901_v12, %v3908_v61  ;;  %v3957_v59 = vrot.slane %v3943_v18, %v12691_v4  ;;  %v16626_v18 = vld [vmem:[#allocation165_spill] sm:$0xff] }
 0x2c5   : > { %v14775_v8 = vadd.f32 %v6458_v62, %v6263_v52  ;;  %v4145_v62 = vor.u32 %v4143_v36, %v4141_v26  ;;  %v4151_v26 = vshrl.u32 %v14765_v28, 16  ;;  %v4002_v23 = vcombine.low %v16625_v2, %v4001_v53 }
 0x2c6   : > { %v11899_v24 = vpop.f32.mrf.mxu0  ;;  %v4155_v57 = vshll.u32 %v14780_v21, 16  ;;  %v4159_v29 = vshrl.u32 %v14780_v21, 16 }
 0x2c7   : > { %6804 = vmatmul.mubr.bf16.gmra.mxu1 %v14708_v56  ;;  %v6265_v56 = vpop.f32.mrf.mxu1  ;;  %v4150_v58 = vsel %vm4010_vm10, %v4145_v62, %v4149_v9  ;;  %v4153_v52 = vor.u32 %v4151_v26, %v4149_v9 }
 0x2c8   : > { %6811 = vmatprep.mubr.bf16.mxu1 %v4142_v33  ;;  %v4157_v33 = vrot.slane %v4155_v57, 1 }
 0x2c9   : > { %12005 = vmatmul.mubr.bf16.gmra.mxu0 %v16618_v35  ;;  %v6266_v60 = vpop.f32.mrf.mxu1 }
 0x2ca   : > { %12008 = vmatprep.mubr.msk.bf16.mxu0 %vm12328_vm5, %v16386_v39  ;;  %v14786_v6 = vadd.f32 %v6461_v19, %v6266_v60  ;;  %v4158_v24 = vsel %vm4010_vm10, %v4153_v52, %v4157_v33  ;;  %v4161_v9 = vor.u32 %v4159_v29, %v4157_v33 }
 0x2cb   : > { %v6268_v40 = vpop.f32.mrf.mxu1 }
 0x2cd   : > { %v6474_v22 = vpop.f32.mrf.mxu0 }
 0x2cf   : > { %6812 = vmatmul.mubr.bf16.gmra.mxu1 %v14725_v30  ;;  %v11902_v19 = vpop.f32.mrf.mxu0  ;;  %v14797_v30 = vcombine.low %v3950_v63, %v3957_v59 }
 0x2d0   : > { %6819 = vmatprep.mubr.bf16.mxu1 %v4150_v58  ;;  %v4009_v58 = vrot.slane %v4002_v23, %v12691_v4  ;;  %v16629_v23 = vld [vmem:[#allocation7_spill] sm:$0xff] }
 0x2d1   : > { %12009 = vmatmul.mubr.bf16.gmra.mxu0 %v16623_v49  ;;  %v6271_v12 = vpop.f32.mrf.mxu1  ;;  %v6477_v61 = vpop.f32.mrf.mxu0  ;;  %v4163_v10 = vshll.u32 %v14797_v30, 16  ;;  %v4167_v26 = vshrl.u32 %v14797_v30, 16 }
 0x2d2   : > { %12012 = vmatprep.mubr.msk.bf16.mxu0 %vm12328_vm5, %v16386_v39  ;;  %v14801_v35 = vadd.f32 %v6466_v3, %v6271_v12  ;;  %v4171_v55 = vshll.u32 %v4009_v58, 16 }
 0x2d3   : > { %v6273_v36 = vpop.f32.mrf.mxu1  ;;  %v11903_v56 = vpop.f32.mrf.mxu0  ;;  %v4165_v62 = vrot.slane %v4163_v10, 1  ;;  %v16628_v10 = vld [vmem:[#allocation8_spill] sm:$0xff] }
 0x2d4   : > { %v4173_v36 = vrot.slane %v4171_v55, 1 }
 0x2d5   : > { %v6274_v15 = vpop.f32.mrf.mxu1  ;;  %v4166_v49 = vsel %vm4010_vm10, %v4161_v9, %v4165_v62  ;;  %v4169_v52 = vor.u32 %v4167_v26, %v4165_v62 }
 0x2d6   : > { %v14809_v60 = vadd.f32 %v6469_v50, %v6274_v15 }
 0x2d7   : > { %6820 = vmatmul.mubr.bf16.gmra.mxu1 %v14746_v44  ;;  %v6276_v3 = vpop.f32.mrf.mxu1  ;;  %v12290_v44 = vld [vmem:[%s16156_s7 + $0x74] ss:$8 sps:$4 sm:$0xff]  }
 0x2d8   : > { %6827 = vmatprep.mubr.bf16.mxu1 %v4158_v24  ;;  %12124 = vmatprep.subr.bf16.mxu1 %v12290_v44  ;;  %v4174_v24 = vsel %vm4010_vm10, %v4169_v52, %v4173_v36  ;;  %v16635_v52 = vld [vmem:[#allocation12_spill] sm:$0xff] }
 0x2d9   : > { %12013 = vmatmul.mubr.bf16.gmra.mxu0 %v16626_v18  ;;  %v6482_v40 = vpop.f32.mrf.mxu0  ;;  %v6279_v57 = vpop.f32.mrf.mxu1  ;;  %10265 = vmatprep.subr.bf16.mxu0 %v12290_v44 }
 0x2da   : > { %12016 = vmatprep.mubr.msk.bf16.mxu0 %vm12328_vm5, %v16386_v39  ;;  %v14817_v59 = vadd.f32 %v6474_v22, %v6279_v57 }
 0x2db   : > { %v11906_v63 = vpop.f32.mrf.mxu0  ;;  %v6281_v50 = vpop.f32.mrf.mxu1 }
 0x2dc   : > { %v16630_v63 = vld [vmem:[#allocation5_spill] sm:$0xff]  ;;  %v16631_v50 = vld [vmem:[#allocation6_spill] sm:$0xff] }
 0x2dd   : > { %v6485_v19 = vpop.f32.mrf.mxu0  ;;  %v6282_v33 = vpop.f32.mrf.mxu1 }
 0x2de   : > { %v14823_v12 = vadd.f32 %v6477_v61, %v6282_v33  ;;  %v4175_v61 = vshrl.u32 %v4009_v58, 16  ;;  %v16633_v58 = vld [vmem:[#allocation4_spill] sm:$0xff] }
 0x2df   : > { %6828 = vmatmul.mubr.bf16.gmra.mxu1 %v14765_v28  ;;  %v11907_v53 = vpop.f32.mrf.mxu0  ;;  %v6284_v22 = vpop.f32.mrf.mxu1  ;;  %v16627_v28 = vld [vmem:[#allocation176_spill] sm:$0xff]  ;;  %v7125_v55 = vshll.u32 %v16633_v58, 16 }
 0x2e0   : > { %6835 = vmatprep.mubr.bf16.mxu1 %v4166_v49  ;;  %v5193_v56 = vrot.slane %v16627_v28, %v12691_v4  ;;  %v4177_v62 = vor.u32 %v4175_v61, %v4173_v36  ;;  %v16632_v49 = vcombine.low %v16630_v63, %v16631_v50  ;;  %v12288_v53 = vld [vmem:[%s16156_s7 + $0x70] ss:$8 sps:$4 sm:$0xff]   ;;  %v7130_v36 = vshll.u32 %v16635_v52, 16  ;;  %v12291_v63 = vld [vmem:[%s16156_s7 + $0x60] ss:$8 sps:$4 sm:$0xff]  }
 0x2e1   : > { %12017 = vmatmul.mubr.bf16.gmra.mxu0 %v14243_v54  ;;  %v7311_v54 = vcombine.low %v16629_v23, %v16628_v10  ;;  %v12293_v23 = vld [vmem:[%s16156_s7 + $0x64] ss:$8 sps:$4 sm:$0xff]  }
 0x2e2   : > { %12020 = vmatprep.mubr.msk.bf16.mxu0 %vm12328_vm5, %v16386_v39  ;;  %v7318_v26 = vrot.slane %v16632_v49, %v12691_v4  ;;  %v7132_v49 = vrot.slane %v7130_v36, 1  ;;  %v16643_v36 = vld [vmem:[#allocation21_spill] sm:$0xff] }
 0x2e3   : > { %v7325_v9 = vrot.slane %v7311_v54, %v12691_v4 }
 0x2e5   : > { %v6490_v29 = vpop.f32.mrf.mxu0  ;;  %v7326_v22 = vcombine.low %v7318_v26, %v7325_v9  ;;  %v7123_v9 = vshrl.u32 %v16633_v58, 16 }
 0x2e7   : > { %6836 = vmatmul.mubr.bf16.gmra.mxu1 %v14780_v21  ;;  %v11910_v15 = vpop.f32.mrf.mxu0 }
 0x2e8   : > { %6841 = vmatprep.mubr.bf16.mxu1 %v4174_v24  ;;  %v16637_v24 = vld [vmem:[#allocation11_spill] sm:$0xff]  ;;  %v7127_v15 = vrot.slane %v7125_v55, 1 }
 0x2e9   : > { %12021 = vmatmul.mubr.bf16.gmra.mxu0 %v5193_v56  ;;  %v6287_v18 = vpop.f32.mrf.mxu1  ;;  %v6493_v44 = vpop.f32.mrf.mxu0  ;;  %v16636_v56 = vld [vmem:[#allocation15_spill] sm:$0xff] }
 0x2ea   : > { %12040 = vmatprep.mubr.msk.bf16.mxu0 %vm12328_vm5, %v16386_v39  ;;  %v14835_v3 = vadd.f32 %v6482_v40, %v6287_v18  ;;  %v7328_v10 = vcombine.low %v16637_v24, %v16636_v56  ;;  %v16638_v18 = vld [vmem:[#allocation10_spill] sm:$0xff] }
 0x2eb   : > { %v6289_v21 = vpop.f32.mrf.mxu1  ;;  %v11911_v57 = vpop.f32.mrf.mxu0 }
 0x2ec   : > { %v16639_v21 = vld [vmem:[#allocation9_spill] sm:$0xff]  ;;  %v7342_v26 = vrot.slane %v7328_v10, %v12691_v4 }
 0x2ed   : > { %v6290_v33 = vpop.f32.mrf.mxu1 }
 0x2ee   : > { %v14847_v40 = vadd.f32 %v6485_v19, %v6290_v33 }
 0x2ef   : > { %6842 = vmatmul.mubr.bf16.gmra.mxu1 %v14797_v30  ;;  %v6498_v54 = vpop.f32.mrf.mxu0  ;;  %v6292_v61 = vpop.f32.mrf.mxu1  ;;  %v7327_v30 = vcombine.low %v16639_v21, %v16638_v18 }
 0x2f0   : > { %16634 = vst [vmem:[#allocation14_spill] sm:$0xff] %v14847_v40  ;;  %6847 = vmatprep.mubr.bf16.mxu1 %v4177_v62  ;;  %v3973_v62 = vrot.slane %v16625_v2, %v12691_v4  ;;  %v16641_v61 = vld [vmem:[#allocation19_spill] sm:$0xff] }
 0x2f1   : > { %12041 = vmatmul.mubr.bf16.vlgmr.msra.gmra.mxu0 %v7326_v22  ;;  %v11914_v19 = vpop.f32.mrf.mxu0  ;;  %v6295_v57 = vpop.f32.mrf.mxu1  ;;  %v7128_v22 = vor.u32 %v7127_v15, %v7123_v9  ;;  %v7335_v56 = vrot.slane %v7327_v30, %v12691_v4  ;;  %v7138_v18 = vshll.u32 %v16641_v61, 16  ;;  %v16645_v15 = vld [vmem:[#allocation17_spill] sm:$0xff]  ;;  %v16646_v30 = vld [vmem:[#allocation16_spill] sm:$0xff] }
 0x2f2   : > { %12044 = vmatprep.mubr.msk.bf16.mxu0 %vm12328_vm5, %v16386_v39  ;;  %10266 = vmatpush1.bf16.msra.mxu0 %v12288_v53  ;;  %v14863_v50 = vadd.f32 %v6490_v29, %v6295_v57  ;;  %v16644_v19 = vld [vmem:[#allocation18_spill] sm:$0xff]  ;;  %v7344_v9 = vcombine.low %v16646_v30, %v16645_v15  ;;  %v16649_v15 = vld [vmem:[#allocation24_spill] sm:$0xff] }
 0x2f3   : > { %10267 = vmatprep.subr.bf16.mxu0 %v12293_v23  ;;  %v6500_v55 = vpop.f32.mrf.mxu0  ;;  %v6297_v33 = vpop.f32.mrf.mxu1  ;;  %v7133_v29 = vsel %vm4010_vm10, %v7128_v22, %v7132_v49  ;;  %v7343_v2 = vcombine.low %v7335_v56, %v7342_v26  ;;  %v7345_v10 = vcombine.low %v16644_v19, %v16643_v36  ;;  %v7140_v22 = vrot.slane %v7138_v18, 1  ;;  %v16647_v19 = vld [vmem:[#allocation27_spill] sm:$0xff] }
 0x2f4   : > { %16640 = vst [vmem:[#allocation13_spill] sm:$0xff] %v14863_v50 }
 0x2f5   : > { %v11915_v24 = vpop.f32.mrf.mxu0  ;;  %v6298_v54 = vpop.f32.mrf.mxu1 }
 0x2f6   : > { %10268 = vmatpush1.bf16.msra.mxu0 %v12291_v63  ;;  %v14871_v21 = vadd.f32 %v6493_v44, %v6298_v54  ;;  %v7359_v44 = vrot.slane %v7345_v10, %v12691_v4  ;;  %v7352_v24 = vrot.slane %v7344_v9, %v12691_v4 }
 0x2f7   : > { %6848 = vmatmul.mubr.bf16.gmra.mxu1 %v3973_v62  ;;  %v6504_v57 = vpop.f32.mrf.mxu0  ;;  %v6300_v55 = vpop.f32.mrf.mxu1  ;;  %v7134_v62 = vshrl.u32 %v16635_v52, 16 }
 0x2f8   : > { %16642 = vst [vmem:[#allocation33_spill] sm:$0xff] %v14871_v21  ;;  %7943 = vmatprep.mubr.bf16.mxu1 %v7133_v29  ;;  %v7360_v36 = vcombine.low %v7352_v24, %v7359_v44  ;;  %v7146_v57 = vshll.u32 %v16647_v19, 16  ;;  %v16648_v55 = vld [vmem:[#allocation28_spill] sm:$0xff]  ;;  %v7142_v44 = vshrl.u32 %v16641_v61, 16 }
 0x2f9   : > { %12045 = vmatmul.mubr.bf16.gmra.mxu0 %v7343_v2  ;;  %v11918_v33 = vpop.f32.mrf.mxu0  ;;  %v7136_v56 = vor.u32 %v7134_v62, %v7132_v49  ;;  %v7362_v30 = vcombine.low %v16649_v15, %v16648_v55  ;;  %v16650_v49 = vld [vmem:[#allocation23_spill] sm:$0xff] }
 0x2fa   : > { %12048 = vmatprep.mubr.msk.bf16.mxu0 %vm12328_vm5, %v16386_v39  ;;  %v16651_v33 = vld [vmem:[#allocation22_spill] sm:$0xff] }
 0x2fb   : > { %v6506_v26 = vpop.f32.mrf.mxu0  ;;  %v7141_v2 = vsel %vm4010_vm10, %v7136_v56, %v7140_v22  ;;  %v7361_v9 = vcombine.low %v16651_v33, %v16650_v49  ;;  %v7376_v56 = vrot.slane %v7362_v30, %v12691_v4  ;;  %v16653_v30 = vld [vmem:[#allocation38_spill] sm:$0xff] }
 0x2fc   : > { %v7148_v26 = vrot.slane %v7146_v57, 1  ;;  %v16652_v57 = vld [vmem:[#allocation37_spill] sm:$0xff] }
 0x2fd   : > { %v11919_v54 = vpop.f32.mrf.mxu0 }
 0x2ff   : > { %v6303_v29 = vpop.f32.mrf.mxu1  ;;  %7944 = vmatmul.mubr.bf16.vlgmr.msra.gmra.mxu1 %v16633_v58 }
 0x300   : > { %7951 = vmatprep.mubr.bf16.mxu1 %v7141_v2  ;;  %v6510_v18 = vpop.f32.mrf.mxu0  ;;  %12132 = vmatpush1.bf16.msra.mxu1 %v12288_v53  ;;  %v7144_v53 = vor.u32 %v7142_v44, %v7140_v22  ;;  %v7369_v29 = vrot.slane %v7361_v9, %v12691_v4  ;;  %v12294_v22 = vld [vmem:[%s16156_s7 + $0x50] ss:$8 sps:$4 sm:$0xff]  }
 0x301   : > { %v6304_v10 = vpop.f32.mrf.mxu1  ;;  %12049 = vmatmul.mubr.bf16.gmra.mxu0 %v7360_v36  ;;  %12125 = vmatprep.subr.bf16.mxu1 %v12293_v23  ;;  %v12296_v23 = vld [vmem:[%s16156_s7 + $0x54] ss:$8 sps:$4 sm:$0xff]   ;;  %v7154_v18 = vshll.u32 %v16652_v57, 16 }
 0x302   : > { %v11922_v62 = vpop.f32.mrf.mxu0  ;;  %12052 = vmatprep.mubr.msk.bf16.mxu0 %vm12328_vm5, %v16386_v39  ;;  %v7149_v55 = vsel %vm4010_vm10, %v7144_v53, %v7148_v26  ;;  %v7377_v15 = vcombine.low %v7369_v29, %v7376_v56  ;;  %v16654_v10 = vld [vmem:[#allocation31_spill] sm:$0xff]  ;;  %v16655_v9 = vld [vmem:[#allocation30_spill] sm:$0xff]  ;;  %10269 = vmatprep.subr.bf16.mxu0 %v12296_v23  ;;  %v7150_v56 = vshrl.u32 %v16647_v19, 16 }
 0x303   : > { %v6305_v58 = vpop.f32.mrf.mxu1  ;;  %v16656_v62 = vld [vmem:[#allocation29_spill] sm:$0xff]  ;;  %10270 = vmatpush1.bf16.msra.mxu0 %v12294_v22 }
 0x304   : > { %v6512_v24 = vpop.f32.mrf.mxu0  ;;  %12133 = vmatpush1.bf16.msra.mxu1 %v12291_v63  ;;  %v7379_v63 = vcombine.low %v16654_v10, %v16653_v30 }
 0x305   : > { %v6306_v54 = vpop.f32.mrf.mxu1  ;;  %12126 = vmatprep.subr.bf16.mxu1 %v12296_v23  ;;  %v7156_v24 = vrot.slane %v7154_v18, 1  ;;  %v16657_v23 = vld [vmem:[#allocation51_spill] sm:$0xff] }
 0x306   : > { %v11923_v2 = vpop.f32.mrf.mxu0  ;;  %v7393_v54 = vrot.slane %v7379_v63, %v12691_v4 }
 0x307   : > { %v6309_v36 = vpop.f32.mrf.mxu1  ;;  %7952 = vmatmul.mubr.bf16.gmra.mxu1 %v16635_v52  ;;  %v7378_v52 = vcombine.low %v16656_v62, %v16655_v9  ;;  %v7152_v2 = vor.u32 %v7150_v56, %v7148_v26  ;;  %v16658_v9 = vld [vmem:[#allocation47_spill] sm:$0xff]  ;;  %v16659_v62 = vld [vmem:[#allocation41_spill] sm:$0xff]  ;;  %v16660_v26 = vld [vmem:[#allocation40_spill] sm:$0xff]  ;;  %v7158_v56 = vshrl.u32 %v16652_v57, 16 }
 0x308   : > { %7959 = vmatprep.mubr.bf16.mxu1 %v7149_v55  ;;  %v6888_v49 = vpop.f32.mrf.mxu0  ;;  %12134 = vmatpush1.bf16.msra.mxu1 %v12294_v22  ;;  %v7396_v18 = vcombine.low %v16659_v62, %v16658_v9 }
 0x309   : > { %v6310_v33 = vpop.f32.mrf.mxu1  ;;  %12053 = vmatmul.mubr.bf16.gmra.mxu0 %v7377_v15  ;;  %v7386_v36 = vrot.slane %v7378_v52, %v12691_v4  ;;  %v7157_v30 = vsel %vm4010_vm10, %v7152_v2, %v7156_v24 }
 0x30a   : > { %v11942_v58 = vpop.f32.mrf.mxu0  ;;  %12056 = vmatprep.mubr.msk.bf16.mxu0 %vm12328_vm5, %v16386_v39  ;;  %v7162_v33 = vshll.u32 %v16657_v23, 16 }
 0x30b   : > { %v6311_v44 = vpop.f32.mrf.mxu1  ;;  %v7394_v10 = vcombine.low %v7386_v36, %v7393_v54  ;;  %v16661_v58 = vld [vmem:[#allocation39_spill] sm:$0xff] }
 0x30c   : > { %v6891_v53 = vpop.f32.mrf.mxu0  ;;  %v7395_v52 = vcombine.low %v16661_v58, %v16660_v26  ;;  %v7164_v54 = vrot.slane %v7162_v33, 1 }
 0x30d   : > { %v6312_v29 = vpop.f32.mrf.mxu1 }
 0x30e   : > { %v11943_v55 = vpop.f32.mrf.mxu0  ;;  %v7410_v29 = vrot.slane %v7396_v18, %v12691_v4  ;;  %v16666_v18 = vld [vmem:[#allocation48_spill] sm:$0xff] }
 0x30f   : > { %v6315_v15 = vpop.f32.mrf.mxu1  ;;  %7960 = vmatmul.mubr.bf16.gmra.mxu1 %v16641_v61  ;;  %v7160_v55 = vor.u32 %v7158_v56, %v7156_v24 }
 0x310   : > { %7967 = vmatprep.mubr.bf16.mxu1 %v7157_v30  ;;  %v14917_v63 = vpop.f32.mrf.mxu0  ;;  %v7403_v15 = vrot.slane %v7395_v52, %v12691_v4  ;;  %v16662_v30 = vld [vmem:[#allocation148_spill] sm:$0xff]  ;;  %v16667_v52 = vld [vmem:[#allocation50_spill] sm:$0xff] }
 0x311   : > { %v6316_v22 = vpop.f32.mrf.mxu1  ;;  %12057 = vmatmul.mubr.bf16.gmra.mxu0 %v7394_v10  ;;  %v16663_v10 = vld [vmem:[#allocation109_spill] sm:$0xff]  ;;  %v7165_v26 = vsel %vm4010_vm10, %v7160_v55, %v7164_v54 }
 0x312   : > { %v11946_v44 = vpop.f32.mrf.mxu0  ;;  %12060 = vmatprep.mubr.msk.bf16.mxu0 %vm12328_vm5, %v16386_v39  ;;  %v6355_v9 = vadd.f32 %v16663_v10, %v16662_v30  ;;  %v7411_v58 = vcombine.low %v7403_v15, %v7410_v29  ;;  %v16669_v10 = vld [vmem:[#allocation152_spill] sm:$0xff] }
 0x313   : > { %v6317_v61 = vpop.f32.mrf.mxu1  ;;  %v16664_v44 = vld [vmem:[#allocation57_spill] sm:$0xff]  ;;  %v12297_v29 = vld [vmem:[%s16156_s7 + $0x40] ss:$8 sps:$4 sm:$0xff]  }
 0x314   : > { %v14925_v2 = vpop.f32.mrf.mxu0  ;;  %v7170_v33 = vshll.u32 %v16664_v44, 16  ;;  %v16665_v61 = vld [vmem:[#allocation58_spill] sm:$0xff]  ;;  %v12299_v55 = vld [vmem:[%s16156_s7 + $0x44] ss:$8 sps:$4 sm:$0xff]  }
 0x315   : > { %v6318_v36 = vpop.f32.mrf.mxu1  ;;  %v7413_v21 = vcombine.low %v16666_v18, %v16665_v61  ;;  %12127 = vmatprep.subr.bf16.mxu1 %v12299_v55  ;;  %10271 = vmatprep.subr.bf16.mxu0 %v12299_v55  ;;  %v16675_v55 = vld [vmem:[#allocation68_spill] sm:$0xff] }
 0x316   : > { %v11947_v62 = vpop.f32.mrf.mxu0  ;;  %v16668_v36 = vld [vmem:[#allocation49_spill] sm:$0xff]  ;;  %12135 = vmatpush1.bf16.msra.mxu1 %v12297_v29  ;;  %10272 = vmatpush1.bf16.msra.mxu0 %v12297_v29 }
 0x317   : > { %v6693_v22 = vpop.f32.mrf.mxu1  ;;  %7968 = vmatmul.mubr.bf16.gmra.mxu1 %v16647_v19  ;;  %v7412_v30 = vcombine.low %v16668_v36, %v16667_v52  ;;  %v16670_v62 = vld [vmem:[#allocation113_spill] sm:$0xff]  ;;  %v16672_v52 = vld [vmem:[#allocation164_spill] sm:$0xff] }
 0x318   : > { %v6694_v50 = vadd.f32 %v6693_v22, %v6355_v9  ;;  %7975 = vmatprep.mubr.bf16.mxu1 %v7165_v26  ;;  %v6358_v19 = vadd.f32 %v16670_v62, %v16669_v10  ;;  %v7166_v22 = vshrl.u32 %v16657_v23, 16  ;;  %v7172_v26 = vrot.slane %v7170_v33, 1  ;;  %v16673_v36 = vld [vmem:[#allocation128_spill] sm:$0xff] }
 0x319   : > { %v6695_v24 = vpop.f32.mrf.mxu1  ;;  %v14935_v56 = vpop.f32.mrf.mxu0  ;;  %12061 = vmatmul.mubr.bf16.gmra.mxu0 %v7411_v58  ;;  %v7427_v58 = vrot.slane %v7413_v21, %v12691_v4  ;;  %v6363_v10 = vadd.f32 %v16673_v36, %v16672_v52  ;;  %v16678_v52 = vld [vmem:[#allocation60_spill] sm:$0xff] }
 0x31a   : > { %v14941_v40 = vadd.f32 %v6888_v49, %v6694_v50  ;;  %12064 = vmatprep.mubr.msk.bf16.mxu0 %vm12328_vm5, %v16386_v39  ;;  %v7168_v18 = vor.u32 %v7166_v22, %v7164_v54  ;;  %v7420_v24 = vrot.slane %v7412_v30, %v12691_v4  ;;  %v16677_v54 = vld [vmem:[#allocation61_spill] sm:$0xff]  ;;  %v16680_v36 = vld [vmem:[#allocation168_spill] sm:$0xff] }
 0x31b   : > { %v6696_v15 = vpop.f32.mrf.mxu1  ;;  %v11950_v9 = vpop.f32.mrf.mxu0 }
 0x31c   : > { %16671 = vst [vmem:[#allocation34_spill] sm:$0xff] %v14941_v40  ;;  %v6697_v50 = vadd.f32 %v6696_v15, %v6358_v19  ;;  %v7173_v21 = vsel %vm4010_vm10, %v7168_v18, %v7172_v26  ;;  %v7428_v19 = vcombine.low %v7420_v24, %v7427_v58  ;;  %v7178_v15 = vshll.u32 %v16675_v55, 16 }
 0x31d   : > { %v6698_v49 = vpop.f32.mrf.mxu1  ;;  %v6907_v61 = vpop.f32.mrf.mxu0 }
 0x31e   : > { %v14956_v62 = vadd.f32 %v6891_v53, %v6697_v50  ;;  %v16676_v49 = vld [vmem:[#allocation67_spill] sm:$0xff] }
 0x31f   : > { %v6701_v9 = vpop.f32.mrf.mxu1  ;;  %7976 = vmatmul.mubr.bf16.gmra.mxu1 %v16652_v57  ;;  %v11951_v33 = vpop.f32.mrf.mxu0  ;;  %v7430_v22 = vcombine.low %v16677_v54, %v16676_v49  ;;  %v16679_v53 = vld [vmem:[#allocation59_spill] sm:$0xff] }
 0x320   : > { %16674 = vst [vmem:[#allocation32_spill] sm:$0xff] %v14956_v62  ;;  %v6702_v30 = vadd.f32 %v6701_v9, %v6363_v10  ;;  %7983 = vmatprep.mubr.bf16.mxu1 %v7173_v21  ;;  %v7429_v50 = vcombine.low %v16679_v53, %v16678_v52  ;;  %v16681_v62 = vld [vmem:[#allocation130_spill] sm:$0xff]  ;;  %v7174_v10 = vshrl.u32 %v16664_v44, 16  ;;  %v7180_v9 = vrot.slane %v7178_v15, 1 }
 0x321   : > { %v6703_v29 = vpop.f32.mrf.mxu1  ;;  %v6912_v40 = vpop.f32.mrf.mxu0  ;;  %12065 = vmatmul.mubr.bf16.gmra.mxu0 %v7428_v19  ;;  %v6366_v57 = vadd.f32 %v16681_v62, %v16680_v36  ;;  %v7444_v21 = vrot.slane %v7430_v22, %v12691_v4  ;;  %v16682_v36 = vld [vmem:[#allocation78_spill] sm:$0xff]  ;;  %v16684_v22 = vld [vmem:[#allocation71_spill] sm:$0xff] }
 0x322   : > { %v14968_v18 = vadd.f32 %v14917_v63, %v6702_v30  ;;  %12068 = vmatprep.mubr.msk.bf16.mxu0 %vm12328_vm5, %v16386_v39  ;;  %v7176_v54 = vor.u32 %v7174_v10, %v7172_v26  ;;  %v7437_v29 = vrot.slane %v7429_v50, %v12691_v4  ;;  %v7186_v15 = vshll.u32 %v16682_v36, 16  ;;  %v16686_v10 = vld [vmem:[#allocation69_spill] sm:$0xff] }
 0x323   : > { %v6704_v58 = vpop.f32.mrf.mxu1  ;;  %v11954_v24 = vpop.f32.mrf.mxu0 }
 0x324   : > { %v6705_v33 = vadd.f32 %v6704_v58, %v6366_v57  ;;  %v7181_v30 = vsel %vm4010_vm10, %v7176_v54, %v7180_v9  ;;  %v7445_v53 = vcombine.low %v7437_v29, %v7444_v21  ;;  %v16683_v24 = vld [vmem:[#allocation77_spill] sm:$0xff]  ;;  %v7182_v54 = vshrl.u32 %v16675_v55, 16 }
 0x325   : > { %v6706_v19 = vpop.f32.mrf.mxu1  ;;  %v6915_v49 = vpop.f32.mrf.mxu0  ;;  %v7447_v57 = vcombine.low %v16684_v22, %v16683_v24  ;;  %v7188_v29 = vrot.slane %v7186_v15, 1 }
 0x326   : > { %v14976_v62 = vadd.f32 %v14925_v2, %v6705_v33  ;;  %v16685_v2 = vld [vmem:[#allocation70_spill] sm:$0xff] }
 0x327   : > { %v6709_v63 = vpop.f32.mrf.mxu1  ;;  %7984 = vmatmul.mubr.bf16.gmra.mxu1 %v16657_v23  ;;  %v11955_v52 = vpop.f32.mrf.mxu0  ;;  %v7446_v33 = vcombine.low %v16686_v10, %v16685_v2  ;;  %v16688_v10 = vld [vmem:[#allocation88_spill] sm:$0xff] }
 0x328   : > { %v6710_v58 = vadd.f32 %v6709_v63, %v14424_v47  ;;  %7991 = vmatprep.mubr.bf16.mxu1 %v7181_v30  ;;  %v7461_v47 = vrot.slane %v7447_v57, %v12691_v4 }
 0x329   : > { %v6711_v26 = vpop.f32.mrf.mxu1  ;;  %v6920_v50 = vpop.f32.mrf.mxu0  ;;  %12069 = vmatmul.mubr.bf16.gmra.mxu0 %v7445_v53  ;;  %v7184_v53 = vor.u32 %v7182_v54, %v7180_v9  ;;  %v7454_v24 = vrot.slane %v7446_v33, %v12691_v4  ;;  %v16687_v9 = vld [vmem:[#allocation87_spill] sm:$0xff]  ;;  %v16689_v33 = vld [vmem:[#allocation81_spill] sm:$0xff] }
 0x32a   : > { %v14987_v23 = vadd.f32 %v14935_v56, %v6710_v58  ;;  %12072 = vmatprep.mubr.msk.bf16.mxu0 %vm12328_vm5, %v16386_v39  ;;  %v12302_v56 = vld [vmem:[%s16156_s7 + $0x34] ss:$8 sps:$4 sm:$0xff]   ;;  %v12300_v58 = vld [vmem:[%s16156_s7 + $0x30] ss:$8 sps:$4 sm:$0xff]   ;;  %v7194_v2 = vshll.u32 %v16687_v9, 16 }
 0x32b   : > { %v6712_v21 = vpop.f32.mrf.mxu1  ;;  %v11958_v19 = vpop.f32.mrf.mxu0  ;;  %v7462_v26 = vcombine.low %v7454_v24, %v7461_v47  ;;  %12128 = vmatprep.subr.bf16.mxu1 %v12302_v56  ;;  %10273 = vmatprep.subr.bf16.mxu0 %v12302_v56 }
 0x32c   : > { %v6713_v63 = vadd.f32 %v6712_v21, %v14432_v0  ;;  %v7189_v0 = vsel %vm4010_vm10, %v7184_v53, %v7188_v29  ;;  %v7464_v21 = vcombine.low %v16689_v33, %v16688_v10  ;;  %12136 = vmatpush1.bf16.msra.mxu1 %v12300_v58  ;;  %10274 = vmatpush1.bf16.msra.mxu0 %v12300_v58 }
 0x32d   : > { %v6714_v30 = vpop.f32.mrf.mxu1  ;;  %v6923_v52 = vpop.f32.mrf.mxu0 }
 0x32e   : > { %v14998_v22 = vadd.f32 %v6907_v61, %v6713_v63  ;;  %v16690_v63 = vld [vmem:[#allocation80_spill] sm:$0xff]  ;;  %v16691_v30 = vld [vmem:[#allocation79_spill] sm:$0xff] }
 0x32f   : > { %v6717_v15 = vpop.f32.mrf.mxu1  ;;  %7992 = vmatmul.mubr.bf16.gmra.mxu1 %v16664_v44  ;;  %v11959_v57 = vpop.f32.mrf.mxu0  ;;  %v7463_v44 = vcombine.low %v16691_v30, %v16690_v63  ;;  %v16693_v30 = vld [vmem:[#allocation99_spill] sm:$0xff] }
 0x330   : > { %v6718_v61 = vadd.f32 %v6717_v15, %v14438_v37  ;;  %7999 = vmatprep.mubr.bf16.mxu1 %v7189_v0  ;;  %v7190_v57 = vshrl.u32 %v16682_v36, 16  ;;  %v7196_v37 = vrot.slane %v7194_v2, 1  ;;  %v7478_v15 = vrot.slane %v7464_v21, %v12691_v4  ;;  %v16695_v21 = vld [vmem:[#allocation91_spill] sm:$0xff] }
 0x331   : > { %v6719_v19 = vpop.f32.mrf.mxu1  ;;  %v6928_v54 = vpop.f32.mrf.mxu0  ;;  %12073 = vmatmul.mubr.bf16.gmra.mxu0 %v7462_v26  ;;  %v7471_v56 = vrot.slane %v7463_v44, %v12691_v4  ;;  %v7202_v2 = vshll.u32 %v16693_v30, 16  ;;  %v16697_v44 = vld [vmem:[#allocation89_spill] sm:$0xff] }
 0x332   : > { %v15011_v53 = vadd.f32 %v6912_v40, %v6718_v61  ;;  %12076 = vmatprep.mubr.msk.bf16.mxu0 %vm12328_vm5, %v16386_v39  ;;  %v7192_v33 = vor.u32 %v7190_v57, %v7188_v29 }
 0x333   : > { %v6720_v47 = vpop.f32.mrf.mxu1  ;;  %v11962_v24 = vpop.f32.mrf.mxu0  ;;  %v7479_v63 = vcombine.low %v7471_v56, %v7478_v15 }
 0x334   : > { %16692 = vst [vmem:[#allocation26_spill] sm:$0xff] %v15011_v53  ;;  %v6721_v0 = vadd.f32 %v6720_v47, %v14445_v16  ;;  %v7197_v58 = vsel %vm4010_vm10, %v7192_v33, %v7196_v37  ;;  %v16694_v24 = vld [vmem:[#allocation97_spill] sm:$0xff]  ;;  %v7204_v33 = vrot.slane %v7202_v2, 1 }
 0x335   : > { %v6722_v26 = vpop.f32.mrf.mxu1  ;;  %v6931_v10 = vpop.f32.mrf.mxu0  ;;  %v7481_v53 = vcombine.low %v16695_v21, %v16694_v24 }
 0x336   : > { %v15019_v40 = vadd.f32 %v6915_v49, %v6721_v0  ;;  %v16696_v49 = vld [vmem:[#allocation90_spill] sm:$0xff]  ;;  %v7198_v26 = vshrl.u32 %v16687_v9, 16 }
 0x337   : > { %v6725_v61 = vpop.f32.mrf.mxu1  ;;  %8000 = vmatmul.mubr.bf16.gmra.mxu1 %v16675_v55  ;;  %v11963_v19 = vpop.f32.mrf.mxu0  ;;  %v7480_v57 = vcombine.low %v16697_v44, %v16696_v49  ;;  %v7495_v56 = vrot.slane %v7481_v53, %v12691_v4  ;;  %v16698_v49 = vld [vmem:[#allocation110_spill] sm:$0xff]  ;;  %v16699_v44 = vld [vmem:[#allocation107_spill] sm:$0xff]  ;;  %v16700_v53 = vld [vmem:[#allocation101_spill] sm:$0xff] }
 0x338   : > { %v6726_v16 = vadd.f32 %v6725_v61, %v14448_v20  ;;  %8007 = vmatprep.mubr.bf16.mxu1 %v7197_v58  ;;  %v7200_v19 = vor.u32 %v7198_v26, %v7196_v37  ;;  %v7210_v2 = vshll.u32 %v16698_v49, 16 }
 0x339   : > { %v6727_v29 = vpop.f32.mrf.mxu1  ;;  %v6936_v47 = vpop.f32.mrf.mxu0  ;;  %12077 = vmatmul.mubr.bf16.gmra.mxu0 %v7479_v63  ;;  %v7488_v63 = vrot.slane %v7480_v57, %v12691_v4  ;;  %v16702_v57 = vld [vmem:[#allocation98_spill] sm:$0xff] }
 0x33a   : > { %v15029_v0 = vadd.f32 %v6920_v50, %v6726_v16  ;;  %12080 = vmatprep.mubr.msk.bf16.mxu0 %vm12328_vm5, %v16386_v39  ;;  %v7205_v21 = vsel %vm4010_vm10, %v7200_v19, %v7204_v33  ;;  %v7212_v19 = vrot.slane %v7210_v2, 1 }
 0x33b   : > { %v6728_v55 = vpop.f32.mrf.mxu1  ;;  %v11966_v15 = vpop.f32.mrf.mxu0  ;;  %v7496_v29 = vcombine.low %v7488_v63, %v7495_v56 }
 0x33c   : > { %v6729_v20 = vadd.f32 %v6728_v55, %v14460_v13  ;;  %v7498_v15 = vcombine.low %v16700_v53, %v16699_v44 }
 0x33d   : > { %v6730_v61 = vpop.f32.mrf.mxu1  ;;  %v6939_v58 = vpop.f32.mrf.mxu0 }
 0x33e   : > { %v15037_v24 = vadd.f32 %v6923_v52, %v6729_v20  ;;  %v16701_v52 = vld [vmem:[#allocation100_spill] sm:$0xff]  ;;  %v7206_v61 = vshrl.u32 %v16693_v30, 16  ;;  %v7512_v63 = vrot.slane %v7498_v15, %v12691_v4 }
 0x33f   : > { %v6733_v50 = vpop.f32.mrf.mxu1  ;;  %8008 = vmatmul.mubr.bf16.gmra.mxu1 %v16682_v36  ;;  %v11967_v16 = vpop.f32.mrf.mxu0  ;;  %v7497_v26 = vcombine.low %v16702_v57, %v16701_v52  ;;  %v16703_v52 = vld [vmem:[#allocation123_spill] sm:$0xff]  ;;  %v16705_v15 = vld [vmem:[#allocation112_spill] sm:$0xff] }
 0x340   : > { %v6734_v13 = vadd.f32 %v6733_v50, %v14477_v41  ;;  %8015 = vmatprep.mubr.bf16.mxu1 %v7205_v21  ;;  %v7208_v16 = vor.u32 %v7206_v61, %v7204_v33  ;;  %v7218_v2 = vshll.u32 %v16703_v52, 16  ;;  %v16704_v57 = vld [vmem:[#allocation119_spill] sm:$0xff]  ;;  %v16707_v61 = vld [vmem:[#allocation108_spill] sm:$0xff] }
 0x341   : > { %v6735_v37 = vpop.f32.mrf.mxu1  ;;  %v6944_v55 = vpop.f32.mrf.mxu0  ;;  %12081 = vmatmul.mubr.bf16.gmra.mxu0 %v7496_v29  ;;  %v7505_v29 = vrot.slane %v7497_v26, %v12691_v4 }
 0x342   : > { %v15047_v20 = vadd.f32 %v6928_v54, %v6734_v13  ;;  %12084 = vmatprep.mubr.msk.bf16.mxu0 %vm12328_vm5, %v16386_v39  ;;  %v7213_v53 = vsel %vm4010_vm10, %v7208_v16, %v7212_v19  ;;  %v7214_v16 = vshrl.u32 %v16698_v49, 16 }
 0x343   : > { %v6736_v36 = vpop.f32.mrf.mxu1  ;;  %v11970_v56 = vpop.f32.mrf.mxu0  ;;  %v7513_v37 = vcombine.low %v7505_v29, %v7512_v63  ;;  %v7220_v29 = vrot.slane %v7218_v2, 1 }
 0x344   : > { %v6737_v41 = vadd.f32 %v6736_v36, %v14491_v31  ;;  %v7515_v56 = vcombine.low %v16705_v15, %v16704_v57  ;;  %v16706_v36 = vld [vmem:[#allocation111_spill] sm:$0xff] }
 0x345   : > { %v6738_v50 = vpop.f32.mrf.mxu1  ;;  %v6947_v21 = vpop.f32.mrf.mxu0  ;;  %v7514_v63 = vcombine.low %v16707_v61, %v16706_v36 }
 0x346   : > { %v15055_v44 = vadd.f32 %v6931_v10, %v6737_v41  ;;  %v12303_v10 = vld [vmem:[%s16156_s7 + $0x20] ss:$8 sps:$4 sm:$0xff]  }
 0x347   : > { %v6741_v54 = vpop.f32.mrf.mxu1  ;;  %8016 = vmatmul.mubr.bf16.gmra.mxu1 %v16687_v9  ;;  %v11971_v13 = vpop.f32.mrf.mxu0  ;;  %v12305_v9 = vld [vmem:[%s16156_s7 + $0x24] ss:$8 sps:$4 sm:$0xff]   ;;  %v7522_v57 = vrot.slane %v7514_v63, %v12691_v4 }
 0x348   : > { %v6742_v31 = vadd.f32 %v6741_v54, %v14521_v14  ;;  %8023 = vmatprep.mubr.bf16.mxu1 %v7213_v53  ;;  %12129 = vmatprep.subr.bf16.mxu1 %v12305_v9  ;;  %v7529_v54 = vrot.slane %v7515_v56, %v12691_v4  ;;  %v16709_v56 = vld [vmem:[#allocation131_spill] sm:$0xff]  ;;  %v16713_v63 = vld [vmem:[#allocation120_spill] sm:$0xff] }
 0x349   : > { %v6743_v33 = vpop.f32.mrf.mxu1  ;;  %v6952_v26 = vpop.f32.mrf.mxu0  ;;  %12085 = vmatmul.mubr.bf16.gmra.mxu0 %v7513_v37  ;;  %12137 = vmatpush1.bf16.msra.mxu1 %v12303_v10  ;;  %v7226_v61 = vshll.u32 %v16709_v56, 16 }
 0x34a   : > { %v15071_v41 = vadd.f32 %v6936_v47, %v6742_v31  ;;  %12088 = vmatprep.mubr.msk.bf16.mxu0 %vm12328_vm5, %v16386_v39  ;;  %10275 = vmatprep.subr.bf16.mxu0 %v12305_v9  ;;  %v7216_v47 = vor.u32 %v7214_v16, %v7212_v19  ;;  %v7530_v36 = vcombine.low %v7522_v57, %v7529_v54  ;;  %v16710_v9 = vld [vmem:[#allocation132_spill] sm:$0xff] }
 0x34b   : > { %v6744_v14 = vpop.f32.mrf.mxu1  ;;  %v11974_v50 = vpop.f32.mrf.mxu0  ;;  %10276 = vmatpush1.bf16.msra.mxu0 %v12303_v10 }
 0x34c   : > { %v6745_v53 = vadd.f32 %v6744_v14, %v14539_v34  ;;  %v7221_v33 = vsel %vm4010_vm10, %v7216_v47, %v7220_v29  ;;  %v16711_v50 = vld [vmem:[#allocation122_spill] sm:$0xff]  ;;  %v7228_v47 = vrot.slane %v7226_v61, 1 }
 0x34d   : > { %v6746_v13 = vpop.f32.mrf.mxu1  ;;  %v6955_v37 = vpop.f32.mrf.mxu0  ;;  %v7532_v34 = vcombine.low %v16711_v50, %v16710_v9 }
 0x34e   : > { %v15079_v15 = vadd.f32 %v6939_v58, %v6745_v53  ;;  %v16712_v58 = vld [vmem:[#allocation121_spill] sm:$0xff]  ;;  %v7222_v13 = vshrl.u32 %v16703_v52, 16 }
 0x34f   : > { %v6749_v31 = vpop.f32.mrf.mxu1  ;;  %8024 = vmatmul.mubr.bf16.gmra.mxu1 %v16693_v30  ;;  %v11975_v2 = vpop.f32.mrf.mxu0  ;;  %v7531_v16 = vcombine.low %v16713_v63, %v16712_v58  ;;  %v7546_v57 = vrot.slane %v7532_v34, %v12691_v4  ;;  %v16717_v63 = vld [vmem:[#allocation134_spill] sm:$0xff]  ;;  %v16718_v34 = vld [vmem:[#allocation133_spill] sm:$0xff] }
 0x350   : > { %16708 = vst [vmem:[#allocation20_spill] sm:$0xff] %v15079_v15  ;;  %v6750_v10 = vadd.f32 %v6749_v31, %v14584_v46  ;;  %8031 = vmatprep.mubr.bf16.mxu1 %v7221_v33  ;;  %v7224_v2 = vor.u32 %v7222_v13, %v7220_v29 }
 0x351   : > { %v6751_v19 = vpop.f32.mrf.mxu1  ;;  %v6960_v14 = vpop.f32.mrf.mxu0  ;;  %12089 = vmatmul.mubr.bf16.gmra.mxu0 %v7530_v36  ;;  %v7539_v36 = vrot.slane %v7531_v16, %v12691_v4 }
 0x352   : > { %v15089_v53 = vadd.f32 %v6944_v55, %v6750_v10  ;;  %12092 = vmatprep.mubr.msk.bf16.mxu0 %vm12328_vm5, %v16386_v39  ;;  %v16716_v55 = vld [vmem:[#allocation143_spill] sm:$0xff]  ;;  %v7229_v19 = vsel %vm4010_vm10, %v7224_v2, %v7228_v47 }
 0x353   : > { %v6752_v30 = vpop.f32.mrf.mxu1  ;;  %v11978_v54 = vpop.f32.mrf.mxu0  ;;  %v7234_v50 = vshll.u32 %v16716_v55, 16  ;;  %v7547_v61 = vcombine.low %v7539_v36, %v7546_v57  ;;  %v7230_v57 = vshrl.u32 %v16709_v56, 16 }
 0x354   : > { %16714 = vst [vmem:[#allocation44_spill] sm:$0xff] %v15089_v53  ;;  %v6753_v46 = vadd.f32 %v6752_v30, %v14596_v11  ;;  %v7548_v54 = vcombine.low %v16718_v34, %v16717_v63  ;;  %v16719_v11 = vld [vmem:[#allocation141_spill] sm:$0xff]  ;;  %v16720_v30 = vld [vmem:[#allocation135_spill] sm:$0xff] }
 0x355   : > { %v6754_v31 = vpop.f32.mrf.mxu1  ;;  %v6963_v33 = vpop.f32.mrf.mxu0  ;;  %v7236_v2 = vrot.slane %v7234_v50, 1  ;;  %v16723_v50 = vld [vmem:[#allocation155_spill] sm:$0xff]  ;;  %v11264_v53 = vld.sshfl [vmem:[#allocation2 + $0xf0] sm:$0x33 pattern:$0x75316420] }
 0x356   : > { %v15097_v9 = vadd.f32 %v6947_v21, %v6753_v46  ;;  %v7549_v31 = vcombine.low %v16720_v30, %v16719_v11  ;;  %v7556_v36 = vrot.slane %v7548_v54, %v12691_v4  ;;  %v16724_v54 = vld [vmem:[#allocation153_spill] sm:$0xff] }
 0x357   : > { %v6757_v10 = vpop.f32.mrf.mxu1  ;;  %8032 = vmatmul.mubr.bf16.gmra.mxu1 %v16698_v49  ;;  %v11979_v58 = vpop.f32.mrf.mxu0 }
 0x358   : > { %16715 = vst [vmem:[#allocation43_spill] sm:$0xff] %v15097_v9  ;;  %v6758_v29 = vadd.f32 %v6757_v10, %v14621_v42  ;;  %8039 = vmatprep.mubr.bf16.mxu1 %v7229_v19  ;;  %v7563_v58 = vrot.slane %v7549_v31, %v12691_v4 }
 0x359   : > { %v6759_v21 = vpop.f32.mrf.mxu1  ;;  %v6968_v16 = vpop.f32.mrf.mxu0  ;;  %12093 = vmatmul.mubr.bf16.gmra.mxu0 %v7547_v61  ;;  %v7232_v61 = vor.u32 %v7230_v57, %v7228_v47  ;;  %v16727_v47 = vld [vmem:[#allocation144_spill] sm:$0xff] }
 0x35a   : > { %v15107_v13 = vadd.f32 %v6952_v26, %v6758_v29  ;;  %12096 = vmatprep.mubr.msk.bf16.mxu0 %vm12328_vm5, %v16386_v39  ;;  %v7564_v30 = vcombine.low %v7556_v36, %v7563_v58  ;;  %v7242_v29 = vshll.u32 %v16723_v50, 16  ;;  %v16725_v21 = vld [vmem:[#allocation142_spill] sm:$0xff] }
 0x35b   : > { %v6760_v49 = vpop.f32.mrf.mxu1  ;;  %v11982_v46 = vpop.f32.mrf.mxu0  ;;  %v7237_v34 = vsel %vm4010_vm10, %v7232_v61, %v7236_v2  ;;  %v7566_v31 = vcombine.low %v16725_v21, %v16724_v54  ;;  %v16730_v54 = vld [vmem:[#allocation169_spill] sm:$0xff] }
 0x35c   : > { %16721 = vst [vmem:[#allocation42_spill] sm:$0xff] %v15107_v13  ;;  %v6761_v42 = vadd.f32 %v6760_v49, %v14636_v17  ;;  %v7250_v21 = vshll.u32 %v16730_v54, 16  ;;  %v16747_v13 = vld [vmem:[#allocation179_spill] sm:$0xff] }
 0x35d   : > { %v6762_v10 = vpop.f32.mrf.mxu1  ;;  %v15115_v19 = vpop.f32.mrf.mxu0  ;;  %v7617_v9 = vcombine.low %v16747_v13, %v14313_v51 }
 0x35e   : > { %v15117_v26 = vadd.f32 %v6955_v37, %v6761_v42  ;;  %v16726_v37 = vld [vmem:[#allocation145_spill] sm:$0xff]  ;;  %v7238_v42 = vshrl.u32 %v16716_v55, 16  ;;  %v7244_v10 = vrot.slane %v7242_v29, 1 }
 0x35f   : > { %v6765_v63 = vpop.f32.mrf.mxu1  ;;  %8040 = vmatmul.mubr.bf16.gmra.mxu1 %v16703_v52  ;;  %v11983_v11 = vpop.f32.mrf.mxu0  ;;  %v7565_v57 = vcombine.low %v16727_v47, %v16726_v37  ;;  %v16732_v47 = vld [vmem:[#allocation154_spill] sm:$0xff] }
 0x360   : > { %16722 = vst [vmem:[#allocation36_spill] sm:$0xff] %v15117_v26  ;;  %v6766_v17 = vadd.f32 %v6765_v63, %v14678_v48  ;;  %8047 = vmatprep.mubr.bf16.mxu1 %v7237_v34  ;;  %v7580_v48 = vrot.slane %v7566_v31, %v12691_v4  ;;  %v7240_v11 = vor.u32 %v7238_v42, %v7236_v2  ;;  %v16731_v31 = vld [vmem:[#allocation156_spill] sm:$0xff] }
 0x361   : > { %v6767_v49 = vpop.f32.mrf.mxu1  ;;  %v15125_v46 = vpop.f32.mrf.mxu0  ;;  %12097 = vmatmul.mubr.bf16.gmra.mxu0 %v7564_v30  ;;  %v7573_v30 = vrot.slane %v7565_v57, %v12691_v4 }
 0x362   : > { %v15129_v52 = vadd.f32 %v6960_v14, %v6766_v17  ;;  %12100 = vmatprep.mubr.msk.bf16.mxu0 %vm12328_vm5, %v16386_v39  ;;  %v7245_v49 = vsel %vm4010_vm10, %v7240_v11, %v7244_v10 }
 0x363   : > { %v6768_v36 = vpop.f32.mrf.mxu1  ;;  %v11986_v58 = vpop.f32.mrf.mxu0  ;;  %v7581_v37 = vcombine.low %v7573_v30, %v7580_v48  ;;  %v7246_v48 = vshrl.u32 %v16723_v50, 16  ;;  %v7252_v30 = vrot.slane %v7250_v21, 1  ;;  %v12306_v21 = vld [vmem:[%s16156_s7 + $0x10] ss:$8 sps:$4 sm:$0xff]  }
 0x364   : > { %16728 = vst [vmem:[#allocation25_spill] sm:$0xff] %v15129_v52  ;;  %v6769_v61 = vadd.f32 %v6768_v36, %v14686_v25  ;;  %v7582_v25 = vcombine.low %v16732_v47, %v16731_v31  ;;  %v16733_v36 = vld [vmem:[#allocation162_spill] sm:$0xff] }
 0x365   : > { %v6770_v63 = vpop.f32.mrf.mxu1  ;;  %v15136_v34 = vpop.f32.mrf.mxu0  ;;  %v16734_v58 = vld [vmem:[#allocation158_spill] sm:$0xff] }
 0x366   : > { %v15139_v14 = vadd.f32 %v6963_v33, %v6769_v61  ;;  %v7583_v63 = vcombine.low %v16734_v58, %v16733_v36  ;;  %v11262_v33 = vld.sshfl [vmem:[#allocation2 + $0xe8] sm:$0x33 pattern:$0x75316420]  ;;  %v16735_v61 = vld [vmem:[#allocation175_spill] sm:$0xff]  ;;  %v7248_v36 = vor.u32 %v7246_v48, %v7244_v10  ;;  %v16737_v58 = vld [vmem:[#allocation166_spill] sm:$0xff] }
 0x367   : > { %v6773_v17 = vpop.f32.mrf.mxu1  ;;  %8048 = vmatmul.mubr.bf16.gmra.mxu1 %v16709_v56  ;;  %v11987_v29 = vpop.f32.mrf.mxu0  ;;  %v7254_v56 = vshrl.u32 %v16730_v54, 16  ;;  %v7258_v11 = vshll.u32 %v16735_v61, 16  ;;  %v2934_v47 = vcombine.high %v11262_v33, %v11262_v33 }
 0x368   : > { %16729 = vst [vmem:[#allocation55_spill] sm:$0xff] %v15139_v14  ;;  %v6774_v2 = vadd.f32 %v6773_v17, %v14703_v45  ;;  %8055 = vmatprep.mubr.bf16.mxu1 %v7245_v49  ;;  %v7590_v17 = vrot.slane %v7582_v25, %v12691_v4  ;;  %v7597_v49 = vrot.slane %v7583_v63, %v12691_v4  ;;  %v12308_v25 = vld [vmem:[%s16156_s7 + $0x14] ss:$8 sps:$4 sm:$0xff]  }
 0x369   : > { %v6775_v57 = vpop.f32.mrf.mxu1  ;;  %v15149_v42 = vpop.f32.mrf.mxu0  ;;  %12101 = vmatmul.mubr.bf16.gmra.mxu0 %v7581_v37  ;;  %v7256_v14 = vor.u32 %v7254_v56, %v7252_v30  ;;  %v7253_v48 = vsel %vm4010_vm10, %v7248_v36, %v7252_v30  ;;  %12130 = vmatprep.subr.bf16.mxu1 %v12308_v25  ;;  %v7262_v30 = vshrl.u32 %v16735_v61, 16  ;;  %v16744_v36 = vld [vmem:[#allocation180_spill] sm:$0xff] }
 0x36a   : > { %v15153_v29 = vadd.f32 %v6968_v16, %v6774_v2  ;;  %12104 = vmatprep.mubr.msk.bf16.mxu0 %vm12328_vm5, %v16386_v39  ;;  %v16738_v57 = vld [vmem:[#allocation163_spill] sm:$0xff]  ;;  %10277 = vmatprep.subr.bf16.mxu0 %v12308_v25 }
 0x36b   : > { %v6776_v31 = vpop.f32.mrf.mxu1  ;;  %v11990_v45 = vpop.f32.mrf.mxu0  ;;  %v7599_v16 = vcombine.low %v16738_v57, %v16737_v58  ;;  %v16739_v2 = vld [vmem:[#allocation167_spill] sm:$0xff]  ;;  %v7598_v58 = vcombine.low %v7590_v17, %v7597_v49  ;;  %v2941_v57 = vrot.slane %v11262_v33, %v12691_v4  ;;  %10278 = vmatpush1.bf16.msra.mxu0 %v12306_v21  ;;  %12138 = vmatpush1.bf16.msra.mxu1 %v12306_v21 }
 0x36c   : > { %16736 = vst [vmem:[#allocation54_spill] sm:$0xff] %v15153_v29  ;;  %v6777_v37 = vadd.f32 %v6776_v31, %v14714_v32  ;;  %v7600_v29 = vcombine.low %v16739_v2, %v16627_v28  ;;  %v7260_v32 = vrot.slane %v7258_v11, 1  ;;  %v15180_v2 = vrot.slane %v2934_v47, %v12691_v4  ;;  %v16743_v47 = vld [vmem:[#allocation182_spill] sm:$0xff] }
 0x36d   : > { %v6778_v45 = vpop.f32.mrf.mxu1  ;;  %v15171_v63 = vpop.f32.mrf.mxu0 }
 0x36e   : > { %v15174_v10 = vadd.f32 %v15115_v19, %v6777_v37  ;;  %v7607_v19 = vrot.slane %v7599_v16, %v12691_v4  ;;  %v7614_v11 = vrot.slane %v7600_v29, %v12691_v4  ;;  %v7261_v33 = vsel %vm4010_vm10, %v7256_v14, %v7260_v32 }
 0x36f   : > { %v6781_v28 = vpop.f32.mrf.mxu1  ;;  %8056 = vmatmul.mubr.bf16.gmra.mxu1 %v16716_v55  ;;  %v11991_v31 = vpop.f32.mrf.mxu0  ;;  %v7633_v29 = vcombine.low %v16744_v36, %v16743_v47  ;;  %v11399_v16 = vcombine.high %v16744_v36, %v16743_v47  ;;  %v7635_v45 = vcombine.low %v2941_v57, %v15180_v2  ;;  %v11400_v14 = vcombine.high %v2941_v57, %v15180_v2  ;;  %v16745_v36 = vld [vmem:[#allocation178_spill] sm:$0xff] }
 0x370   : > { %16740 = vst [vmem:[#allocation53_spill] sm:$0xff] %v15174_v10  ;;  %v6782_v56 = vadd.f32 %v6781_v28, %v14731_v5  ;;  %8063 = vmatprep.mubr.bf16.mxu1 %v7253_v48  ;;  %v16742_v5 = vld [vmem:[#allocation181_spill] sm:$0xff]  ;;  %v2926_v28 = vcombine.high %v16743_v47, %v16743_v47  ;;  %v2949_v31 = vcombine.high %v2941_v57, %v2941_v57 }
 0x371   : > { %v6783_v37 = vpop.f32.mrf.mxu1  ;;  %v15186_v55 = vpop.f32.mrf.mxu0  ;;  %12105 = vmatmul.mubr.bf16.gmra.mxu0 %v7598_v58  ;;  %v7266_v49 = vshll.u32 %v16742_v5, 16  ;;  %v12311_v48 = vld [vmem:[%s16156_s7 + $0x4] ss:$8 sps:$4 sm:$0xff]   ;;  %v7657_v13 = vrot.slane %v7635_v45, %v12691_v4 }
 0x372   : > { %v15190_v17 = vadd.f32 %v15125_v46, %v6782_v56  ;;  %12108 = vmatprep.mubr.msk.bf16.mxu0 %vm12328_vm5, %v16386_v39  ;;  %v12309_v46 = vld [vmem:[%s16156_s7] ss:$8 sps:$4 sm:$0xff]   ;;  %v7615_v56 = vcombine.low %v7607_v19, %v7614_v11  ;;  %v7264_v37 = vor.u32 %v7262_v30, %v7260_v32  ;;  %v11263_v10 = vld.sshfl [vmem:[#allocation2 + $0xec] sm:$0x1 pattern:$0x75316420]  ;;  %10279 = vmatprep.subr.bf16.mxu0 %v12311_v48 }
 0x373   : > { %v6784_v21 = vpop.f32.mrf.mxu1  ;;  %v11994_v25 = vpop.f32.mrf.mxu0  ;;  %v7050_v15 = vcombine.low %v2926_v28, %v2941_v57  ;;  %v7051_v47 = vcombine.low %v15180_v2, %v2949_v31  ;;  %12131 = vmatprep.subr.bf16.mxu1 %v12311_v48  ;;  %v7268_v32 = vrot.slane %v7266_v49, 1  ;;  %v7643_v19 = vrot.slane %v7633_v29, %v12691_v4  ;;  %10280 = vmatpush1.bf16.msra.mxu0 %v12309_v46 }
 0x374   : > { %16741 = vst [vmem:[#allocation46_spill] sm:$0xff] %v15190_v17  ;;  %v6785_v58 = vadd.f32 %v6784_v21, %v14738_v27  ;;  %v16746_v25 = vld [vmem:[#allocation177_spill] sm:$0xff]  ;;  %v7650_v11 = vrot.slane %v11399_v16, %v12691_v4  ;;  %12139 = vmatpush1.bf16.msra.mxu1 %v12309_v46  ;;  %v7664_v57 = vrot.slane %v11400_v14, %v12691_v4 }
 0x375   : > { %v7616_v17 = vcombine.low %v16746_v25, %v16745_v36  ;;  %v6786_v52 = vpop.f32.mrf.mxu1  ;;  %v15212_v26 = vpop.f32.mrf.mxu0  ;;  %v7065_v30 = vrot.slane %v7050_v15, %v12691_v4  ;;  %v15229_v29 = vrot.slane %v11263_v10, %v12691_v4  ;;  %v15232_v16 = vrot.slane %v11264_v53, %v12691_v4 }
 0x376   : > { %v15218_v27 = vadd.f32 %v15136_v34, %v6785_v58  ;;  %v7072_v34 = vrot.slane %v7051_v47, %v12691_v4  ;;  %v7631_v14 = vrot.slane %v7617_v9, %v12691_v4  ;;  %v7665_v28 = vcombine.low %v7643_v19, %v7650_v11 }
 0x377   : > { %v6789_v52 = vpop.f32.mrf.mxu1  ;;  %8064 = vmatmul.mubr.bf16.gmra.mxu1 %v16723_v50  ;;  %v11995_v51 = vpop.f32.mrf.mxu0  ;;  %v2950_v50 = vcombine.high %v15180_v2, %v15180_v2  ;;  %v7624_v15 = vrot.slane %v7616_v17, %v12691_v4  ;;  %v7113_v2 = vrot.slane %v15232_v16, %v12691_v4  ;;  %v7666_v31 = vcombine.low %v7657_v13, %v7664_v57 }
 0x378   : > { %v6790_v49 = vadd.f32 %v6789_v52, %v14754_v7  ;;  %8071 = vmatprep.mubr.bf16.mxu1 %v7261_v33  ;;  %v7074_v46 = vcombine.low %v7065_v30, %v7072_v34  ;;  %v7081_v7 = vrot.slane %v14340_v38, %v12691_v4  ;;  %v7270_v47 = vshrl.u32 %v16742_v5, 16 }
 0x379   : > { %v6791_v21 = vpop.f32.mrf.mxu1  ;;  %v15236_v45 = vpop.f32.mrf.mxu0  ;;  %12109 = vmatmul.mubr.bf16.gmra.mxu0 %v7615_v56  ;;  %v7090_v53 = vcombine.low %v2950_v50, %v15229_v29  ;;  %v7269_v56 = vsel %vm4010_vm10, %v7264_v37, %v7268_v32  ;;  %v7632_v36 = vcombine.low %v7624_v15, %v7631_v14  ;;  %v7673_v37 = vrot.slane %v7665_v28, %v12691_v4 }
 0x37a   : > { %v15243_v10 = vadd.f32 %v15149_v42, %v6790_v49  ;;  %12112 = vmatprep.mubr.msk.bf16.mxu0 %vm12328_vm5, %v16386_v39  ;;  %v7088_v17 = vrot.slane %v7074_v46, %v12691_v4  ;;  %v7680_v57 = vrot.slane %v7666_v31, %v12691_v4 }
 0x37b   : > { %v6792_v33 = vpop.f32.mrf.mxu1  ;;  %v11998_v48 = vpop.f32.mrf.mxu0  ;;  %v15253_v38 = vrot.slane %v7090_v53, %v12691_v4  ;;  %v7682_v53 = vcombine.low %v15229_v29, %v15232_v16 }
 0x37c   : > { %v6793_v9 = vadd.f32 %v6792_v33, %v14767_v43  ;;  %v15256_v25 = vcombine.low %v7081_v7, %v7088_v17  ;;  %v7681_v14 = vcombine.low %v7673_v37, %v7680_v57 }
 0x37d   : > { %v6794_v42 = vpop.f32.mrf.mxu1  ;;  %v7003_v58 = vpop.f32.mrf.mxu0  ;;  %v7114_v51 = vcombine.low %v15253_v38, %v7113_v2  ;;  %v7689_v29 = vrot.slane %v7682_v53, %v12691_v4 }
 0x37e   : > { %v15260_v52 = vadd.f32 %v15171_v63, %v6793_v9  ;;  %v7274_v11 = vshll.u32 %v15256_v25, 16  ;;  %v7272_v63 = vor.u32 %v7270_v47, %v7268_v32  ;;  %v7278_v2 = vshrl.u32 %v15256_v25, 16 }
 0x37f   : > { %v6797_v43 = vpop.f32.mrf.mxu1  ;;  %8072 = vmatmul.mubr.bf16.gmra.mxu1 %v16730_v54  ;;  %v11999_v19 = vpop.f32.mrf.mxu0  ;;  %v7121_v50 = vrot.slane %v7114_v51, %v12691_v4  ;;  %v7696_v47 = vrot.slane %v7689_v29, %v12691_v4 }
 0x380   : > { %v6798_v13 = vadd.f32 %v6797_v43, %v14775_v8  ;;  %8079 = vmatprep.mubr.bf16.mxu1 %v7269_v56  ;;  %v7276_v49 = vrot.slane %v7274_v11, 1 }
 0x381   : > { %v6799_v30 = vpop.f32.mrf.mxu1  ;;  %v7008_v34 = vpop.f32.mrf.mxu0  ;;  %12113 = vmatmul.mubr.bf16.gmra.mxu0 %v7632_v36  ;;  %v7282_v33 = vshll.u32 %v7121_v50, 16 }
 0x382   : > { %v15270_v21 = vadd.f32 %v15186_v55, %v6798_v13  ;;  %12116 = vmatprep.mubr.msk.bf16.mxu0 %vm12328_vm5, %v16386_v39  ;;  %v7277_v32 = vsel %vm4010_vm10, %v7272_v63, %v7276_v49  ;;  %v7280_v16 = vor.u32 %v7278_v2, %v7276_v49 }
 0x383   : > { %v6800_v54 = vpop.f32.mrf.mxu1  ;;  %v12002_v8 = vpop.f32.mrf.mxu0  ;;  %v7284_v31 = vrot.slane %v7282_v33, 1 }
 0x384   : > { %v6801_v15 = vadd.f32 %v6800_v54, %v14786_v6 }
 0x385   : > { %v6802_v46 = vpop.f32.mrf.mxu1  ;;  %v7011_v7 = vpop.f32.mrf.mxu0  ;;  %v7285_v51 = vsel %vm4010_vm10, %v7280_v16, %v7284_v31 }
 0x386   : > { %v15280_v55 = vadd.f32 %v15212_v26, %v6801_v15 }
 0x387   : > { %v6805_v48 = vpop.f32.mrf.mxu1  ;;  %8080 = vmatmul.mubr.bf16.gmra.mxu1 %v16735_v61  ;;  %v12003_v17 = vpop.f32.mrf.mxu0 }
 0x388   : > { %v6806_v6 = vadd.f32 %v6805_v48, %v14801_v35  ;;  %8087 = vmatprep.mubr.bf16.mxu1 %v7277_v32  ;;  %v16748_v32 = vld [vmem:[#allocation14_spill] sm:$0xff] }
 0x389   : > { %v6807_v9 = vpop.f32.mrf.mxu1  ;;  %v7016_v28 = vpop.f32.mrf.mxu0  ;;  %12117 = vmatmul.mubr.bf16.gmra.mxu0 %v7681_v14 }
 0x38a   : > { %v15286_v42 = vadd.f32 %v15236_v45, %v6806_v6  ;;  %12120 = vmatprep.mubr.msk.bf16.mxu0 %vm12328_vm5, %v16386_v39  ;;  %v7286_v39 = vshrl.u32 %v7121_v50, 16 }
 0x38b   : > { %v6808_v26 = vpop.f32.mrf.mxu1  ;;  %v12006_v56 = vpop.f32.mrf.mxu0 }
 0x38c   : > { %v6809_v61 = vadd.f32 %v6808_v26, %v14809_v60  ;;  %v7288_v63 = vor.u32 %v7286_v39, %v7284_v31 }
 0x38d   : > { %v6810_v36 = vpop.f32.mrf.mxu1  ;;  %v7019_v35 = vpop.f32.mrf.mxu0 }
 0x38e   : > { %v15293_v43 = vadd.f32 %v7003_v58, %v6809_v61 }
 0x38f   : > { %v6813_v19 = vpop.f32.mrf.mxu1  ;;  %v12007_v11 = vpop.f32.mrf.mxu0  ;;  %8088 = vmatmul.mubr.bf16.gmra.mxu1 %v16742_v5 }
 0x390   : > { %v6814_v45 = vadd.f32 %v6813_v19, %v14817_v59  ;;  %8093 = vmatprep.mubr.bf16.mxu1 %v7285_v51 }
 0x391   : > { %v6815_v13 = vpop.f32.mrf.mxu1  ;;  %v7024_v37 = vpop.f32.mrf.mxu0  ;;  %12121 = vmatmul.mubr.bf16.gmra.mxu0 %v7696_v47 }
 0x392   : > { %v15297_v60 = vadd.f32 %v7008_v34, %v6814_v45  ;;  %10297 = vmatprep.mubr.bf16.mxu0 %v16384_v1 }
 0x393   : > { %v6816_v57 = vpop.f32.mrf.mxu1  ;;  %v12010_v30 = vpop.f32.mrf.mxu0 }
 0x394   : > { %v6817_v58 = vadd.f32 %v6816_v57, %v14823_v12  ;;  %v7104_v12 = vrot.slane %v15253_v38, %v12691_v4  ;;  %v16750_v38 = vld [vmem:[#allocation33_spill] sm:$0xff] }
 0x395   : > { %v6818_v49 = vpop.f32.mrf.mxu1  ;;  %v7027_v54 = vpop.f32.mrf.mxu0 }
 0x396   : > { %v15301_v8 = vadd.f32 %v7011_v7, %v6817_v58 }
 0x397   : > { %v6821_v5 = vpop.f32.mrf.mxu1  ;;  %v12011_v59 = vpop.f32.mrf.mxu0  ;;  %8094 = vmatmul.mubr.bf16.gmra.mxu1 %v15256_v25 }
 0x398   : > { %v6822_v50 = vadd.f32 %v6821_v5, %v14835_v3  ;;  %8099 = vmatprep.mubr.bf16.mxu1 %v7288_v63  ;;  %v16749_v3 = vld [vmem:[#allocation13_spill] sm:$0xff] }
 0x399   : > { %v6823_v34 = vpop.f32.mrf.mxu1  ;;  %v7032_v15 = vpop.f32.mrf.mxu0 }
 0x39a   : > { %v15305_v14 = vadd.f32 %v7016_v28, %v6822_v50 }
 0x39b   : > { %v6824_v46 = vpop.f32.mrf.mxu1  ;;  %v12014_v53 = vpop.f32.mrf.mxu0 }
 0x39c   : > { %v6825_v2 = vadd.f32 %v6824_v46, %v16748_v32 }
 0x39d   : > { %v6826_v7 = vpop.f32.mrf.mxu1  ;;  %v7034_v33 = vpop.f32.mrf.mxu0 }
 0x39e   : > { %v15310_v48 = vadd.f32 %v7019_v35, %v6825_v2 }
 0x39f   : > { %v6829_v17 = vpop.f32.mrf.mxu1  ;;  %v12015_v25 = vpop.f32.mrf.mxu0  ;;  %8100 = vmatmul.mubr.bf16.gmra.mxu1 %v7104_v12 }
 0x3a0   : > { %v6830_v6 = vadd.f32 %v6829_v17, %v16749_v3  ;;  %10317 = vmatprep.mubr.bf16.mxu1 %v16384_v1  ;;  %v15322_v17 = vld [vmem:[%s16154_s5] ss:$0 sm:$0xff] }
 0x3a1   : > { %v6831_v9 = vpop.f32.mrf.mxu1  ;;  %v7038_v28 = vpop.f32.mrf.mxu0 }
 0x3a2   : > { %v15314_v29 = vadd.f32 %v7024_v37, %v6830_v6  ;;  %v16751_v6 = vld [vmem:[#allocation34_spill] sm:$0xff] }
 0x3a3   : > { %v6832_v16 = vpop.f32.mrf.mxu1  ;;  %v12018_v31 = vpop.f32.mrf.mxu0 }
 0x3a4   : > { %v6833_v26 = vadd.f32 %v6832_v16, %v16750_v38 }
 0x3a5   : > { %v6834_v56 = vpop.f32.mrf.mxu1  ;;  %v7040_v61 = vpop.f32.mrf.mxu0 }
 0x3a6   : > { %v15317_v36 = vadd.f32 %v7027_v54, %v6833_v26  ;;  %v15329_v26 = vld [vmem:[%s16155_s6] ss:$0 sm:$0xff] }
 0x3a7   : > { %v6837_v35 = vpop.f32.mrf.mxu1  ;;  %v12019_v47 = vpop.f32.mrf.mxu0 }
 0x3a8   : > { %v16752_v35 = vld [vmem:[#allocation32_spill] sm:$0xff] }
 0x3a9   : > { %v6838_v51 = vpop.f32.mrf.mxu1  ;;  %v7044_v19 = vpop.f32.mrf.mxu0 }
 0x3ab   : > { %v6839_v11 = vpop.f32.mrf.mxu1  ;;  %v12022_v45 = vpop.f32.mrf.mxu0 }
 0x3ad   : > { %v6840_v39 = vpop.f32.mrf.mxu1  ;;  %v7046_v13 = vpop.f32.mrf.mxu0 }
 0x3af   : > { %v6843_v57 = vpop.f32.mrf.mxu1  ;;  %v12023_v30 = vpop.f32.mrf.mxu0 }
 0x3b1   : > { %v6844_v37 = vpop.f32.mrf.mxu1  ;;  %v8140_v58 = vpop.f32.mrf.mxu0 }
 0x3b3   : > { %v6845_v63 = vpop.f32.mrf.mxu1  ;;  %v12042_v49 = vpop.f32.mrf.mxu0 }
 0x3b5   : > { %v6846_v5 = vpop.f32.mrf.mxu1  ;;  %v8143_v59 = vpop.f32.mrf.mxu0 }
 0x3b7   : > { %v6849_v50 = vpop.f32.mrf.mxu1  ;;  %v12043_v34 = vpop.f32.mrf.mxu0 }
 0x3b9   : > { %v6850_v54 = vpop.f32.mrf.mxu1  ;;  %v8148_v15 = vpop.f32.mrf.mxu0 }
 0x3bb   : > { %v6851_v46 = vpop.f32.mrf.mxu1  ;;  %v12046_v53 = vpop.f32.mrf.mxu0 }
 0x3bd   : > { %v6852_v12 = vpop.f32.mrf.mxu1  ;;  %v8151_v32 = vpop.f32.mrf.mxu0 }
 0x3bf   : > { %v7945_v2 = vpop.f32.mrf.mxu1  ;;  %v12047_v7 = vpop.f32.mrf.mxu0 }
 0x3c0   : > { %v8141_v33 = vadd.f32 %v8140_v58, %v7945_v2 }
 0x3c1   : > { %v7947_v25 = vpop.f32.mrf.mxu1  ;;  %v8156_v3 = vpop.f32.mrf.mxu0 }
 0x3c2   : > { %v8301_v9 = vadd.f32 %v8141_v33, %v16751_v6 }
 0x3c3   : > { %v7948_v28 = vpop.f32.mrf.mxu1  ;;  %v12050_v16 = vpop.f32.mrf.mxu0 }
 0x3c4   : > { %v8344_v31 = vmul.f32 %v15322_v17, %v8301_v9  ;;  %v8144_v38 = vadd.f32 %v8143_v59, %v7948_v28 }
 0x3c5   : > { %v7950_v56 = vpop.f32.mrf.mxu1  ;;  %v8159_v61 = vpop.f32.mrf.mxu0 }
 0x3c6   : > { %v8302_v47 = vadd.f32 %v8144_v38, %v16752_v35  ;;  %v8387_v11 = vadd.f32 %v15329_v26, %v8344_v31 }
 0x3c7   : > { %v7953_v51 = vpop.f32.mrf.mxu1  ;;  %v12051_v19 = vpop.f32.mrf.mxu0 }
 0x3c8   : > { %v8345_v45 = vmul.f32 %v15322_v17, %v8302_v47  ;;  %v8149_v39 = vadd.f32 %v8148_v15, %v7953_v51  ;;  %v8423_v49 = vmax.f32 %v8387_v11, 0.0 }
 0x3c9   : > { %v7955_v13 = vpop.f32.mrf.mxu1  ;;  %v8164_v57 = vpop.f32.mrf.mxu0 }
 0x3ca   : > { %v8388_v30 = vadd.f32 %v15329_v26, %v8345_v45  ;;  %v8303_v37 = vadd.f32 %v8149_v39, %v14968_v18 }
 0x3cb   : > { %v7956_v58 = vpop.f32.mrf.mxu1  ;;  %v12054_v63 = vpop.f32.mrf.mxu0 }
 0x3cc   : > { %v8424_v5 = vmax.f32 %v8388_v30, 0.0  ;;  %v8152_v59 = vadd.f32 %v8151_v32, %v7956_v58  ;;  %v8346_v50 = vmul.f32 %v15322_v17, %v8303_v37 }
 0x3cd   : > { %v7958_v34 = vpop.f32.mrf.mxu1  ;;  %v8167_v54 = vpop.f32.mrf.mxu0 }
 0x3ce   : > { %v8459_v46 = vpack.c.bf16 %v8424_v5, %v8423_v49  ;;  %v11475_v53 = vpack.c.bf16 %v8424_v5, %v8424_v5  ;;  %v8304_v12 = vadd.f32 %v8152_v59, %v14976_v62  ;;  %v8389_v25 = vadd.f32 %v15329_v26, %v8346_v50 }
 0x3cf   : > { %v7961_v15 = vpop.f32.mrf.mxu1  ;;  %v12055_v2 = vpop.f32.mrf.mxu0 }
 0x3d0   : > { %v8502_v7 = vrot.slane %v8459_v46, %v12691_v4  ;;  %v8509_v33 = vrot.slane %v11475_v53, %v12691_v4  ;;  %v8347_v18 = vmul.f32 %v15322_v17, %v8304_v12  ;;  %v8157_v6 = vadd.f32 %v8156_v3, %v7961_v15 }
 0x3d1   : > { %v7963_v32 = vpop.f32.mrf.mxu1  ;;  %v15342_v9 = vpop.f32.mrf.mxu0  ;;  %v8425_v11 = vmax.f32 %v8389_v25, 0.0 }
 0x3d2   : > { %v8510_v28 = vcombine.high %v8502_v7, %v8502_v7  ;;  %v8511_v16 = vcombine.high %v8509_v33, %v8509_v33  ;;  %v8518_v31 = vrot.slane %v8502_v7, %v12691_v4  ;;  %v8390_v62 = vadd.f32 %v15329_v26, %v8347_v18 }
 0x3d3   : > { %v8305_v38 = vadd.f32 %v8157_v6, %v14987_v23  ;;  %v7964_v56 = vpop.f32.mrf.mxu1  ;;  %v12058_v35 = vpop.f32.mrf.mxu0  ;;  %v8525_v47 = vrot.slane %v8509_v33, %v12691_v4 }
 0x3d4   : > { %v8532_v51 = vrot.slane %v8510_v28, %v12691_v4  ;;  %v8539_v19 = vrot.slane %v8511_v16, %v12691_v4  ;;  %v8160_v3 = vadd.f32 %v8159_v61, %v7964_v56  ;;  %v8426_v45 = vmax.f32 %v8390_v62, 0.0 }
 0x3d5   : > { %v8348_v39 = vmul.f32 %v15322_v17, %v8305_v38  ;;  %v7966_v13 = vpop.f32.mrf.mxu1  ;;  %v15351_v30 = vpop.f32.mrf.mxu0 }
 0x3d6   : > { %v9385_v37 = vcombine.low %v8518_v31, %v8532_v51  ;;  %v11493_v58 = vcombine.high %v8518_v31, %v8532_v51  ;;  %v9387_v63 = vcombine.low %v8525_v47, %v8539_v19  ;;  %v11494_v23 = vcombine.high %v8525_v47, %v8539_v19  ;;  %v16753_v51 = vld [vmem:[#allocation26_spill] sm:$0xff] }
 0x3d7   : > { %v8460_v49 = vpack.c.bf16 %v8426_v45, %v8425_v11  ;;  %v11476_v5 = vpack.c.bf16 %v8426_v45, %v8426_v45  ;;  %v8391_v59 = vadd.f32 %v15329_v26, %v8348_v39  ;;  %v8306_v50 = vadd.f32 %v8160_v3, %v14998_v22  ;;  %v7969_v34 = vpop.f32.mrf.mxu1  ;;  %v12059_v46 = vpop.f32.mrf.mxu0 }
 0x3d8   : > { %v9395_v61 = vrot.slane %v9385_v37, %v12691_v4  ;;  %v9402_v53 = vrot.slane %v11493_v58, %v12691_v4  ;;  %v9409_v12 = vrot.slane %v9387_v63, %v12691_v4  ;;  %v9416_v15 = vrot.slane %v11494_v23, %v12691_v4 }
 0x3d9   : > { %v8551_v2 = vrot.slane %v8460_v49, %v12691_v4  ;;  %v8558_v7 = vrot.slane %v11476_v5, %v12691_v4  ;;  %v8349_v33 = vmul.f32 %v15322_v17, %v8306_v50  ;;  %v7971_v18 = vpop.f32.mrf.mxu1  ;;  %v15362_v25 = vpop.f32.mrf.mxu0  ;;  %v8427_v32 = vmax.f32 %v8391_v59, 0.0 }
 0x3da   : > { %v9417_v22 = vcombine.low %v9395_v61, %v9402_v53  ;;  %v9418_v6 = vcombine.low %v9409_v12, %v9416_v15  ;;  %v8165_v28 = vadd.f32 %v8164_v57, %v7969_v34 }
 0x3db   : > { %v8559_v16 = vcombine.high %v8551_v2, %v8551_v2  ;;  %v8560_v31 = vcombine.high %v8558_v7, %v8558_v7  ;;  %v8567_v62 = vrot.slane %v8551_v2, %v12691_v4  ;;  %v8574_v38 = vrot.slane %v8558_v7, %v12691_v4  ;;  %v7972_v56 = vpop.f32.mrf.mxu1  ;;  %v12062_v35 = vpop.f32.mrf.mxu0 }
 0x3dc   : > { %v8392_v47 = vadd.f32 %v15329_v26, %v8349_v33  ;;  %v8307_v19 = vadd.f32 %v8165_v28, %v16753_v51  ;;  %v8168_v3 = vadd.f32 %v8167_v54, %v7972_v56  ;;  %v9425_v11 = vrot.slane %v9417_v22, %v12691_v4 }
 0x3dd   : > { %v8581_v45 = vrot.slane %v8559_v16, %v12691_v4  ;;  %v8588_v39 = vrot.slane %v8560_v31, %v12691_v4  ;;  %v8589_v57 = vcombine.high %v8567_v62, %v8567_v62  ;;  %v8590_v13 = vcombine.high %v8574_v38, %v8574_v38  ;;  %v7974_v37 = vpop.f32.mrf.mxu1  ;;  %v15371_v58 = vpop.f32.mrf.mxu0 }
 0x3de   : > { %v8428_v63 = vmax.f32 %v8392_v47, 0.0  ;;  %v8350_v23 = vmul.f32 %v15322_v17, %v8307_v19  ;;  %v8308_v49 = vadd.f32 %v8168_v3, %v15019_v40  ;;  %v9432_v5 = vrot.slane %v9418_v6, %v12691_v4 }
 0x3df   : > { %v8591_v59 = vcombine.high %v8581_v45, %v8581_v45  ;;  %v7977_v54 = vpop.f32.mrf.mxu1  ;;  %v12063_v50 = vpop.f32.mrf.mxu0  ;;  %v9434_v34 = vcombine.low %v8581_v45, %v8589_v57  ;;  %v15376_v46 = vcombine.low %v8588_v39, %v8590_v13  ;;  %v8592_v22 = vcombine.high %v8588_v39, %v8588_v39 }
 0x3e0   : > { %v8461_v61 = vpack.c.bf16 %v8428_v63, %v8427_v32  ;;  %v11477_v53 = vpack.c.bf16 %v8428_v63, %v8428_v63  ;;  %v8393_v12 = vadd.f32 %v15329_v26, %v8350_v23  ;;  %v8351_v15 = vmul.f32 %v15322_v17, %v8308_v49 }
 0x3e1   : > { %v9435_v2 = vcombine.low %v8591_v59, %v8574_v38  ;;  %v8173_v7 = vadd.f32 %v15342_v9, %v7977_v54  ;;  %v9433_v33 = vcombine.low %v9425_v11, %v9432_v5  ;;  %v7979_v18 = vpop.f32.mrf.mxu1  ;;  %v15381_v40 = vpop.f32.mrf.mxu0  ;;  %v9444_v38 = vrot.slane %v9434_v34, %v12691_v4 }
 0x3e2   : > { %v8600_v6 = vrot.slane %v8461_v61, %v12691_v4  ;;  %v8607_v28 = vrot.slane %v11477_v53, %v12691_v4  ;;  %v8394_v16 = vadd.f32 %v15329_v26, %v8351_v15  ;;  %v8429_v32 = vmax.f32 %v8393_v12, 0.0 }
 0x3e3   : > { %v8309_v31 = vadd.f32 %v8173_v7, %v15029_v0  ;;  %10298 = vmatmul.mubr.bf16.vlgmr.msra.gmra.mxu0 %v9433_v33  ;;  %v7980_v62 = vpop.f32.mrf.mxu1  ;;  %v12066_v56 = vpop.f32.mrf.mxu0  ;;  %v9451_v9 = vrot.slane %v9435_v2, %v12691_v4  ;;  %v9458_v19 = vrot.slane %v15376_v46, %v12691_v4 }
 0x3e4   : > { %v8608_v35 = vcombine.high %v8600_v6, %v8600_v6  ;;  %v8609_v47 = vcombine.high %v8607_v28, %v8607_v28  ;;  %v8616_v51 = vrot.slane %v8600_v6, %v12691_v4  ;;  %10307 = vmatprep.mubr.bf16.mxu0 %v16384_v1  ;;  %v8430_v3 = vmax.f32 %v8394_v16, 0.0 }
 0x3e5   : > { %v8352_v11 = vmul.f32 %v15322_v17, %v8309_v31  ;;  %v8176_v0 = vadd.f32 %v15351_v30, %v7980_v62  ;;  %v7982_v45 = vpop.f32.mrf.mxu1  ;;  %v15395_v39 = vpop.f32.mrf.mxu0  ;;  %v15397_v57 = vcombine.low %v9444_v38, %v9451_v9  ;;  %v8623_v13 = vrot.slane %v8607_v28, %v12691_v4 }
 0x3e6   : > { %v8630_v37 = vrot.slane %v8608_v35, %v12691_v4  ;;  %v8637_v63 = vrot.slane %v8609_v47, %v12691_v4  ;;  %v9437_v23 = vcombine.low %v8592_v22, %v8616_v51  ;;  %v8462_v49 = vpack.c.bf16 %v8430_v3, %v8429_v32 }
 0x3e7   : > { %v11478_v5 = vpack.c.bf16 %v8430_v3, %v8430_v3  ;;  %v8395_v59 = vadd.f32 %v15329_v26, %v8352_v11  ;;  %v8310_v54 = vadd.f32 %v8176_v0, %v15037_v24  ;;  %v7985_v50 = vpop.f32.mrf.mxu1  ;;  %v12067_v30 = vpop.f32.mrf.mxu0 }
 0x3e8   : > { %v11495_v34 = vcombine.high %v8616_v51, %v8630_v37  ;;  %v9484_v46 = vcombine.low %v8623_v13, %v8637_v63  ;;  %v11496_v61 = vcombine.high %v8623_v13, %v8637_v63  ;;  %v8181_v53 = vadd.f32 %v15362_v25, %v7985_v50 }
 0x3e9   : > { %v8649_v12 = vrot.slane %v8462_v49, %v12691_v4  ;;  %v8656_v15 = vrot.slane %v11478_v5, %v12691_v4  ;;  %v8431_v2 = vmax.f32 %v8395_v59, 0.0  ;;  %v8353_v7 = vmul.f32 %v15322_v17, %v8310_v54  ;;  %v7987_v33 = vpop.f32.mrf.mxu1  ;;  %v15408_v18 = vpop.f32.mrf.mxu0 }
 0x3ea   : > { %v9493_v22 = vrot.slane %v11495_v34, %v12691_v4  ;;  %v9500_v24 = vrot.slane %v9484_v46, %v12691_v4  ;;  %v9507_v6 = vrot.slane %v11496_v61, %v12691_v4  ;;  %v8311_v28 = vadd.f32 %v8181_v53, %v15047_v20 }
 0x3eb   : > { %v8657_v16 = vcombine.high %v8649_v12, %v8649_v12  ;;  %v8658_v25 = vcombine.high %v8656_v15, %v8656_v15  ;;  %v8665_v32 = vrot.slane %v8649_v12, %v12691_v4  ;;  %v8672_v31 = vrot.slane %v8656_v15, %v12691_v4  ;;  %v7988_v62 = vpop.f32.mrf.mxu1  ;;  %v12070_v56 = vpop.f32.mrf.mxu0 }
 0x3ec   : > { %v9515_v38 = vcombine.low %v9493_v22, %v9500_v24  ;;  %v8396_v9 = vadd.f32 %v15329_v26, %v8353_v7  ;;  %v8354_v35 = vmul.f32 %v15322_v17, %v8311_v28  ;;  %v8184_v47 = vadd.f32 %v15371_v58, %v7988_v62 }
 0x3ed   : > { %v8679_v51 = vrot.slane %v8657_v16, %v12691_v4  ;;  %v8686_v3 = vrot.slane %v8658_v25, %v12691_v4  ;;  %v8687_v20 = vcombine.high %v8672_v31, %v8672_v31  ;;  %v7990_v11 = vpop.f32.mrf.mxu1  ;;  %v9465_v0 = vrot.slane %v9437_v23, %v12691_v4  ;;  %v15422_v45 = vpop.f32.mrf.mxu0 }
 0x3ee   : > { %v8432_v13 = vmax.f32 %v8396_v9, 0.0  ;;  %v8397_v37 = vadd.f32 %v15329_v26, %v8354_v35  ;;  %v8312_v63 = vadd.f32 %v8184_v47, %v15055_v44  ;;  %v9474_v49 = vrot.slane %v15397_v57, %v12691_v4 }
 0x3ef   : > { %v8688_v5 = vcombine.high %v8679_v51, %v8679_v51  ;;  %v9486_v58 = vcombine.low %v8665_v32, %v8679_v51  ;;  %v8689_v59 = vcombine.high %v8686_v3, %v8686_v3  ;;  %v9467_v54 = vcombine.low %v9458_v19, %v9465_v0  ;;  %v7993_v50 = vpop.f32.mrf.mxu1  ;;  %v12071_v30 = vpop.f32.mrf.mxu0 }
 0x3f0   : > { %v8463_v34 = vpack.c.bf16 %v8432_v13, %v8431_v2  ;;  %v11479_v46 = vpack.c.bf16 %v8432_v13, %v8432_v13  ;;  %v8433_v61 = vmax.f32 %v8397_v37, 0.0  ;;  %v8355_v23 = vmul.f32 %v15322_v17, %v8312_v63 }
 0x3f1   : > { %v9514_v53 = vrot.slane %v9486_v58, %v12691_v4  ;;  %v15430_v12 = vcombine.low %v8688_v5, %v8672_v31  ;;  %v9481_v44 = vrot.slane %v9467_v54, %v12691_v4  ;;  %v8189_v15 = vadd.f32 %v15381_v40, %v7993_v50  ;;  %v7995_v57 = vpop.f32.mrf.mxu1  ;;  %v15434_v7 = vpop.f32.mrf.mxu0 }
 0x3f2   : > { %v8697_v19 = vrot.slane %v8463_v34, %v12691_v4  ;;  %v8704_v33 = vrot.slane %v11479_v46, %v12691_v4  ;;  %v8398_v2 = vadd.f32 %v15329_v26, %v8355_v23  ;;  %v9523_v22 = vrot.slane %v9515_v38, %v12691_v4 }
 0x3f3   : > { %v9516_v24 = vcombine.low %v9507_v6, %v9514_v53  ;;  %v9482_v28 = vcombine.low %v9474_v49, %v9481_v44  ;;  %v8313_v16 = vadd.f32 %v8189_v15, %v15071_v41  ;;  %v7996_v25 = vpop.f32.mrf.mxu1  ;;  %v12074_v32 = vpop.f32.mrf.mxu0  ;;  %v9533_v31 = vcombine.low %v8686_v3, %v8687_v20  ;;  %v16754_v49 = vld [vmem:[#allocation20_spill] sm:$0xff] }
 0x3f4   : > { %v8705_v62 = vcombine.high %v8697_v19, %v8697_v19  ;;  %v8706_v40 = vcombine.high %v8704_v33, %v8704_v33  ;;  %v8713_v56 = vrot.slane %v8697_v19, %v12691_v4  ;;  %v15443_v9 = vrot.slane %v8704_v33, %v12691_v4  ;;  %v16755_v15 = vld [vmem:[#allocation44_spill] sm:$0xff] }
 0x3f5   : > { %v8434_v35 = vmax.f32 %v8398_v2, 0.0  ;;  %10308 = vmatmul.mubr.bf16.gmra.mxu0 %v9482_v28  ;;  %v8356_v47 = vmul.f32 %v15322_v17, %v8313_v16  ;;  %v8192_v38 = vadd.f32 %v15395_v39, %v7996_v25  ;;  %v7998_v6 = vpop.f32.mrf.mxu1  ;;  %v15447_v51 = vpop.f32.mrf.mxu0  ;;  %v9530_v41 = vrot.slane %v9516_v24, %v12691_v4 }
 0x3f6   : > { %v8727_v3 = vrot.slane %v8705_v62, %v12691_v4  ;;  %v15452_v20 = vrot.slane %v8706_v40, %v12691_v4  ;;  %v8735_v11 = vcombine.high %v8713_v56, %v8713_v56  ;;  %v9534_v0 = vcombine.low %v8689_v59, %v8713_v56 }
 0x3f7   : > { %v8464_v13 = vpack.c.bf16 %v8434_v35, %v8433_v61  ;;  %v11480_v37 = vpack.c.bf16 %v8434_v35, %v8434_v35  ;;  %v8399_v63 = vadd.f32 %v15329_v26, %v8356_v47  ;;  %v8314_v5 = vadd.f32 %v8192_v38, %v16754_v49  ;;  %v8001_v58 = vpop.f32.mrf.mxu1  ;;  %v12075_v39 = vpop.f32.mrf.mxu0 }
 0x3f8   : > { %v9581_v54 = vcombine.low %v15443_v9, %v15452_v20  ;;  %v11497_v50 = vcombine.high %v15443_v9, %v15452_v20  ;;  %v8197_v30 = vadd.f32 %v15408_v18, %v8001_v58  ;;  %v9531_v34 = vcombine.low %v9523_v22, %v9530_v41 }
 0x3f9   : > { %v8745_v46 = vrot.slane %v8464_v13, %v12691_v4  ;;  %v8752_v59 = vrot.slane %v11480_v37, %v12691_v4  ;;  %v8435_v61 = vmax.f32 %v8399_v63, 0.0  ;;  %v8357_v23 = vmul.f32 %v15322_v17, %v8314_v5  ;;  %v8003_v53 = vpop.f32.mrf.mxu1  ;;  %v15464_v44 = vpop.f32.mrf.mxu0 }
 0x3fa   : > { %v8315_v57 = vadd.f32 %v8197_v30, %v16755_v15  ;;  %10318 = vmatmul.mubr.bf16.vlgmr.msra.gmra.mxu1 %v9531_v34  ;;  %v9535_v19 = vcombine.low %v8727_v3, %v8735_v11  ;;  %v9542_v33 = vrot.slane %v15430_v12, %v12691_v4  ;;  %v9549_v18 = vrot.slane %v9533_v31, %v12691_v4  ;;  %v16756_v3 = vld [vmem:[#allocation43_spill] sm:$0xff] }
 0x3fb   : > { %v8753_v2 = vcombine.high %v8745_v46, %v8745_v46  ;;  %v8754_v22 = vcombine.high %v8752_v59, %v8752_v59  ;;  %v8761_v24 = vrot.slane %v8745_v46, %v12691_v4  ;;  %v15472_v28 = vrot.slane %v8752_v59, %v12691_v4  ;;  %v8004_v16 = vpop.f32.mrf.mxu1  ;;  %v12078_v25 = vpop.f32.mrf.mxu0  ;;  %10327 = vmatprep.mubr.bf16.mxu1 %v16384_v1 }
 0x3fc   : > { %v8400_v32 = vadd.f32 %v15329_v26, %v8357_v23  ;;  %v8358_v62 = vmul.f32 %v15322_v17, %v8315_v57  ;;  %v8200_v40 = vadd.f32 %v15422_v45, %v8004_v16  ;;  %v9556_v12 = vrot.slane %v9534_v0, %v12691_v4 }
 0x3fd   : > { %v8775_v31 = vrot.slane %v8753_v2, %v12691_v4  ;;  %v15481_v56 = vrot.slane %v8754_v22, %v12691_v4  ;;  %v8784_v9 = vcombine.high %v15472_v28, %v15472_v28  ;;  %v8006_v35 = vpop.f32.mrf.mxu1  ;;  %v15485_v47 = vpop.f32.mrf.mxu0  ;;  %v9563_v38 = vrot.slane %v9535_v19, %v12691_v4 }
 0x3fe   : > { %v8436_v6 = vmax.f32 %v8400_v32, 0.0  ;;  %v8401_v41 = vadd.f32 %v15329_v26, %v8358_v62  ;;  %v8316_v45 = vadd.f32 %v8200_v40, %v16756_v3  ;;  %v9564_v20 = vcombine.low %v9542_v33, %v9549_v18  ;;  %v16757_v18 = vld [vmem:[#allocation42_spill] sm:$0xff] }
 0x3ff   : > { %v9583_v11 = vcombine.low %v8761_v24, %v8775_v31  ;;  %v11498_v0 = vcombine.high %v8761_v24, %v8775_v31  ;;  %v8786_v13 = vcombine.high %v15481_v56, %v15481_v56  ;;  %v8009_v37 = vpop.f32.mrf.mxu1  ;;  %v9565_v63 = vcombine.low %v9556_v12, %v9563_v38  ;;  %v12079_v49 = vpop.f32.mrf.mxu0 }
 0x400   : > { %v8465_v5 = vpack.c.bf16 %v8436_v6, %v8435_v61  ;;  %v11481_v58 = vpack.c.bf16 %v8436_v6, %v8436_v6  ;;  %v8437_v39 = vmax.f32 %v8401_v41, 0.0  ;;  %v8359_v30 = vmul.f32 %v15322_v17, %v8316_v45 }
 0x401   : > { %v8205_v34 = vadd.f32 %v15434_v7, %v8009_v37  ;;  %v9572_v46 = vrot.slane %v9564_v20, %v12691_v4  ;;  %v9579_v59 = vrot.slane %v9565_v63, %v12691_v4  ;;  %v8011_v23 = vpop.f32.mrf.mxu1  ;;  %v15496_v53 = vpop.f32.mrf.mxu0  ;;  %v9591_v15 = vrot.slane %v9581_v54, %v12691_v4  ;;  %v16758_v63 = vld [vmem:[#allocation36_spill] sm:$0xff] }
 0x402   : > { %v8794_v57 = vrot.slane %v8465_v5, %v12691_v4  ;;  %v8801_v19 = vrot.slane %v11481_v58, %v12691_v4  ;;  %v8402_v61 = vadd.f32 %v15329_v26, %v8359_v30  ;;  %v9598_v33 = vrot.slane %v11497_v50, %v12691_v4 }
 0x403   : > { %v8317_v2 = vadd.f32 %v8205_v34, %v16757_v18  ;;  %v9580_v7 = vcombine.low %v9572_v46, %v9579_v59  ;;  %v8012_v22 = vpop.f32.mrf.mxu1  ;;  %v12082_v24 = vpop.f32.mrf.mxu0  ;;  %v9605_v16 = vrot.slane %v9583_v11, %v12691_v4  ;;  %v9612_v25 = vrot.slane %v11498_v0, %v12691_v4 }
 0x404   : > { %v8802_v32 = vcombine.high %v8794_v57, %v8794_v57  ;;  %v8803_v62 = vcombine.high %v8801_v19, %v8801_v19  ;;  %v8810_v54 = vrot.slane %v8794_v57, %v12691_v4  ;;  %v15508_v40 = vrot.slane %v8801_v19, %v12691_v4 }
 0x405   : > { %v8438_v12 = vmax.f32 %v8402_v61, 0.0  ;;  %v8360_v31 = vmul.f32 %v15322_v17, %v8317_v2  ;;  %10328 = vmatmul.mubr.bf16.gmra.mxu1 %v9580_v7  ;;  %v8208_v50 = vadd.f32 %v15447_v51, %v8012_v22  ;;  %v8014_v35 = vpop.f32.mrf.mxu1  ;;  %v15512_v38 = vpop.f32.mrf.mxu0  ;;  %v9613_v6 = vcombine.low %v9591_v15, %v9598_v33  ;;  %v16759_v61 = vld [vmem:[#allocation25_spill] sm:$0xff] }
 0x406   : > { %v8824_v41 = vrot.slane %v8802_v32, %v12691_v4  ;;  %v15516_v3 = vrot.slane %v8803_v62, %v12691_v4  ;;  %v8832_v45 = vcombine.high %v8810_v54, %v8810_v54  ;;  %v15518_v20 = vcombine.low %v8786_v13, %v8810_v54  ;;  %10337 = vmatprep.mubr.bf16.mxu1 %v16384_v1 }
 0x407   : > { %v8466_v11 = vpack.c.bf16 %v8438_v12, %v8437_v39  ;;  %v11482_v0 = vpack.c.bf16 %v8438_v12, %v8438_v12  ;;  %v8403_v37 = vadd.f32 %v15329_v26, %v8360_v31  ;;  %v8318_v51 = vadd.f32 %v8208_v50, %v16758_v63  ;;  %v8017_v49 = vpop.f32.mrf.mxu1  ;;  %v12083_v5 = vpop.f32.mrf.mxu0 }
 0x408   : > { %v8834_v58 = vcombine.high %v8824_v41, %v8824_v41  ;;  %v11499_v30 = vcombine.high %v15508_v40, %v15516_v3  ;;  %v8213_v34 = vadd.f32 %v15464_v44, %v8017_v49  ;;  %v9614_v46 = vcombine.low %v9605_v16, %v9612_v25 }
 0x409   : > { %v8843_v13 = vrot.slane %v8466_v11, %v12691_v4  ;;  %v8850_v59 = vrot.slane %v11482_v0, %v12691_v4  ;;  %v8439_v23 = vmax.f32 %v8403_v37, 0.0  ;;  %v8361_v39 = vmul.f32 %v15322_v17, %v8318_v51  ;;  %v8019_v15 = vpop.f32.mrf.mxu1  ;;  %v15529_v57 = vpop.f32.mrf.mxu0  ;;  %v16760_v37 = vld [vmem:[#allocation55_spill] sm:$0xff] }
 0x40a   : > { %v9633_v19 = vcombine.low %v8834_v58, %v15508_v40  ;;  %v8319_v33 = vadd.f32 %v8213_v34, %v16759_v61  ;;  %v9621_v18 = vrot.slane %v9613_v6, %v12691_v4  ;;  %v9628_v2 = vrot.slane %v9614_v46, %v12691_v4 }
 0x40b   : > { %v8851_v44 = vcombine.high %v8843_v13, %v8843_v13  ;;  %v8852_v7 = vcombine.high %v8850_v59, %v8850_v59  ;;  %v15536_v22 = vrot.slane %v8843_v13, %v12691_v4  ;;  %v8866_v24 = vrot.slane %v8850_v59, %v12691_v4  ;;  %v8020_v16 = vpop.f32.mrf.mxu1  ;;  %v12086_v25 = vpop.f32.mrf.mxu0 }
 0x40c   : > { %v8404_v32 = vadd.f32 %v15329_v26, %v8361_v39  ;;  %v8362_v62 = vmul.f32 %v15322_v17, %v8319_v33  ;;  %v9629_v54 = vcombine.low %v9621_v18, %v9628_v2  ;;  %v8216_v40 = vadd.f32 %v15485_v47, %v8020_v16  ;;  %v16761_v2 = vld [vmem:[#allocation54_spill] sm:$0xff] }
 0x40d   : > { %v15543_v12 = vrot.slane %v8851_v44, %v12691_v4  ;;  %v8880_v31 = vrot.slane %v8852_v7, %v12691_v4  ;;  %v8022_v50 = vpop.f32.mrf.mxu1  ;;  %v15546_v35 = vpop.f32.mrf.mxu0  ;;  %v9630_v6 = vcombine.low %v15481_v56, %v8784_v9  ;;  %v9632_v3 = vcombine.low %v8824_v41, %v8832_v45 }
 0x40e   : > { %v8440_v11 = vmax.f32 %v8404_v32, 0.0  ;;  %v8405_v0 = vadd.f32 %v15329_v26, %v8362_v62  ;;  %10338 = vmatmul.mubr.bf16.gmra.mxu1 %v9629_v54  ;;  %v8320_v47 = vadd.f32 %v8216_v40, %v16760_v37  ;;  %v9647_v63 = vrot.slane %v15518_v20, %v12691_v4 }
 0x40f   : > { %v9680_v51 = vcombine.low %v15536_v22, %v15543_v12  ;;  %v11500_v49 = vcombine.high %v15536_v22, %v15543_v12  ;;  %v15560_v5 = vcombine.low %v8866_v24, %v8880_v31  ;;  %v8883_v28 = vcombine.high %v8880_v31, %v8880_v31  ;;  %v8025_v56 = vpop.f32.mrf.mxu1  ;;  %v12087_v9 = vpop.f32.mrf.mxu0  ;;  %10347 = vmatprep.mubr.bf16.mxu1 %v16384_v1 }
 0x410   : > { %v8467_v41 = vpack.c.bf16 %v8440_v11, %v8439_v23  ;;  %v11483_v45 = vpack.c.bf16 %v8440_v11, %v8440_v11  ;;  %v8441_v58 = vmax.f32 %v8405_v0, 0.0  ;;  %v8363_v34 = vmul.f32 %v15322_v17, %v8320_v47 }
 0x411   : > { %v8221_v20 = vadd.f32 %v15496_v53, %v8025_v56  ;;  %v8027_v46 = vpop.f32.mrf.mxu1  ;;  %v9640_v13 = vrot.slane %v9630_v6, %v12691_v4  ;;  %v9654_v59 = vrot.slane %v9632_v3, %v12691_v4  ;;  %v9661_v39 = vrot.slane %v9633_v19, %v12691_v4  ;;  %v15568_v15 = vpop.f32.mrf.mxu0 }
 0x412   : > { %v8891_v61 = vrot.slane %v8467_v41, %v12691_v4  ;;  %v8898_v33 = vrot.slane %v11483_v45, %v12691_v4  ;;  %v8406_v23 = vadd.f32 %v15329_v26, %v8363_v34  ;;  %v9689_v18 = vrot.slane %v11499_v30, %v12691_v4 }
 0x413   : > { %v8321_v44 = vadd.f32 %v8221_v20, %v16761_v2  ;;  %v9662_v53 = vcombine.low %v9640_v13, %v9647_v63  ;;  %v9663_v7 = vcombine.low %v9654_v59, %v9661_v39  ;;  %v8028_v22 = vpop.f32.mrf.mxu1  ;;  %v12090_v24 = vpop.f32.mrf.mxu0  ;;  %v9696_v16 = vrot.slane %v9680_v51, %v12691_v4  ;;  %v16763_v2 = vld [vmem:[#allocation46_spill] sm:$0xff] }
 0x414   : > { %v8899_v25 = vcombine.high %v8891_v61, %v8891_v61  ;;  %v8900_v19 = vcombine.high %v8898_v33, %v8898_v33  ;;  %v8907_v32 = vrot.slane %v8891_v61, %v12691_v4  ;;  %v15578_v62 = vrot.slane %v8898_v33, %v12691_v4  ;;  %v16762_v33 = vld [vmem:[#allocation53_spill] sm:$0xff] }
 0x415   : > { %v8442_v54 = vmax.f32 %v8406_v23, 0.0  ;;  %v8364_v40 = vmul.f32 %v15322_v17, %v8321_v44  ;;  %v9670_v30 = vrot.slane %v9662_v53, %v12691_v4  ;;  %v9677_v12 = vrot.slane %v9663_v7, %v12691_v4  ;;  %v8030_v31 = vpop.f32.mrf.mxu1  ;;  %v15583_v50 = vpop.f32.mrf.mxu0 }
 0x416   : > { %v8921_v6 = vrot.slane %v8899_v25, %v12691_v4  ;;  %v8928_v3 = vrot.slane %v8900_v19, %v12691_v4  ;;  %v8929_v11 = vcombine.high %v8907_v32, %v8907_v32  ;;  %v8930_v0 = vcombine.high %v15578_v62, %v15578_v62 }
 0x417   : > { %v15589_v37 = vcombine.low %v8883_v28, %v8907_v32  ;;  %v8468_v47 = vpack.c.bf16 %v8442_v54, %v8441_v58  ;;  %v11484_v63 = vpack.c.bf16 %v8442_v54, %v8442_v54  ;;  %v8407_v51 = vadd.f32 %v15329_v26, %v8364_v40  ;;  %v8033_v56 = vpop.f32.mrf.mxu1  ;;  %v12091_v9 = vpop.f32.mrf.mxu0 }
 0x418   : > { %v8931_v41 = vcombine.high %v8921_v6, %v8921_v6  ;;  %v9678_v45 = vcombine.low %v9670_v30, %v9677_v12  ;;  %v8224_v34 = vadd.f32 %v15512_v38, %v8028_v22  ;;  %v8229_v20 = vadd.f32 %v15529_v57, %v8033_v56 }
 0x419   : > { %v8939_v46 = vrot.slane %v8468_v47, %v12691_v4  ;;  %v8946_v13 = vrot.slane %v11484_v63, %v12691_v4  ;;  %v8443_v59 = vmax.f32 %v8407_v51, 0.0  ;;  %v8035_v39 = vpop.f32.mrf.mxu1  ;;  %v9703_v28 = vrot.slane %v11500_v49, %v12691_v4  ;;  %v15597_v58 = vpop.f32.mrf.mxu0 }
 0x41a   : > { %v9730_v61 = vcombine.low %v8931_v41, %v15578_v62  ;;  %10348 = vmatmul.mubr.bf16.gmra.mxu1 %v9678_v45  ;;  %v8322_v23 = vadd.f32 %v8224_v34, %v16762_v33  ;;  %v8323_v44 = vadd.f32 %v8229_v20, %v16763_v2  ;;  %v9710_v38 = vrot.slane %v15560_v5, %v12691_v4 }
 0x41b   : > { %v8947_v57 = vcombine.high %v8939_v46, %v8939_v46  ;;  %v8948_v53 = vcombine.high %v8946_v13, %v8946_v13  ;;  %v8955_v7 = vrot.slane %v8939_v46, %v12691_v4  ;;  %v15606_v22 = vrot.slane %v8946_v13, %v12691_v4  ;;  %10357 = vmatprep.mubr.bf16.mxu1 %v16384_v1  ;;  %v8036_v49 = vpop.f32.mrf.mxu1  ;;  %v12094_v24 = vpop.f32.mrf.mxu0 }
 0x41c   : > { %v8365_v25 = vmul.f32 %v15322_v17, %v8322_v23  ;;  %v8366_v19 = vmul.f32 %v15322_v17, %v8323_v44  ;;  %v9711_v32 = vcombine.low %v9689_v18, %v9696_v16  ;;  %v9712_v62 = vcombine.low %v9703_v28, %v9710_v38 }
 0x41d   : > { %v8969_v54 = vrot.slane %v8947_v57, %v12691_v4  ;;  %v15613_v5 = vrot.slane %v8948_v53, %v12691_v4  ;;  %v8232_v40 = vadd.f32 %v15546_v35, %v8036_v49  ;;  %v8038_v30 = vpop.f32.mrf.mxu1  ;;  %v15616_v12 = vpop.f32.mrf.mxu0  ;;  %v9729_v31 = vcombine.low %v8921_v6, %v8929_v11 }
 0x41e   : > { %v8408_v47 = vadd.f32 %v15329_v26, %v8365_v25  ;;  %v8409_v63 = vadd.f32 %v15329_v26, %v8366_v19  ;;  %v9719_v51 = vrot.slane %v9711_v32, %v12691_v4  ;;  %v9726_v18 = vrot.slane %v9712_v62, %v12691_v4 }
 0x41f   : > { %v9777_v16 = vcombine.low %v8955_v7, %v8969_v54  ;;  %v11501_v56 = vcombine.high %v8955_v7, %v8969_v54  ;;  %v9779_v9 = vcombine.low %v15606_v22, %v15613_v5  ;;  %v11502_v35 = vcombine.high %v15606_v22, %v15613_v5  ;;  %v8041_v41 = vpop.f32.mrf.mxu1  ;;  %v12095_v45 = vpop.f32.mrf.mxu0 }
 0x420   : > { %v8444_v34 = vmax.f32 %v8408_v47, 0.0  ;;  %v8445_v6 = vmax.f32 %v8409_v63, 0.0  ;;  %v9727_v11 = vcombine.low %v9719_v51, %v9726_v18  ;;  %v8324_v20 = vadd.f32 %v8232_v40, %v15218_v27 }
 0x421   : > { %v8237_v46 = vadd.f32 %v15568_v15, %v8041_v41  ;;  %v8043_v13 = vpop.f32.mrf.mxu1  ;;  %v9731_v39 = vcombine.low %v8928_v3, %v8930_v0  ;;  %v9738_v28 = vrot.slane %v15589_v37, %v12691_v4  ;;  %v9745_v33 = vrot.slane %v9729_v31, %v12691_v4  ;;  %v15631_v23 = vpop.f32.mrf.mxu0 }
 0x422   : > { %v8469_v2 = vpack.c.bf16 %v8444_v34, %v8443_v59  ;;  %v11485_v44 = vpack.c.bf16 %v8444_v34, %v8444_v34  ;;  %10358 = vmatmul.mubr.bf16.gmra.mxu1 %v9727_v11  ;;  %v8367_v38 = vmul.f32 %v15322_v17, %v8324_v20  ;;  %v9752_v57 = vrot.slane %v9730_v61, %v12691_v4 }
 0x423   : > { %v8325_v27 = vadd.f32 %v8237_v46, %v15243_v10  ;;  %10367 = vmatprep.mubr.bf16.mxu1 %v16384_v1  ;;  %v9759_v15 = vrot.slane %v9731_v39, %v12691_v4  ;;  %v9760_v3 = vcombine.low %v9738_v28, %v9745_v33  ;;  %v8044_v0 = vpop.f32.mrf.mxu1  ;;  %v12098_v37 = vpop.f32.mrf.mxu0  ;;  %v9787_v53 = vrot.slane %v9777_v16, %v12691_v4 }
 0x424   : > { %v8988_v7 = vrot.slane %v8469_v2, %v12691_v4  ;;  %v8995_v59 = vrot.slane %v11485_v44, %v12691_v4  ;;  %v8410_v49 = vadd.f32 %v15329_v26, %v8367_v38  ;;  %v8240_v24 = vadd.f32 %v15583_v50, %v8044_v0 }
 0x425   : > { %v8368_v61 = vmul.f32 %v15322_v17, %v8325_v27  ;;  %v9761_v10 = vcombine.low %v9752_v57, %v9759_v15  ;;  %v9768_v25 = vrot.slane %v9760_v3, %v12691_v4  ;;  %v8046_v19 = vpop.f32.mrf.mxu1  ;;  %v15645_v32 = vpop.f32.mrf.mxu0  ;;  %v9794_v62 = vrot.slane %v11501_v56, %v12691_v4 }
 0x426   : > { %v8996_v54 = vcombine.high %v8988_v7, %v8988_v7  ;;  %v8997_v40 = vcombine.high %v8995_v59, %v8995_v59  ;;  %v15649_v30 = vrot.slane %v8988_v7, %v12691_v4  ;;  %v15652_v31 = vrot.slane %v8995_v59, %v12691_v4 }
 0x427   : > { %v8446_v47 = vmax.f32 %v8410_v49, 0.0  ;;  %v8411_v50 = vadd.f32 %v15329_v26, %v8368_v61  ;;  %v9775_v63 = vrot.slane %v9761_v10, %v12691_v4  ;;  %v8326_v51 = vadd.f32 %v8240_v24, %v15260_v52  ;;  %v8049_v18 = vpop.f32.mrf.mxu1  ;;  %v12099_v16 = vpop.f32.mrf.mxu0 }
 0x428   : > { %v9018_v41 = vrot.slane %v8996_v54, %v12691_v4  ;;  %v9025_v56 = vrot.slane %v8997_v40, %v12691_v4  ;;  %v9026_v45 = vcombine.high %v15649_v30, %v15649_v30  ;;  %v9027_v34 = vcombine.high %v15652_v31, %v15652_v31 }
 0x429   : > { %v8470_v11 = vpack.c.bf16 %v8446_v47, %v8445_v6  ;;  %v11486_v20 = vpack.c.bf16 %v8446_v47, %v8446_v47  ;;  %v8447_v46 = vmax.f32 %v8411_v50, 0.0  ;;  %v9776_v13 = vcombine.low %v9768_v25, %v9775_v63  ;;  %v8051_v39 = vpop.f32.mrf.mxu1  ;;  %v15663_v28 = vpop.f32.mrf.mxu0 }
 0x42a   : > { %v9028_v52 = vcombine.high %v9018_v41, %v9018_v41  ;;  %v9029_v33 = vcombine.high %v9025_v56, %v9025_v56  ;;  %v8369_v2 = vmul.f32 %v15322_v17, %v8326_v51  ;;  %v8245_v44 = vadd.f32 %v15597_v58, %v8049_v18  ;;  %v15722_v39 = vld [vmem:[%s16154_s5] ss:$0 sm:$0xff] }
 0x42b   : > { %v9037_v38 = vrot.slane %v8470_v11, %v12691_v4  ;;  %v9044_v57 = vrot.slane %v11486_v20, %v12691_v4  ;;  %10368 = vmatmul.mubr.bf16.gmra.mxu1 %v9776_v13  ;;  %v9801_v6 = vrot.slane %v9779_v9, %v12691_v4  ;;  %v9808_v27 = vrot.slane %v11502_v35, %v12691_v4  ;;  %v8052_v15 = vpop.f32.mrf.mxu1  ;;  %v12102_v3 = vpop.f32.mrf.mxu0 }
 0x42c   : > { %v15678_v0 = vcombine.low %v9028_v52, %v15652_v31  ;;  %v8412_v58 = vadd.f32 %v15329_v26, %v8369_v2  ;;  %v8327_v37 = vadd.f32 %v8245_v44, %v15270_v21  ;;  %10377 = vmatprep.mubr.bf16.mxu1 %v16384_v1  ;;  %v9809_v7 = vcombine.low %v9787_v53, %v9794_v62 }
 0x42d   : > { %v9045_v59 = vcombine.high %v9037_v38, %v9037_v38  ;;  %v9046_v49 = vcombine.high %v9044_v57, %v9044_v57  ;;  %v15684_v9 = vrot.slane %v9037_v38, %v12691_v4  ;;  %v15687_v22 = vrot.slane %v9044_v57, %v12691_v4  ;;  %v8054_v5 = vpop.f32.mrf.mxu1  ;;  %v15689_v35 = vpop.f32.mrf.mxu0 }
 0x42e   : > { %v8448_v24 = vmax.f32 %v8412_v58, 0.0  ;;  %v8370_v61 = vmul.f32 %v15322_v17, %v8327_v37  ;;  %v9810_v26 = vcombine.low %v9801_v6, %v9808_v27  ;;  %v9817_v21 = vrot.slane %v9809_v7, %v12691_v4  ;;  %v15704_v17 = vld [vmem:[%s16155_s6] ss:$0 sm:$0xff] }
 0x42f   : > { %v15694_v10 = vrot.slane %v9045_v59, %v12691_v4  ;;  %v15697_v53 = vrot.slane %v9046_v49, %v12691_v4  ;;  %v9829_v25 = vcombine.low %v9029_v33, %v15684_v9  ;;  %v8248_v19 = vadd.f32 %v15616_v12, %v8052_v15  ;;  %v8057_v62 = vpop.f32.mrf.mxu1  ;;  %v12103_v54 = vpop.f32.mrf.mxu0 }
 0x430   : > { %v8471_v40 = vpack.c.bf16 %v8448_v24, %v8447_v46  ;;  %v11487_v30 = vpack.c.bf16 %v8448_v24, %v8448_v24  ;;  %v8413_v31 = vadd.f32 %v15704_v17, %v8370_v61  ;;  %v9824_v47 = vrot.slane %v9810_v26, %v12691_v4 }
 0x431   : > { %v11503_v50 = vcombine.high %v15684_v9, %v15694_v10  ;;  %v9876_v63 = vcombine.low %v15687_v22, %v15697_v53  ;;  %v11504_v12 = vcombine.high %v15687_v22, %v15697_v53  ;;  %v8328_v51 = vadd.f32 %v8248_v19, %v15280_v55  ;;  %v8059_v18 = vpop.f32.mrf.mxu1  ;;  %v15715_v16 = vpop.f32.mrf.mxu0 }
 0x432   : > { %v9086_v11 = vrot.slane %v8471_v40, %v12691_v4  ;;  %v9093_v20 = vrot.slane %v11487_v30, %v12691_v4  ;;  %v8449_v46 = vmax.f32 %v8413_v31, 0.0  ;;  %v9825_v13 = vcombine.low %v9817_v21, %v9824_v47 }
 0x433   : > { %v8371_v52 = vmul.f32 %v15722_v39, %v8328_v51  ;;  %v8253_v33 = vadd.f32 %v15631_v23, %v8057_v62  ;;  %v8060_v2 = vpop.f32.mrf.mxu1  ;;  %v12106_v55 = vpop.f32.mrf.mxu0  ;;  %v9826_v44 = vcombine.low %v9018_v41, %v9026_v45  ;;  %v9828_v38 = vcombine.low %v9025_v56, %v9027_v34 }
 0x434   : > { %v9094_v57 = vcombine.high %v9086_v11, %v9086_v11  ;;  %v9095_v6 = vcombine.high %v9093_v20, %v9093_v20  ;;  %v9102_v27 = vrot.slane %v9086_v11, %v12691_v4  ;;  %v15728_v15 = vrot.slane %v9093_v20, %v12691_v4  ;;  %10378 = vmatmul.mubr.bf16.gmra.mxu1 %v9825_v13 }
 0x435   : > { %v8414_v3 = vadd.f32 %v15704_v17, %v8371_v52  ;;  %v8329_v58 = vadd.f32 %v8253_v33, %v15286_v42  ;;  %v8256_v37 = vadd.f32 %v15645_v32, %v8060_v2  ;;  %v8062_v7 = vpop.f32.mrf.mxu1  ;;  %10387 = vmatprep.mubr.bf16.mxu1 %v16384_v1  ;;  %v9836_v23 = vrot.slane %v9826_v44, %v12691_v4  ;;  %v15735_v41 = vpop.f32.mrf.mxu0 }
 0x436   : > { %v9116_v56 = vrot.slane %v9094_v57, %v12691_v4  ;;  %v15739_v45 = vrot.slane %v9095_v6, %v12691_v4  ;;  %v9124_v34 = vcombine.high %v15728_v15, %v15728_v15  ;;  %v9843_v42 = vrot.slane %v15678_v0, %v12691_v4 }
 0x437   : > { %v8450_v59 = vmax.f32 %v8414_v3, 0.0  ;;  %v8372_v32 = vmul.f32 %v15722_v39, %v8329_v58  ;;  %v8330_v49 = vadd.f32 %v8256_v37, %v15293_v43  ;;  %v9850_v5 = vrot.slane %v9828_v38, %v12691_v4  ;;  %v8065_v24 = vpop.f32.mrf.mxu1  ;;  %v12107_v61 = vpop.f32.mrf.mxu0 }
 0x438   : > { %v9125_v26 = vcombine.high %v9116_v56, %v9116_v56  ;;  %v15748_v21 = vcombine.low %v9102_v27, %v9116_v56  ;;  %v9126_v19 = vcombine.high %v15739_v45, %v15739_v45  ;;  %v9857_v62 = vrot.slane %v9829_v25, %v12691_v4 }
 0x439   : > { %v8472_v54 = vpack.c.bf16 %v8450_v59, %v8449_v46  ;;  %v11488_v40 = vpack.c.bf16 %v8450_v59, %v8450_v59  ;;  %v8415_v0 = vadd.f32 %v15704_v17, %v8372_v32  ;;  %v8373_v30 = vmul.f32 %v15722_v39, %v8330_v49  ;;  %v8067_v31 = vpop.f32.mrf.mxu1  ;;  %v15755_v43 = vpop.f32.mrf.mxu0 }
 0x43a   : > { %v15758_v47 = vcombine.low %v9125_v26, %v15728_v15  ;;  %v9858_v51 = vcombine.low %v9836_v23, %v9843_v42  ;;  %v9859_v18 = vcombine.low %v9850_v5, %v9857_v62  ;;  %v8261_v11 = vadd.f32 %v15663_v28, %v8065_v24 }
 0x43b   : > { %v9134_v20 = vrot.slane %v8472_v54, %v12691_v4  ;;  %v9141_v25 = vrot.slane %v11488_v40, %v12691_v4  ;;  %v8451_v46 = vmax.f32 %v8415_v0, 0.0  ;;  %v8416_v13 = vadd.f32 %v15704_v17, %v8373_v30  ;;  %v8068_v52 = vpop.f32.mrf.mxu1  ;;  %v12110_v33 = vpop.f32.mrf.mxu0 }
 0x43c   : > { %v9866_v2 = vrot.slane %v9858_v51, %v12691_v4  ;;  %v9873_v55 = vrot.slane %v9859_v18, %v12691_v4  ;;  %v8331_v44 = vadd.f32 %v8261_v11, %v15297_v60  ;;  %v8264_v38 = vadd.f32 %v15689_v35, %v8068_v52 }
 0x43d   : > { %v9142_v57 = vcombine.high %v9134_v20, %v9134_v20  ;;  %v9143_v6 = vcombine.high %v9141_v25, %v9141_v25  ;;  %v15769_v28 = vrot.slane %v9134_v20, %v12691_v4  ;;  %v15772_v27 = vrot.slane %v9141_v25, %v12691_v4  ;;  %v8070_v3 = vpop.f32.mrf.mxu1  ;;  %v15774_v58 = vpop.f32.mrf.mxu0 }
 0x43e   : > { %v8452_v37 = vmax.f32 %v8416_v13, 0.0  ;;  %v9874_v7 = vcombine.low %v9866_v2, %v9873_v55  ;;  %v8374_v23 = vmul.f32 %v15722_v39, %v8331_v44  ;;  %v8332_v56 = vadd.f32 %v8264_v38, %v15301_v8 }
 0x43f   : > { %v9164_v60 = vrot.slane %v9142_v57, %v12691_v4  ;;  %v15780_v35 = vrot.slane %v9143_v6, %v12691_v4  ;;  %v9172_v42 = vcombine.high %v15769_v28, %v15769_v28  ;;  %v15785_v59 = vcombine.low %v9126_v19, %v15769_v28  ;;  %v8073_v32 = vpop.f32.mrf.mxu1  ;;  %v12111_v49 = vpop.f32.mrf.mxu0 }
 0x440   : > { %v8473_v5 = vpack.c.bf16 %v8452_v37, %v8451_v46  ;;  %v11489_v24 = vpack.c.bf16 %v8452_v37, %v8452_v37  ;;  %10388 = vmatmul.mubr.bf16.gmra.mxu1 %v9874_v7  ;;  %v8417_v61 = vadd.f32 %v15704_v17, %v8374_v23  ;;  %v8375_v8 = vmul.f32 %v15722_v39, %v8332_v56 }
 0x441   : > { %v9973_v26 = vcombine.low %v15772_v27, %v15780_v35  ;;  %v11505_v62 = vcombine.high %v15772_v27, %v15780_v35  ;;  %v8269_v54 = vadd.f32 %v15715_v16, %v8073_v32  ;;  %10397 = vmatprep.mubr.bf16.mxu1 %v16384_v1  ;;  %v9885_v19 = vrot.slane %v11503_v50, %v12691_v4  ;;  %v8075_v40 = vpop.f32.mrf.mxu1  ;;  %v8284_v0 = vpop.f32.mrf.mxu0 }
 0x442   : > { %v9182_v30 = vrot.slane %v8473_v5, %v12691_v4  ;;  %v9189_v31 = vrot.slane %v11489_v24, %v12691_v4  ;;  %v8453_v51 = vmax.f32 %v8417_v61, 0.0  ;;  %v8418_v18 = vadd.f32 %v15704_v17, %v8375_v8 }
 0x443   : > { %v8333_v11 = vadd.f32 %v8269_v54, %v15305_v14  ;;  %v9892_v16 = vrot.slane %v9876_v63, %v12691_v4  ;;  %v9899_v9 = vrot.slane %v11504_v12, %v12691_v4  ;;  %v9906_v10 = vrot.slane %v15748_v21, %v12691_v4  ;;  %v8076_v50 = vpop.f32.mrf.mxu1  ;;  %v12114_v20 = vpop.f32.mrf.mxu0 }
 0x444   : > { %v9190_v25 = vcombine.high %v9182_v30, %v9182_v30  ;;  %v9191_v46 = vcombine.high %v9189_v31, %v9189_v31  ;;  %v15814_v13 = vrot.slane %v9182_v30, %v12691_v4  ;;  %v15817_v14 = vrot.slane %v9189_v31, %v12691_v4 }
 0x445   : > { %v8454_v52 = vmax.f32 %v8418_v18, 0.0  ;;  %v8376_v63 = vmul.f32 %v15722_v39, %v8333_v11  ;;  %v9907_v33 = vcombine.low %v9885_v19, %v9892_v16  ;;  %v9908_v2 = vcombine.low %v9899_v9, %v9906_v10  ;;  %v8078_v22 = vpop.f32.mrf.mxu1  ;;  %v8286_v53 = vpop.f32.mrf.mxu0 }
 0x446   : > { %v15821_v12 = vrot.slane %v9190_v25, %v12691_v4  ;;  %v15824_v21 = vrot.slane %v9191_v46, %v12691_v4  ;;  %v9221_v55 = vcombine.high %v15817_v14, %v15817_v14  ;;  %v8272_v44 = vadd.f32 %v15735_v41, %v8076_v50 }
 0x447   : > { %v8474_v38 = vpack.c.bf16 %v8454_v52, %v8453_v51  ;;  %v11490_v57 = vpack.c.bf16 %v8454_v52, %v8454_v52  ;;  %v8419_v6 = vadd.f32 %v15704_v17, %v8376_v63  ;;  %v9915_v28 = vrot.slane %v9907_v33, %v12691_v4  ;;  %v8081_v3 = vpop.f32.mrf.mxu1  ;;  %v12115_v37 = vpop.f32.mrf.mxu0 }
 0x448   : > { %v9975_v7 = vcombine.low %v15814_v13, %v15821_v12  ;;  %v11506_v23 = vcombine.high %v15814_v13, %v15821_v12  ;;  %v9223_v56 = vcombine.high %v15824_v21, %v15824_v21  ;;  %v9922_v32 = vrot.slane %v9908_v2, %v12691_v4 }
 0x449   : > { %v9231_v41 = vrot.slane %v8474_v38, %v12691_v4  ;;  %v9238_v49 = vrot.slane %v11490_v57, %v12691_v4  ;;  %v8455_v5 = vmax.f32 %v8419_v6, 0.0  ;;  %v8334_v24 = vadd.f32 %v8272_v44, %v15310_v48  ;;  %v8083_v61 = vpop.f32.mrf.mxu1  ;;  %v8290_v8 = vpop.f32.mrf.mxu0 }
 0x44a   : > { %v9923_v54 = vcombine.low %v9915_v28, %v9922_v32  ;;  %v8277_v19 = vadd.f32 %v15755_v43, %v8081_v3  ;;  %v9925_v40 = vcombine.low %v15739_v45, %v9124_v34  ;;  %v9927_v0 = vcombine.low %v9164_v60, %v9172_v42 }
 0x44b   : > { %v9239_v30 = vcombine.high %v9231_v41, %v9231_v41  ;;  %v9240_v31 = vcombine.high %v9238_v49, %v9238_v49  ;;  %v9247_v51 = vrot.slane %v9231_v41, %v12691_v4  ;;  %v15848_v18 = vrot.slane %v9238_v49, %v12691_v4  ;;  %v8084_v11 = vpop.f32.mrf.mxu1  ;;  %v12118_v48 = vpop.f32.mrf.mxu0 }
 0x44c   : > { %10398 = vmatmul.mubr.bf16.gmra.mxu1 %v9923_v54  ;;  %v8377_v16 = vmul.f32 %v15722_v39, %v8334_v24  ;;  %v8335_v43 = vadd.f32 %v8277_v19, %v15314_v29  ;;  %v9934_v15 = vrot.slane %v15758_v47, %v12691_v4  ;;  %v9941_v45 = vrot.slane %v9925_v40, %v12691_v4 }
 0x44d   : > { %v9261_v34 = vrot.slane %v9239_v30, %v12691_v4  ;;  %v15857_v60 = vrot.slane %v9240_v31, %v12691_v4  ;;  %v9269_v42 = vcombine.high %v9247_v51, %v9247_v51  ;;  %v15859_v9 = vcombine.low %v9223_v56, %v9247_v51  ;;  %10407 = vmatprep.mubr.bf16.mxu1 %v16384_v1  ;;  %v8086_v10 = vpop.f32.mrf.mxu1  ;;  %v8292_v50 = vpop.f32.mrf.mxu0 }
 0x44e   : > { %v8420_v20 = vadd.f32 %v15704_v17, %v8377_v16  ;;  %v8378_v29 = vmul.f32 %v15722_v39, %v8335_v43  ;;  %v9948_v47 = vrot.slane %v15785_v59, %v12691_v4  ;;  %v9955_v25 = vrot.slane %v9927_v0, %v12691_v4 }
 0x44f   : > { %v9271_v46 = vcombine.high %v9261_v34, %v9261_v34  ;;  %v11507_v13 = vcombine.high %v15848_v18, %v15857_v60  ;;  %v9956_v52 = vcombine.low %v9934_v15, %v9941_v45  ;;  %v8280_v63 = vadd.f32 %v15774_v58, %v8084_v11  ;;  %v12119_v33 = vpop.f32.mrf.mxu0  ;;  %v8089_v2 = vpop.f32.mrf.mxu1 }
 0x450   : > { %v8456_v22 = vmax.f32 %v8420_v20, 0.0  ;;  %v8421_v53 = vadd.f32 %v15704_v17, %v8378_v29  ;;  %v9957_v12 = vcombine.low %v9948_v47, %v9955_v25  ;;  %v9983_v59 = vrot.slane %v9973_v26, %v12691_v4 }
 0x451   : > { %v10025_v44 = vcombine.low %v9271_v46, %v15848_v18  ;;  %v9964_v38 = vrot.slane %v9956_v52, %v12691_v4  ;;  %v8336_v57 = vadd.f32 %v8280_v63, %v15317_v36  ;;  %v9990_v58 = vrot.slane %v11505_v62, %v12691_v4  ;;  %v8296_v6 = vpop.f32.mrf.mxu0  ;;  %v8090_v28 = vpop.f32.mrf.mxu1 }
 0x452   : > { %v8475_v3 = vpack.c.bf16 %v8456_v22, %v8455_v5  ;;  %v11491_v37 = vpack.c.bf16 %v8456_v22, %v8456_v22  ;;  %v8457_v56 = vmax.f32 %v8421_v53, 0.0  ;;  %v9971_v32 = vrot.slane %v9957_v12, %v12691_v4 }
 0x453   : > { %v8379_v26 = vmul.f32 %v15722_v39, %v8336_v57  ;;  %v9997_v41 = vrot.slane %v9975_v7, %v12691_v4  ;;  %v10004_v49 = vrot.slane %v11506_v23, %v12691_v4  ;;  %v10005_v24 = vcombine.low %v9983_v59, %v9990_v58  ;;  %v12122_v36 = vpop.f32.mrf.mxu0  ;;  %v8091_v61 = vpop.f32.mrf.mxu1 }
 0x454   : > { %v9280_v8 = vrot.slane %v8475_v3, %v12691_v4  ;;  %v9287_v27 = vrot.slane %v11491_v37, %v12691_v4  ;;  %v9972_v35 = vcombine.low %v9964_v38, %v9971_v32  ;;  %v10022_v62 = vcombine.low %v15824_v21, %v9221_v55 }
 0x455   : > { %v8422_v5 = vadd.f32 %v15704_v17, %v8379_v26  ;;  %v10006_v39 = vcombine.low %v9997_v41, %v10004_v49  ;;  %v10013_v7 = vrot.slane %v10005_v24, %v12691_v4  ;;  %v10024_v54 = vcombine.low %v9261_v34, %v9269_v42  ;;  %v8298_v23 = vpop.f32.mrf.mxu0  ;;  %v8092_v19 = vpop.f32.mrf.mxu1 }
 0x456   : > { %v9288_v40 = vcombine.high %v9280_v8, %v9280_v8  ;;  %v9289_v0 = vcombine.high %v9287_v27, %v9287_v27  ;;  %v9296_v30 = vrot.slane %v9280_v8, %v12691_v4  ;;  %v9303_v31 = vrot.slane %v9287_v27, %v12691_v4  ;;  %10408 = vmatmul.mubr.bf16.gmra.mxu1 %v9972_v35 }
 0x457   : > { %v8458_v51 = vmax.f32 %v8422_v5, 0.0  ;;  %10417 = vmatprep.mubr.bf16.mxu1 %v16384_v1  ;;  %v10020_v14 = vrot.slane %v10006_v39, %v12691_v4  ;;  %v10032_v17 = vrot.slane %v10022_v62, %v12691_v4  ;;  %v10039_v21 = vrot.slane %v15859_v9, %v12691_v4  ;;  %v12123_v55 = vpop.f32.mrf.mxu0  ;;  %v8095_v11 = vpop.f32.mrf.mxu1 }
 0x458   : > { %v9310_v48 = vrot.slane %v9288_v40, %v12691_v4  ;;  %v9317_v16 = vrot.slane %v9289_v0, %v12691_v4  ;;  %v10046_v43 = vrot.slane %v10024_v54, %v12691_v4  ;;  %v10053_v15 = vrot.slane %v10025_v44, %v12691_v4  ;;  %v10534_v55 = vld [vmem:[%s16158_s9] sm:$0x3] }
 0x459   : > { %v8476_v45 = vpack.c.bf16 %v8458_v51, %v8457_v56  ;;  %v11492_v34 = vpack.c.bf16 %v8458_v51, %v8458_v51  ;;  %v10021_v42 = vcombine.low %v10013_v7, %v10020_v14  ;;  %v10054_v10 = vcombine.low %v10032_v17, %v10039_v21  ;;  %v8096_v50 = vpop.f32.mrf.mxu1  ;;  %v16764_v51 = vld [vmem:[#allocation3_spill] sm:$0xff] }
 0x45a   : > { %v10072_v20 = vcombine.low %v9296_v30, %v9310_v48  ;;  %v11508_v29 = vcombine.high %v9296_v30, %v9310_v48  ;;  %v10074_v47 = vcombine.low %v9303_v31, %v9317_v16  ;;  %v9320_v25 = vcombine.high %v9317_v16, %v9317_v16  ;;  %v10458_v17 = vld [vmem:[%s16157_s8] sm:$0x3] }
 0x45b   : > { %v9328_v9 = vrot.slane %v8476_v45, %v12691_v4  ;;  %v9335_v46 = vrot.slane %v11492_v34, %v12691_v4  ;;  %v10055_v52 = vcombine.low %v10046_v43, %v10053_v15  ;;  %v8097_v63 = vpop.f32.mrf.mxu1  ;;  %v10081_v33 = vrot.slane %v11507_v13, %v12691_v4 }
 0x45c   : > { %v10088_v2 = vrot.slane %v10072_v20, %v12691_v4  ;;  %v10095_v22 = vrot.slane %v11508_v29, %v12691_v4  ;;  %v10102_v53 = vrot.slane %v10074_v47, %v12691_v4  ;;  %v10062_v58 = vrot.slane %v10054_v10, %v12691_v4 }
 0x45d   : > { %v9336_v12 = vcombine.high %v9328_v9, %v9328_v9  ;;  %v9337_v59 = vcombine.high %v9335_v46, %v9335_v46  ;;  %v9344_v44 = vrot.slane %v9328_v9, %v12691_v4  ;;  %v9351_v38 = vrot.slane %v9335_v46, %v12691_v4  ;;  %v8098_v57 = vpop.f32.mrf.mxu1 }
 0x45e   : > { %10418 = vmatmul.mubr.bf16.gmra.mxu1 %v10021_v42  ;;  %v10069_v6 = vrot.slane %v10055_v52, %v12691_v4  ;;  %v10103_v18 = vcombine.low %v10081_v33, %v10088_v2  ;;  %v10104_v60 = vcombine.low %v10095_v22, %v10102_v53  ;;  %v10462_v14 = vsub.s32 0, %v16764_v51  ;;  %v10611_v42 = vld [vmem:[%s12428_s18 + $0x8] sm:$0xff] }
 0x45f   : > { %v9358_v13 = vrot.slane %v9336_v12, %v12691_v4  ;;  %v9365_v28 = vrot.slane %v9337_v59, %v12691_v4  ;;  %v9366_v3 = vcombine.high %v9344_v44, %v9344_v44  ;;  %v9367_v37 = vcombine.high %v9351_v38, %v9351_v38  ;;  %10427 = vmatprep.mubr.bf16.mxu1 %v16384_v1  ;;  %v8101_v56 = vpop.f32.mrf.mxu1 }
 0x460   : > { %v10120_v32 = vcombine.low %v9320_v25, %v9344_v44  ;;  %v10070_v26 = vcombine.low %v10062_v58, %v10069_v6  ;;  %v10111_v41 = vrot.slane %v10103_v18, %v12691_v4  ;;  %v10118_v49 = vrot.slane %v10104_v60, %v12691_v4  ;;  %v10612_v60 = vld [vmem:[%s12428_s18 + $0x10] sm:$0xff]  ;;  %v10613_v56 = vld [vmem:[%s12428_s18 + $0x18] sm:$0xff] }
 0x461   : > { %v9368_v24 = vcombine.high %v9358_v13, %v9358_v13  ;;  %v10121_v36 = vcombine.low %v9358_v13, %v9366_v3  ;;  %v10123_v61 = vcombine.low %v9365_v28, %v9367_v37  ;;  %v8102_v8 = vpop.f32.mrf.mxu1  ;;  %v10466_v21 = vsub.s32 1, %v16764_v51 }
 0x462   : > { %v10119_v27 = vcombine.low %v10111_v41, %v10118_v49  ;;  %v10130_v62 = vrot.slane %v10120_v32, %v12691_v4  ;;  %v15939_v11 = vrot.slane %v10458_v17, %v10462_v14  ;;  %v15942_v48 = vrot.slane %v10534_v55, %v10462_v14  ;;  %v10614_v49 = vld [vmem:[%s12428_s18 + $0x20] sm:$0xff] }
 0x463   : > { %v10122_v35 = vcombine.low %v9368_v24, %v9351_v38  ;;  %v10137_v5 = vrot.slane %v10121_v36, %v12691_v4  ;;  %v8103_v39 = vpop.f32.mrf.mxu1  ;;  %v10151_v54 = vrot.slane %v10123_v61, %v12691_v4  ;;  %v15944_v16 = vrot.slane %v10458_v17, %v10466_v21 }
 0x464   : > { %v15947_v45 = vrot.slane %v10534_v55, %v10466_v21  ;;  %v10644_v46 = vunpack.c.l.bf16 %v10611_v42  ;;  %v10645_v22 = vunpack.c.h.bf16 %v10611_v42  ;;  %v10646_v3 = vunpack.c.l.bf16 %v10612_v60 }
 0x465   : > { %v10144_v7 = vrot.slane %v10122_v35, %v12691_v4  ;;  %v10152_v23 = vcombine.low %v10130_v62, %v10137_v5  ;;  %v8104_v19 = vpop.f32.mrf.mxu1  ;;  %v10647_v41 = vunpack.c.h.bf16 %v10612_v60  ;;  %v10650_v39 = vunpack.c.l.bf16 %v10614_v49  ;;  %v10617_v60 = vld [vmem:[%s12428_s18 + $0x38] sm:$0xff] }
 0x466   : > { %10428 = vmatmul.mubr.bf16.gmra.mxu1 %v10070_v26  ;;  %v10649_v19 = vunpack.c.h.bf16 %v10613_v56  ;;  %v10651_v51 = vunpack.c.h.bf16 %v10614_v49  ;;  %v10656_v49 = vunpack.c.l.bf16 %v10617_v60 }
 0x467   : > { %10437 = vmatprep.mubr.bf16.mxu1 %v16384_v1  ;;  %v10153_v40 = vcombine.low %v10144_v7, %v10151_v54  ;;  %v10160_v0 = vrot.slane %v10152_v23, %v12691_v4 }
 0x469   : > { %v10167_v30 = vrot.slane %v10153_v40, %v12691_v4  ;;  %v10610_v4 = vld [vmem:[%s12428_s18] sm:$0xff] }
 0x46a   : > { %v10642_v15 = vunpack.c.l.bf16 %v10610_v4  ;;  %v10643_v20 = vunpack.c.h.bf16 %v10610_v4 }
 0x46b   : > { %v10168_v31 = vcombine.low %v10160_v0, %v10167_v30  ;;  %v10615_v0 = vld [vmem:[%s12428_s18 + $0x28] sm:$0xff] }
 0x46e   : > { %10438 = vmatmul.mubr.bf16.gmra.mxu1 %v10119_v27  ;;  %v10648_v27 = vunpack.c.l.bf16 %v10613_v56 }
 0x46f   : > { %10447 = vmatprep.mubr.bf16.mxu1 %v16384_v1 }
 0x476   : > { %10448 = vmatmul.mubr.bf16.gmra.mxu1 %v10168_v31 }
 0x4a3   : > { %v10299_v1 = vpop.f32.mrf.mxu0 }
 0x4a4   : > { %v10470_v43 = vmul.f32 %v15939_v11, %v10299_v1 }
 0x4a5   : > { %v10301_v34 = vpop.f32.mrf.mxu0 }
 0x4a6   : > { %v10546_v10 = vadd.f32 %v15942_v48, %v10470_v43  ;;  %v10471_v50 = vmul.f32 %v15944_v16, %v10301_v34  ;;  %v10652_v34 = vunpack.c.l.bf16 %v10615_v0 }
 0x4a7   : > { %v10303_v29 = vpop.f32.mrf.mxu0 }
 0x4a8   : > { %v10706_v47 = vadd.f32 %v10642_v15, %v10546_v10  ;;  %v10547_v25 = vadd.f32 %v15947_v45, %v10471_v50  ;;  %v10472_v9 = vmul.f32 %v15939_v11, %v10303_v29 }
 0x4a9   : > { %v10305_v52 = vpop.f32.mrf.mxu0 }
 0x4aa   : > { %v10707_v63 = vadd.f32 %v10643_v20, %v10547_v25  ;;  %v10548_v33 = vadd.f32 %v15942_v48, %v10472_v9  ;;  %v10473_v2 = vmul.f32 %v15944_v16, %v10305_v52  ;;  %v10770_v53 = vmax.f32 %v10706_v47, 0.0 }
 0x4ab   : > { %v10653_v25 = vunpack.c.h.bf16 %v10615_v0 }
 0x4ac   : > { %v10771_v12 = vmax.f32 %v10707_v63, 0.0  ;;  %v10708_v59 = vadd.f32 %v10644_v46, %v10548_v33  ;;  %v10549_v44 = vadd.f32 %v15947_v45, %v10473_v2 }
 0x4ae   : > { %v11593_v38 = vpack.c.bf16 %v10771_v12, %v10770_v53  ;;  %v10709_v57 = vadd.f32 %v10645_v22, %v10549_v44  ;;  %v10772_v58 = vmax.f32 %v10708_v59, 0.0  ;;  %v10616_v22 = vld [vmem:[%s12428_s18 + $0x30] sm:$0xff] }
 0x4b0   : > { %11026 = vst [vmem:[%s15962_s27] sm:$0xff] %v11593_v38  ;;  %v10773_v6 = vmax.f32 %v10709_v57, 0.0  ;;  %v10654_v57 = vunpack.c.l.bf16 %v10616_v22 }
 0x4b2   : > { %v11594_v18 = vpack.c.bf16 %v10773_v6, %v10772_v58 }
 0x4b4   : > { %11027 = vst [vmem:[%s15962_s27 + $0x8] sm:$0xff] %v11594_v18 }
 0x4b5   : > { %v10309_v13 = vpop.f32.mrf.mxu0 }
 0x4b6   : > { %v10474_v28 = vmul.f32 %v15939_v11, %v10309_v13 }
 0x4b7   : > { %v10311_v37 = vpop.f32.mrf.mxu0 }
 0x4b8   : > { %v10550_v32 = vadd.f32 %v15942_v48, %v10474_v28  ;;  %v10475_v26 = vmul.f32 %v15944_v16, %v10311_v37 }
 0x4b9   : > { %v10313_v24 = vpop.f32.mrf.mxu0 }
 0x4ba   : > { %v10710_v36 = vadd.f32 %v10646_v3, %v10550_v32  ;;  %v10551_v61 = vadd.f32 %v15947_v45, %v10475_v26  ;;  %v10476_v8 = vmul.f32 %v15939_v11, %v10313_v24  ;;  %v10319_v35 = vpop.f32.mrf.mxu1  ;;  %v10655_v3 = vunpack.c.h.bf16 %v10616_v22 }
 0x4bb   : > { %v10315_v62 = vpop.f32.mrf.mxu0  ;;  %v10478_v5 = vmul.f32 %v15939_v11, %v10319_v35  ;;  %v10618_v35 = vld [vmem:[%s12428_s18 + $0x40] sm:$0xff] }
 0x4bc   : > { %v10711_v7 = vadd.f32 %v10647_v41, %v10551_v61  ;;  %v10552_v54 = vadd.f32 %v15942_v48, %v10476_v8  ;;  %v10477_v23 = vmul.f32 %v15944_v16, %v10315_v62  ;;  %v10321_v40 = vpop.f32.mrf.mxu1  ;;  %v10774_v14 = vmax.f32 %v10710_v36, 0.0 }
 0x4bd   : > { %v10554_v30 = vadd.f32 %v15942_v48, %v10478_v5  ;;  %v10479_v31 = vmul.f32 %v15944_v16, %v10321_v40 }
 0x4be   : > { %v10775_v17 = vmax.f32 %v10711_v7, 0.0  ;;  %v10712_v21 = vadd.f32 %v10648_v27, %v10552_v54  ;;  %v10553_v55 = vadd.f32 %v15947_v45, %v10477_v23  ;;  %v10323_v4 = vpop.f32.mrf.mxu1  ;;  %v10657_v27 = vunpack.c.h.bf16 %v10617_v60 }
 0x4bf   : > { %v10714_v1 = vadd.f32 %v10650_v39, %v10554_v30  ;;  %v10555_v43 = vadd.f32 %v15947_v45, %v10479_v31  ;;  %v10480_v15 = vmul.f32 %v15939_v11, %v10323_v4  ;;  %v10619_v31 = vld [vmem:[%s12428_s18 + $0x48] sm:$0xff] }
 0x4c0   : > { %v11595_v42 = vpack.c.bf16 %v10775_v17, %v10774_v14  ;;  %v10713_v10 = vadd.f32 %v10649_v19, %v10553_v55  ;;  %v10325_v50 = vpop.f32.mrf.mxu1  ;;  %v10776_v9 = vmax.f32 %v10712_v21, 0.0  ;;  %v10658_v19 = vunpack.c.l.bf16 %v10618_v35 }
 0x4c1   : > { %v10715_v20 = vadd.f32 %v10651_v51, %v10555_v43  ;;  %v10556_v29 = vadd.f32 %v15942_v48, %v10480_v15  ;;  %v10481_v47 = vmul.f32 %v15944_v16, %v10325_v50  ;;  %v10778_v52 = vmax.f32 %v10714_v1, 0.0 }
 0x4c2   : > { %11028 = vst [vmem:[%s15962_s27 + $0x10] sm:$0xff] %v11595_v42  ;;  %v10777_v46 = vmax.f32 %v10713_v10, 0.0  ;;  %v10659_v17 = vunpack.c.h.bf16 %v10618_v35 }
 0x4c3   : > { %v10779_v63 = vmax.f32 %v10715_v20, 0.0  ;;  %v10716_v33 = vadd.f32 %v10652_v34, %v10556_v29  ;;  %v10557_v2 = vadd.f32 %v15947_v45, %v10481_v47  ;;  %v10660_v34 = vunpack.c.l.bf16 %v10619_v31 }
 0x4c4   : > { %v11596_v53 = vpack.c.bf16 %v10777_v46, %v10776_v9  ;;  %v10661_v47 = vunpack.c.h.bf16 %v10619_v31 }
 0x4c5   : > { %v11597_v12 = vpack.c.bf16 %v10779_v63, %v10778_v52  ;;  %v10717_v59 = vadd.f32 %v10653_v25, %v10557_v2  ;;  %v10329_v44 = vpop.f32.mrf.mxu1  ;;  %v10780_v58 = vmax.f32 %v10716_v33, 0.0  ;;  %v10620_v63 = vld [vmem:[%s12428_s18 + $0x50] sm:$0xff] }
 0x4c6   : > { %11029 = vst [vmem:[%s15962_s27 + $0x18] sm:$0xff] %v11596_v53  ;;  %v10482_v38 = vmul.f32 %v15939_v11, %v10329_v44  ;;  %v10662_v44 = vunpack.c.l.bf16 %v10620_v63  ;;  %v10663_v60 = vunpack.c.h.bf16 %v10620_v63 }
 0x4c7   : > { %11030 = vst [vmem:[%s15962_s27 + $0x20] sm:$0xff] %v11597_v12  ;;  %v10781_v6 = vmax.f32 %v10717_v59, 0.0  ;;  %v10331_v18 = vpop.f32.mrf.mxu1 }
 0x4c8   : > { %v10558_v13 = vadd.f32 %v15942_v48, %v10482_v38  ;;  %v10483_v28 = vmul.f32 %v15944_v16, %v10331_v18 }
 0x4c9   : > { %v11598_v37 = vpack.c.bf16 %v10781_v6, %v10780_v58  ;;  %v10333_v56 = vpop.f32.mrf.mxu1 }
 0x4ca   : > { %v10718_v32 = vadd.f32 %v10654_v57, %v10558_v13  ;;  %v10559_v26 = vadd.f32 %v15947_v45, %v10483_v28  ;;  %v10484_v41 = vmul.f32 %v15939_v11, %v10333_v56  ;;  %v10621_v57 = vld [vmem:[%s12428_s18 + $0x58] sm:$0xff] }
 0x4cb   : > { %11031 = vst [vmem:[%s15962_s27 + $0x28] sm:$0xff] %v11598_v37  ;;  %v10335_v24 = vpop.f32.mrf.mxu1  ;;  %v10664_v56 = vunpack.c.l.bf16 %v10621_v57 }
 0x4cc   : > { %v10719_v36 = vadd.f32 %v10655_v3, %v10559_v26  ;;  %v10560_v61 = vadd.f32 %v15942_v48, %v10484_v41  ;;  %v10485_v8 = vmul.f32 %v15944_v16, %v10335_v24  ;;  %v10782_v62 = vmax.f32 %v10718_v32, 0.0 }
 0x4cd   : > { %v10665_v24 = vunpack.c.h.bf16 %v10621_v57 }
 0x4ce   : > { %v10783_v5 = vmax.f32 %v10719_v36, 0.0  ;;  %v10720_v39 = vadd.f32 %v10656_v49, %v10560_v61  ;;  %v10561_v7 = vadd.f32 %v15947_v45, %v10485_v8  ;;  %v10339_v54 = vpop.f32.mrf.mxu1  ;;  %v10622_v36 = vld [vmem:[%s12428_s18 + $0x60] sm:$0xff] }
 0x4cf   : > { %v10486_v23 = vmul.f32 %v15939_v11, %v10339_v54  ;;  %v10623_v54 = vld [vmem:[%s12428_s18 + $0x68] sm:$0xff] }
 0x4d0   : > { %v11599_v40 = vpack.c.bf16 %v10783_v5, %v10782_v62  ;;  %v10721_v0 = vadd.f32 %v10657_v27, %v10561_v7  ;;  %v10341_v30 = vpop.f32.mrf.mxu1  ;;  %v10784_v21 = vmax.f32 %v10720_v39, 0.0  ;;  %v10666_v39 = vunpack.c.l.bf16 %v10622_v36 }
 0x4d1   : > { %v10562_v51 = vadd.f32 %v15942_v48, %v10486_v23  ;;  %v10487_v14 = vmul.f32 %v15944_v16, %v10341_v30  ;;  %v10667_v30 = vunpack.c.h.bf16 %v10622_v36 }
 0x4d2   : > { %11032 = vst [vmem:[%s15962_s27 + $0x30] sm:$0xff] %v11599_v40  ;;  %v10785_v55 = vmax.f32 %v10721_v0, 0.0  ;;  %v10343_v4 = vpop.f32.mrf.mxu1 }
 0x4d3   : > { %v10722_v1 = vadd.f32 %v10658_v19, %v10562_v51  ;;  %v10563_v43 = vadd.f32 %v15947_v45, %v10487_v14  ;;  %v10488_v15 = vmul.f32 %v15939_v11, %v10343_v4 }
 0x4d4   : > { %v11600_v42 = vpack.c.bf16 %v10785_v55, %v10784_v21  ;;  %v10345_v10 = vpop.f32.mrf.mxu1  ;;  %v10668_v21 = vunpack.c.l.bf16 %v10623_v54 }
 0x4d5   : > { %v10723_v50 = vadd.f32 %v10659_v17, %v10563_v43  ;;  %v10564_v20 = vadd.f32 %v15942_v48, %v10488_v15  ;;  %v10489_v29 = vmul.f32 %v15944_v16, %v10345_v10  ;;  %v10786_v25 = vmax.f32 %v10722_v1, 0.0  ;;  %v10624_v10 = vld [vmem:[%s12428_s18 + $0x70] sm:$0xff] }
 0x4d6   : > { %11033 = vst [vmem:[%s15962_s27 + $0x38] sm:$0xff] %v11600_v42  ;;  %v10669_v42 = vunpack.c.h.bf16 %v10623_v54 }
 0x4d7   : > { %v10787_v9 = vmax.f32 %v10723_v50, 0.0  ;;  %v10724_v46 = vadd.f32 %v10660_v34, %v10564_v20  ;;  %v10565_v52 = vadd.f32 %v15947_v45, %v10489_v29 }
 0x4d9   : > { %v11601_v33 = vpack.c.bf16 %v10787_v9, %v10786_v25  ;;  %v10725_v2 = vadd.f32 %v10661_v47, %v10565_v52  ;;  %v10788_v53 = vmax.f32 %v10724_v46, 0.0  ;;  %v10670_v52 = vunpack.c.l.bf16 %v10624_v10 }
 0x4da   : > { %v10349_v22 = vpop.f32.mrf.mxu1 }
 0x4db   : > { %11034 = vst [vmem:[%s15962_s27 + $0x40] sm:$0xff] %v11601_v33  ;;  %v10789_v12 = vmax.f32 %v10725_v2, 0.0  ;;  %v10490_v59 = vmul.f32 %v15939_v11, %v10349_v22  ;;  %v10625_v2 = vld [vmem:[%s12428_s18 + $0x78] sm:$0xff] }
 0x4dc   : > { %v10351_v38 = vpop.f32.mrf.mxu1 }
 0x4dd   : > { %v11602_v58 = vpack.c.bf16 %v10789_v12, %v10788_v53  ;;  %v10566_v6 = vadd.f32 %v15942_v48, %v10490_v59  ;;  %v10491_v18 = vmul.f32 %v15944_v16, %v10351_v38  ;;  %v10671_v59 = vunpack.c.h.bf16 %v10624_v10 }
 0x4de   : > { %v10353_v13 = vpop.f32.mrf.mxu1 }
 0x4df   : > { %11035 = vst [vmem:[%s15962_s27 + $0x48] sm:$0xff] %v11602_v58  ;;  %v10726_v28 = vadd.f32 %v10662_v44, %v10566_v6  ;;  %v10567_v3 = vadd.f32 %v15947_v45, %v10491_v18  ;;  %v10492_v37 = vmul.f32 %v15939_v11, %v10353_v13 }
 0x4e0   : > { %v10355_v32 = vpop.f32.mrf.mxu1 }
 0x4e1   : > { %v10727_v26 = vadd.f32 %v10663_v60, %v10567_v3  ;;  %v10568_v41 = vadd.f32 %v15942_v48, %v10492_v37  ;;  %v10493_v49 = vmul.f32 %v15944_v16, %v10355_v32  ;;  %v10790_v61 = vmax.f32 %v10726_v28, 0.0 }
 0x4e2   : > { %v10359_v8 = vpop.f32.mrf.mxu1  ;;  %v10672_v60 = vunpack.c.l.bf16 %v10625_v2  ;;  %v10673_v32 = vunpack.c.h.bf16 %v10625_v2 }
 0x4e3   : > { %v10791_v27 = vmax.f32 %v10727_v26, 0.0  ;;  %v10728_v35 = vadd.f32 %v10664_v56, %v10568_v41  ;;  %v10569_v62 = vadd.f32 %v15947_v45, %v10493_v49  ;;  %v10494_v5 = vmul.f32 %v15939_v11, %v10359_v8  ;;  %v10626_v26 = vld [vmem:[%s12428_s18 + $0x80] sm:$0xff] }
 0x4e4   : > { %v10361_v7 = vpop.f32.mrf.mxu1 }
 0x4e5   : > { %v11603_v23 = vpack.c.bf16 %v10791_v27, %v10790_v61  ;;  %v10729_v19 = vadd.f32 %v10665_v24, %v10569_v62  ;;  %v10570_v40 = vadd.f32 %v15942_v48, %v10494_v5  ;;  %v10495_v0 = vmul.f32 %v15944_v16, %v10361_v7 }
 0x4e6   : > { %v10363_v31 = vpop.f32.mrf.mxu1  ;;  %v10792_v51 = vmax.f32 %v10728_v35, 0.0  ;;  %v10674_v27 = vunpack.c.l.bf16 %v10626_v26 }
 0x4e7   : > { %11036 = vst [vmem:[%s15962_s27 + $0x50] sm:$0xff] %v11603_v23  ;;  %v10793_v14 = vmax.f32 %v10729_v19, 0.0  ;;  %v10496_v17 = vmul.f32 %v15939_v11, %v10363_v31  ;;  %v10730_v55 = vadd.f32 %v10666_v39, %v10570_v40  ;;  %v10571_v4 = vadd.f32 %v15947_v45, %v10495_v0  ;;  %v10627_v39 = vld [vmem:[%s12428_s18 + $0x88] sm:$0xff] }
 0x4e8   : > { %v10365_v1 = vpop.f32.mrf.mxu1  ;;  %v10675_v23 = vunpack.c.h.bf16 %v10626_v26  ;;  %v10630_v26 = vld [vmem:[%s12428_s18 + $0xa0] sm:$0xff] }
 0x4e9   : > { %v11604_v43 = vpack.c.bf16 %v10793_v14, %v10792_v51  ;;  %v10572_v15 = vadd.f32 %v15942_v48, %v10496_v17  ;;  %v10497_v34 = vmul.f32 %v15944_v16, %v10365_v1  ;;  %v10731_v50 = vadd.f32 %v10667_v30, %v10571_v4 }
 0x4ea   : > { %v10794_v25 = vmax.f32 %v10730_v55, 0.0  ;;  %v10676_v14 = vunpack.c.l.bf16 %v10627_v39 }
 0x4eb   : > { %11037 = vst [vmem:[%s15962_s27 + $0x58] sm:$0xff] %v11604_v43  ;;  %v10732_v20 = vadd.f32 %v10668_v21, %v10572_v15  ;;  %v10573_v29 = vadd.f32 %v15947_v45, %v10497_v34  ;;  %v10369_v47 = vpop.f32.mrf.mxu1  ;;  %v10795_v9 = vmax.f32 %v10731_v50, 0.0  ;;  %v10677_v43 = vunpack.c.h.bf16 %v10627_v39  ;;  %v10628_v50 = vld [vmem:[%s12428_s18 + $0x90] sm:$0xff] }
 0x4ec   : > { %v10498_v46 = vmul.f32 %v15939_v11, %v10369_v47 }
 0x4ed   : > { %v10733_v63 = vadd.f32 %v10669_v42, %v10573_v29  ;;  %v10371_v33 = vpop.f32.mrf.mxu1  ;;  %v11605_v22 = vpack.c.bf16 %v10795_v9, %v10794_v25  ;;  %v10796_v44 = vmax.f32 %v10732_v20, 0.0 }
 0x4ee   : > { %v10574_v53 = vadd.f32 %v15942_v48, %v10498_v46  ;;  %v10499_v12 = vmul.f32 %v15944_v16, %v10371_v33  ;;  %v10629_v33 = vld [vmem:[%s12428_s18 + $0x98] sm:$0xff] }
 0x4ef   : > { %v10797_v38 = vmax.f32 %v10733_v63, 0.0  ;;  %v10373_v57 = vpop.f32.mrf.mxu1  ;;  %11038 = vst [vmem:[%s15962_s27 + $0x60] sm:$0xff] %v11605_v22 }
 0x4f0   : > { %v10734_v58 = vadd.f32 %v10670_v52, %v10574_v53  ;;  %v10575_v6 = vadd.f32 %v15947_v45, %v10499_v12  ;;  %v10500_v18 = vmul.f32 %v15939_v11, %v10373_v57  ;;  %v10678_v52 = vunpack.c.l.bf16 %v10628_v50 }
 0x4f1   : > { %v11606_v13 = vpack.c.bf16 %v10797_v38, %v10796_v44  ;;  %v10375_v28 = vpop.f32.mrf.mxu1  ;;  %v10679_v12 = vunpack.c.h.bf16 %v10628_v50 }
 0x4f2   : > { %v10735_v3 = vadd.f32 %v10671_v59, %v10575_v6  ;;  %v10576_v37 = vadd.f32 %v15942_v48, %v10500_v18  ;;  %v10501_v56 = vmul.f32 %v15944_v16, %v10375_v28  ;;  %v10798_v41 = vmax.f32 %v10734_v58, 0.0 }
 0x4f3   : > { %11039 = vst [vmem:[%s15962_s27 + $0x68] sm:$0xff] %v11606_v13  ;;  %v10680_v58 = vunpack.c.l.bf16 %v10629_v33  ;;  %v10681_v28 = vunpack.c.h.bf16 %v10629_v33 }
 0x4f4   : > { %v10799_v49 = vmax.f32 %v10735_v3, 0.0  ;;  %v10736_v24 = vadd.f32 %v10672_v60, %v10576_v37  ;;  %v10577_v36 = vadd.f32 %v15947_v45, %v10501_v56  ;;  %v10379_v61 = vpop.f32.mrf.mxu1 }
 0x4f5   : > { %v10502_v8 = vmul.f32 %v15939_v11, %v10379_v61 }
 0x4f6   : > { %v11607_v35 = vpack.c.bf16 %v10799_v49, %v10798_v41  ;;  %v10737_v62 = vadd.f32 %v10673_v32, %v10577_v36  ;;  %v10381_v5 = vpop.f32.mrf.mxu1  ;;  %v10800_v19 = vmax.f32 %v10736_v24, 0.0 }
 0x4f7   : > { %v10578_v7 = vadd.f32 %v15942_v48, %v10502_v8  ;;  %v10503_v54 = vmul.f32 %v15944_v16, %v10381_v5 }
 0x4f8   : > { %11040 = vst [vmem:[%s15962_s27 + $0x70] sm:$0xff] %v11607_v35  ;;  %v10801_v40 = vmax.f32 %v10737_v62, 0.0  ;;  %v10383_v0 = vpop.f32.mrf.mxu1  ;;  %v10631_v62 = vld [vmem:[%s12428_s18 + $0xa8] sm:$0xff] }
 0x4f9   : > { %v10738_v30 = vadd.f32 %v10674_v27, %v10578_v7  ;;  %v10579_v31 = vadd.f32 %v15947_v45, %v10503_v54  ;;  %v10504_v51 = vmul.f32 %v15939_v11, %v10383_v0  ;;  %v10682_v27 = vunpack.c.l.bf16 %v10630_v26 }
 0x4fa   : > { %v11608_v17 = vpack.c.bf16 %v10801_v40, %v10800_v19  ;;  %v10385_v21 = vpop.f32.mrf.mxu1  ;;  %v10683_v54 = vunpack.c.h.bf16 %v10630_v26 }
 0x4fb   : > { %v10739_v55 = vadd.f32 %v10675_v23, %v10579_v31  ;;  %v10580_v4 = vadd.f32 %v15942_v48, %v10504_v51  ;;  %v10505_v1 = vmul.f32 %v15944_v16, %v10385_v21  ;;  %v10802_v15 = vmax.f32 %v10738_v30, 0.0 }
 0x4fc   : > { %11041 = vst [vmem:[%s15962_s27 + $0x78] sm:$0xff] %v11608_v17  ;;  %v10684_v30 = vunpack.c.l.bf16 %v10631_v62  ;;  %v10685_v21 = vunpack.c.h.bf16 %v10631_v62 }
 0x4fd   : > { %v10803_v34 = vmax.f32 %v10739_v55, 0.0  ;;  %v10740_v42 = vadd.f32 %v10676_v14, %v10580_v4  ;;  %v10581_v10 = vadd.f32 %v15947_v45, %v10505_v1  ;;  %v10632_v55 = vld [vmem:[%s12428_s18 + $0xb0] sm:$0xff] }
 0x4ff   : > { %v11609_v20 = vpack.c.bf16 %v10803_v34, %v10802_v15  ;;  %v10741_v29 = vadd.f32 %v10677_v43, %v10581_v10  ;;  %v10804_v25 = vmax.f32 %v10740_v42, 0.0 }
 0x500   : > { %v10389_v47 = vpop.f32.mrf.mxu1 }
 0x501   : > { %11042 = vst [vmem:[%s15962_s27 + $0x80] sm:$0xff] %v11609_v20  ;;  %v10805_v9 = vmax.f32 %v10741_v29, 0.0  ;;  %v10506_v46 = vmul.f32 %v15939_v11, %v10389_v47  ;;  %v10686_v20 = vunpack.c.l.bf16 %v10632_v55  ;;  %v10633_v29 = vld [vmem:[%s12428_s18 + $0xb8] sm:$0xff] }
 0x502   : > { %v10391_v63 = vpop.f32.mrf.mxu1 }
 0x503   : > { %v11610_v2 = vpack.c.bf16 %v10805_v9, %v10804_v25  ;;  %v10582_v22 = vadd.f32 %v15942_v48, %v10506_v46  ;;  %v10507_v53 = vmul.f32 %v15944_v16, %v10391_v63  ;;  %v10687_v25 = vunpack.c.h.bf16 %v10632_v55 }
 0x504   : > { %v10393_v59 = vpop.f32.mrf.mxu1 }
 0x505   : > { %11043 = vst [vmem:[%s15962_s27 + $0x88] sm:$0xff] %v11610_v2  ;;  %v10742_v44 = vadd.f32 %v10678_v52, %v10582_v22  ;;  %v10583_v38 = vadd.f32 %v15947_v45, %v10507_v53  ;;  %v10508_v57 = vmul.f32 %v15939_v11, %v10393_v59  ;;  %v10688_v2 = vunpack.c.l.bf16 %v10633_v29 }
 0x506   : > { %v10395_v6 = vpop.f32.mrf.mxu1 }
 0x507   : > { %v10743_v18 = vadd.f32 %v10679_v12, %v10583_v38  ;;  %v10584_v60 = vadd.f32 %v15942_v48, %v10508_v57  ;;  %v10509_v13 = vmul.f32 %v15944_v16, %v10395_v6  ;;  %v10806_v3 = vmax.f32 %v10742_v44, 0.0 }
 0x508   : > { %v10689_v6 = vunpack.c.h.bf16 %v10633_v29 }
 0x509   : > { %v10807_v37 = vmax.f32 %v10743_v18, 0.0  ;;  %v10744_v56 = vadd.f32 %v10680_v58, %v10584_v60  ;;  %v10585_v32 = vadd.f32 %v15947_v45, %v10509_v13  ;;  %v10634_v18 = vld [vmem:[%s12428_s18 + $0xc0] sm:$0xff] }
 0x50b   : > { %v11611_v41 = vpack.c.bf16 %v10807_v37, %v10806_v3  ;;  %v10745_v49 = vadd.f32 %v10681_v28, %v10585_v32  ;;  %v10808_v36 = vmax.f32 %v10744_v56, 0.0  ;;  %v10690_v32 = vunpack.c.l.bf16 %v10634_v18 }
 0x50c   : > { %v10399_v24 = vpop.f32.mrf.mxu1 }
 0x50d   : > { %11044 = vst [vmem:[%s15962_s27 + $0x90] sm:$0xff] %v11611_v41  ;;  %v10809_v61 = vmax.f32 %v10745_v49, 0.0  ;;  %v10510_v8 = vmul.f32 %v15939_v11, %v10399_v24  ;;  %v10635_v41 = vld [vmem:[%s12428_s18 + $0xc8] sm:$0xff] }
 0x50e   : > { %v10401_v35 = vpop.f32.mrf.mxu1 }
 0x50f   : > { %v11612_v5 = vpack.c.bf16 %v10809_v61, %v10808_v36  ;;  %v10586_v39 = vadd.f32 %v15942_v48, %v10510_v8  ;;  %v10511_v7 = vmul.f32 %v15944_v16, %v10401_v35  ;;  %v10691_v8 = vunpack.c.h.bf16 %v10634_v18 }
 0x510   : > { %v10403_v23 = vpop.f32.mrf.mxu1 }
 0x511   : > { %11045 = vst [vmem:[%s15962_s27 + $0x98] sm:$0xff] %v11612_v5  ;;  %v10746_v19 = vadd.f32 %v10682_v27, %v10586_v39  ;;  %v10587_v40 = vadd.f32 %v15947_v45, %v10511_v7  ;;  %v10512_v0 = vmul.f32 %v15939_v11, %v10403_v23  ;;  %v10692_v39 = vunpack.c.l.bf16 %v10635_v41 }
 0x512   : > { %v10405_v31 = vpop.f32.mrf.mxu1 }
 0x513   : > { %v10747_v51 = vadd.f32 %v10683_v54, %v10587_v40  ;;  %v10588_v14 = vadd.f32 %v15942_v48, %v10512_v0  ;;  %v10513_v17 = vmul.f32 %v15944_v16, %v10405_v31  ;;  %v10810_v4 = vmax.f32 %v10746_v19, 0.0  ;;  %v10636_v19 = vld [vmem:[%s12428_s18 + $0xd0] sm:$0xff] }
 0x514   : > { %v10693_v31 = vunpack.c.h.bf16 %v10635_v41 }
 0x515   : > { %v10811_v1 = vmax.f32 %v10747_v51, 0.0  ;;  %v10748_v43 = vadd.f32 %v10684_v30, %v10588_v14  ;;  %v10589_v15 = vadd.f32 %v15947_v45, %v10513_v17 }
 0x516   : > { %v10409_v34 = vpop.f32.mrf.mxu1 }
 0x517   : > { %v11613_v42 = vpack.c.bf16 %v10811_v1, %v10810_v4  ;;  %v10749_v10 = vadd.f32 %v10685_v21, %v10589_v15  ;;  %v10514_v50 = vmul.f32 %v15939_v11, %v10409_v34  ;;  %v10812_v9 = vmax.f32 %v10748_v43, 0.0 }
 0x518   : > { %v10411_v47 = vpop.f32.mrf.mxu1  ;;  %v10694_v4 = vunpack.c.l.bf16 %v10636_v19 }
 0x519   : > { %11046 = vst [vmem:[%s15962_s27 + $0xa0] sm:$0xff] %v11613_v42  ;;  %v10813_v46 = vmax.f32 %v10749_v10, 0.0  ;;  %v10590_v52 = vadd.f32 %v15942_v48, %v10514_v50  ;;  %v10515_v63 = vmul.f32 %v15944_v16, %v10411_v47  ;;  %v10695_v50 = vunpack.c.h.bf16 %v10636_v19  ;;  %v10640_v19 = vld [vmem:[%s12428_s18 + $0xf0] sm:$0xff] }
 0x51a   : > { %v10413_v33 = vpop.f32.mrf.mxu1 }
 0x51b   : > { %v11614_v22 = vpack.c.bf16 %v10813_v46, %v10812_v9  ;;  %v10750_v53 = vadd.f32 %v10686_v20, %v10590_v52  ;;  %v10591_v12 = vadd.f32 %v15947_v45, %v10515_v63  ;;  %v10516_v59 = vmul.f32 %v15939_v11, %v10413_v33  ;;  %v10637_v20 = vld [vmem:[%s12428_s18 + $0xd8] sm:$0xff] }
 0x51c   : > { %v10415_v44 = vpop.f32.mrf.mxu1  ;;  %v10696_v33 = vunpack.c.l.bf16 %v10637_v20 }
 0x51d   : > { %11047 = vst [vmem:[%s15962_s27 + $0xa8] sm:$0xff] %v11614_v22  ;;  %v10751_v38 = vadd.f32 %v10687_v25, %v10591_v12  ;;  %v10592_v57 = vadd.f32 %v15942_v48, %v10516_v59  ;;  %v10517_v58 = vmul.f32 %v15944_v16, %v10415_v44  ;;  %v10814_v60 = vmax.f32 %v10750_v53, 0.0  ;;  %v10638_v22 = vld [vmem:[%s12428_s18 + $0xe0] sm:$0xff] }
 0x51e   : > { %v10419_v13 = vpop.f32.mrf.mxu1  ;;  %v10699_v41 = vunpack.c.h.bf16 %v10638_v22 }
 0x51f   : > { %v10815_v28 = vmax.f32 %v10751_v38, 0.0  ;;  %v10752_v3 = vadd.f32 %v10688_v2, %v10592_v57  ;;  %v10593_v37 = vadd.f32 %v15947_v45, %v10517_v58  ;;  %v10518_v56 = vmul.f32 %v15939_v11, %v10419_v13 }
 0x520   : > { %v10421_v26 = vpop.f32.mrf.mxu1  ;;  %v10697_v38 = vunpack.c.h.bf16 %v10637_v20 }
 0x521   : > { %v11615_v49 = vpack.c.bf16 %v10815_v28, %v10814_v60  ;;  %v10753_v24 = vadd.f32 %v10689_v6, %v10593_v37  ;;  %v10594_v36 = vadd.f32 %v15942_v48, %v10518_v56  ;;  %v10519_v61 = vmul.f32 %v15944_v16, %v10421_v26  ;;  %v10639_v37 = vld [vmem:[%s12428_s18 + $0xe8] sm:$0xff] }
 0x522   : > { %v10423_v27 = vpop.f32.mrf.mxu1  ;;  %v10816_v35 = vmax.f32 %v10752_v3, 0.0  ;;  %v10698_v60 = vunpack.c.l.bf16 %v10638_v22 }
 0x523   : > { %11048 = vst [vmem:[%s15962_s27 + $0xb0] sm:$0xff] %v11615_v49  ;;  %v10817_v62 = vmax.f32 %v10753_v24, 0.0  ;;  %v10520_v5 = vmul.f32 %v15939_v11, %v10423_v27  ;;  %v10754_v7 = vadd.f32 %v10690_v32, %v10594_v36  ;;  %v10595_v54 = vadd.f32 %v15947_v45, %v10519_v61 }
 0x524   : > { %v10425_v23 = vpop.f32.mrf.mxu1  ;;  %v10700_v27 = vunpack.c.l.bf16 %v10639_v37 }
 0x525   : > { %v11616_v40 = vpack.c.bf16 %v10817_v62, %v10816_v35  ;;  %v10596_v0 = vadd.f32 %v15942_v48, %v10520_v5  ;;  %v10521_v30 = vmul.f32 %v15944_v16, %v10425_v23  ;;  %v10755_v51 = vadd.f32 %v10691_v8, %v10595_v54 }
 0x526   : > { %v10429_v14 = vpop.f32.mrf.mxu1  ;;  %v10818_v1 = vmax.f32 %v10754_v7, 0.0  ;;  %v10701_v23 = vunpack.c.h.bf16 %v10639_v37 }
 0x527   : > { %11049 = vst [vmem:[%s15962_s27 + $0xb8] sm:$0xff] %v11616_v40  ;;  %v10756_v17 = vadd.f32 %v10692_v39, %v10596_v0  ;;  %v10597_v21 = vadd.f32 %v15947_v45, %v10521_v30  ;;  %v10522_v55 = vmul.f32 %v15939_v11, %v10429_v14  ;;  %v10819_v43 = vmax.f32 %v10755_v51, 0.0 }
 0x528   : > { %v10431_v15 = vpop.f32.mrf.mxu1 }
 0x529   : > { %v10757_v34 = vadd.f32 %v10693_v31, %v10597_v21  ;;  %v10598_v42 = vadd.f32 %v15942_v48, %v10522_v55  ;;  %v10523_v10 = vmul.f32 %v15944_v16, %v10431_v15  ;;  %v11617_v29 = vpack.c.bf16 %v10819_v43, %v10818_v1 }
 0x52a   : > { %v10820_v47 = vmax.f32 %v10756_v17, 0.0  ;;  %v10433_v25 = vpop.f32.mrf.mxu1  ;;  %v10702_v21 = vunpack.c.l.bf16 %v10640_v19 }
 0x52b   : > { %v10821_v9 = vmax.f32 %v10757_v34, 0.0  ;;  %v10758_v46 = vadd.f32 %v10694_v4, %v10598_v42  ;;  %v10599_v52 = vadd.f32 %v15947_v45, %v10523_v10  ;;  %v10524_v63 = vmul.f32 %v15939_v11, %v10433_v25  ;;  %11050 = vst [vmem:[%s15962_s27 + $0xc0] sm:$0xff] %v11617_v29  ;;  %v10641_v4 = vld [vmem:[%s12428_s18 + $0xf8] sm:$0xff] }
 0x52c   : > { %v10435_v2 = vpop.f32.mrf.mxu1  ;;  %v10703_v42 = vunpack.c.h.bf16 %v10640_v19 }
 0x52d   : > { %v11618_v53 = vpack.c.bf16 %v10821_v9, %v10820_v47  ;;  %v10759_v12 = vadd.f32 %v10695_v50, %v10599_v52  ;;  %v10600_v59 = vadd.f32 %v15942_v48, %v10524_v63  ;;  %v10525_v44 = vmul.f32 %v15944_v16, %v10435_v2 }
 0x52e   : > { %v10439_v57 = vpop.f32.mrf.mxu1  ;;  %v10822_v58 = vmax.f32 %v10758_v46, 0.0  ;;  %v10704_v47 = vunpack.c.l.bf16 %v10641_v4  ;;  %v10705_v2 = vunpack.c.h.bf16 %v10641_v4 }
 0x52f   : > { %11051 = vst [vmem:[%s15962_s27 + $0xc8] sm:$0xff] %v11618_v53  ;;  %v10823_v6 = vmax.f32 %v10759_v12, 0.0  ;;  %v10526_v18 = vmul.f32 %v15939_v11, %v10439_v57  ;;  %v10760_v13 = vadd.f32 %v10696_v33, %v10600_v59  ;;  %v10601_v28 = vadd.f32 %v15947_v45, %v10525_v44 }
 0x530   : > { %v10441_v3 = vpop.f32.mrf.mxu1 }
 0x531   : > { %v11619_v56 = vpack.c.bf16 %v10823_v6, %v10822_v58  ;;  %v10602_v32 = vadd.f32 %v15942_v48, %v10526_v18  ;;  %v10527_v26 = vmul.f32 %v15944_v16, %v10441_v3  ;;  %v10761_v49 = vadd.f32 %v10697_v38, %v10601_v28 }
 0x532   : > { %v10443_v24 = vpop.f32.mrf.mxu1  ;;  %v10824_v35 = vmax.f32 %v10760_v13, 0.0 }
 0x533   : > { %11052 = vst [vmem:[%s15962_s27 + $0xd0] sm:$0xff] %v11619_v56  ;;  %v10762_v36 = vadd.f32 %v10698_v60, %v10602_v32  ;;  %v10603_v61 = vadd.f32 %v15947_v45, %v10527_v26  ;;  %v10528_v8 = vmul.f32 %v15939_v11, %v10443_v24  ;;  %v10825_v62 = vmax.f32 %v10761_v49, 0.0 }
 0x534   : > { %v10445_v5 = vpop.f32.mrf.mxu1 }
 0x535   : > { %v10763_v39 = vadd.f32 %v10699_v41, %v10603_v61  ;;  %v10604_v7 = vadd.f32 %v15942_v48, %v10528_v8  ;;  %v10529_v54 = vmul.f32 %v15944_v16, %v10445_v5  ;;  %v11620_v40 = vpack.c.bf16 %v10825_v62, %v10824_v35 }
 0x536   : > { %v10826_v0 = vmax.f32 %v10762_v36, 0.0  ;;  %v10449_v30 = vpop.f32.mrf.mxu1 }
 0x537   : > { %v10827_v31 = vmax.f32 %v10763_v39, 0.0  ;;  %v10764_v51 = vadd.f32 %v10700_v27, %v10604_v7  ;;  %v10605_v14 = vadd.f32 %v15947_v45, %v10529_v54  ;;  %v10530_v17 = vmul.f32 %v15939_v11, %v10449_v30  ;;  %11053 = vst [vmem:[%s15962_s27 + $0xd8] sm:$0xff] %v11620_v40 }
 0x538   : > { %v10451_v55 = vpop.f32.mrf.mxu1 }
 0x539   : > { %v11621_v1 = vpack.c.bf16 %v10827_v31, %v10826_v0  ;;  %v10765_v43 = vadd.f32 %v10701_v23, %v10605_v14  ;;  %v10606_v15 = vadd.f32 %v15942_v48, %v10530_v17  ;;  %v10531_v34 = vmul.f32 %v15944_v16, %v10451_v55 }
 0x53a   : > { %v10453_v10 = vpop.f32.mrf.mxu1  ;;  %v10828_v50 = vmax.f32 %v10764_v51, 0.0 }
 0x53b   : > { %11054 = vst [vmem:[%s15962_s27 + $0xe0] sm:$0xff] %v11621_v1  ;;  %v10829_v20 = vmax.f32 %v10765_v43, 0.0  ;;  %v10532_v29 = vmul.f32 %v15939_v11, %v10453_v10  ;;  %v10766_v25 = vadd.f32 %v10702_v21, %v10606_v15  ;;  %v10607_v9 = vadd.f32 %v15947_v45, %v10531_v34 }
 0x53c   : > { %v10455_v46 = vpop.f32.mrf.mxu1 }
 0x53d   : > { %v11622_v52 = vpack.c.bf16 %v10829_v20, %v10828_v50  ;;  %v10608_v63 = vadd.f32 %v15942_v48, %v10532_v29  ;;  %v10533_v33 = vmul.f32 %v15944_v16, %v10455_v46  ;;  %v10767_v22 = vadd.f32 %v10703_v42, %v10607_v9 }
 0x53e   : > { %v10830_v59 = vmax.f32 %v10766_v25, 0.0 }
 0x53f   : > { %11055 = vst [vmem:[%s15962_s27 + $0xe8] sm:$0xff] %v11622_v52  ;;  %v10768_v53 = vadd.f32 %v10704_v47, %v10608_v63  ;;  %v10609_v12 = vadd.f32 %v15947_v45, %v10533_v33  ;;  %v10831_v11 = vmax.f32 %v10767_v22, 0.0 }
 0x541   : > { %v10769_v44 = vadd.f32 %v10705_v2, %v10609_v12  ;;  %v11623_v38 = vpack.c.bf16 %v10831_v11, %v10830_v59  ;;  %v10832_v57 = vmax.f32 %v10768_v53, 0.0 }
 0x543   : > { %v10833_v58 = vmax.f32 %v10769_v44, 0.0  ;;  %11056 = vst [vmem:[%s15962_s27 + $0xf0] sm:$0xff] %v11623_v38 }
 0x545   : > { %v11624_v6 = vpack.c.bf16 %v10833_v58, %v10832_v57 }
 0x547   : > { %11057 = vst [vmem:[%s15962_s27 + $0xf8] sm:$0xff] %v11624_v6 }
 0x548 PF: > { %s20_s13 = sadd.s32 1, %s12324_s13  }
 0x549   : > { %p17_p4 = scmp.ge.s32.totalorder %s20_s13, 4  }
 0x54b   :  { %19 = sbr.rel (!%p17_p4) target bundleno = 1 (0x1), region = 95 }

</bundles_post_ra>
